<compile_context>
chip_gen: v7x
topology: tpu7x:2x2x1
jax: 0.10.0
libtpu: 0.0.40
codegen_flags: <defaults>
</compile_context>

<pallas_src>
import numpy as np
import jax
import jax.numpy as jnp
from jax import lax
from jax.experimental import pallas as pl
from jax.experimental.pallas import tpu as pltpu

_MS_SSIM_WEIGHTS = (0.0448, 0.2856, 0.3001, 0.2363, 0.1333)


# --------------------------------------------------------------------------------------
# constant-matrix builders (numpy, baked in as jit constants)
# --------------------------------------------------------------------------------------
def _round_up(x, m):
    return -(-x // m) * m


def _gauss_win(win_size, sigma):
    # matches pytorch_msssim._fspecial_gauss_1d (win_size=4 is even in the reference
    # module; the window is centered asymmetrically over coords -2..1, kept as-is).
    coords = np.arange(win_size, dtype=np.float64) - (win_size // 2)
    g = np.exp(-(coords ** 2) / (2.0 * sigma ** 2))
    return g / g.sum()


def _gauss_matrix(s, g):
    """(sf, s) 'valid' cross-correlation matrix along one axis.
    Identity when the dim is smaller than the window (pytorch_msssim skips that dim)."""
    win = len(g)
    if s < win:
        return np.eye(s, dtype=np.float32)
    sf = s - win + 1
    m = np.zeros((sf, s), dtype=np.float32)
    for i in range(sf):
        m[i, i:i + win] = g
    return m


def _pool_matrix(s):
    """P (out, s) with 0.5 taps so P @ x @ P_w^T == F.avg_pool2d(kernel=2, stride=2,
    padding=s%2, count_include_pad=True)."""
    pad = s % 2
    out = (s + 2 * pad) // 2
    m = np.zeros((out, s), dtype=np.float32)
    for i in range(out):
        for j in (2 * i - pad, 2 * i + 1 - pad):
            if 0 <= j < s:
                m[i, j] = 0.5
    return m


def _pad_rows(m, rows):
    """Zero-pad a (r, c) matrix to (rows, c) so downstream reshapes are 8-row aligned."""
    r, c = m.shape
    out = np.zeros((rows, c), dtype=np.float32)
    out[:r] = m
    return out


def _build_level_consts(H, W, win_w, levels):
    """Per-level shared (not per-plane!) filter/pool constants + static metadata."""
    consts, meta = [], []
    h, w = H, W
    for l in range(levels):
        gv = _gauss_matrix(h, win_w)            # (hf, h)  vertical Gaussian
        gh = _gauss_matrix(w, win_w)            # (wf, w)  horizontal Gaussian
        hf, wf = gv.shape[0], gh.shape[0]
        hf8 = _round_up(hf, 8)
        level_c = [_pad_rows(gv, hf8),          # (hf8, h) zero-padded rows
                   np.ascontiguousarray(gh.T)]  # (w, wf)
        has_pool = l < levels - 1
        if has_pool:
            pv = _pool_matrix(h)                # (hp, h)
            pw = _pool_matrix(w)                # (wp, w)
            hp, wp = pv.shape[0], pw.shape[0]
            hp8 = _round_up(hp, 8)
            level_c += [_pad_rows(pv, hp8), np.ascontiguousarray(pw.T)]
        else:
            hp = wp = hp8 = 0
        consts.append(level_c)
        meta.append(dict(h=h, w=w, hf=hf, wf=wf, hf8=hf8, hp=hp, wp=wp, hp8=hp8,
                         inv_area=1.0 / float(hf * wf), has_pool=has_pool))
        if has_pool:
            h, w = hp, wp
    return consts, meta


# --------------------------------------------------------------------------------------
# fused multi-scale kernel
# --------------------------------------------------------------------------------------
def _make_fused_kernel(Np, levels, meta, C1, C2, stats_w):
    mm_dtype = jnp.bfloat16
    # (Np, m, k) x (Np, k, n) -> (Np, m, n): canonical batched matmul on the MXU.
    batched_dn = (((2,), (1,)), ((0,), (0,)))

    def _recip(d):
        # EUP approximate reciprocal (separate VLIW slot) + one Newton step for accuracy.
        r = pl.reciprocal(d, approx=True)
        return r * (2.0 - d * r)

    def kernel(*refs):
        x_ref, y_ref = refs[0], refs[1]
        stats_ref = refs[-1]
        cref = refs[2:-1]

        # (I + 1) / 2 rescale fused at load; planes kept as a leading batch axis.
        x = (x_ref[...] + 1.0) * 0.5            # (Np, H, W) f32
        y = (y_ref[...] + 1.0) * 0.5

        cols = []
        ci = 0
        for l in range(levels):
            m = meta[l]
            h, w, hf, wf, hf8 = m['h'], m['w'], m['hf'], m['wf'], m['hf8']
            gv = cref[ci][...].astype(mm_dtype)        # (hf8, h) zero-padded rows
            ghT = cref[ci + 1][...].astype(mm_dtype)   # (w, wf)  shared
            ci += 2

            # lane-concat [x | y] (full 128-lane vregs for W=64) and build the fused
            # 5-map RHS: [x, y, x*x, y*y, x*y] along the lane axis.
            xy_cat = jnp.concatenate([x, y], axis=-1)             # (Np, h, 2w) f32
            sq = xy_cat * xy_cat                                   # [x*x | y*y]
            big = jnp.concatenate([xy_cat, sq, x * y], axis=-1)    # (Np, h, 5w)
            big = big.astype(mm_dtype)

            # ONE batched vertical Gaussian matmul over all five maps (wide N = 5w).
            gvb = jnp.broadcast_to(gv, (Np, hf8, h))
            V = lax.dot_general(gvb, big, batched_dn,
                                preferred_element_type=jnp.float32)  # (Np, hf8, 5w) f32

            # shared horizontal Gaussian: plain 2D matmuls on the sliced chunks.
            def hfilt(chunk, _ghT=ghT, _w=w, _wf=wf, _hf8=hf8):
                c2 = chunk.reshape(Np * _hf8, _w).astype(mm_dtype)   # layout-preserving
                r = jnp.dot(c2, _ghT, preferred_element_type=jnp.float32)
                return r.reshape(Np, _hf8, _wf)

            mu1 = hfilt(V[:, :, 0 * w:1 * w])
            mu2 = hfilt(V[:, :, 1 * w:2 * w])
            exx = hfilt(V[:, :, 2 * w:3 * w])
            eyy = hfilt(V[:, :, 3 * w:4 * w])
            exy = hfilt(V[:, :, 4 * w:5 * w])

            # SSIM / CS maps (all f32; the cancellation-prone subtractions stay f32).
            mu1mu2 = mu1 * mu2
            sxx = exx - mu1 * mu1
            syy = eyy - mu2 * mu2
            sxy = exy - mu1mu2
            cs_map = (2.0 * sxy + C2) * _recip(sxx + syy + C2)
            ssim_map = (2.0 * mu1mu2 + C1) * _recip(mu1 * mu1 + mu2 * mu2 + C1) * cs_map

            # mask out the zero-padded filter rows (they evaluate to ~1) before reducing
            if hf8 != hf:
                rows = lax.broadcasted_iota(jnp.int32, (Np, hf8, wf), 1)
                keep = rows < hf
                ssim_map = jnp.where(keep, ssim_map, 0.0)
                cs_map = jnp.where(keep, cs_map, 0.0)

            # per-plane spatial means: lane reduce then sublane reduce (no tiny matmuls)
            inv_area = m['inv_area']
            ssim_col = jnp.sum(jnp.sum(ssim_map, axis=2, keepdims=True), axis=1) * inv_area
            cs_col = jnp.sum(jnp.sum(cs_map, axis=2, keepdims=True), axis=1) * inv_area
            cols += [ssim_col, cs_col]                             # each (Np, 1)

            if m['has_pool']:
                hp, wp, hp8 = m['hp'], m['wp'], m['hp8']
                pv = cref[ci][...].astype(mm_dtype)        # (hp8, h) zero-padded rows
                pwT = cref[ci + 1][...].astype(mm_dtype)   # (w, wp)  shared
                ci += 2

                # batched vertical 2x2-pool on [x | y], shared horizontal pool in 2D.
                pvb = jnp.broadcast_to(pv, (Np, hp8, h))
                Vp = lax.dot_general(pvb, xy_cat.astype(mm_dtype), batched_dn,
                                     preferred_element_type=jnp.float32)  # (Np, hp8, 2w)

                def hpool(chunk, _pwT=pwT, _w=w, _wp=wp, _hp=hp, _hp8=hp8):
                    c2 = chunk.reshape(Np * _hp8, _w).astype(mm_dtype)
                    r = jnp.dot(c2, _pwT, preferred_element_type=jnp.float32)
                    return r.reshape(Np, _hp8, _wp)[:, :_hp, :]    # drop padded rows

                x = hpool(Vp[:, :, :w])
                y = hpool(Vp[:, :, w:])

        # single lane-contiguous stats write per grid step:
        # column 2*l = ssim level l, column 2*l+1 = cs level l, rest zero padding.
        if stats_w > 2 * levels:
            cols.append(jnp.zeros((Np, stats_w - 2 * levels), jnp.float32))
        stats_ref[0] = jnp.concatenate(cols, axis=1)

    return kernel


# --------------------------------------------------------------------------------------
# public API
# --------------------------------------------------------------------------------------
def ms_ssim_loss(I1, I2, win_size=4, win_sigma=1.5, data_range=1.0,
                 K=(0.01, 0.03), weights=_MS_SSIM_WEIGHTS, planes_per_step=None):
    """Returns 1 - MS_SSIM(I1, I2) per batch element, shape (B,). Inputs are NCHW in [-1, 1]."""
    B, C, H, W = I1.shape
    N = B * C
    levels = len(weights)
    if min(H, W) <= (win_size - 1) * (2 ** (levels - 1)):
        raise ValueError("image too small for %d-level MS-SSIM with win_size=%d"
                         % (levels, win_size))
    C1 = float((K[0] * data_range) ** 2)
    C2 = float((K[1] * data_range) ** 2)
    win_w = _gauss_win(win_size, win_sigma)

    # planes per grid step: large enough to amortize per-step pipeline overhead, small
    # enough to keep the working set well inside VMEM (v7x has only 64 MiB), and chosen
    # so the grid has >= 2 steps so both v7x TensorCores participate.
    if planes_per_step is None:
        cap_rows = max(1, 2048 // max(H, 1))                  # Np*H <= ~2048 rows
        cap_vmem = max(1, (24 << 20) // max(64 * H * W, 1))   # ~16x f32 plane working set
        Np = max(1, min(cap_rows, cap_vmem, N))
    else:
        Np = max(1, int(planes_per_step))
        Np = min(Np, N)
    Gsteps = -(-N // Np)
    if Gsteps < 2 and N >= 2:                                  # let both v7x cores work
        Gsteps = 2
        Np = -(-N // Gsteps)
        Gsteps = -(-N // Np)
    Npad = Gsteps * Np
    stats_w = max(8, _round_up(2 * levels, 8))                 # pad stats lanes (10 -> 16)

    X = jnp.asarray(I1, jnp.float32).reshape(N, H, W)
    Y = jnp.asarray(I2, jnp.float32).reshape(N, H, W)
    if Npad != N:
        padw = ((0, Npad - N), (0, 0), (0, 0))
        X = jnp.pad(X, padw)
        Y = jnp.pad(Y, padw)

    consts_np, meta = _build_level_consts(H, W, win_w, levels)
    const_args, const_specs = [], []
    for lvl_c in consts_np:
        for c in lvl_c:
            const_args.append(jnp.asarray(c))                  # tiny shared f32 filters
            const_specs.append(pl.BlockSpec(c.shape, lambda n: (0, 0)))

    kernel = _make_fused_kernel(Np, levels, meta, C1, C2, stats_w)

    stats = pl.pallas_call(
        kernel,
        grid=(Gsteps,),
        in_specs=[pl.BlockSpec((Np, H, W), lambda n: (n, 0, 0)),
                  pl.BlockSpec((Np, H, W), lambda n: (n, 0, 0))] + const_specs,
        out_specs=pl.BlockSpec((1, Np, stats_w), lambda n: (n, 0, 0)),
        out_shape=jax.ShapeDtypeStruct((Gsteps, Np, stats_w), jnp.float32),
        compiler_params=pltpu.CompilerParams(
            dimension_semantics=("parallel",)),
    )(X, Y, *const_args)

    # decode per-plane, per-level stats and combine (plain JAX on ten scalars per plane)
    stats = stats.reshape(Npad, stats_w)[:N].reshape(B, C, stats_w)
    mcs = [jnp.maximum(stats[..., 2 * l + 1], 0.0) for l in range(levels - 1)]  # relu(cs)
    ssim_last = jnp.maximum(stats[..., 2 * (levels - 1)], 0.0)                  # relu(ssim)
    vals = jnp.stack(mcs + [ssim_last], axis=0)                                  # (L, B, C)
    wts = jnp.asarray(weights, jnp.float32).reshape(-1, 1, 1)
    ms_val = jnp.prod(vals ** wts, axis=0)                                       # (B, C)
    return 1.0 - jnp.mean(ms_val, axis=1)                                        # (B,)


if __name__ == "__main__":
    # MS-SSIM needs min(H, W) > (win_size - 1) * 2**4 = 48, so 64 is the smallest nice size.
    B, C, H, W = 2, 4, 64, 64
    key = jax.random.PRNGKey(0)
    k1, k2 = jax.random.split(key)
    I1 = jax.random.uniform(k1, (B, C, H, W), jnp.float32, minval=-1.0, maxval=1.0)
    I2 = jax.random.uniform(k2, (B, C, H, W), jnp.float32, minval=-1.0, maxval=1.0)

    fn = jax.jit(ms_ssim_loss)
    loss = fn(I1, I2)
    jax.block_until_ready(loss)
    assert loss.shape == (B,) and loss.dtype == jnp.float32
    assert bool(jnp.all(jnp.isfinite(loss)))

    # sanity: identical images -> MS-SSIM == 1 -> loss == 0
    loss_same = fn(I1, I1)
    jax.block_until_ready(loss_same)
    assert float(jnp.max(jnp.abs(loss_same))) < 2e-3

    print("KERNEL_OK")
</pallas_src>

<mosaic_0001>
module attributes {stable_mosaic.version = 11 : i64} {
  func.func @kernel(%arg0: i32, %arg1: memref<4x64x64xf32, #tpu.memory_space<vmem>>, %arg2: memref<4x64x64xf32, #tpu.memory_space<vmem>>, %arg3: memref<64x64xf32, #tpu.memory_space<vmem>>, %arg4: memref<64x61xf32, #tpu.memory_space<vmem>>, %arg5: memref<32x64xf32, #tpu.memory_space<vmem>>, %arg6: memref<64x32xf32, #tpu.memory_space<vmem>>, %arg7: memref<32x32xf32, #tpu.memory_space<vmem>>, %arg8: memref<32x29xf32, #tpu.memory_space<vmem>>, %arg9: memref<16x32xf32, #tpu.memory_space<vmem>>, %arg10: memref<32x16xf32, #tpu.memory_space<vmem>>, %arg11: memref<16x16xf32, #tpu.memory_space<vmem>>, %arg12: memref<16x13xf32, #tpu.memory_space<vmem>>, %arg13: memref<8x16xf32, #tpu.memory_space<vmem>>, %arg14: memref<16x8xf32, #tpu.memory_space<vmem>>, %arg15: memref<8x8xf32, #tpu.memory_space<vmem>>, %arg16: memref<8x5xf32, #tpu.memory_space<vmem>>, %arg17: memref<8x8xf32, #tpu.memory_space<vmem>>, %arg18: memref<8x4xf32, #tpu.memory_space<vmem>>, %arg19: memref<8x4xf32, #tpu.memory_space<vmem>>, %arg20: memref<4x1xf32, #tpu.memory_space<vmem>>, %arg21: memref<1x4x16xf32, #tpu.memory_space<vmem>>) attributes {dimension_semantics = [#tpu.dimension_semantics<parallel>], iteration_bounds = array<i64: 2>, scalar_prefetch = 0 : i64, scratch_operands = 0 : i64, tpu.core_type = #tpu.core_type<tc>, window_params = [{transform_indices = @transform_0, window_bounds = array<i64: 4, 64, 64>}, {transform_indices = @transform_1, window_bounds = array<i64: 4, 64, 64>}, {pipeline_mode = #tpu.pipeline_mode<synchronous>, transform_indices = @transform_2, window_bounds = array<i64: 64, 64>}, {pipeline_mode = #tpu.pipeline_mode<synchronous>, transform_indices = @transform_3, window_bounds = array<i64: 64, 61>}, {pipeline_mode = #tpu.pipeline_mode<synchronous>, transform_indices = @transform_4, window_bounds = array<i64: 32, 64>}, {pipeline_mode = #tpu.pipeline_mode<synchronous>, transform_indices = @transform_5, window_bounds = array<i64: 64, 32>}, {pipeline_mode = #tpu.pipeline_mode<synchronous>, transform_indices = @transform_6, window_bounds = array<i64: 32, 32>}, {pipeline_mode = #tpu.pipeline_mode<synchronous>, transform_indices = @transform_7, window_bounds = array<i64: 32, 29>}, {pipeline_mode = #tpu.pipeline_mode<synchronous>, transform_indices = @transform_8, window_bounds = array<i64: 16, 32>}, {pipeline_mode = #tpu.pipeline_mode<synchronous>, transform_indices = @transform_9, window_bounds = array<i64: 32, 16>}, {pipeline_mode = #tpu.pipeline_mode<synchronous>, transform_indices = @transform_10, window_bounds = array<i64: 16, 16>}, {pipeline_mode = #tpu.pipeline_mode<synchronous>, transform_indices = @transform_11, window_bounds = array<i64: 16, 13>}, {pipeline_mode = #tpu.pipeline_mode<synchronous>, transform_indices = @transform_12, window_bounds = array<i64: 8, 16>}, {pipeline_mode = #tpu.pipeline_mode<synchronous>, transform_indices = @transform_13, window_bounds = array<i64: 16, 8>}, {pipeline_mode = #tpu.pipeline_mode<synchronous>, transform_indices = @transform_14, window_bounds = array<i64: 8, 8>}, {pipeline_mode = #tpu.pipeline_mode<synchronous>, transform_indices = @transform_15, window_bounds = array<i64: 8, 5>}, {pipeline_mode = #tpu.pipeline_mode<synchronous>, transform_indices = @transform_16, window_bounds = array<i64: 8, 8>}, {pipeline_mode = #tpu.pipeline_mode<synchronous>, transform_indices = @transform_17, window_bounds = array<i64: 8, 4>}, {pipeline_mode = #tpu.pipeline_mode<synchronous>, transform_indices = @transform_18, window_bounds = array<i64: 8, 4>}, {pipeline_mode = #tpu.pipeline_mode<synchronous>, transform_indices = @transform_19, window_bounds = array<i64: 4, 1>}, {transform_indices = @transform_20, window_bounds = array<i64: 1, 4, 16>}]} {
    %c0 = arith.constant 0 : index
    %c0_0 = arith.constant 0 : index
    %c0_1 = arith.constant 0 : index
    %0 = vector.load %arg1[%c0, %c0_0, %c0_1] : memref<4x64x64xf32, #tpu.memory_space<vmem>>, vector<4x64x64xf32>
    %cst = arith.constant 1.000000e+00 : f32
    %1 = vector.broadcast %cst : f32 to vector<4x64x64xf32>
    %2 = arith.addf %0, %1 : vector<4x64x64xf32>
    %cst_2 = arith.constant 5.000000e-01 : f32
    %3 = vector.broadcast %cst_2 : f32 to vector<4x64x64xf32>
    %4 = arith.mulf %2, %3 : vector<4x64x64xf32>
    %c0_3 = arith.constant 0 : index
    %c0_4 = arith.constant 0 : index
    %c0_5 = arith.constant 0 : index
    %5 = vector.load %arg2[%c0_3, %c0_4, %c0_5] : memref<4x64x64xf32, #tpu.memory_space<vmem>>, vector<4x64x64xf32>
    %cst_6 = arith.constant 1.000000e+00 : f32
    %6 = vector.broadcast %cst_6 : f32 to vector<4x64x64xf32>
    %7 = arith.addf %5, %6 : vector<4x64x64xf32>
    %cst_7 = arith.constant 5.000000e-01 : f32
    %8 = vector.broadcast %cst_7 : f32 to vector<4x64x64xf32>
    %9 = arith.mulf %7, %8 : vector<4x64x64xf32>
    %c0_8 = arith.constant 0 : index
    %c0_9 = arith.constant 0 : index
    %10 = vector.load %arg3[%c0_8, %c0_9] : memref<64x64xf32, #tpu.memory_space<vmem>>, vector<64x64xf32>
    %11 = arith.truncf %10 : vector<64x64xf32> to vector<64x64xbf16>
    %c0_10 = arith.constant 0 : index
    %c0_11 = arith.constant 0 : index
    %12 = vector.load %arg4[%c0_10, %c0_11] : memref<64x61xf32, #tpu.memory_space<vmem>>, vector<64x61xf32>
    %13 = arith.truncf %12 : vector<64x61xf32> to vector<64x61xbf16>
    %14 = tpu.concatenate %4, %9 in 2 : vector<4x64x64xf32>, vector<4x64x64xf32> -> vector<4x64x128xf32>
    %15 = arith.mulf %14, %14 : vector<4x64x128xf32>
    %16 = arith.mulf %4, %9 : vector<4x64x64xf32>
    %17 = tpu.concatenate %14, %15, %16 in 2 : vector<4x64x128xf32>, vector<4x64x128xf32>, vector<4x64x64xf32> -> vector<4x64x320xf32>
    %18 = arith.truncf %17 : vector<4x64x320xf32> to vector<4x64x320xbf16>
    %19 = vector.shape_cast %11 : vector<64x64xbf16> to vector<1x64x64xbf16>
    %20 = vector.broadcast %19 : vector<1x64x64xbf16> to vector<4x64x64xbf16>
    %cst_12 = arith.constant dense<0.000000e+00> : vector<4x64x320xf32>
    %21 = tpu.matmul %20, %18, %cst_12 {dimension_numbers = #tpu.dot_dimension_numbers<[2], [1], [1], [2], [0, 0, 0, 1, 1, 2], [0], [0]>} : vector<4x64x64xbf16>, vector<4x64x320xbf16>, vector<4x64x320xf32> -> vector<4x64x320xf32>
    %22 = vector.extract_strided_slice %21 {offsets = [0, 0, 0], sizes = [4, 64, 64], strides = [1, 1, 1]} : vector<4x64x320xf32> to vector<4x64x64xf32>
    %23 = vector.shape_cast %22 : vector<4x64x64xf32> to vector<256x64xf32>
    %24 = arith.truncf %23 : vector<256x64xf32> to vector<256x64xbf16>
    %cst_13 = arith.constant dense<0.000000e+00> : vector<256x61xf32>
    %25 = tpu.matmul %24, %13, %cst_13 {dimension_numbers = #tpu.dot_dimension_numbers<[1], [0], [0], [1], [0, 0, 1, 1], [], []>} : vector<256x64xbf16>, vector<64x61xbf16>, vector<256x61xf32> -> vector<256x61xf32>
    %26 = vector.shape_cast %25 : vector<256x61xf32> to vector<4x64x61xf32>
    %27 = vector.extract_strided_slice %21 {offsets = [0, 0, 64], sizes = [4, 64, 64], strides = [1, 1, 1]} : vector<4x64x320xf32> to vector<4x64x64xf32>
    %28 = vector.shape_cast %27 : vector<4x64x64xf32> to vector<256x64xf32>
    %29 = arith.truncf %28 : vector<256x64xf32> to vector<256x64xbf16>
    %cst_14 = arith.constant dense<0.000000e+00> : vector<256x61xf32>
    %30 = tpu.matmul %29, %13, %cst_14 {dimension_numbers = #tpu.dot_dimension_numbers<[1], [0], [0], [1], [0, 0, 1, 1], [], []>} : vector<256x64xbf16>, vector<64x61xbf16>, vector<256x61xf32> -> vector<256x61xf32>
    %31 = vector.shape_cast %30 : vector<256x61xf32> to vector<4x64x61xf32>
    %32 = vector.extract_strided_slice %21 {offsets = [0, 0, 128], sizes = [4, 64, 64], strides = [1, 1, 1]} : vector<4x64x320xf32> to vector<4x64x64xf32>
    %33 = vector.shape_cast %32 : vector<4x64x64xf32> to vector<256x64xf32>
    %34 = arith.truncf %33 : vector<256x64xf32> to vector<256x64xbf16>
    %cst_15 = arith.constant dense<0.000000e+00> : vector<256x61xf32>
    %35 = tpu.matmul %34, %13, %cst_15 {dimension_numbers = #tpu.dot_dimension_numbers<[1], [0], [0], [1], [0, 0, 1, 1], [], []>} : vector<256x64xbf16>, vector<64x61xbf16>, vector<256x61xf32> -> vector<256x61xf32>
    %36 = vector.shape_cast %35 : vector<256x61xf32> to vector<4x64x61xf32>
    %37 = vector.extract_strided_slice %21 {offsets = [0, 0, 192], sizes = [4, 64, 64], strides = [1, 1, 1]} : vector<4x64x320xf32> to vector<4x64x64xf32>
    %38 = vector.shape_cast %37 : vector<4x64x64xf32> to vector<256x64xf32>
    %39 = arith.truncf %38 : vector<256x64xf32> to vector<256x64xbf16>
    %cst_16 = arith.constant dense<0.000000e+00> : vector<256x61xf32>
    %40 = tpu.matmul %39, %13, %cst_16 {dimension_numbers = #tpu.dot_dimension_numbers<[1], [0], [0], [1], [0, 0, 1, 1], [], []>} : vector<256x64xbf16>, vector<64x61xbf16>, vector<256x61xf32> -> vector<256x61xf32>
    %41 = vector.shape_cast %40 : vector<256x61xf32> to vector<4x64x61xf32>
    %42 = vector.extract_strided_slice %21 {offsets = [0, 0, 256], sizes = [4, 64, 64], strides = [1, 1, 1]} : vector<4x64x320xf32> to vector<4x64x64xf32>
    %43 = vector.shape_cast %42 : vector<4x64x64xf32> to vector<256x64xf32>
    %44 = arith.truncf %43 : vector<256x64xf32> to vector<256x64xbf16>
    %cst_17 = arith.constant dense<0.000000e+00> : vector<256x61xf32>
    %45 = tpu.matmul %44, %13, %cst_17 {dimension_numbers = #tpu.dot_dimension_numbers<[1], [0], [0], [1], [0, 0, 1, 1], [], []>} : vector<256x64xbf16>, vector<64x61xbf16>, vector<256x61xf32> -> vector<256x61xf32>
    %46 = vector.shape_cast %45 : vector<256x61xf32> to vector<4x64x61xf32>
    %47 = arith.mulf %26, %31 : vector<4x64x61xf32>
    %48 = arith.mulf %26, %26 : vector<4x64x61xf32>
    %49 = arith.subf %36, %48 : vector<4x64x61xf32>
    %50 = arith.mulf %31, %31 : vector<4x64x61xf32>
    %51 = arith.subf %41, %50 : vector<4x64x61xf32>
    %52 = arith.subf %46, %47 : vector<4x64x61xf32>
    %cst_18 = arith.constant 2.000000e+00 : f32
    %53 = vector.broadcast %cst_18 : f32 to vector<4x64x61xf32>
    %54 = arith.mulf %53, %52 : vector<4x64x61xf32>
    %cst_19 = arith.constant 8.99999984E-4 : f32
    %55 = vector.broadcast %cst_19 : f32 to vector<4x64x61xf32>
    %56 = arith.addf %54, %55 : vector<4x64x61xf32>
    %57 = arith.addf %49, %51 : vector<4x64x61xf32>
    %cst_20 = arith.constant 8.99999984E-4 : f32
    %58 = vector.broadcast %cst_20 : f32 to vector<4x64x61xf32>
    %59 = arith.addf %57, %58 : vector<4x64x61xf32>
    %60 = tpu.reciprocal %59 {approx = true} : vector<4x64x61xf32> -> vector<4x64x61xf32>
    %61 = arith.mulf %59, %60 : vector<4x64x61xf32>
    %cst_21 = arith.constant 2.000000e+00 : f32
    %62 = vector.broadcast %cst_21 : f32 to vector<4x64x61xf32>
    %63 = arith.subf %62, %61 : vector<4x64x61xf32>
    %64 = arith.mulf %60, %63 : vector<4x64x61xf32>
    %65 = arith.mulf %56, %64 : vector<4x64x61xf32>
    %cst_22 = arith.constant 2.000000e+00 : f32
    %66 = vector.broadcast %cst_22 : f32 to vector<4x64x61xf32>
    %67 = arith.mulf %66, %47 : vector<4x64x61xf32>
    %cst_23 = arith.constant 9.99999974E-5 : f32
    %68 = vector.broadcast %cst_23 : f32 to vector<4x64x61xf32>
    %69 = arith.addf %67, %68 : vector<4x64x61xf32>
    %70 = arith.mulf %26, %26 : vector<4x64x61xf32>
    %71 = arith.mulf %31, %31 : vector<4x64x61xf32>
    %72 = arith.addf %70, %71 : vector<4x64x61xf32>
    %cst_24 = arith.constant 9.99999974E-5 : f32
    %73 = vector.broadcast %cst_24 : f32 to vector<4x64x61xf32>
    %74 = arith.addf %72, %73 : vector<4x64x61xf32>
    %75 = tpu.reciprocal %74 {approx = true} : vector<4x64x61xf32> -> vector<4x64x61xf32>
    %76 = arith.mulf %74, %75 : vector<4x64x61xf32>
    %cst_25 = arith.constant 2.000000e+00 : f32
    %77 = vector.broadcast %cst_25 : f32 to vector<4x64x61xf32>
    %78 = arith.subf %77, %76 : vector<4x64x61xf32>
    %79 = arith.mulf %75, %78 : vector<4x64x61xf32>
    %80 = arith.mulf %69, %79 : vector<4x64x61xf32>
    %81 = arith.mulf %80, %65 : vector<4x64x61xf32>
    %82 = tpu.iota {dimensions = array<i32: 1>} : vector<4x64x61xi32>
    %c61_i32 = arith.constant 61 : i32
    %83 = vector.broadcast %c61_i32 : i32 to vector<4x64x61xi32>
    %84 = arith.cmpi slt, %82, %83 : vector<4x64x61xi32>
    %cst_26 = arith.constant 0.000000e+00 : f32
    %85 = vector.broadcast %cst_26 : f32 to vector<4x64x61xf32>
    %86 = arith.select %84, %81, %85 : vector<4x64x61xi1>, vector<4x64x61xf32>
    %cst_27 = arith.constant 0.000000e+00 : f32
    %87 = vector.broadcast %cst_27 : f32 to vector<4x64x61xf32>
    %88 = arith.select %84, %65, %87 : vector<4x64x61xi1>, vector<4x64x61xf32>
    %cst_28 = arith.constant dense<0.000000e+00> : vector<4x64xf32>
    %89 = vector.multi_reduction <add>, %86, %cst_28 [2] : vector<4x64x61xf32> to vector<4x64xf32>
    %90 = vector.shape_cast %89 : vector<4x64xf32> to vector<4x64x1xf32>
    %cst_29 = arith.constant dense<0.000000e+00> : vector<4x1xf32>
    %91 = vector.multi_reduction <add>, %90, %cst_29 [1] : vector<4x64x1xf32> to vector<4x1xf32>
    %cst_30 = arith.constant 2.68744974E-4 : f32
    %92 = vector.broadcast %cst_30 : f32 to vector<4x1xf32>
    %93 = arith.mulf %91, %92 : vector<4x1xf32>
    %cst_31 = arith.constant dense<0.000000e+00> : vector<4x64xf32>
    %94 = vector.multi_reduction <add>, %88, %cst_31 [2] : vector<4x64x61xf32> to vector<4x64xf32>
    %95 = vector.shape_cast %94 : vector<4x64xf32> to vector<4x64x1xf32>
    %cst_32 = arith.constant dense<0.000000e+00> : vector<4x1xf32>
    %96 = vector.multi_reduction <add>, %95, %cst_32 [1] : vector<4x64x1xf32> to vector<4x1xf32>
    %cst_33 = arith.constant 2.68744974E-4 : f32
    %97 = vector.broadcast %cst_33 : f32 to vector<4x1xf32>
    %98 = arith.mulf %96, %97 : vector<4x1xf32>
    %c0_34 = arith.constant 0 : index
    %c0_35 = arith.constant 0 : index
    %99 = vector.load %arg5[%c0_34, %c0_35] : memref<32x64xf32, #tpu.memory_space<vmem>>, vector<32x64xf32>
    %100 = arith.truncf %99 : vector<32x64xf32> to vector<32x64xbf16>
    %c0_36 = arith.constant 0 : index
    %c0_37 = arith.constant 0 : index
    %101 = vector.load %arg6[%c0_36, %c0_37] : memref<64x32xf32, #tpu.memory_space<vmem>>, vector<64x32xf32>
    %102 = arith.truncf %101 : vector<64x32xf32> to vector<64x32xbf16>
    %103 = vector.shape_cast %100 : vector<32x64xbf16> to vector<1x32x64xbf16>
    %104 = vector.broadcast %103 : vector<1x32x64xbf16> to vector<4x32x64xbf16>
    %105 = arith.truncf %14 : vector<4x64x128xf32> to vector<4x64x128xbf16>
    %cst_38 = arith.constant dense<0.000000e+00> : vector<4x32x128xf32>
    %106 = tpu.matmul %104, %105, %cst_38 {dimension_numbers = #tpu.dot_dimension_numbers<[2], [1], [1], [2], [0, 0, 0, 1, 1, 2], [0], [0]>} : vector<4x32x64xbf16>, vector<4x64x128xbf16>, vector<4x32x128xf32> -> vector<4x32x128xf32>
    %107 = vector.extract_strided_slice %106 {offsets = [0, 0, 0], sizes = [4, 32, 64], strides = [1, 1, 1]} : vector<4x32x128xf32> to vector<4x32x64xf32>
    %108 = vector.shape_cast %107 : vector<4x32x64xf32> to vector<128x64xf32>
    %109 = arith.truncf %108 : vector<128x64xf32> to vector<128x64xbf16>
    %cst_39 = arith.constant dense<0.000000e+00> : vector<128x32xf32>
    %110 = tpu.matmul %109, %102, %cst_39 {dimension_numbers = #tpu.dot_dimension_numbers<[1], [0], [0], [1], [0, 0, 1, 1], [], []>} : vector<128x64xbf16>, vector<64x32xbf16>, vector<128x32xf32> -> vector<128x32xf32>
    %111 = vector.shape_cast %110 : vector<128x32xf32> to vector<4x32x32xf32>
    %112 = vector.extract_strided_slice %106 {offsets = [0, 0, 64], sizes = [4, 32, 64], strides = [1, 1, 1]} : vector<4x32x128xf32> to vector<4x32x64xf32>
    %113 = vector.shape_cast %112 : vector<4x32x64xf32> to vector<128x64xf32>
    %114 = arith.truncf %113 : vector<128x64xf32> to vector<128x64xbf16>
    %cst_40 = arith.constant dense<0.000000e+00> : vector<128x32xf32>
    %115 = tpu.matmul %114, %102, %cst_40 {dimension_numbers = #tpu.dot_dimension_numbers<[1], [0], [0], [1], [0, 0, 1, 1], [], []>} : vector<128x64xbf16>, vector<64x32xbf16>, vector<128x32xf32> -> vector<128x32xf32>
    %116 = vector.shape_cast %115 : vector<128x32xf32> to vector<4x32x32xf32>
    %c0_41 = arith.constant 0 : index
    %c0_42 = arith.constant 0 : index
    %117 = vector.load %arg7[%c0_41, %c0_42] : memref<32x32xf32, #tpu.memory_space<vmem>>, vector<32x32xf32>
    %118 = arith.truncf %117 : vector<32x32xf32> to vector<32x32xbf16>
    %c0_43 = arith.constant 0 : index
    %c0_44 = arith.constant 0 : index
    %119 = vector.load %arg8[%c0_43, %c0_44] : memref<32x29xf32, #tpu.memory_space<vmem>>, vector<32x29xf32>
    %120 = arith.truncf %119 : vector<32x29xf32> to vector<32x29xbf16>
    %121 = tpu.concatenate %111, %116 in 2 : vector<4x32x32xf32>, vector<4x32x32xf32> -> vector<4x32x64xf32>
    %122 = arith.mulf %121, %121 : vector<4x32x64xf32>
    %123 = arith.mulf %111, %116 : vector<4x32x32xf32>
    %124 = tpu.concatenate %121, %122, %123 in 2 : vector<4x32x64xf32>, vector<4x32x64xf32>, vector<4x32x32xf32> -> vector<4x32x160xf32>
    %125 = arith.truncf %124 : vector<4x32x160xf32> to vector<4x32x160xbf16>
    %126 = vector.shape_cast %118 : vector<32x32xbf16> to vector<1x32x32xbf16>
    %127 = vector.broadcast %126 : vector<1x32x32xbf16> to vector<4x32x32xbf16>
    %cst_45 = arith.constant dense<0.000000e+00> : vector<4x32x160xf32>
    %128 = tpu.matmul %127, %125, %cst_45 {dimension_numbers = #tpu.dot_dimension_numbers<[2], [1], [1], [2], [0, 0, 0, 1, 1, 2], [0], [0]>} : vector<4x32x32xbf16>, vector<4x32x160xbf16>, vector<4x32x160xf32> -> vector<4x32x160xf32>
    %129 = vector.extract_strided_slice %128 {offsets = [0, 0, 0], sizes = [4, 32, 32], strides = [1, 1, 1]} : vector<4x32x160xf32> to vector<4x32x32xf32>
    %130 = vector.shape_cast %129 : vector<4x32x32xf32> to vector<128x32xf32>
    %131 = arith.truncf %130 : vector<128x32xf32> to vector<128x32xbf16>
    %cst_46 = arith.constant dense<0.000000e+00> : vector<128x29xf32>
    %132 = tpu.matmul %131, %120, %cst_46 {dimension_numbers = #tpu.dot_dimension_numbers<[1], [0], [0], [1], [0, 0, 1, 1], [], []>} : vector<128x32xbf16>, vector<32x29xbf16>, vector<128x29xf32> -> vector<128x29xf32>
    %133 = vector.shape_cast %132 : vector<128x29xf32> to vector<4x32x29xf32>
    %134 = vector.extract_strided_slice %128 {offsets = [0, 0, 32], sizes = [4, 32, 32], strides = [1, 1, 1]} : vector<4x32x160xf32> to vector<4x32x32xf32>
    %135 = vector.shape_cast %134 : vector<4x32x32xf32> to vector<128x32xf32>
    %136 = arith.truncf %135 : vector<128x32xf32> to vector<128x32xbf16>
    %cst_47 = arith.constant dense<0.000000e+00> : vector<128x29xf32>
    %137 = tpu.matmul %136, %120, %cst_47 {dimension_numbers = #tpu.dot_dimension_numbers<[1], [0], [0], [1], [0, 0, 1, 1], [], []>} : vector<128x32xbf16>, vector<32x29xbf16>, vector<128x29xf32> -> vector<128x29xf32>
    %138 = vector.shape_cast %137 : vector<128x29xf32> to vector<4x32x29xf32>
    %139 = vector.extract_strided_slice %128 {offsets = [0, 0, 64], sizes = [4, 32, 32], strides = [1, 1, 1]} : vector<4x32x160xf32> to vector<4x32x32xf32>
    %140 = vector.shape_cast %139 : vector<4x32x32xf32> to vector<128x32xf32>
    %141 = arith.truncf %140 : vector<128x32xf32> to vector<128x32xbf16>
    %cst_48 = arith.constant dense<0.000000e+00> : vector<128x29xf32>
    %142 = tpu.matmul %141, %120, %cst_48 {dimension_numbers = #tpu.dot_dimension_numbers<[1], [0], [0], [1], [0, 0, 1, 1], [], []>} : vector<128x32xbf16>, vector<32x29xbf16>, vector<128x29xf32> -> vector<128x29xf32>
    %143 = vector.shape_cast %142 : vector<128x29xf32> to vector<4x32x29xf32>
    %144 = vector.extract_strided_slice %128 {offsets = [0, 0, 96], sizes = [4, 32, 32], strides = [1, 1, 1]} : vector<4x32x160xf32> to vector<4x32x32xf32>
    %145 = vector.shape_cast %144 : vector<4x32x32xf32> to vector<128x32xf32>
    %146 = arith.truncf %145 : vector<128x32xf32> to vector<128x32xbf16>
    %cst_49 = arith.constant dense<0.000000e+00> : vector<128x29xf32>
    %147 = tpu.matmul %146, %120, %cst_49 {dimension_numbers = #tpu.dot_dimension_numbers<[1], [0], [0], [1], [0, 0, 1, 1], [], []>} : vector<128x32xbf16>, vector<32x29xbf16>, vector<128x29xf32> -> vector<128x29xf32>
    %148 = vector.shape_cast %147 : vector<128x29xf32> to vector<4x32x29xf32>
    %149 = vector.extract_strided_slice %128 {offsets = [0, 0, 128], sizes = [4, 32, 32], strides = [1, 1, 1]} : vector<4x32x160xf32> to vector<4x32x32xf32>
    %150 = vector.shape_cast %149 : vector<4x32x32xf32> to vector<128x32xf32>
    %151 = arith.truncf %150 : vector<128x32xf32> to vector<128x32xbf16>
    %cst_50 = arith.constant dense<0.000000e+00> : vector<128x29xf32>
    %152 = tpu.matmul %151, %120, %cst_50 {dimension_numbers = #tpu.dot_dimension_numbers<[1], [0], [0], [1], [0, 0, 1, 1], [], []>} : vector<128x32xbf16>, vector<32x29xbf16>, vector<128x29xf32> -> vector<128x29xf32>
    %153 = vector.shape_cast %152 : vector<128x29xf32> to vector<4x32x29xf32>
    %154 = arith.mulf %133, %138 : vector<4x32x29xf32>
    %155 = arith.mulf %133, %133 : vector<4x32x29xf32>
    %156 = arith.subf %143, %155 : vector<4x32x29xf32>
    %157 = arith.mulf %138, %138 : vector<4x32x29xf32>
    %158 = arith.subf %148, %157 : vector<4x32x29xf32>
    %159 = arith.subf %153, %154 : vector<4x32x29xf32>
    %cst_51 = arith.constant 2.000000e+00 : f32
    %160 = vector.broadcast %cst_51 : f32 to vector<4x32x29xf32>
    %161 = arith.mulf %160, %159 : vector<4x32x29xf32>
    %cst_52 = arith.constant 8.99999984E-4 : f32
    %162 = vector.broadcast %cst_52 : f32 to vector<4x32x29xf32>
    %163 = arith.addf %161, %162 : vector<4x32x29xf32>
    %164 = arith.addf %156, %158 : vector<4x32x29xf32>
    %cst_53 = arith.constant 8.99999984E-4 : f32
    %165 = vector.broadcast %cst_53 : f32 to vector<4x32x29xf32>
    %166 = arith.addf %164, %165 : vector<4x32x29xf32>
    %167 = tpu.reciprocal %166 {approx = true} : vector<4x32x29xf32> -> vector<4x32x29xf32>
    %168 = arith.mulf %166, %167 : vector<4x32x29xf32>
    %cst_54 = arith.constant 2.000000e+00 : f32
    %169 = vector.broadcast %cst_54 : f32 to vector<4x32x29xf32>
    %170 = arith.subf %169, %168 : vector<4x32x29xf32>
    %171 = arith.mulf %167, %170 : vector<4x32x29xf32>
    %172 = arith.mulf %163, %171 : vector<4x32x29xf32>
    %cst_55 = arith.constant 2.000000e+00 : f32
    %173 = vector.broadcast %cst_55 : f32 to vector<4x32x29xf32>
    %174 = arith.mulf %173, %154 : vector<4x32x29xf32>
    %cst_56 = arith.constant 9.99999974E-5 : f32
    %175 = vector.broadcast %cst_56 : f32 to vector<4x32x29xf32>
    %176 = arith.addf %174, %175 : vector<4x32x29xf32>
    %177 = arith.mulf %133, %133 : vector<4x32x29xf32>
    %178 = arith.mulf %138, %138 : vector<4x32x29xf32>
    %179 = arith.addf %177, %178 : vector<4x32x29xf32>
    %cst_57 = arith.constant 9.99999974E-5 : f32
    %180 = vector.broadcast %cst_57 : f32 to vector<4x32x29xf32>
    %181 = arith.addf %179, %180 : vector<4x32x29xf32>
    %182 = tpu.reciprocal %181 {approx = true} : vector<4x32x29xf32> -> vector<4x32x29xf32>
    %183 = arith.mulf %181, %182 : vector<4x32x29xf32>
    %cst_58 = arith.constant 2.000000e+00 : f32
    %184 = vector.broadcast %cst_58 : f32 to vector<4x32x29xf32>
    %185 = arith.subf %184, %183 : vector<4x32x29xf32>
    %186 = arith.mulf %182, %185 : vector<4x32x29xf32>
    %187 = arith.mulf %176, %186 : vector<4x32x29xf32>
    %188 = arith.mulf %187, %172 : vector<4x32x29xf32>
    %189 = tpu.iota {dimensions = array<i32: 1>} : vector<4x32x29xi32>
    %c29_i32 = arith.constant 29 : i32
    %190 = vector.broadcast %c29_i32 : i32 to vector<4x32x29xi32>
    %191 = arith.cmpi slt, %189, %190 : vector<4x32x29xi32>
    %cst_59 = arith.constant 0.000000e+00 : f32
    %192 = vector.broadcast %cst_59 : f32 to vector<4x32x29xf32>
    %193 = arith.select %191, %188, %192 : vector<4x32x29xi1>, vector<4x32x29xf32>
    %cst_60 = arith.constant 0.000000e+00 : f32
    %194 = vector.broadcast %cst_60 : f32 to vector<4x32x29xf32>
    %195 = arith.select %191, %172, %194 : vector<4x32x29xi1>, vector<4x32x29xf32>
    %cst_61 = arith.constant dense<0.000000e+00> : vector<4x32xf32>
    %196 = vector.multi_reduction <add>, %193, %cst_61 [2] : vector<4x32x29xf32> to vector<4x32xf32>
    %197 = vector.shape_cast %196 : vector<4x32xf32> to vector<4x32x1xf32>
    %cst_62 = arith.constant dense<0.000000e+00> : vector<4x1xf32>
    %198 = vector.multi_reduction <add>, %197, %cst_62 [1] : vector<4x32x1xf32> to vector<4x1xf32>
    %cst_63 = arith.constant 0.00118906063 : f32
    %199 = vector.broadcast %cst_63 : f32 to vector<4x1xf32>
    %200 = arith.mulf %198, %199 : vector<4x1xf32>
    %cst_64 = arith.constant dense<0.000000e+00> : vector<4x32xf32>
    %201 = vector.multi_reduction <add>, %195, %cst_64 [2] : vector<4x32x29xf32> to vector<4x32xf32>
    %202 = vector.shape_cast %201 : vector<4x32xf32> to vector<4x32x1xf32>
    %cst_65 = arith.constant dense<0.000000e+00> : vector<4x1xf32>
    %203 = vector.multi_reduction <add>, %202, %cst_65 [1] : vector<4x32x1xf32> to vector<4x1xf32>
    %cst_66 = arith.constant 0.00118906063 : f32
    %204 = vector.broadcast %cst_66 : f32 to vector<4x1xf32>
    %205 = arith.mulf %203, %204 : vector<4x1xf32>
    %c0_67 = arith.constant 0 : index
    %c0_68 = arith.constant 0 : index
    %206 = vector.load %arg9[%c0_67, %c0_68] : memref<16x32xf32, #tpu.memory_space<vmem>>, vector<16x32xf32>
    %207 = arith.truncf %206 : vector<16x32xf32> to vector<16x32xbf16>
    %c0_69 = arith.constant 0 : index
    %c0_70 = arith.constant 0 : index
    %208 = vector.load %arg10[%c0_69, %c0_70] : memref<32x16xf32, #tpu.memory_space<vmem>>, vector<32x16xf32>
    %209 = arith.truncf %208 : vector<32x16xf32> to vector<32x16xbf16>
    %210 = vector.shape_cast %207 : vector<16x32xbf16> to vector<1x16x32xbf16>
    %211 = vector.broadcast %210 : vector<1x16x32xbf16> to vector<4x16x32xbf16>
    %212 = arith.truncf %121 : vector<4x32x64xf32> to vector<4x32x64xbf16>
    %cst_71 = arith.constant dense<0.000000e+00> : vector<4x16x64xf32>
    %213 = tpu.matmul %211, %212, %cst_71 {dimension_numbers = #tpu.dot_dimension_numbers<[2], [1], [1], [2], [0, 0, 0, 1, 1, 2], [0], [0]>} : vector<4x16x32xbf16>, vector<4x32x64xbf16>, vector<4x16x64xf32> -> vector<4x16x64xf32>
    %214 = vector.extract_strided_slice %213 {offsets = [0, 0, 0], sizes = [4, 16, 32], strides = [1, 1, 1]} : vector<4x16x64xf32> to vector<4x16x32xf32>
    %215 = vector.shape_cast %214 : vector<4x16x32xf32> to vector<64x32xf32>
    %216 = arith.truncf %215 : vector<64x32xf32> to vector<64x32xbf16>
    %cst_72 = arith.constant dense<0.000000e+00> : vector<64x16xf32>
    %217 = tpu.matmul %216, %209, %cst_72 {dimension_numbers = #tpu.dot_dimension_numbers<[1], [0], [0], [1], [0, 0, 1, 1], [], []>} : vector<64x32xbf16>, vector<32x16xbf16>, vector<64x16xf32> -> vector<64x16xf32>
    %218 = vector.shape_cast %217 : vector<64x16xf32> to vector<4x16x16xf32>
    %219 = vector.extract_strided_slice %213 {offsets = [0, 0, 32], sizes = [4, 16, 32], strides = [1, 1, 1]} : vector<4x16x64xf32> to vector<4x16x32xf32>
    %220 = vector.shape_cast %219 : vector<4x16x32xf32> to vector<64x32xf32>
    %221 = arith.truncf %220 : vector<64x32xf32> to vector<64x32xbf16>
    %cst_73 = arith.constant dense<0.000000e+00> : vector<64x16xf32>
    %222 = tpu.matmul %221, %209, %cst_73 {dimension_numbers = #tpu.dot_dimension_numbers<[1], [0], [0], [1], [0, 0, 1, 1], [], []>} : vector<64x32xbf16>, vector<32x16xbf16>, vector<64x16xf32> -> vector<64x16xf32>
    %223 = vector.shape_cast %222 : vector<64x16xf32> to vector<4x16x16xf32>
    %c0_74 = arith.constant 0 : index
    %c0_75 = arith.constant 0 : index
    %224 = vector.load %arg11[%c0_74, %c0_75] : memref<16x16xf32, #tpu.memory_space<vmem>>, vector<16x16xf32>
    %225 = arith.truncf %224 : vector<16x16xf32> to vector<16x16xbf16>
    %c0_76 = arith.constant 0 : index
    %c0_77 = arith.constant 0 : index
    %226 = vector.load %arg12[%c0_76, %c0_77] : memref<16x13xf32, #tpu.memory_space<vmem>>, vector<16x13xf32>
    %227 = arith.truncf %226 : vector<16x13xf32> to vector<16x13xbf16>
    %228 = tpu.concatenate %218, %223 in 2 : vector<4x16x16xf32>, vector<4x16x16xf32> -> vector<4x16x32xf32>
    %229 = arith.mulf %228, %228 : vector<4x16x32xf32>
    %230 = arith.mulf %218, %223 : vector<4x16x16xf32>
    %231 = tpu.concatenate %228, %229, %230 in 2 : vector<4x16x32xf32>, vector<4x16x32xf32>, vector<4x16x16xf32> -> vector<4x16x80xf32>
    %232 = arith.truncf %231 : vector<4x16x80xf32> to vector<4x16x80xbf16>
    %233 = vector.shape_cast %225 : vector<16x16xbf16> to vector<1x16x16xbf16>
    %234 = vector.broadcast %233 : vector<1x16x16xbf16> to vector<4x16x16xbf16>
    %cst_78 = arith.constant dense<0.000000e+00> : vector<4x16x80xf32>
    %235 = tpu.matmul %234, %232, %cst_78 {dimension_numbers = #tpu.dot_dimension_numbers<[2], [1], [1], [2], [0, 0, 0, 1, 1, 2], [0], [0]>} : vector<4x16x16xbf16>, vector<4x16x80xbf16>, vector<4x16x80xf32> -> vector<4x16x80xf32>
    %236 = vector.extract_strided_slice %235 {offsets = [0, 0, 0], sizes = [4, 16, 16], strides = [1, 1, 1]} : vector<4x16x80xf32> to vector<4x16x16xf32>
    %237 = vector.shape_cast %236 : vector<4x16x16xf32> to vector<64x16xf32>
    %238 = arith.truncf %237 : vector<64x16xf32> to vector<64x16xbf16>
    %cst_79 = arith.constant dense<0.000000e+00> : vector<64x13xf32>
    %239 = tpu.matmul %238, %227, %cst_79 {dimension_numbers = #tpu.dot_dimension_numbers<[1], [0], [0], [1], [0, 0, 1, 1], [], []>} : vector<64x16xbf16>, vector<16x13xbf16>, vector<64x13xf32> -> vector<64x13xf32>
    %240 = vector.shape_cast %239 : vector<64x13xf32> to vector<4x16x13xf32>
    %241 = vector.extract_strided_slice %235 {offsets = [0, 0, 16], sizes = [4, 16, 16], strides = [1, 1, 1]} : vector<4x16x80xf32> to vector<4x16x16xf32>
    %242 = vector.shape_cast %241 : vector<4x16x16xf32> to vector<64x16xf32>
    %243 = arith.truncf %242 : vector<64x16xf32> to vector<64x16xbf16>
    %cst_80 = arith.constant dense<0.000000e+00> : vector<64x13xf32>
    %244 = tpu.matmul %243, %227, %cst_80 {dimension_numbers = #tpu.dot_dimension_numbers<[1], [0], [0], [1], [0, 0, 1, 1], [], []>} : vector<64x16xbf16>, vector<16x13xbf16>, vector<64x13xf32> -> vector<64x13xf32>
    %245 = vector.shape_cast %244 : vector<64x13xf32> to vector<4x16x13xf32>
    %246 = vector.extract_strided_slice %235 {offsets = [0, 0, 32], sizes = [4, 16, 16], strides = [1, 1, 1]} : vector<4x16x80xf32> to vector<4x16x16xf32>
    %247 = vector.shape_cast %246 : vector<4x16x16xf32> to vector<64x16xf32>
    %248 = arith.truncf %247 : vector<64x16xf32> to vector<64x16xbf16>
    %cst_81 = arith.constant dense<0.000000e+00> : vector<64x13xf32>
    %249 = tpu.matmul %248, %227, %cst_81 {dimension_numbers = #tpu.dot_dimension_numbers<[1], [0], [0], [1], [0, 0, 1, 1], [], []>} : vector<64x16xbf16>, vector<16x13xbf16>, vector<64x13xf32> -> vector<64x13xf32>
    %250 = vector.shape_cast %249 : vector<64x13xf32> to vector<4x16x13xf32>
    %251 = vector.extract_strided_slice %235 {offsets = [0, 0, 48], sizes = [4, 16, 16], strides = [1, 1, 1]} : vector<4x16x80xf32> to vector<4x16x16xf32>
    %252 = vector.shape_cast %251 : vector<4x16x16xf32> to vector<64x16xf32>
    %253 = arith.truncf %252 : vector<64x16xf32> to vector<64x16xbf16>
    %cst_82 = arith.constant dense<0.000000e+00> : vector<64x13xf32>
    %254 = tpu.matmul %253, %227, %cst_82 {dimension_numbers = #tpu.dot_dimension_numbers<[1], [0], [0], [1], [0, 0, 1, 1], [], []>} : vector<64x16xbf16>, vector<16x13xbf16>, vector<64x13xf32> -> vector<64x13xf32>
    %255 = vector.shape_cast %254 : vector<64x13xf32> to vector<4x16x13xf32>
    %256 = vector.extract_strided_slice %235 {offsets = [0, 0, 64], sizes = [4, 16, 16], strides = [1, 1, 1]} : vector<4x16x80xf32> to vector<4x16x16xf32>
    %257 = vector.shape_cast %256 : vector<4x16x16xf32> to vector<64x16xf32>
    %258 = arith.truncf %257 : vector<64x16xf32> to vector<64x16xbf16>
    %cst_83 = arith.constant dense<0.000000e+00> : vector<64x13xf32>
    %259 = tpu.matmul %258, %227, %cst_83 {dimension_numbers = #tpu.dot_dimension_numbers<[1], [0], [0], [1], [0, 0, 1, 1], [], []>} : vector<64x16xbf16>, vector<16x13xbf16>, vector<64x13xf32> -> vector<64x13xf32>
    %260 = vector.shape_cast %259 : vector<64x13xf32> to vector<4x16x13xf32>
    %261 = arith.mulf %240, %245 : vector<4x16x13xf32>
    %262 = arith.mulf %240, %240 : vector<4x16x13xf32>
    %263 = arith.subf %250, %262 : vector<4x16x13xf32>
    %264 = arith.mulf %245, %245 : vector<4x16x13xf32>
    %265 = arith.subf %255, %264 : vector<4x16x13xf32>
    %266 = arith.subf %260, %261 : vector<4x16x13xf32>
    %cst_84 = arith.constant 2.000000e+00 : f32
    %267 = vector.broadcast %cst_84 : f32 to vector<4x16x13xf32>
    %268 = arith.mulf %267, %266 : vector<4x16x13xf32>
    %cst_85 = arith.constant 8.99999984E-4 : f32
    %269 = vector.broadcast %cst_85 : f32 to vector<4x16x13xf32>
    %270 = arith.addf %268, %269 : vector<4x16x13xf32>
    %271 = arith.addf %263, %265 : vector<4x16x13xf32>
    %cst_86 = arith.constant 8.99999984E-4 : f32
    %272 = vector.broadcast %cst_86 : f32 to vector<4x16x13xf32>
    %273 = arith.addf %271, %272 : vector<4x16x13xf32>
    %274 = tpu.reciprocal %273 {approx = true} : vector<4x16x13xf32> -> vector<4x16x13xf32>
    %275 = arith.mulf %273, %274 : vector<4x16x13xf32>
    %cst_87 = arith.constant 2.000000e+00 : f32
    %276 = vector.broadcast %cst_87 : f32 to vector<4x16x13xf32>
    %277 = arith.subf %276, %275 : vector<4x16x13xf32>
    %278 = arith.mulf %274, %277 : vector<4x16x13xf32>
    %279 = arith.mulf %270, %278 : vector<4x16x13xf32>
    %cst_88 = arith.constant 2.000000e+00 : f32
    %280 = vector.broadcast %cst_88 : f32 to vector<4x16x13xf32>
    %281 = arith.mulf %280, %261 : vector<4x16x13xf32>
    %cst_89 = arith.constant 9.99999974E-5 : f32
    %282 = vector.broadcast %cst_89 : f32 to vector<4x16x13xf32>
    %283 = arith.addf %281, %282 : vector<4x16x13xf32>
    %284 = arith.mulf %240, %240 : vector<4x16x13xf32>
    %285 = arith.mulf %245, %245 : vector<4x16x13xf32>
    %286 = arith.addf %284, %285 : vector<4x16x13xf32>
    %cst_90 = arith.constant 9.99999974E-5 : f32
    %287 = vector.broadcast %cst_90 : f32 to vector<4x16x13xf32>
    %288 = arith.addf %286, %287 : vector<4x16x13xf32>
    %289 = tpu.reciprocal %288 {approx = true} : vector<4x16x13xf32> -> vector<4x16x13xf32>
    %290 = arith.mulf %288, %289 : vector<4x16x13xf32>
    %cst_91 = arith.constant 2.000000e+00 : f32
    %291 = vector.broadcast %cst_91 : f32 to vector<4x16x13xf32>
    %292 = arith.subf %291, %290 : vector<4x16x13xf32>
    %293 = arith.mulf %289, %292 : vector<4x16x13xf32>
    %294 = arith.mulf %283, %293 : vector<4x16x13xf32>
    %295 = arith.mulf %294, %279 : vector<4x16x13xf32>
    %296 = tpu.iota {dimensions = array<i32: 1>} : vector<4x16x13xi32>
    %c13_i32 = arith.constant 13 : i32
    %297 = vector.broadcast %c13_i32 : i32 to vector<4x16x13xi32>
    %298 = arith.cmpi slt, %296, %297 : vector<4x16x13xi32>
    %cst_92 = arith.constant 0.000000e+00 : f32
    %299 = vector.broadcast %cst_92 : f32 to vector<4x16x13xf32>
    %300 = arith.select %298, %295, %299 : vector<4x16x13xi1>, vector<4x16x13xf32>
    %cst_93 = arith.constant 0.000000e+00 : f32
    %301 = vector.broadcast %cst_93 : f32 to vector<4x16x13xf32>
    %302 = arith.select %298, %279, %301 : vector<4x16x13xi1>, vector<4x16x13xf32>
    %cst_94 = arith.constant dense<0.000000e+00> : vector<4x16xf32>
    %303 = vector.multi_reduction <add>, %300, %cst_94 [2] : vector<4x16x13xf32> to vector<4x16xf32>
    %304 = vector.shape_cast %303 : vector<4x16xf32> to vector<4x16x1xf32>
    %cst_95 = arith.constant dense<0.000000e+00> : vector<4x1xf32>
    %305 = vector.multi_reduction <add>, %304, %cst_95 [1] : vector<4x16x1xf32> to vector<4x1xf32>
    %cst_96 = arith.constant 5.917160e-03 : f32
    %306 = vector.broadcast %cst_96 : f32 to vector<4x1xf32>
    %307 = arith.mulf %305, %306 : vector<4x1xf32>
    %cst_97 = arith.constant dense<0.000000e+00> : vector<4x16xf32>
    %308 = vector.multi_reduction <add>, %302, %cst_97 [2] : vector<4x16x13xf32> to vector<4x16xf32>
    %309 = vector.shape_cast %308 : vector<4x16xf32> to vector<4x16x1xf32>
    %cst_98 = arith.constant dense<0.000000e+00> : vector<4x1xf32>
    %310 = vector.multi_reduction <add>, %309, %cst_98 [1] : vector<4x16x1xf32> to vector<4x1xf32>
    %cst_99 = arith.constant 5.917160e-03 : f32
    %311 = vector.broadcast %cst_99 : f32 to vector<4x1xf32>
    %312 = arith.mulf %310, %311 : vector<4x1xf32>
    %c0_100 = arith.constant 0 : index
    %c0_101 = arith.constant 0 : index
    %313 = vector.load %arg13[%c0_100, %c0_101] : memref<8x16xf32, #tpu.memory_space<vmem>>, vector<8x16xf32>
    %314 = arith.truncf %313 : vector<8x16xf32> to vector<8x16xbf16>
    %c0_102 = arith.constant 0 : index
    %c0_103 = arith.constant 0 : index
    %315 = vector.load %arg14[%c0_102, %c0_103] : memref<16x8xf32, #tpu.memory_space<vmem>>, vector<16x8xf32>
    %316 = arith.truncf %315 : vector<16x8xf32> to vector<16x8xbf16>
    %317 = vector.shape_cast %314 : vector<8x16xbf16> to vector<1x8x16xbf16>
    %318 = vector.broadcast %317 : vector<1x8x16xbf16> to vector<4x8x16xbf16>
    %319 = arith.truncf %228 : vector<4x16x32xf32> to vector<4x16x32xbf16>
    %cst_104 = arith.constant dense<0.000000e+00> : vector<4x8x32xf32>
    %320 = tpu.matmul %318, %319, %cst_104 {dimension_numbers = #tpu.dot_dimension_numbers<[2], [1], [1], [2], [0, 0, 0, 1, 1, 2], [0], [0]>} : vector<4x8x16xbf16>, vector<4x16x32xbf16>, vector<4x8x32xf32> -> vector<4x8x32xf32>
    %321 = vector.extract_strided_slice %320 {offsets = [0, 0, 0], sizes = [4, 8, 16], strides = [1, 1, 1]} : vector<4x8x32xf32> to vector<4x8x16xf32>
    %322 = vector.shape_cast %321 : vector<4x8x16xf32> to vector<32x16xf32>
    %323 = arith.truncf %322 : vector<32x16xf32> to vector<32x16xbf16>
    %cst_105 = arith.constant dense<0.000000e+00> : vector<32x8xf32>
    %324 = tpu.matmul %323, %316, %cst_105 {dimension_numbers = #tpu.dot_dimension_numbers<[1], [0], [0], [1], [0, 0, 1, 1], [], []>} : vector<32x16xbf16>, vector<16x8xbf16>, vector<32x8xf32> -> vector<32x8xf32>
    %325 = vector.shape_cast %324 : vector<32x8xf32> to vector<4x8x8xf32>
    %326 = vector.extract_strided_slice %320 {offsets = [0, 0, 16], sizes = [4, 8, 16], strides = [1, 1, 1]} : vector<4x8x32xf32> to vector<4x8x16xf32>
    %327 = vector.shape_cast %326 : vector<4x8x16xf32> to vector<32x16xf32>
    %328 = arith.truncf %327 : vector<32x16xf32> to vector<32x16xbf16>
    %cst_106 = arith.constant dense<0.000000e+00> : vector<32x8xf32>
    %329 = tpu.matmul %328, %316, %cst_106 {dimension_numbers = #tpu.dot_dimension_numbers<[1], [0], [0], [1], [0, 0, 1, 1], [], []>} : vector<32x16xbf16>, vector<16x8xbf16>, vector<32x8xf32> -> vector<32x8xf32>
    %330 = vector.shape_cast %329 : vector<32x8xf32> to vector<4x8x8xf32>
    %c0_107 = arith.constant 0 : index
    %c0_108 = arith.constant 0 : index
    %331 = vector.load %arg15[%c0_107, %c0_108] : memref<8x8xf32, #tpu.memory_space<vmem>>, vector<8x8xf32>
    %332 = arith.truncf %331 : vector<8x8xf32> to vector<8x8xbf16>
    %c0_109 = arith.constant 0 : index
    %c0_110 = arith.constant 0 : index
    %333 = vector.load %arg16[%c0_109, %c0_110] : memref<8x5xf32, #tpu.memory_space<vmem>>, vector<8x5xf32>
    %334 = arith.truncf %333 : vector<8x5xf32> to vector<8x5xbf16>
    %335 = tpu.concatenate %325, %330 in 2 : vector<4x8x8xf32>, vector<4x8x8xf32> -> vector<4x8x16xf32>
    %336 = arith.mulf %335, %335 : vector<4x8x16xf32>
    %337 = arith.mulf %325, %330 : vector<4x8x8xf32>
    %338 = tpu.concatenate %335, %336, %337 in 2 : vector<4x8x16xf32>, vector<4x8x16xf32>, vector<4x8x8xf32> -> vector<4x8x40xf32>
    %339 = arith.truncf %338 : vector<4x8x40xf32> to vector<4x8x40xbf16>
    %340 = vector.shape_cast %332 : vector<8x8xbf16> to vector<1x8x8xbf16>
    %341 = vector.broadcast %340 : vector<1x8x8xbf16> to vector<4x8x8xbf16>
    %cst_111 = arith.constant dense<0.000000e+00> : vector<4x8x40xf32>
    %342 = tpu.matmul %341, %339, %cst_111 {dimension_numbers = #tpu.dot_dimension_numbers<[2], [1], [1], [2], [0, 0, 0, 1, 1, 2], [0], [0]>} : vector<4x8x8xbf16>, vector<4x8x40xbf16>, vector<4x8x40xf32> -> vector<4x8x40xf32>
    %343 = vector.extract_strided_slice %342 {offsets = [0, 0, 0], sizes = [4, 8, 8], strides = [1, 1, 1]} : vector<4x8x40xf32> to vector<4x8x8xf32>
    %344 = vector.shape_cast %343 : vector<4x8x8xf32> to vector<32x8xf32>
    %345 = arith.truncf %344 : vector<32x8xf32> to vector<32x8xbf16>
    %cst_112 = arith.constant dense<0.000000e+00> : vector<32x5xf32>
    %346 = tpu.matmul %345, %334, %cst_112 {dimension_numbers = #tpu.dot_dimension_numbers<[1], [0], [0], [1], [0, 0, 1, 1], [], []>} : vector<32x8xbf16>, vector<8x5xbf16>, vector<32x5xf32> -> vector<32x5xf32>
    %347 = vector.shape_cast %346 : vector<32x5xf32> to vector<4x8x5xf32>
    %348 = vector.extract_strided_slice %342 {offsets = [0, 0, 8], sizes = [4, 8, 8], strides = [1, 1, 1]} : vector<4x8x40xf32> to vector<4x8x8xf32>
    %349 = vector.shape_cast %348 : vector<4x8x8xf32> to vector<32x8xf32>
    %350 = arith.truncf %349 : vector<32x8xf32> to vector<32x8xbf16>
    %cst_113 = arith.constant dense<0.000000e+00> : vector<32x5xf32>
    %351 = tpu.matmul %350, %334, %cst_113 {dimension_numbers = #tpu.dot_dimension_numbers<[1], [0], [0], [1], [0, 0, 1, 1], [], []>} : vector<32x8xbf16>, vector<8x5xbf16>, vector<32x5xf32> -> vector<32x5xf32>
    %352 = vector.shape_cast %351 : vector<32x5xf32> to vector<4x8x5xf32>
    %353 = vector.extract_strided_slice %342 {offsets = [0, 0, 16], sizes = [4, 8, 8], strides = [1, 1, 1]} : vector<4x8x40xf32> to vector<4x8x8xf32>
    %354 = vector.shape_cast %353 : vector<4x8x8xf32> to vector<32x8xf32>
    %355 = arith.truncf %354 : vector<32x8xf32> to vector<32x8xbf16>
    %cst_114 = arith.constant dense<0.000000e+00> : vector<32x5xf32>
    %356 = tpu.matmul %355, %334, %cst_114 {dimension_numbers = #tpu.dot_dimension_numbers<[1], [0], [0], [1], [0, 0, 1, 1], [], []>} : vector<32x8xbf16>, vector<8x5xbf16>, vector<32x5xf32> -> vector<32x5xf32>
    %357 = vector.shape_cast %356 : vector<32x5xf32> to vector<4x8x5xf32>
    %358 = vector.extract_strided_slice %342 {offsets = [0, 0, 24], sizes = [4, 8, 8], strides = [1, 1, 1]} : vector<4x8x40xf32> to vector<4x8x8xf32>
    %359 = vector.shape_cast %358 : vector<4x8x8xf32> to vector<32x8xf32>
    %360 = arith.truncf %359 : vector<32x8xf32> to vector<32x8xbf16>
    %cst_115 = arith.constant dense<0.000000e+00> : vector<32x5xf32>
    %361 = tpu.matmul %360, %334, %cst_115 {dimension_numbers = #tpu.dot_dimension_numbers<[1], [0], [0], [1], [0, 0, 1, 1], [], []>} : vector<32x8xbf16>, vector<8x5xbf16>, vector<32x5xf32> -> vector<32x5xf32>
    %362 = vector.shape_cast %361 : vector<32x5xf32> to vector<4x8x5xf32>
    %363 = vector.extract_strided_slice %342 {offsets = [0, 0, 32], sizes = [4, 8, 8], strides = [1, 1, 1]} : vector<4x8x40xf32> to vector<4x8x8xf32>
    %364 = vector.shape_cast %363 : vector<4x8x8xf32> to vector<32x8xf32>
    %365 = arith.truncf %364 : vector<32x8xf32> to vector<32x8xbf16>
    %cst_116 = arith.constant dense<0.000000e+00> : vector<32x5xf32>
    %366 = tpu.matmul %365, %334, %cst_116 {dimension_numbers = #tpu.dot_dimension_numbers<[1], [0], [0], [1], [0, 0, 1, 1], [], []>} : vector<32x8xbf16>, vector<8x5xbf16>, vector<32x5xf32> -> vector<32x5xf32>
    %367 = vector.shape_cast %366 : vector<32x5xf32> to vector<4x8x5xf32>
    %368 = arith.mulf %347, %352 : vector<4x8x5xf32>
    %369 = arith.mulf %347, %347 : vector<4x8x5xf32>
    %370 = arith.subf %357, %369 : vector<4x8x5xf32>
    %371 = arith.mulf %352, %352 : vector<4x8x5xf32>
    %372 = arith.subf %362, %371 : vector<4x8x5xf32>
    %373 = arith.subf %367, %368 : vector<4x8x5xf32>
    %cst_117 = arith.constant 2.000000e+00 : f32
    %374 = vector.broadcast %cst_117 : f32 to vector<4x8x5xf32>
    %375 = arith.mulf %374, %373 : vector<4x8x5xf32>
    %cst_118 = arith.constant 8.99999984E-4 : f32
    %376 = vector.broadcast %cst_118 : f32 to vector<4x8x5xf32>
    %377 = arith.addf %375, %376 : vector<4x8x5xf32>
    %378 = arith.addf %370, %372 : vector<4x8x5xf32>
    %cst_119 = arith.constant 8.99999984E-4 : f32
    %379 = vector.broadcast %cst_119 : f32 to vector<4x8x5xf32>
    %380 = arith.addf %378, %379 : vector<4x8x5xf32>
    %381 = tpu.reciprocal %380 {approx = true} : vector<4x8x5xf32> -> vector<4x8x5xf32>
    %382 = arith.mulf %380, %381 : vector<4x8x5xf32>
    %cst_120 = arith.constant 2.000000e+00 : f32
    %383 = vector.broadcast %cst_120 : f32 to vector<4x8x5xf32>
    %384 = arith.subf %383, %382 : vector<4x8x5xf32>
    %385 = arith.mulf %381, %384 : vector<4x8x5xf32>
    %386 = arith.mulf %377, %385 : vector<4x8x5xf32>
    %cst_121 = arith.constant 2.000000e+00 : f32
    %387 = vector.broadcast %cst_121 : f32 to vector<4x8x5xf32>
    %388 = arith.mulf %387, %368 : vector<4x8x5xf32>
    %cst_122 = arith.constant 9.99999974E-5 : f32
    %389 = vector.broadcast %cst_122 : f32 to vector<4x8x5xf32>
    %390 = arith.addf %388, %389 : vector<4x8x5xf32>
    %391 = arith.mulf %347, %347 : vector<4x8x5xf32>
    %392 = arith.mulf %352, %352 : vector<4x8x5xf32>
    %393 = arith.addf %391, %392 : vector<4x8x5xf32>
    %cst_123 = arith.constant 9.99999974E-5 : f32
    %394 = vector.broadcast %cst_123 : f32 to vector<4x8x5xf32>
    %395 = arith.addf %393, %394 : vector<4x8x5xf32>
    %396 = tpu.reciprocal %395 {approx = true} : vector<4x8x5xf32> -> vector<4x8x5xf32>
    %397 = arith.mulf %395, %396 : vector<4x8x5xf32>
    %cst_124 = arith.constant 2.000000e+00 : f32
    %398 = vector.broadcast %cst_124 : f32 to vector<4x8x5xf32>
    %399 = arith.subf %398, %397 : vector<4x8x5xf32>
    %400 = arith.mulf %396, %399 : vector<4x8x5xf32>
    %401 = arith.mulf %390, %400 : vector<4x8x5xf32>
    %402 = arith.mulf %401, %386 : vector<4x8x5xf32>
    %403 = tpu.iota {dimensions = array<i32: 1>} : vector<4x8x5xi32>
    %c5_i32 = arith.constant 5 : i32
    %404 = vector.broadcast %c5_i32 : i32 to vector<4x8x5xi32>
    %405 = arith.cmpi slt, %403, %404 : vector<4x8x5xi32>
    %cst_125 = arith.constant 0.000000e+00 : f32
    %406 = vector.broadcast %cst_125 : f32 to vector<4x8x5xf32>
    %407 = arith.select %405, %402, %406 : vector<4x8x5xi1>, vector<4x8x5xf32>
    %cst_126 = arith.constant 0.000000e+00 : f32
    %408 = vector.broadcast %cst_126 : f32 to vector<4x8x5xf32>
    %409 = arith.select %405, %386, %408 : vector<4x8x5xi1>, vector<4x8x5xf32>
    %cst_127 = arith.constant dense<0.000000e+00> : vector<4x8xf32>
    %410 = vector.multi_reduction <add>, %407, %cst_127 [2] : vector<4x8x5xf32> to vector<4x8xf32>
    %411 = vector.shape_cast %410 : vector<4x8xf32> to vector<4x8x1xf32>
    %cst_128 = arith.constant dense<0.000000e+00> : vector<4x1xf32>
    %412 = vector.multi_reduction <add>, %411, %cst_128 [1] : vector<4x8x1xf32> to vector<4x1xf32>
    %cst_129 = arith.constant 4.000000e-02 : f32
    %413 = vector.broadcast %cst_129 : f32 to vector<4x1xf32>
    %414 = arith.mulf %412, %413 : vector<4x1xf32>
    %cst_130 = arith.constant dense<0.000000e+00> : vector<4x8xf32>
    %415 = vector.multi_reduction <add>, %409, %cst_130 [2] : vector<4x8x5xf32> to vector<4x8xf32>
    %416 = vector.shape_cast %415 : vector<4x8xf32> to vector<4x8x1xf32>
    %cst_131 = arith.constant dense<0.000000e+00> : vector<4x1xf32>
    %417 = vector.multi_reduction <add>, %416, %cst_131 [1] : vector<4x8x1xf32> to vector<4x1xf32>
    %cst_132 = arith.constant 4.000000e-02 : f32
    %418 = vector.broadcast %cst_132 : f32 to vector<4x1xf32>
    %419 = arith.mulf %417, %418 : vector<4x1xf32>
    %c0_133 = arith.constant 0 : index
    %c0_134 = arith.constant 0 : index
    %420 = vector.load %arg17[%c0_133, %c0_134] : memref<8x8xf32, #tpu.memory_space<vmem>>, vector<8x8xf32>
    %421 = arith.truncf %420 : vector<8x8xf32> to vector<8x8xbf16>
    %c0_135 = arith.constant 0 : index
    %c0_136 = arith.constant 0 : index
    %422 = vector.load %arg18[%c0_135, %c0_136] : memref<8x4xf32, #tpu.memory_space<vmem>>, vector<8x4xf32>
    %423 = arith.truncf %422 : vector<8x4xf32> to vector<8x4xbf16>
    %424 = vector.shape_cast %421 : vector<8x8xbf16> to vector<1x8x8xbf16>
    %425 = vector.broadcast %424 : vector<1x8x8xbf16> to vector<4x8x8xbf16>
    %426 = arith.truncf %335 : vector<4x8x16xf32> to vector<4x8x16xbf16>
    %cst_137 = arith.constant dense<0.000000e+00> : vector<4x8x16xf32>
    %427 = tpu.matmul %425, %426, %cst_137 {dimension_numbers = #tpu.dot_dimension_numbers<[2], [1], [1], [2], [0, 0, 0, 1, 1, 2], [0], [0]>} : vector<4x8x8xbf16>, vector<4x8x16xbf16>, vector<4x8x16xf32> -> vector<4x8x16xf32>
    %428 = vector.extract_strided_slice %427 {offsets = [0, 0, 0], sizes = [4, 8, 8], strides = [1, 1, 1]} : vector<4x8x16xf32> to vector<4x8x8xf32>
    %429 = vector.shape_cast %428 : vector<4x8x8xf32> to vector<32x8xf32>
    %430 = arith.truncf %429 : vector<32x8xf32> to vector<32x8xbf16>
    %cst_138 = arith.constant dense<0.000000e+00> : vector<32x4xf32>
    %431 = tpu.matmul %430, %423, %cst_138 {dimension_numbers = #tpu.dot_dimension_numbers<[1], [0], [0], [1], [0, 0, 1, 1], [], []>} : vector<32x8xbf16>, vector<8x4xbf16>, vector<32x4xf32> -> vector<32x4xf32>
    %432 = vector.shape_cast %431 : vector<32x4xf32> to vector<4x8x4xf32>
    %433 = vector.extract_strided_slice %432 {offsets = [0, 0, 0], sizes = [4, 4, 4], strides = [1, 1, 1]} : vector<4x8x4xf32> to vector<4x4x4xf32>
    %434 = vector.extract_strided_slice %427 {offsets = [0, 0, 8], sizes = [4, 8, 8], strides = [1, 1, 1]} : vector<4x8x16xf32> to vector<4x8x8xf32>
    %435 = vector.shape_cast %434 : vector<4x8x8xf32> to vector<32x8xf32>
    %436 = arith.truncf %435 : vector<32x8xf32> to vector<32x8xbf16>
    %cst_139 = arith.constant dense<0.000000e+00> : vector<32x4xf32>
    %437 = tpu.matmul %436, %423, %cst_139 {dimension_numbers = #tpu.dot_dimension_numbers<[1], [0], [0], [1], [0, 0, 1, 1], [], []>} : vector<32x8xbf16>, vector<8x4xbf16>, vector<32x4xf32> -> vector<32x4xf32>
    %438 = vector.shape_cast %437 : vector<32x4xf32> to vector<4x8x4xf32>
    %439 = vector.extract_strided_slice %438 {offsets = [0, 0, 0], sizes = [4, 4, 4], strides = [1, 1, 1]} : vector<4x8x4xf32> to vector<4x4x4xf32>
    %c0_140 = arith.constant 0 : index
    %c0_141 = arith.constant 0 : index
    %440 = vector.load %arg19[%c0_140, %c0_141] : memref<8x4xf32, #tpu.memory_space<vmem>>, vector<8x4xf32>
    %441 = arith.truncf %440 : vector<8x4xf32> to vector<8x4xbf16>
    %c0_142 = arith.constant 0 : index
    %c0_143 = arith.constant 0 : index
    %442 = vector.load %arg20[%c0_142, %c0_143] : memref<4x1xf32, #tpu.memory_space<vmem>>, vector<4x1xf32>
    %443 = arith.truncf %442 : vector<4x1xf32> to vector<4x1xbf16>
    %444 = tpu.concatenate %433, %439 in 2 : vector<4x4x4xf32>, vector<4x4x4xf32> -> vector<4x4x8xf32>
    %445 = arith.mulf %444, %444 : vector<4x4x8xf32>
    %446 = arith.mulf %433, %439 : vector<4x4x4xf32>
    %447 = tpu.concatenate %444, %445, %446 in 2 : vector<4x4x8xf32>, vector<4x4x8xf32>, vector<4x4x4xf32> -> vector<4x4x20xf32>
    %448 = arith.truncf %447 : vector<4x4x20xf32> to vector<4x4x20xbf16>
    %449 = vector.shape_cast %441 : vector<8x4xbf16> to vector<1x8x4xbf16>
    %450 = vector.broadcast %449 : vector<1x8x4xbf16> to vector<4x8x4xbf16>
    %cst_144 = arith.constant dense<0.000000e+00> : vector<4x8x20xf32>
    %451 = tpu.matmul %450, %448, %cst_144 {dimension_numbers = #tpu.dot_dimension_numbers<[2], [1], [1], [2], [0, 0, 0, 1, 1, 2], [0], [0]>} : vector<4x8x4xbf16>, vector<4x4x20xbf16>, vector<4x8x20xf32> -> vector<4x8x20xf32>
    %452 = vector.extract_strided_slice %451 {offsets = [0, 0, 0], sizes = [4, 8, 4], strides = [1, 1, 1]} : vector<4x8x20xf32> to vector<4x8x4xf32>
    %453 = vector.shape_cast %452 : vector<4x8x4xf32> to vector<32x4xf32>
    %454 = arith.truncf %453 : vector<32x4xf32> to vector<32x4xbf16>
    %cst_145 = arith.constant dense<0.000000e+00> : vector<32x1xf32>
    %455 = tpu.matmul %454, %443, %cst_145 {dimension_numbers = #tpu.dot_dimension_numbers<[1], [0], [0], [1], [0, 0, 1, 1], [], []>} : vector<32x4xbf16>, vector<4x1xbf16>, vector<32x1xf32> -> vector<32x1xf32>
    %456 = vector.shape_cast %455 : vector<32x1xf32> to vector<4x8x1xf32>
    %457 = vector.extract_strided_slice %451 {offsets = [0, 0, 4], sizes = [4, 8, 4], strides = [1, 1, 1]} : vector<4x8x20xf32> to vector<4x8x4xf32>
    %458 = vector.shape_cast %457 : vector<4x8x4xf32> to vector<32x4xf32>
    %459 = arith.truncf %458 : vector<32x4xf32> to vector<32x4xbf16>
    %cst_146 = arith.constant dense<0.000000e+00> : vector<32x1xf32>
    %460 = tpu.matmul %459, %443, %cst_146 {dimension_numbers = #tpu.dot_dimension_numbers<[1], [0], [0], [1], [0, 0, 1, 1], [], []>} : vector<32x4xbf16>, vector<4x1xbf16>, vector<32x1xf32> -> vector<32x1xf32>
    %461 = vector.shape_cast %460 : vector<32x1xf32> to vector<4x8x1xf32>
    %462 = vector.extract_strided_slice %451 {offsets = [0, 0, 8], sizes = [4, 8, 4], strides = [1, 1, 1]} : vector<4x8x20xf32> to vector<4x8x4xf32>
    %463 = vector.shape_cast %462 : vector<4x8x4xf32> to vector<32x4xf32>
    %464 = arith.truncf %463 : vector<32x4xf32> to vector<32x4xbf16>
    %cst_147 = arith.constant dense<0.000000e+00> : vector<32x1xf32>
    %465 = tpu.matmul %464, %443, %cst_147 {dimension_numbers = #tpu.dot_dimension_numbers<[1], [0], [0], [1], [0, 0, 1, 1], [], []>} : vector<32x4xbf16>, vector<4x1xbf16>, vector<32x1xf32> -> vector<32x1xf32>
    %466 = vector.shape_cast %465 : vector<32x1xf32> to vector<4x8x1xf32>
    %467 = vector.extract_strided_slice %451 {offsets = [0, 0, 12], sizes = [4, 8, 4], strides = [1, 1, 1]} : vector<4x8x20xf32> to vector<4x8x4xf32>
    %468 = vector.shape_cast %467 : vector<4x8x4xf32> to vector<32x4xf32>
    %469 = arith.truncf %468 : vector<32x4xf32> to vector<32x4xbf16>
    %cst_148 = arith.constant dense<0.000000e+00> : vector<32x1xf32>
    %470 = tpu.matmul %469, %443, %cst_148 {dimension_numbers = #tpu.dot_dimension_numbers<[1], [0], [0], [1], [0, 0, 1, 1], [], []>} : vector<32x4xbf16>, vector<4x1xbf16>, vector<32x1xf32> -> vector<32x1xf32>
    %471 = vector.shape_cast %470 : vector<32x1xf32> to vector<4x8x1xf32>
    %472 = vector.extract_strided_slice %451 {offsets = [0, 0, 16], sizes = [4, 8, 4], strides = [1, 1, 1]} : vector<4x8x20xf32> to vector<4x8x4xf32>
    %473 = vector.shape_cast %472 : vector<4x8x4xf32> to vector<32x4xf32>
    %474 = arith.truncf %473 : vector<32x4xf32> to vector<32x4xbf16>
    %cst_149 = arith.constant dense<0.000000e+00> : vector<32x1xf32>
    %475 = tpu.matmul %474, %443, %cst_149 {dimension_numbers = #tpu.dot_dimension_numbers<[1], [0], [0], [1], [0, 0, 1, 1], [], []>} : vector<32x4xbf16>, vector<4x1xbf16>, vector<32x1xf32> -> vector<32x1xf32>
    %476 = vector.shape_cast %475 : vector<32x1xf32> to vector<4x8x1xf32>
    %477 = arith.mulf %456, %461 : vector<4x8x1xf32>
    %478 = arith.mulf %456, %456 : vector<4x8x1xf32>
    %479 = arith.subf %466, %478 : vector<4x8x1xf32>
    %480 = arith.mulf %461, %461 : vector<4x8x1xf32>
    %481 = arith.subf %471, %480 : vector<4x8x1xf32>
    %482 = arith.subf %476, %477 : vector<4x8x1xf32>
    %cst_150 = arith.constant 2.000000e+00 : f32
    %483 = vector.broadcast %cst_150 : f32 to vector<4x8x1xf32>
    %484 = arith.mulf %483, %482 : vector<4x8x1xf32>
    %cst_151 = arith.constant 8.99999984E-4 : f32
    %485 = vector.broadcast %cst_151 : f32 to vector<4x8x1xf32>
    %486 = arith.addf %484, %485 : vector<4x8x1xf32>
    %487 = arith.addf %479, %481 : vector<4x8x1xf32>
    %cst_152 = arith.constant 8.99999984E-4 : f32
    %488 = vector.broadcast %cst_152 : f32 to vector<4x8x1xf32>
    %489 = arith.addf %487, %488 : vector<4x8x1xf32>
    %490 = tpu.reciprocal %489 {approx = true} : vector<4x8x1xf32> -> vector<4x8x1xf32>
    %491 = arith.mulf %489, %490 : vector<4x8x1xf32>
    %cst_153 = arith.constant 2.000000e+00 : f32
    %492 = vector.broadcast %cst_153 : f32 to vector<4x8x1xf32>
    %493 = arith.subf %492, %491 : vector<4x8x1xf32>
    %494 = arith.mulf %490, %493 : vector<4x8x1xf32>
    %495 = arith.mulf %486, %494 : vector<4x8x1xf32>
    %cst_154 = arith.constant 2.000000e+00 : f32
    %496 = vector.broadcast %cst_154 : f32 to vector<4x8x1xf32>
    %497 = arith.mulf %496, %477 : vector<4x8x1xf32>
    %cst_155 = arith.constant 9.99999974E-5 : f32
    %498 = vector.broadcast %cst_155 : f32 to vector<4x8x1xf32>
    %499 = arith.addf %497, %498 : vector<4x8x1xf32>
    %500 = arith.mulf %456, %456 : vector<4x8x1xf32>
    %501 = arith.mulf %461, %461 : vector<4x8x1xf32>
    %502 = arith.addf %500, %501 : vector<4x8x1xf32>
    %cst_156 = arith.constant 9.99999974E-5 : f32
    %503 = vector.broadcast %cst_156 : f32 to vector<4x8x1xf32>
    %504 = arith.addf %502, %503 : vector<4x8x1xf32>
    %505 = tpu.reciprocal %504 {approx = true} : vector<4x8x1xf32> -> vector<4x8x1xf32>
    %506 = arith.mulf %504, %505 : vector<4x8x1xf32>
    %cst_157 = arith.constant 2.000000e+00 : f32
    %507 = vector.broadcast %cst_157 : f32 to vector<4x8x1xf32>
    %508 = arith.subf %507, %506 : vector<4x8x1xf32>
    %509 = arith.mulf %505, %508 : vector<4x8x1xf32>
    %510 = arith.mulf %499, %509 : vector<4x8x1xf32>
    %511 = arith.mulf %510, %495 : vector<4x8x1xf32>
    %512 = tpu.iota {dimensions = array<i32: 1>} : vector<4x8x1xi32>
    %c1_i32 = arith.constant 1 : i32
    %513 = vector.broadcast %c1_i32 : i32 to vector<4x8x1xi32>
    %514 = arith.cmpi slt, %512, %513 : vector<4x8x1xi32>
    %cst_158 = arith.constant 0.000000e+00 : f32
    %515 = vector.broadcast %cst_158 : f32 to vector<4x8x1xf32>
    %516 = arith.select %514, %511, %515 : vector<4x8x1xi1>, vector<4x8x1xf32>
    %cst_159 = arith.constant 0.000000e+00 : f32
    %517 = vector.broadcast %cst_159 : f32 to vector<4x8x1xf32>
    %518 = arith.select %514, %495, %517 : vector<4x8x1xi1>, vector<4x8x1xf32>
    %cst_160 = arith.constant dense<0.000000e+00> : vector<4x8xf32>
    %519 = vector.multi_reduction <add>, %516, %cst_160 [2] : vector<4x8x1xf32> to vector<4x8xf32>
    %520 = vector.shape_cast %519 : vector<4x8xf32> to vector<4x8x1xf32>
    %cst_161 = arith.constant dense<0.000000e+00> : vector<4x1xf32>
    %521 = vector.multi_reduction <add>, %520, %cst_161 [1] : vector<4x8x1xf32> to vector<4x1xf32>
    %cst_162 = arith.constant 1.000000e+00 : f32
    %522 = vector.broadcast %cst_162 : f32 to vector<4x1xf32>
    %523 = arith.mulf %521, %522 : vector<4x1xf32>
    %cst_163 = arith.constant dense<0.000000e+00> : vector<4x8xf32>
    %524 = vector.multi_reduction <add>, %518, %cst_163 [2] : vector<4x8x1xf32> to vector<4x8xf32>
    %525 = vector.shape_cast %524 : vector<4x8xf32> to vector<4x8x1xf32>
    %cst_164 = arith.constant dense<0.000000e+00> : vector<4x1xf32>
    %526 = vector.multi_reduction <add>, %525, %cst_164 [1] : vector<4x8x1xf32> to vector<4x1xf32>
    %cst_165 = arith.constant 1.000000e+00 : f32
    %527 = vector.broadcast %cst_165 : f32 to vector<4x1xf32>
    %528 = arith.mulf %526, %527 : vector<4x1xf32>
    %cst_166 = arith.constant 0.000000e+00 : f32
    %529 = vector.broadcast %cst_166 : f32 to vector<4x6xf32>
    %530 = tpu.concatenate %93, %98, %200, %205, %307, %312, %414, %419, %523, %528, %529 in 1 : vector<4x1xf32>, vector<4x1xf32>, vector<4x1xf32>, vector<4x1xf32>, vector<4x1xf32>, vector<4x1xf32>, vector<4x1xf32>, vector<4x1xf32>, vector<4x1xf32>, vector<4x1xf32>, vector<4x6xf32> -> vector<4x16xf32>
    %c0_167 = arith.constant 0 : index
    %c0_168 = arith.constant 0 : index
    %c0_169 = arith.constant 0 : index
    %531 = vector.load %arg21[%c0_167, %c0_168, %c0_169] : memref<1x4x16xf32, #tpu.memory_space<vmem>>, vector<1x4x16xf32>
    %532 = vector.shape_cast %531 : vector<1x4x16xf32> to vector<4x16xf32>
    %533 = vector.shape_cast %530 : vector<4x16xf32> to vector<1x4x16xf32>
    tpu.vector_store %arg21[%c0_167, %c0_168, %c0_169], %533 {strides = array<i32>} : memref<1x4x16xf32, #tpu.memory_space<vmem>>, vector<1x4x16xf32>,
    return
  }
  func.func @transform_0(%arg0: i32) -> (i32, i32, i32) {
    %c0_i32 = arith.constant 0 : i32
    %c0_i32_0 = arith.constant 0 : i32
    %c0_i32_1 = arith.constant 0 : i32
    return %arg0, %c0_i32, %c0_i32_0 : i32, i32, i32
  }
  func.func @transform_1(%arg0: i32) -> (i32, i32, i32) {
    %c0_i32 = arith.constant 0 : i32
    %c0_i32_0 = arith.constant 0 : i32
    %c0_i32_1 = arith.constant 0 : i32
    return %arg0, %c0_i32, %c0_i32_0 : i32, i32, i32
  }
  func.func @transform_2(%arg0: i32) -> (i32, i32) {
    %c0_i32 = arith.constant 0 : i32
    %c0_i32_0 = arith.constant 0 : i32
    %c0_i32_1 = arith.constant 0 : i32
    return %c0_i32, %c0_i32_0 : i32, i32
  }
  func.func @transform_3(%arg0: i32) -> (i32, i32) {
    %c0_i32 = arith.constant 0 : i32
    %c0_i32_0 = arith.constant 0 : i32
    %c0_i32_1 = arith.constant 0 : i32
    return %c0_i32, %c0_i32_0 : i32, i32
  }
  func.func @transform_4(%arg0: i32) -> (i32, i32) {
    %c0_i32 = arith.constant 0 : i32
    %c0_i32_0 = arith.constant 0 : i32
    %c0_i32_1 = arith.constant 0 : i32
    return %c0_i32, %c0_i32_0 : i32, i32
  }
  func.func @transform_5(%arg0: i32) -> (i32, i32) {
    %c0_i32 = arith.constant 0 : i32
    %c0_i32_0 = arith.constant 0 : i32
    %c0_i32_1 = arith.constant 0 : i32
    return %c0_i32, %c0_i32_0 : i32, i32
  }
  func.func @transform_6(%arg0: i32) -> (i32, i32) {
    %c0_i32 = arith.constant 0 : i32
    %c0_i32_0 = arith.constant 0 : i32
    %c0_i32_1 = arith.constant 0 : i32
    return %c0_i32, %c0_i32_0 : i32, i32
  }
  func.func @transform_7(%arg0: i32) -> (i32, i32) {
    %c0_i32 = arith.constant 0 : i32
    %c0_i32_0 = arith.constant 0 : i32
    %c0_i32_1 = arith.constant 0 : i32
    return %c0_i32, %c0_i32_0 : i32, i32
  }
  func.func @transform_8(%arg0: i32) -> (i32, i32) {
    %c0_i32 = arith.constant 0 : i32
    %c0_i32_0 = arith.constant 0 : i32
    %c0_i32_1 = arith.constant 0 : i32
    return %c0_i32, %c0_i32_0 : i32, i32
  }
  func.func @transform_9(%arg0: i32) -> (i32, i32) {
    %c0_i32 = arith.constant 0 : i32
    %c0_i32_0 = arith.constant 0 : i32
    %c0_i32_1 = arith.constant 0 : i32
    return %c0_i32, %c0_i32_0 : i32, i32
  }
  func.func @transform_10(%arg0: i32) -> (i32, i32) {
    %c0_i32 = arith.constant 0 : i32
    %c0_i32_0 = arith.constant 0 : i32
    %c0_i32_1 = arith.constant 0 : i32
    return %c0_i32, %c0_i32_0 : i32, i32
  }
  func.func @transform_11(%arg0: i32) -> (i32, i32) {
    %c0_i32 = arith.constant 0 : i32
    %c0_i32_0 = arith.constant 0 : i32
    %c0_i32_1 = arith.constant 0 : i32
    return %c0_i32, %c0_i32_0 : i32, i32
  }
  func.func @transform_12(%arg0: i32) -> (i32, i32) {
    %c0_i32 = arith.constant 0 : i32
    %c0_i32_0 = arith.constant 0 : i32
    %c0_i32_1 = arith.constant 0 : i32
    return %c0_i32, %c0_i32_0 : i32, i32
  }
  func.func @transform_13(%arg0: i32) -> (i32, i32) {
    %c0_i32 = arith.constant 0 : i32
    %c0_i32_0 = arith.constant 0 : i32
    %c0_i32_1 = arith.constant 0 : i32
    return %c0_i32, %c0_i32_0 : i32, i32
  }
  func.func @transform_14(%arg0: i32) -> (i32, i32) {
    %c0_i32 = arith.constant 0 : i32
    %c0_i32_0 = arith.constant 0 : i32
    %c0_i32_1 = arith.constant 0 : i32
    return %c0_i32, %c0_i32_0 : i32, i32
  }
  func.func @transform_15(%arg0: i32) -> (i32, i32) {
    %c0_i32 = arith.constant 0 : i32
    %c0_i32_0 = arith.constant 0 : i32
    %c0_i32_1 = arith.constant 0 : i32
    return %c0_i32, %c0_i32_0 : i32, i32
  }
  func.func @transform_16(%arg0: i32) -> (i32, i32) {
    %c0_i32 = arith.constant 0 : i32
    %c0_i32_0 = arith.constant 0 : i32
    %c0_i32_1 = arith.constant 0 : i32
    return %c0_i32, %c0_i32_0 : i32, i32
  }
  func.func @transform_17(%arg0: i32) -> (i32, i32) {
    %c0_i32 = arith.constant 0 : i32
    %c0_i32_0 = arith.constant 0 : i32
    %c0_i32_1 = arith.constant 0 : i32
    return %c0_i32, %c0_i32_0 : i32, i32
  }
  func.func @transform_18(%arg0: i32) -> (i32, i32) {
    %c0_i32 = arith.constant 0 : i32
    %c0_i32_0 = arith.constant 0 : i32
    %c0_i32_1 = arith.constant 0 : i32
    return %c0_i32, %c0_i32_0 : i32, i32
  }
  func.func @transform_19(%arg0: i32) -> (i32, i32) {
    %c0_i32 = arith.constant 0 : i32
    %c0_i32_0 = arith.constant 0 : i32
    %c0_i32_1 = arith.constant 0 : i32
    return %c0_i32, %c0_i32_0 : i32, i32
  }
  func.func @transform_20(%arg0: i32) -> (i32, i32, i32) {
    %c0_i32 = arith.constant 0 : i32
    %c0_i32_0 = arith.constant 0 : i32
    %c0_i32_1 = arith.constant 0 : i32
    return %arg0, %c0_i32, %c0_i32_0 : i32, i32, i32
  }
}

</mosaic_0001>

<bundles_post_ra>
// kernel: ms_ssim_loss.1
= control target key start
LH: loop header
LB: loop body
LE: loop exit
PB: predicated region body
PF: predicated region fallthrough
CT: control target
= control target key end

     0   :  { %s18810_s0 = inlined_call_operand.hbm [shape: f32[8,64,64], index: 0, kind: input, shape index: {}]   ;;  %s18811_s1 = inlined_call_operand.hbm [shape: f32[8,64,64], index: 1, kind: input, shape index: {}]   ;;  %s18812_s2 = inlined_call_operand.hbm [shape: f32[64,64], index: 2, kind: input, shape index: {}]   ;;  %s18813_s3 = inlined_call_operand.hbm [shape: f32[64,61], index: 3, kind: input, shape index: {}]   ;;  %s18814_s4 = inlined_call_operand.hbm [shape: f32[32,64], index: 4, kind: input, shape index: {}]   ;;  %s18815_s5 = inlined_call_operand.hbm [shape: f32[64,32], index: 5, kind: input, shape index: {}]   ;;  %s18816_s6 = inlined_call_operand.hbm [shape: f32[32,32], index: 6, kind: input, shape index: {}]   ;;  %s18817_s7 = inlined_call_operand.hbm [shape: f32[32,29], index: 7, kind: input, shape index: {}]   ;;  %s18818_s8 = inlined_call_operand.hbm [shape: f32[16,32], index: 8, kind: input, shape index: {}]   ;;  %s18819_s9 = inlined_call_operand.vmem [shape: f32[32,16], index: 9, kind: input, shape index: {}]   ;;  %s18820_s10 = inlined_call_operand.hbm [shape: f32[16,16], index: 10, kind: input, shape index: {}]   ;;  %s18821_s11 = inlined_call_operand.hbm [shape: f32[16,13], index: 11, kind: input, shape index: {}]   ;;  %s18822_s12 = inlined_call_operand.hbm [shape: f32[8,16], index: 12, kind: input, shape index: {}]   ;;  %s18823_s13 = inlined_call_operand.vmem [shape: f32[16,8], index: 13, kind: input, shape index: {}]   ;;  %s18824_s14 = inlined_call_operand.hbm [shape: f32[8,8], index: 14, kind: input, shape index: {}]   ;;  %s18825_s15 = inlined_call_operand.hbm [shape: f32[8,5], index: 15, kind: input, shape index: {}]   ;;  %s18826_s16 = inlined_call_operand.vmem [shape: f32[8,8], index: 16, kind: input, shape index: {}]   ;;  %s18827_s17 = inlined_call_operand.vmem [shape: f32[8,4], index: 17, kind: input, shape index: {}]   ;;  %s18828_s18 = inlined_call_operand.vmem [shape: f32[8,4], index: 18, kind: input, shape index: {}]   ;;  %s18829_s19 = inlined_call_operand.vmem [shape: f32[4,1], index: 19, kind: input, shape index: {}]   ;;  %s18830_s20 = inlined_call_operand.vmem [shape: f32[2,4,16], index: 20, kind: output, shape index: {}]  }
   0x1   :  { %19110 = sst [smem:[#allocation216_spill]] %s18810_s0 }
   0x2   :  { %19111 = sst [smem:[#allocation217_spill]] %s18811_s1 }
   0x3   :  { %19112 = sst [smem:[#allocation218_spill]] %s18812_s2 }
   0x4   :  { %19113 = sst [smem:[#allocation219_spill]] %s18813_s3 }
   0x5   :  { %19114 = sst [smem:[#allocation220_spill]] %s18814_s4 }
   0x6   :  { %19115 = sst [smem:[#allocation221_spill]] %s18815_s5 }
   0x7   :  { %19116 = sst [smem:[#allocation222_spill]] %s18816_s6 }
   0x8   :  { %19117 = sst [smem:[#allocation223_spill]] %s18817_s7 }
   0x9   :  { %19118 = sst [smem:[#allocation224_spill]] %s18818_s8 }
   0xa   :  { %19119 = sst [smem:[#allocation225_spill]] %s18819_s9 }
   0xb   :  { %19120 = sst [smem:[#allocation226_spill]] %s18820_s10 }
   0xc   :  { %19121 = sst [smem:[#allocation227_spill]] %s18823_s13 }
   0xd   :  { %19122 = sst [smem:[#allocation228_spill]] %s18826_s16 }
   0xe   :  { %19123 = sst [smem:[#allocation229_spill]] %s18827_s17 }
   0xf   :  { %19124 = sst [smem:[#allocation230_spill]] %s18828_s18 }
  0x10   :  { %19125 = sst [smem:[#allocation231_spill]] %s18829_s19 }
  0x11   :  { %19126 = sst [smem:[#allocation232_spill]] %s18830_s20 }
  0x12   :  { %25 = vsyncpa [#allocation3], 0 }
  0x13   :  { %27 = vsyncpa [#allocation3 + $0x1], 0 }
  0x14   :  { %28 = vsyncpa [#allocation5], 0 }
  0x15   :  { %30 = vsyncpa [#allocation5 + $0x1], 0 }
  0x16   :  { %31 = vsyncpa [#allocation8], 0 }
  0x17   :  { %32 = vsyncpa [#allocation11], 0 }
  0x18   :  { %33 = vsyncpa [#allocation14], 0 }
  0x19   :  { %34 = vsyncpa [#allocation17], 0 }
  0x1a   :  { %35 = vsyncpa [#allocation20], 0 }
  0x1b   :  { %36 = vsyncpa [#allocation23], 0  ;;  %s12915_s1 = smov 0   ;;  %s12917_s22 = smov 0  }
  0x1c   :  { %s12919_s23 = smov 0   ;;  %s12921_s24 = smov 0  }
  0x1d LB: > { %s12778_s2 = smov [#allocation6]   ;;  %s12936_s3 = sadd.s32 4294967295, %s12776_s24   ;;  %s12776_s24 = sphi %s12921_s24, %s20088_s24   ;;  %s12772_s23 = sphi %s12919_s23, %s20087_s23   ;;  %s12768_s22 = sphi %s12917_s22, %s20086_s22   ;;  %s12764_s1 = sphi %s12915_s1, %s20085_s1  }
  0x1e   : > { %s515_s25 = sshll.u32 %s12778_s2, 4  ;;  %19127 = sst [smem:[#allocation33_spill]] %s12936_s3  ;;  %s12941_s25 = int_to_ptr.vmem [resolvable:$true] %s515_s25 }
  0x1f   : > { %p10304_p0 = scmp.ge.s32.totalorder %s12776_s24, 1  ;;  %p18842_p1 = scmp.eq.s32.totalorder %s12936_s3, 0 }
  0x20   : > { %p503_p2 = scmp.lt.s32.totalorder %s12776_s24, 3  ;;  %s12779_s27 = smov [#allocation7]  }
  0x21   : > { %s528_s28 = sshll.u32 %s12779_s27, 4  ;;  %s12780_s29 = smov [#allocation10]   ;;  %s12955_s28 = int_to_ptr.vmem [resolvable:$true] %s528_s28 }
  0x22   : > { %p12943_p3 = pnand %p10304_p0, %p503_p2  ;;  %s554_s30 = sshll.u32 %s12780_s29, 4  ;;  %s12957_s30 = int_to_ptr.vmem [resolvable:$true] %s554_s30 }
  0x23   : > { %s19131_s2 = sld [smem:[#allocation218_spill]] }
  0x24   : > { %s19128_s26 = scalar_select %p12943_p3, 1, 0 }
  0x25   : > { %p11807_p4 = pneg %p12943_p3 }
  0x26   : > { %19129 = sst [smem:[#allocation34_spill]] %s19128_s26 }
  0x27   : > { %p12951_p5 = pnand %p11807_p4, %p18842_p1 }
  0x29   : > { %s12314_s20 = scalar_lea.hbm %s19131_s2, 1024  ;;  %p12967_p7 = pneg %p12951_p5 }
  0x2a   : > { %p12315_p6 = scmp.ne.s32.totalorder %s19131_s2, %s12314_s20  ;;  %p12321_p10 = scmp.lt.u32.totalorder %s12314_s20, %s19131_s2 }
  0x2c   : > { %p12317_p8 = pnand %p12967_p7, %p12315_p6 }
  0x2e   : > { %p12318_p9 = pneg %p12317_p8 }
  0x30   : > { %p12323_p11 = pnand %p12321_p10, %p12318_p9 }
  0x32   : > { %12326 = shalt.err (!%p12323_p11)
}
  0x33   : > { %s12327_s18 = scalar_lea.vmem %s12941_s25, 1024  ;;  %p12335_p2 = scmp.lt.s32.totalorder %s12941_s25, %s12941_s25 }
  0x34   : > { %p12328_p12 = scmp.ne.s32.totalorder %s12941_s25, %s12327_s18  ;;  %p12336_p4 = scmp.lt.s32.totalorder %s12327_s18, %s12327_s18 }
  0x36   : > { %p12330_p13 = pnand %p12328_p12, %p12967_p7  ;;  %p12337_p6 = por %p12336_p4, %p12335_p2 }
  0x38   : > { %p12331_p0 = pneg %p12330_p13 }
  0x3a   : > { %p12338_p8 = pnand %p12337_p6, %p12331_p0 }
  0x3c   : > { %12341 = shalt.err (!%p12338_p8)
}
  0x3d   : > { %s18844_s19 = smov 128   ;;  %s18846_s17 = smov 8  }
  0x3e   : > { %11810 = dma.hbm_to_vmem [thread:$0]  (!%p12951_p5), %s19131_s2, 1024, %s12941_s25, [#allocation5], %s18844_s19, %s18844_s19, %s18846_s17  }
  0x3f   : > { %s19133_s16 = sld [smem:[#allocation219_spill]] }
  0x45   : > { %s12342_s18 = scalar_lea.hbm %s19133_s16, 1024 }
  0x46   : > { %p12343_p9 = scmp.ne.s32.totalorder %s19133_s16, %s12342_s18  ;;  %p12349_p12 = scmp.lt.u32.totalorder %s12342_s18, %s19133_s16 }
  0x48   : > { %p12345_p10 = pnand %p12343_p9, %p12967_p7 }
  0x4a   : > { %p12346_p11 = pneg %p12345_p10 }
  0x4c   : > { %p12351_p13 = pnand %p12349_p12, %p12346_p11 }
  0x4e   : > { %12354 = shalt.err (!%p12351_p13)
}
  0x4f   : > { %s12355_s25 = scalar_lea.vmem %s12955_s28, 1024  ;;  %p12363_p6 = scmp.lt.s32.totalorder %s12955_s28, %s12955_s28 }
  0x50   : > { %p12356_p0 = scmp.ne.s32.totalorder %s12955_s28, %s12355_s25  ;;  %p12364_p8 = scmp.lt.s32.totalorder %s12355_s25, %s12355_s25 }
  0x52   : > { %p12358_p2 = pnand %p12356_p0, %p12967_p7  ;;  %p12365_p9 = por %p12364_p8, %p12363_p6 }
  0x54   : > { %p12359_p4 = pneg %p12358_p2 }
  0x56   : > { %p12366_p10 = pnand %p12365_p9, %p12359_p4 }
  0x58   : > { %12369 = shalt.err (!%p12366_p10)
}
  0x59   : > { %11813 = dma.hbm_to_vmem [thread:$0]  (!%p12951_p5), %s19133_s16, 1024, %s12955_s28, [#allocation8], %s18844_s19, %s18844_s19, %s18846_s17  }
  0x5a   : > { %s19134_s5 = sld [smem:[#allocation221_spill]] }
  0x60   : > { %s12370_s20 = scalar_lea.hbm %s19134_s5, 1024 }
  0x61   : > { %p12371_p11 = scmp.ne.s32.totalorder %s19134_s5, %s12370_s20  ;;  %p12377_p0 = scmp.lt.u32.totalorder %s12370_s20, %s19134_s5 }
  0x63   : > { %p12373_p12 = pnand %p12371_p11, %p12967_p7 }
  0x65   : > { %p12374_p13 = pneg %p12373_p12 }
  0x67   : > { %p12379_p2 = pnand %p12377_p0, %p12374_p13 }
  0x69   : > { %12382 = shalt.err (!%p12379_p2)
}
  0x6a   : > { %s12383_s28 = scalar_lea.vmem %s12957_s30, 1024  ;;  %p12391_p9 = scmp.lt.s32.totalorder %s12957_s30, %s12957_s30 }
  0x6b   : > { %p12384_p4 = scmp.ne.s32.totalorder %s12957_s30, %s12383_s28  ;;  %p12392_p10 = scmp.lt.s32.totalorder %s12383_s28, %s12383_s28 }
  0x6d   : > { %p12386_p6 = pnand %p12384_p4, %p12967_p7  ;;  %p12393_p11 = por %p12392_p10, %p12391_p9 }
  0x6f   : > { %p12387_p8 = pneg %p12386_p6 }
  0x71   : > { %p12394_p12 = pnand %p12393_p11, %p12387_p8 }
  0x73   : > { %12397 = shalt.err (!%p12394_p12)
}
  0x74   : > { %11819 = dma.hbm_to_vmem [thread:$0]  (!%p12951_p5), %s19134_s5, 1024, %s12957_s30, [#allocation11], %s18844_s19, %s18844_s19, %s18846_s17  }
  0x75   : > { %s12783_s13 = smov [#allocation13]   ;;  %s12784_s26 = smov [#allocation16]  }
  0x76   : > { %s580_s3 = sshll.u32 %s12783_s13, 4  ;;  %s609_s20 = sshll.u32 %s12784_s26, 4  ;;  %s581_s3 = int_to_ptr.vmem [resolvable:$true] %s580_s3  ;;  %s610_s20 = int_to_ptr.vmem [resolvable:$true] %s609_s20 }
  0x77   : > { %s19135_s7 = sld [smem:[#allocation223_spill]] }
  0x7d   : > { %s12398_s29 = scalar_lea.hbm %s19135_s7, 512 }
  0x7e   : > { %p12399_p13 = scmp.ne.s32.totalorder %s19135_s7, %s12398_s29  ;;  %p12405_p4 = scmp.lt.u32.totalorder %s12398_s29, %s19135_s7 }
  0x80   : > { %p12401_p0 = pnand %p12399_p13, %p12967_p7 }
  0x82   : > { %p12402_p2 = pneg %p12401_p0 }
  0x84   : > { %p12407_p6 = pnand %p12405_p4, %p12402_p2 }
  0x86   : > { %12410 = shalt.err (!%p12407_p6)
}
  0x87   : > { %s12411_s30 = scalar_lea.vmem %s581_s3, 512  ;;  %p12419_p11 = scmp.lt.s32.totalorder %s581_s3, %s581_s3 }
  0x88   : > { %p12412_p8 = scmp.ne.s32.totalorder %s581_s3, %s12411_s30  ;;  %p12420_p12 = scmp.lt.s32.totalorder %s12411_s30, %s12411_s30 }
  0x8a   : > { %p12414_p9 = pnand %p12412_p8, %p12967_p7  ;;  %p12421_p1 = por %p12420_p12, %p12419_p11 }
  0x8c   : > { %p12415_p10 = pneg %p12414_p9 }
  0x8e   : > { %p12422_p3 = pnand %p12421_p1, %p12415_p10 }
  0x90   : > { %12425 = shalt.err (!%p12422_p3)
}
  0x91   : > { %11825 = dma.hbm_to_vmem [thread:$0]  (!%p12951_p5), %s19135_s7, 512, %s581_s3, [#allocation14], %s18844_s19, %s18844_s19, %s18846_s17  }
  0x92   : > { %s19136_s10 = sld [smem:[#allocation226_spill]] }
  0x98   : > { %s12426_s0 = scalar_lea.hbm %s19136_s10, 256 }
  0x99   : > { %p12427_p1 = scmp.ne.s32.totalorder %s19136_s10, %s12426_s0  ;;  %p12433_p0 = scmp.lt.u32.totalorder %s12426_s0, %s19136_s10 }
  0x9b   : > { %p12429_p3 = pnand %p12427_p1, %p12967_p7 }
  0x9d   : > { %p12430_p13 = pneg %p12429_p3 }
  0x9f   : > { %p12435_p2 = pnand %p12433_p0, %p12430_p13 }
  0xa1   : > { %12438 = shalt.err (!%p12435_p2)
}
  0xa2   : > { %s12439_s25 = scalar_lea.vmem %s610_s20, 256  ;;  %p12447_p9 = scmp.lt.s32.totalorder %s610_s20, %s610_s20 }
  0xa3   : > { %p12440_p4 = scmp.ne.s32.totalorder %s610_s20, %s12439_s25  ;;  %p12448_p10 = scmp.lt.s32.totalorder %s12439_s25, %s12439_s25 }
  0xa5   : > { %p12442_p6 = pnand %p12440_p4, %p12967_p7  ;;  %p12449_p11 = por %p12448_p10, %p12447_p9 }
  0xa7   : > { %p12443_p8 = pneg %p12442_p6 }
  0xa9   : > { %p12450_p12 = pnand %p12449_p11, %p12443_p8 }
  0xab   : > { %12453 = shalt.err (!%p12450_p12)
}
  0xac   : > { %11831 = dma.hbm_to_vmem [thread:$0]  (!%p12951_p5), %s19136_s10, 256, %s610_s20, [#allocation17], %s18844_s19, %s18844_s19, %s18846_s17  }
  0xad   : > { %s12785_s2 = smov [#allocation19]   ;;  %s12786_s13 = smov [#allocation9]  }
  0xae   : > { %s636_s9 = sshll.u32 %s12785_s2, 4  ;;  %s541_s26 = sshll.u32 %s12786_s13, 4  ;;  %s637_s9 = int_to_ptr.vmem [resolvable:$true] %s636_s9  ;;  %s542_s26 = int_to_ptr.vmem [resolvable:$true] %s541_s26 }
  0xaf   : > { %s12454_s29 = scalar_lea.hbm %s18822_s12, 128 }
  0xb0   : > { %p12455_p1 = scmp.ne.s32.totalorder %s18822_s12, %s12454_s29  ;;  %p12461_p0 = scmp.lt.u32.totalorder %s12454_s29, %s18822_s12 }
  0xb2   : > { %p12457_p3 = pnand %p12455_p1, %p12967_p7 }
  0xb4   : > { %p12458_p13 = pneg %p12457_p3 }
  0xb6   : > { %p12463_p2 = pnand %p12461_p0, %p12458_p13 }
  0xb8   : > { %12466 = shalt.err (!%p12463_p2)
}
  0xb9   : > { %s12467_s20 = scalar_lea.vmem %s637_s9, 128  ;;  %p12475_p9 = scmp.lt.s32.totalorder %s637_s9, %s637_s9 }
  0xba   : > { %p12468_p4 = scmp.ne.s32.totalorder %s637_s9, %s12467_s20  ;;  %p12476_p10 = scmp.lt.s32.totalorder %s12467_s20, %s12467_s20 }
  0xbc   : > { %p12470_p6 = pnand %p12468_p4, %p12967_p7  ;;  %p12477_p11 = por %p12476_p10, %p12475_p9 }
  0xbe   : > { %p12471_p8 = pneg %p12470_p6 }
  0xc0   : > { %p12478_p12 = pnand %p12477_p11, %p12471_p8 }
  0xc2   : > { %12481 = shalt.err (!%p12478_p12)
}
  0xc3   : > { %11837 = dma.hbm_to_vmem [thread:$0]  (!%p12951_p5), %s18822_s12, 128, %s637_s9, [#allocation20]  }
  0xc4   : > { %s19137_s21 = sld [smem:[#allocation220_spill]] }
  0xca   : > { %s12482_s29 = scalar_lea.hbm %s19137_s21, 512 }
  0xcb   : > { %p12483_p1 = scmp.ne.s32.totalorder %s19137_s21, %s12482_s29  ;;  %p12489_p0 = scmp.lt.u32.totalorder %s12482_s29, %s19137_s21 }
  0xcd   : > { %p12485_p3 = pnand %p12483_p1, %p12967_p7 }
  0xcf   : > { %p12486_p13 = pneg %p12485_p3 }
  0xd1   : > { %p12491_p2 = pnand %p12489_p0, %p12486_p13 }
  0xd3   : > { %12494 = shalt.err (!%p12491_p2)
}
  0xd4   : > { %s12495_s20 = scalar_lea.vmem %s542_s26, 512  ;;  %p12503_p9 = scmp.lt.s32.totalorder %s542_s26, %s542_s26 }
  0xd5   : > { %p12496_p4 = scmp.ne.s32.totalorder %s542_s26, %s12495_s20  ;;  %p12504_p10 = scmp.lt.s32.totalorder %s12495_s20, %s12495_s20 }
  0xd7   : > { %p12498_p6 = pnand %p12496_p4, %p12967_p7  ;;  %p12505_p11 = por %p12504_p10, %p12503_p9 }
  0xd9   : > { %p12499_p8 = pneg %p12498_p6 }
  0xdb   : > { %p12506_p12 = pnand %p12505_p11, %p12499_p8 }
  0xdd   : > { %12509 = shalt.err (!%p12506_p12)
}
  0xde   : > { %11816 = dma.hbm_to_vmem [thread:$0]  (!%p12951_p5), %s19137_s21, 512, %s542_s26, [#allocation8], %s18844_s19, %s18844_s19, %s18846_s17  }
  0xdf   : > { %s12787_s2 = smov [#allocation12]   ;;  %s12788_s0 = smov [#allocation15]  }
  0xe0   : > { %s567_s13 = sshll.u32 %s12787_s2, 4  ;;  %s593_s29 = sshll.u32 %s12788_s0, 4  ;;  %s568_s13 = int_to_ptr.vmem [resolvable:$true] %s567_s13  ;;  %s594_s29 = int_to_ptr.vmem [resolvable:$true] %s593_s29 }
  0xe1   : > { %s19138_s6 = sld [smem:[#allocation222_spill]] }
  0xe7   : > { %s12510_s25 = scalar_lea.hbm %s19138_s6, 512 }
  0xe8   : > { %p12511_p1 = scmp.ne.s32.totalorder %s19138_s6, %s12510_s25  ;;  %p12517_p0 = scmp.lt.u32.totalorder %s12510_s25, %s19138_s6 }
  0xea   : > { %p12513_p3 = pnand %p12511_p1, %p12967_p7 }
  0xec   : > { %p12514_p13 = pneg %p12513_p3 }
  0xee   : > { %p12519_p2 = pnand %p12517_p0, %p12514_p13 }
  0xf0   : > { %12522 = shalt.err (!%p12519_p2)
}
  0xf1   : > { %s12523_s26 = scalar_lea.vmem %s568_s13, 512  ;;  %p12531_p9 = scmp.lt.s32.totalorder %s568_s13, %s568_s13 }
  0xf2   : > { %p12524_p4 = scmp.ne.s32.totalorder %s568_s13, %s12523_s26  ;;  %p12532_p10 = scmp.lt.s32.totalorder %s12523_s26, %s12523_s26 }
  0xf4   : > { %p12526_p6 = pnand %p12524_p4, %p12967_p7  ;;  %p12533_p11 = por %p12532_p10, %p12531_p9 }
  0xf6   : > { %p12527_p8 = pneg %p12526_p6 }
  0xf8   : > { %p12534_p12 = pnand %p12533_p11, %p12527_p8 }
  0xfa   : > { %12537 = shalt.err (!%p12534_p12)
}
  0xfb   : > { %11822 = dma.hbm_to_vmem [thread:$0]  (!%p12951_p5), %s19138_s6, 512, %s568_s13, [#allocation11], %s18844_s19, %s18844_s19, %s18846_s17  }
  0xfc   : > { %s19139_s8 = sld [smem:[#allocation224_spill]] }
 0x102   : > { %s12538_s18 = scalar_lea.hbm %s19139_s8, 256 }
 0x103   : > { %p12539_p1 = scmp.ne.s32.totalorder %s19139_s8, %s12538_s18  ;;  %p12545_p0 = scmp.lt.u32.totalorder %s12538_s18, %s19139_s8 }
 0x105   : > { %p12541_p3 = pnand %p12539_p1, %p12967_p7 }
 0x107   : > { %p12542_p13 = pneg %p12541_p3 }
 0x109   : > { %p12547_p2 = pnand %p12545_p0, %p12542_p13 }
 0x10b   : > { %12550 = shalt.err (!%p12547_p2)
}
 0x10c   : > { %s12551_s9 = scalar_lea.vmem %s594_s29, 256  ;;  %p12559_p9 = scmp.lt.s32.totalorder %s594_s29, %s594_s29 }
 0x10d   : > { %p12552_p4 = scmp.ne.s32.totalorder %s594_s29, %s12551_s9  ;;  %p12560_p10 = scmp.lt.s32.totalorder %s12551_s9, %s12551_s9 }
 0x10f   : > { %p12554_p6 = pnand %p12552_p4, %p12967_p7  ;;  %p12561_p11 = por %p12560_p10, %p12559_p9 }
 0x111   : > { %p12555_p8 = pneg %p12554_p6 }
 0x113   : > { %p12562_p12 = pnand %p12561_p11, %p12555_p8 }
 0x115   : > { %12565 = shalt.err (!%p12562_p12)
}
 0x116   : > { %11828 = dma.hbm_to_vmem [thread:$0]  (!%p12951_p5), %s19139_s8, 256, %s594_s29, [#allocation14], %s18844_s19, %s18844_s19, %s18846_s17  }
 0x117   : > { %s12789_s5 = smov [#allocation18]   ;;  %s12790_s2 = smov [#allocation21]  }
 0x118   : > { %s622_s30 = sshll.u32 %s12789_s5, 4  ;;  %s650_s0 = sshll.u32 %s12790_s2, 4  ;;  %s623_s30 = int_to_ptr.vmem [resolvable:$true] %s622_s30  ;;  %s651_s0 = int_to_ptr.vmem [resolvable:$true] %s650_s0 }
 0x119   : > { %s12566_s25 = scalar_lea.hbm %s18821_s11, 256 }
 0x11a   : > { %p12567_p1 = scmp.ne.s32.totalorder %s18821_s11, %s12566_s25  ;;  %p12573_p0 = scmp.lt.u32.totalorder %s12566_s25, %s18821_s11 }
 0x11c   : > { %p12569_p3 = pnand %p12567_p1, %p12967_p7 }
 0x11e   : > { %p12570_p13 = pneg %p12569_p3 }
 0x120   : > { %p12575_p2 = pnand %p12573_p0, %p12570_p13 }
 0x122   : > { %12578 = shalt.err (!%p12575_p2)
}
 0x123   : > { %s12579_s29 = scalar_lea.vmem %s623_s30, 256  ;;  %p12587_p9 = scmp.lt.s32.totalorder %s623_s30, %s623_s30 }
 0x124   : > { %p12580_p4 = scmp.ne.s32.totalorder %s623_s30, %s12579_s29  ;;  %p12588_p10 = scmp.lt.s32.totalorder %s12579_s29, %s12579_s29 }
 0x126   : > { %p12582_p6 = pnand %p12580_p4, %p12967_p7  ;;  %p12589_p11 = por %p12588_p10, %p12587_p9 }
 0x128   : > { %p12583_p8 = pneg %p12582_p6 }
 0x12a   : > { %p12590_p12 = pnand %p12589_p11, %p12583_p8 }
 0x12c   : > { %12593 = shalt.err (!%p12590_p12)
}
 0x12d   : > { %11834 = dma.hbm_to_vmem [thread:$0]  (!%p12951_p5), %s18821_s11, 256, %s623_s30, [#allocation17], %s18844_s19, %s18844_s19, %s18846_s17  }
 0x12e   : > { %s12594_s28 = scalar_lea.hbm %s18824_s14, 128 }
 0x12f   : > { %p12595_p1 = scmp.ne.s32.totalorder %s18824_s14, %s12594_s28  ;;  %p12601_p0 = scmp.lt.u32.totalorder %s12594_s28, %s18824_s14 }
 0x131   : > { %p12597_p3 = pnand %p12595_p1, %p12967_p7 }
 0x133   : > { %p12598_p13 = pneg %p12597_p3 }
 0x135   : > { %p12603_p2 = pnand %p12601_p0, %p12598_p13 }
 0x137   : > { %12606 = shalt.err (!%p12603_p2)
}
 0x138   : > { %s12607_s13 = scalar_lea.vmem %s651_s0, 128  ;;  %p12615_p9 = scmp.lt.s32.totalorder %s651_s0, %s651_s0 }
 0x139   : > { %p12608_p4 = scmp.ne.s32.totalorder %s651_s0, %s12607_s13  ;;  %p12616_p10 = scmp.lt.s32.totalorder %s12607_s13, %s12607_s13 }
 0x13b   : > { %p12610_p6 = pnand %p12608_p4, %p12967_p7  ;;  %p12617_p11 = por %p12616_p10, %p12615_p9 }
 0x13d   : > { %p12611_p8 = pneg %p12610_p6 }
 0x13f   : > { %p12618_p12 = pnand %p12617_p11, %p12611_p8 }
 0x141   : > { %12621 = shalt.err (!%p12618_p12)
}
 0x142   : > { %11840 = dma.hbm_to_vmem [thread:$0]  (!%p12951_p5), %s18824_s14, 128, %s651_s0, [#allocation20]  }
 0x143   : > { %s12791_s26 = smov [#allocation22]   ;;  %s12622_s28 = scalar_lea.hbm %s18825_s15, 128 }
 0x144   : > { %s661_s5 = sshll.u32 %s12791_s26, 4  ;;  %p12623_p1 = scmp.ne.s32.totalorder %s18825_s15, %s12622_s28  ;;  %s662_s5 = int_to_ptr.vmem [resolvable:$true] %s661_s5 }
 0x145   : > { %p12629_p0 = scmp.lt.u32.totalorder %s12622_s28, %s18825_s15 }
 0x146   : > { %p12625_p3 = pnand %p12623_p1, %p12967_p7 }
 0x148   : > { %p12626_p13 = pneg %p12625_p3 }
 0x14a   : > { %p12631_p2 = pnand %p12629_p0, %p12626_p13 }
 0x14c   : > { %12634 = shalt.err (!%p12631_p2)
}
 0x14d   : > { %s12635_s0 = scalar_lea.vmem %s662_s5, 128  ;;  %p12643_p9 = scmp.lt.s32.totalorder %s662_s5, %s662_s5 }
 0x14e   : > { %p12636_p4 = scmp.ne.s32.totalorder %s662_s5, %s12635_s0  ;;  %p12644_p10 = scmp.lt.s32.totalorder %s12635_s0, %s12635_s0 }
 0x150   : > { %p12638_p6 = pnand %p12636_p4, %p12967_p7  ;;  %p12645_p11 = por %p12644_p10, %p12643_p9 }
 0x152   : > { %p12639_p8 = pneg %p12638_p6 }
 0x154   : > { %p12646_p12 = pnand %p12645_p11, %p12639_p8 }
 0x156   : > { %12649 = shalt.err (!%p12646_p12)
}
 0x157   : > { %s19140_s27 = sld [smem:[#allocation33_spill]]  ;;  %s13224_s29 = sadd.s32 1, %s12776_s24  }
 0x158   : > { %11843 = dma.hbm_to_vmem [thread:$0]  (!%p12951_p5), %s18825_s15, 128, %s662_s5, [#allocation23]  }
 0x159   : > { %s49_s4 = sadd.s32 1, %s12772_s23  ;;  %s46_s26 = ssub.s32 %s12776_s24, %s13224_s29 }
 0x15a   : > { %p56_p7 = scmp.ne.s32.totalorder %s12772_s23, %s12768_s22  ;;  %p47_p1 = scmp.eq.s32.totalorder %s46_s26, 0 }
 0x15b   : > { %p57_p3 = scmp.eq.s32.totalorder %s12776_s24, 0  ;;  %p62_p13 = scmp.ne.s32.totalorder %s12768_s22, %s12764_s1 }
 0x15c   : > { %p11863_p0 = scmp.lt.s32.totalorder %s12776_s24, 2  ;;  %s684_s28 = sand.u32 1, %s12772_s23  }
 0x15d   : > { %s13236_s2 = scalar_select %p47_p1, %s12772_s23, %s49_s4  }
 0x15e   : > { %p58_p2 = por %p57_p3, %p56_p7  ;;  %p19141_p4 = scmp.eq.s32.totalorder %s19140_s27, 0 }
 0x15f   : > { %s10609_s5 = sshll.u32 %s12776_s24, 12  ;;  %s13246_s25 = sshll.u32 %s684_s28, 8 }
 0x160   : > { %p13240_p6 = por %p19141_p4, %p62_p13  ;;  %s19143_s9 = sld [smem:[#allocation216_spill]] }
 0x161   : > { %s688_s1 = scalar_lea.vmem [#allocation2], %s13246_s25  ;;  %p13254_p5 = pnand %p11863_p0, %p58_p2 }
 0x162   : > { %s696_s13 = sshll.u32 %s688_s1, 4  ;;  %s19145_s26 = sld [smem:[#allocation217_spill]]  ;;  %s13258_s13 = int_to_ptr.vmem [resolvable:$true] %s696_s13 }
 0x163   : > { %s13265_s20 = scalar_lea.sflag [#allocation3], %s684_s28  ;;  %p12652_p9 = pneg %p13254_p5 }
 0x166   : > { %s13251_s0 = scalar_lea.hbm %s19143_s9, %s10609_s5  ;;  %s12655_s6 = scalar_lea.hbm %s19143_s9, 8192 }
 0x167   : > { %s12650_s19 = scalar_lea.hbm %s13251_s0, 4096  ;;  %p12656_p12 = scmp.lt.u32.totalorder %s13251_s0, %s19143_s9 }
 0x168   : > { %s13263_s3 = scalar_lea.hbm %s19145_s26, %s10609_s5  ;;  %p12651_p8 = scmp.ne.s32.totalorder %s13251_s0, %s12650_s19 }
 0x169   : > { %p12657_p7 = scmp.lt.u32.totalorder %s12655_s6, %s12650_s19  ;;  %p12659_p3 = scmp.lt.u32.totalorder %s12650_s19, %s13251_s0 }
 0x16a   : > { %p12653_p10 = pnand %p12652_p9, %p12651_p8 }
 0x16b   : > { %p12658_p1 = por %p12657_p7, %p12656_p12 }
 0x16c   : > { %p12654_p11 = pneg %p12653_p10 }
 0x16d   : > { %p12660_p13 = por %p12659_p3, %p12658_p1 }
 0x16f   : > { %p12661_p0 = pnand %p12660_p13, %p12654_p11 }
 0x171   : > { %12664 = shalt.err (!%p12661_p0)
}
 0x172   : > { %s12665_s28 = scalar_lea.vmem %s13258_s13, 4096  ;;  %s12792_s17 = smov [#allocation2]  }
 0x173   : > { %p12666_p2 = scmp.ne.s32.totalorder %s13258_s13, %s12665_s28  ;;  %s12670_s5 = sshll.u32 %s12792_s17, 4  ;;  %s12671_s5 = int_to_ptr.vmem [resolvable:$false] %s12670_s5 }
 0x174   : > { %s12672_s7 = scalar_lea.vmem %s12671_s5, 8192  ;;  %p12673_p10 = scmp.lt.s32.totalorder %s13258_s13, %s12671_s5 }
 0x175   : > { %p12668_p4 = pnand %p12666_p2, %p12652_p9  ;;  %p12674_p12 = scmp.lt.s32.totalorder %s12672_s7, %s12665_s28 }
 0x177   : > { %p12669_p8 = pneg %p12668_p4  ;;  %p12675_p7 = por %p12674_p12, %p12673_p10 }
 0x179   : > { %p12676_p1 = pnand %p12675_p7, %p12669_p8 }
 0x17b   : > { %12679 = shalt.err (!%p12676_p1)
}
 0x17c   : > { %s19146_s6 = smov 8   ;;  %s19147_s8 = smov 128  }
 0x17d   : > { %11847 = dma.hbm_to_vmem [thread:$0]  (!%p13254_p5), %s13251_s0, 4096, %s13258_s13, %s13265_s20, %s19147_s8, %s19147_s8, %s19146_s6  }
 0x17e   : > { %s710_s19 = scalar_lea.vmem [#allocation4], %s13246_s25  ;;  %s706_s4 = sand.u32 1, %s12776_s24  }
 0x17f   : > { %s718_s27 = sshll.u32 %s710_s19, 4  ;;  %s13300_s1 = scalar_lea.sflag [#allocation5], %s706_s4  ;;  %s13298_s27 = int_to_ptr.vmem [resolvable:$true] %s718_s27 }
 0x180   : > { %s12680_s28 = scalar_lea.hbm %s13263_s3, 4096  ;;  %s12685_s7 = scalar_lea.hbm %s19145_s26, 8192 }
 0x181   : > { %p12681_p11 = scmp.ne.s32.totalorder %s13263_s3, %s12680_s28  ;;  %p12686_p0 = scmp.lt.u32.totalorder %s13263_s3, %s19145_s26 }
 0x182   : > { %p12687_p2 = scmp.lt.u32.totalorder %s12685_s7, %s12680_s28  ;;  %p12689_p8 = scmp.lt.u32.totalorder %s12680_s28, %s13263_s3 }
 0x183   : > { %p12683_p3 = pnand %p12681_p11, %p12652_p9 }
 0x184   : > { %p12688_p4 = por %p12687_p2, %p12686_p0 }
 0x185   : > { %p12684_p13 = pneg %p12683_p3 }
 0x186   : > { %p12690_p10 = por %p12689_p8, %p12688_p4 }
 0x188   : > { %p12691_p12 = pnand %p12690_p10, %p12684_p13 }
 0x18a   : > { %12694 = shalt.err (!%p12691_p12)
}
 0x18b   : > { %s12695_s24 = scalar_lea.vmem %s13298_s27, 4096  ;;  %s12793_s25 = smov [#allocation4]  }
 0x18c   : > { %p12696_p7 = scmp.ne.s32.totalorder %s13298_s27, %s12695_s24  ;;  %s12700_s0 = sshll.u32 %s12793_s25, 4  ;;  %s12701_s0 = int_to_ptr.vmem [resolvable:$false] %s12700_s0 }
 0x18d   : > { %s12702_s10 = scalar_lea.vmem %s12701_s0, 8192  ;;  %p12703_p3 = scmp.lt.s32.totalorder %s13298_s27, %s12701_s0 }
 0x18e   : > { %p12698_p1 = pnand %p12696_p7, %p12652_p9  ;;  %p12704_p0 = scmp.lt.s32.totalorder %s12702_s10, %s12695_s24 }
 0x190   : > { %p12699_p11 = pneg %p12698_p1  ;;  %p12705_p2 = por %p12704_p0, %p12703_p3 }
 0x192   : > { %p12706_p4 = pnand %p12705_p2, %p12699_p11 }
 0x194   : > { %12709 = shalt.err (!%p12706_p4)
}
 0x195   : > { %11850 = dma.hbm_to_vmem [thread:$0]  (!%p13254_p5), %s13263_s3, 4096, %s13298_s27, %s13300_s1, %s19147_s8, %s19147_s8, %s19146_s6  }
 0x196   : > { %s19148_s9 = sld [smem:[#allocation34_spill]] }
 0x19c   : > { %p19149_p9 = scmp.ne.s32.totalorder %s19148_s9, 0 }
 0x19e   : > { %730 = sbr.rel (%p19149_p9) target bundleno = 6188 (0x182c), region = 100 }
 0x1a5   : > { %s732_s13 = sand.u32 1, %s12768_s22  }
 0x1a6   : > { %s10327_s20 = sshll.u32 %s732_s13, 8  ;;  %s733_s19 = scalar_lea.sflag [#allocation3], %s732_s13 }
 0x1a7   : > { %s13332_s4 = scalar_lea.vmem [#allocation2], %s10327_s20 }
 0x1a8   : > { %12727 = dma.done.wait (%p13240_p6), %s733_s19, 4096  }
 0x1a9   : > { %12729 = vsyncadd (%p13240_p6), %s733_s19, 4294963200  ;;  %s19150_s30 = sld [smem:[#allocation33_spill]]  ;;  %s13339_s3 = scalar_lea.vmem [#allocation4], %s10327_s20 }
 0x1af   : > { %s741_s28 = sand.u32 1, %s19150_s30  }
 0x1b0   : > { %s742_s17 = scalar_lea.sflag [#allocation5], %s741_s28 }
 0x1b1   : > { %12731 = dma.done.wait (%p13240_p6), %s742_s17, 4096  }
 0x1b2   : > { %12733 = vsyncadd (%p13240_p6), %s742_s17, 4294963200  ;;  %p19151_p5 = scmp.eq.s32.totalorder %s19150_s30, 0 }
 0x1b4   : > { %12735 = dma.done.wait (%p19151_p5), [#allocation5], 1024   ;;  %p19152_p13 = pmov %p19151_p5 }
 0x1b5   : > { %p19153_p8 = pmov %p19151_p5 }
 0x1b6   : > { %12737 = vsyncadd (%p19152_p13), [#allocation5], 4294966272 }
 0x1b7   : > { %12739 = dma.done.wait (%p19153_p8), [#allocation8], 1536   ;;  %p19154_p10 = pmov %p19151_p5 }
 0x1b8   : > { %p19155_p12 = pmov %p19151_p5 }
 0x1b9   : > { %12741 = vsyncadd (%p19154_p10), [#allocation8], 4294965760 }
 0x1ba   : > { %12743 = dma.done.wait (%p19155_p12), [#allocation11], 1536   ;;  %p19156_p7 = pmov %p19151_p5 }
 0x1bb   : > { %p19157_p6 = pmov %p19151_p5 }
 0x1bc   : > { %12745 = vsyncadd (%p19156_p7), [#allocation11], 4294965760 }
 0x1bd   : > { %12747 = dma.done.wait (%p19157_p6), [#allocation14], 768   ;;  %p19158_p1 = pmov %p19151_p5 }
 0x1bf   : > { %12749 = vsyncadd (%p19158_p1), [#allocation14], 4294966528  ;;  %p19159_p11 = pmov %p19158_p1 }
 0x1c0   : > { %p19160_p3 = pmov %p19158_p1 }
 0x1c1   : > { %12751 = dma.done.wait (%p19159_p11), [#allocation17], 512  }
 0x1c2   : > { %12753 = vsyncadd (%p19160_p3), [#allocation17], 4294966784  ;;  %p19161_p0 = pmov %p19158_p1 }
 0x1c4   : > { %12755 = dma.done.wait (%p19161_p0), [#allocation20], 256   ;;  %p19162_p2 = pmov %p19161_p0 }
 0x1c5   : > { %p19163_p4 = pmov %p19161_p0 }
 0x1c6   : > { %12757 = vsyncadd (%p19162_p2), [#allocation20], 4294967040 }
 0x1c7   : > { %12759 = dma.done.wait (%p19163_p4), [#allocation23], 128   ;;  %p19164_p9 = pmov %p19161_p0 }
 0x1c8   : > { %v959_v0 = vld [vmem:[%s13339_s3 + $0x10] sm:$0xff]  ;;  %v957_v1 = vld [vmem:[%s13339_s3] sm:$0xff]  ;;  %v960_v4 = vld [vmem:[%s13339_s3 + $0x18] sm:$0xff]  ;;  %s12794_s18 = smov 64   ;;  %vm1205_vm0 = vcmask 523264   ;;  %vm3984_vm1 = vcmask 498688  }
 0x1c9   : > { %12761 = vsyncadd (%p19164_p9), [#allocation23], 4294967168  ;;  %v991_v2 = vadd.f32 1.0, %v959_v0  ;;  %v989_v3 = vadd.f32 1.0, %v957_v1  ;;  %v958_v5 = vld [vmem:[%s13339_s3 + $0x8] sm:$0xff]  ;;  %v992_v6 = vadd.f32 1.0, %v960_v4 }
 0x1ca   : > { %v990_v7 = vadd.f32 1.0, %v958_v5  ;;  %v962_v8 = vld [vmem:[%s13339_s3 + $0x28] sm:$0xff]  ;;  %v961_v9 = vld [vmem:[%s13339_s3 + $0x20] sm:$0xff]  ;;  %v863_v12 = vld [vmem:[%s13332_s4 + $0x10] sm:$0xff]  ;;  %s12796_s6 = smov 32   ;;  %vm4859_vm3 = vcmask 261120  }
 0x1cb   : > { %v1023_v10 = vmul.f32 0.5, %v991_v2  ;;  %v13379_v11 = vmul.f32 0.5, %v989_v3  ;;  %v13385_v13 = vmul.f32 0.5, %v992_v6  ;;  %v994_v15 = vadd.f32 1.0, %v962_v8  ;;  %v964_v17 = vld [vmem:[%s13339_s3 + $0x38] sm:$0xff]  ;;  %v963_v18 = vld [vmem:[%s13339_s3 + $0x30] sm:$0xff] }
 0x1cc   : > { %v13387_v14 = vmul.f32 0.5, %v990_v7  ;;  %v993_v16 = vadd.f32 1.0, %v961_v9  ;;  %v895_v19 = vadd.f32 1.0, %v863_v12  ;;  %v996_v22 = vadd.f32 1.0, %v964_v17  ;;  %v966_v24 = vld [vmem:[%s13339_s3 + $0x48] sm:$0xff]  ;;  %v965_v25 = vld [vmem:[%s13339_s3 + $0x40] sm:$0xff] }
 0x1cd   : > { %1113 = vrot.lane.b32.xlu1 %v1023_v10, %s12794_s18  ;;  %1109 = vrot.lane.b32.xlu0 %v13379_v11, %s12794_s18  ;;  %v13395_v20 = vmul.f32 0.5, %v994_v15  ;;  %v995_v23 = vadd.f32 1.0, %v963_v18  ;;  %v998_v29 = vadd.f32 1.0, %v966_v24  ;;  %v997_v30 = vadd.f32 1.0, %v965_v25  ;;  %v968_v31 = vld [vmem:[%s13339_s3 + $0x58] sm:$0xff]  ;;  %v967_v32 = vld [vmem:[%s13339_s3 + $0x50] sm:$0xff] }
 0x1ce   : > { %v13397_v21 = vmul.f32 0.5, %v993_v16  ;;  %v13401_v26 = vmul.f32 0.5, %v895_v19  ;;  %v13407_v27 = vmul.f32 0.5, %v996_v22  ;;  %v970_v33 = vld [vmem:[%s13339_s3 + $0x68] sm:$0xff]  ;;  %v861_v34 = vld [vmem:[%s13332_s4] sm:$0xff]  ;;  %v864_v35 = vld [vmem:[%s13332_s4 + $0x18] sm:$0xff] }
 0x1cf   : > { %v13409_v28 = vmul.f32 0.5, %v995_v23  ;;  %v1000_v37 = vadd.f32 1.0, %v968_v31  ;;  %v969_v38 = vld [vmem:[%s13339_s3 + $0x60] sm:$0xff]  ;;  %v862_v39 = vld [vmem:[%s13332_s4 + $0x8] sm:$0xff]  ;;  %v13424_v41 = vmul.f32 0.5, %v998_v29  ;;  %v13426_v42 = vmul.f32 0.5, %v997_v30 }
 0x1d0   : > { %v1272_v36 = vmul.f32 %v1023_v10, %v13401_v26  ;;  %v866_v40 = vld [vmem:[%s13332_s4 + $0x28] sm:$0xff]  ;;  %v999_v43 = vadd.f32 1.0, %v967_v32  ;;  %v893_v44 = vadd.f32 1.0, %v861_v34  ;;  %v865_v45 = vld [vmem:[%s13332_s4 + $0x20] sm:$0xff]  ;;  %v868_v46 = vld [vmem:[%s13332_s4 + $0x38] sm:$0xff]  ;;  %v1002_v47 = vadd.f32 1.0, %v970_v33 }
 0x1d1   : > { %1115 = vrot.lane.b32.xlu1 %v13385_v13, %s12794_s18  ;;  %1111 = vrot.lane.b32.xlu0 %v13387_v14, %s12794_s18  ;;  %v896_v48 = vadd.f32 1.0, %v864_v35  ;;  %v894_v49 = vadd.f32 1.0, %v862_v39  ;;  %v898_v50 = vadd.f32 1.0, %v866_v40  ;;  %v867_v51 = vld [vmem:[%s13332_s4 + $0x30] sm:$0xff]  ;;  %v1001_v52 = vadd.f32 1.0, %v969_v38  ;;  %v972_v53 = vld [vmem:[%s13339_s3 + $0x78] sm:$0xff] }
 0x1d2   : > { %v13432_v54 = vmul.f32 0.5, %v893_v44  ;;  %v897_v55 = vadd.f32 1.0, %v865_v45  ;;  %v900_v56 = vadd.f32 1.0, %v868_v46  ;;  %v899_v60 = vadd.f32 1.0, %v867_v51  ;;  %v870_v61 = vld [vmem:[%s13332_s4 + $0x48] sm:$0xff]  ;;  %v869_v62 = vld [vmem:[%s13332_s4 + $0x40] sm:$0xff] }
 0x1d3   : > { %v13434_v57 = vmul.f32 0.5, %v896_v48  ;;  %v13436_v58 = vmul.f32 0.5, %v894_v49  ;;  %v13438_v59 = vmul.f32 0.5, %v898_v50  ;;  %v13446_v63 = vmul.f32 0.5, %v1000_v37  ;;  %v971_v4 = vld [vmem:[%s13339_s3 + $0x70] sm:$0xff]  ;;  %v1053_v7 = vld [vmem:[#allocation6] sm:$0xff] }
 0x1d4   : > { %v13448_v0 = vmul.f32 0.5, %v999_v43  ;;  %v1270_v1 = vmul.f32 %v13379_v11, %v13432_v54  ;;  %v13452_v2 = vmul.f32 0.5, %v897_v55  ;;  %v1004_v3 = vadd.f32 1.0, %v972_v53  ;;  %v1054_v8 = vld [vmem:[#allocation6 + $0x8] sm:$0xff]  ;;  %v872_v11 = vld [vmem:[%s13332_s4 + $0x58] sm:$0xff]  ;;  %v871_v16 = vld [vmem:[%s13332_s4 + $0x50] sm:$0xff] }
 0x1d5   : > { %1119 = vrot.lane.b32.xlu1 %v13395_v20, %s12794_s18  ;;  %1117 = vrot.lane.b32.xlu0 %v13397_v21, %s12794_s18  ;;  %v1271_v5 = vmul.f32 %v13387_v14, %v13436_v58  ;;  %v1273_v6 = vmul.f32 %v13385_v13, %v13434_v57  ;;  %v13459_v9 = vmul.f32 0.5, %v900_v56  ;;  %v13461_v10 = vmul.f32 0.5, %v899_v60  ;;  %v974_v17 = vld [vmem:[%s13339_s3 + $0x88] sm:$0xff]  ;;  %v973_v29 = vld [vmem:[%s13339_s3 + $0x80] sm:$0xff]  ;;  %s12797_s8 = smov 96   ;;  %s19879_s5 = sld [smem:[#allocation225_spill]] }
 0x1d6   : > { %v902_v12 = vadd.f32 1.0, %v870_v61  ;;  %v901_v15 = vadd.f32 1.0, %v869_v62  ;;  %v1274_v14 = vmul.f32 %v13397_v21, %v13452_v2  ;;  %v1275_v13 = vmul.f32 %v13395_v20, %v13438_v59  ;;  %v874_v33 = vld [vmem:[%s13332_s4 + $0x68] sm:$0xff]  ;;  %v873_v34 = vld [vmem:[%s13332_s4 + $0x60] sm:$0xff]  ;;  %v976_v44 = vld [vmem:[%s13339_s3 + $0x98] sm:$0xff]  ;;  %s12800_s13 = smov 16  }
 0x1d7   : > { %v1304_v18 = vpack.c.bf16 %v1271_v5, %v1270_v1  ;;  %v1307_v19 = vpack.c.bf16 %v1273_v6, %v1272_v36  ;;  %v13474_v22 = vmul.f32 0.5, %v1002_v47  ;;  %v13476_v23 = vmul.f32 0.5, %v1001_v52  ;;  %v975_v45 = vld [vmem:[%s13339_s3 + $0x90] sm:$0xff]  ;;  %v876_v50 = vld [vmem:[%s13332_s4 + $0x78] sm:$0xff]  ;;  %v978_v55 = vld [vmem:[%s13339_s3 + $0xa8] sm:$0xff]  ;;  %s12801_s20 = smov 112  }
 0x1d8   : > { %v1003_v24 = vadd.f32 1.0, %v971_v4  ;;  %v13478_v25 = vpack.c.bf16 %v1054_v8, %v1053_v7  ;;  %v904_v21 = vadd.f32 1.0, %v872_v11  ;;  %v903_v20 = vadd.f32 1.0, %v871_v16  ;;  %v875_v51 = vld [vmem:[%s13332_s4 + $0x70] sm:$0xff]  ;;  %v977_v1 = vld [vmem:[%s13339_s3 + $0xa0] sm:$0xff]  ;;  %v980_v4 = vld [vmem:[%s13339_s3 + $0xb8] sm:$0xff] }
 0x1d9   : > { %1123 = vrot.lane.b32.xlu1 %v13407_v27, %s12794_s18  ;;  %1121 = vrot.lane.b32.xlu0 %v13409_v28, %s12794_s18  ;;  %v1006_v30 = vadd.f32 1.0, %v974_v17  ;;  %v13481_v31 = vmul.f32 0.5, %v902_v12  ;;  %v13483_v32 = vmul.f32 0.5, %v901_v15  ;;  %v13489_v35 = vmul.f32 0.5, %v1004_v3  ;;  %v1055_v8 = vld [vmem:[#allocation6 + $0x10] sm:$0xff]  ;;  %v1056_v12 = vld [vmem:[#allocation6 + $0x18] sm:$0xff] }
 0x1da   : > { %10973 = vmatprep.subr.bf16.mxu1 %v1304_v18  ;;  %10981 = vmatprep.mubr.msk.bf16.mxu1 %vm1205_vm0, %v13478_v25  ;;  %v1310_v36 = vpack.c.bf16 %v1275_v13, %v1274_v14  ;;  %v1276_v37 = vmul.f32 %v13409_v28, %v13461_v10  ;;  %v1277_v38 = vmul.f32 %v13407_v27, %v13459_v9  ;;  %v18849_v39 = vmov 0   ;;  %v1057_v15 = vld [vmem:[#allocation6 + $0x20] sm:$0xff]  ;;  %v1058_v17 = vld [vmem:[#allocation6 + $0x28] sm:$0xff]  ;;  %s12802_s19 = smov 80   ;;  %s19975_s17 = sld [smem:[#allocation227_spill]] }
 0x1db   : > { %10974 = vmatpush3.bf16.msra.mxu1 %v1304_v18  ;;  %1394 = vmatprep.mubr.bf16.mxu0 %v18849_v39  ;;  %v13500_v40 = vmul.f32 0.5, %v1003_v24  ;;  %v1005_v43 = vadd.f32 1.0, %v973_v29  ;;  %v1278_v28 = vmul.f32 %v13426_v42, %v13483_v32  ;;  %v1279_v27 = vmul.f32 %v13424_v41, %v13481_v31  ;;  %v878_v18 = vld [vmem:[%s13332_s4 + $0x88] sm:$0xff]  ;;  %s12803_s27 = smov 8   ;;  %s12805_s1 = smov 104  }
 0x1dc   : > { %10975 = vmatprep.subr.bf16.mxu1 %v1307_v19  ;;  %v13508_v46 = vmul.f32 0.5, %v904_v21  ;;  %v13510_v47 = vmul.f32 0.5, %v903_v20  ;;  %v906_v48 = vadd.f32 1.0, %v874_v33  ;;  %v905_v49 = vadd.f32 1.0, %v873_v34  ;;  %v979_v21 = vld [vmem:[%s13339_s3 + $0xb0] sm:$0xff]  ;;  %s19983_s24 = sld [smem:[#allocation228_spill]] }
 0x1dd   : > { %1127 = vrot.lane.b32.xlu1 %v13424_v41, %s12794_s18  ;;  %1125 = vrot.lane.b32.xlu0 %v13426_v42, %s12794_s18  ;;  %v13514_v52 = vpack.c.bf16 %v1279_v27, %v1278_v28  ;;  %v1008_v53 = vadd.f32 1.0, %v976_v44  ;;  %v1313_v42 = vpack.c.bf16 %v1277_v38, %v1276_v37  ;;  %v1038_v60 = vmul.f32 0.5, %v1006_v30  ;;  %v880_v27 = vld [vmem:[%s13332_s4 + $0x98] sm:$0xff]  ;;  %s19984_s10 = sld [smem:[#allocation229_spill]]  ;;  %s12806_s9 = smov 4  }
 0x1de   : > { %v1280_v41 = vmul.f32 %v13448_v0, %v13510_v47  ;;  %v1281_v56 = vmul.f32 %v13446_v63, %v13508_v46  ;;  %v1037_v61 = vmul.f32 0.5, %v1005_v43  ;;  %v1007_v62 = vadd.f32 1.0, %v975_v45  ;;  %v879_v45 = vld [vmem:[%s13332_s4 + $0x90] sm:$0xff]  ;;  %p856_p5 = scmp.lt.s32.totalorder %s19150_s30, 1 }
 0x1df   : > { %10976 = vmatpush3.bf16.msra.mxu1 %v1307_v19  ;;  %v908_v3 = vadd.f32 1.0, %v876_v50  ;;  %v13527_v5 = vmul.f32 0.5, %v906_v48  ;;  %v907_v6 = vadd.f32 1.0, %v875_v51  ;;  %v1010_v7 = vadd.f32 1.0, %v978_v55  ;;  %v877_v19 = vld [vmem:[%s13332_s4 + $0x80] sm:$0xff]  ;;  %v982_v50 = vld [vmem:[%s13339_s3 + $0xc8] sm:$0xff] }
 0x1e0   : > { %10977 = vmatprep.subr.bf16.mxu1 %v1310_v36  ;;  %v1040_v11 = vmul.f32 0.5, %v1008_v53  ;;  %v1009_v16 = vadd.f32 1.0, %v977_v1  ;;  %v1039_v24 = vmul.f32 0.5, %v1007_v62  ;;  %v1012_v29 = vadd.f32 1.0, %v980_v4  ;;  %v882_v4 = vld [vmem:[%s13332_s4 + $0xa8] sm:$0xff]  ;;  %s20090_s30 = smov (!%p856_p5, %s19150_s30), 1 }
 0x1e1   : > { %1131 = vrot.lane.b32.xlu1 %v13446_v63, %s12794_s18  ;;  %1129 = vrot.lane.b32.xlu0 %v13448_v0, %s12794_s18  ;;  %v13529_v0 = vmul.f32 0.5, %v905_v49  ;;  %v13531_v63 = vpack.c.bf16 %v1281_v56, %v1280_v41  ;;  %v1283_v13 = vmul.f32 %v13474_v22, %v13527_v5  ;;  %v910_v20 = vadd.f32 1.0, %v878_v18  ;;  %v981_v41 = vld [vmem:[%s13339_s3 + $0xc0] sm:$0xff]  ;;  %v1060_v56 = vld [vmem:[#allocation6 + $0x38] sm:$0xff] }
 0x1e2   : > { %v909_v30 = vadd.f32 1.0, %v877_v19  ;;  %v13542_v33 = vpack.c.bf16 %v1056_v12, %v1055_v8  ;;  %v13544_v34 = vmul.f32 0.5, %v908_v3  ;;  %v13550_v37 = vpack.c.bf16 %v1058_v17, %v1057_v15  ;;  %v983_v17 = vld [vmem:[%s13339_s3 + $0xd0] sm:$0xff] }
 0x1e3   : > { %10978 = vmatpush3.bf16.msra.mxu1 %v1310_v36  ;;  %v1282_v14 = vmul.f32 %v13476_v23, %v13529_v0  ;;  %v13552_v38 = vmul.f32 0.5, %v910_v20  ;;  %v1041_v44 = vmul.f32 0.5, %v1009_v16  ;;  %v1011_v28 = vadd.f32 1.0, %v979_v21  ;;  %v984_v16 = vld [vmem:[%s13339_s3 + $0xd8] sm:$0xff] }
 0x1e4   : > { %10979 = vmatprep.subr.bf16.mxu1 %v1313_v42  ;;  %v13554_v43 = vmul.f32 0.5, %v909_v30  ;;  %v1285_v49 = vmul.f32 %v13489_v35, %v13544_v34  ;;  %v912_v55 = vadd.f32 1.0, %v880_v27  ;;  %v1044_v1 = vmul.f32 0.5, %v1012_v29 }
 0x1e5   : > { %1135 = vrot.lane.b32.xlu1 %v13474_v22, %s12794_s18  ;;  %1133 = vrot.lane.b32.xlu0 %v13476_v23, %s12794_s18  ;;  %v13546_v23 = vmul.f32 0.5, %v907_v6  ;;  %v13548_v36 = vpack.c.bf16 %v1283_v13, %v1282_v14  ;;  %v1042_v22 = vmul.f32 0.5, %v1010_v7  ;;  %v1287_v53 = vmul.f32 %v1038_v60, %v13552_v38  ;;  %v881_v6 = vld [vmem:[%s13332_s4 + $0xa0] sm:$0xff] }
 0x1e6   : > { %v1286_v51 = vmul.f32 %v1037_v61, %v13554_v43  ;;  %v1014_v3 = vadd.f32 1.0, %v982_v50  ;;  %v1043_v7 = vmul.f32 0.5, %v1011_v28  ;;  %v1013_v8 = vadd.f32 1.0, %v981_v41 }
 0x1e7   : > { %10980 = vmatpush3.bf16.msra.mxu1 %v1313_v42  ;;  %v1284_v48 = vmul.f32 %v13500_v40, %v13546_v23  ;;  %v911_v42 = vadd.f32 1.0, %v879_v45  ;;  %v914_v12 = vadd.f32 1.0, %v882_v4  ;;  %v913_v15 = vadd.f32 1.0, %v881_v6  ;;  %v884_v45 = vld [vmem:[%s13332_s4 + $0xb8] sm:$0xff] }
 0x1e8   : > { %v13574_v62 = vpack.c.bf16 %v1287_v53, %v1286_v51  ;;  %v13598_v20 = vmul.f32 0.5, %v1014_v3  ;;  %v13600_v30 = vmul.f32 0.5, %v1013_v8  ;;  %v1016_v28 = vadd.f32 1.0, %v984_v16  ;;  %v988_v4 = vld [vmem:[%s13339_s3 + $0xf8] sm:$0xff] }
 0x1e9   : > { %1139 = vrot.lane.b32.xlu1 %v13489_v35, %s12794_s18  ;;  %1137 = vrot.lane.b32.xlu0 %v13500_v40, %s12794_s18  ;;  %v13570_v40 = vpack.c.bf16 %v1285_v49, %v1284_v48  ;;  %v1059_v35 = vld [vmem:[#allocation6 + $0x30] sm:$0xff]  ;;  %v13590_v13 = vmul.f32 0.5, %v914_v12  ;;  %v13592_v29 = vmul.f32 0.5, %v913_v15  ;;  %v1015_v27 = vadd.f32 1.0, %v983_v17  ;;  %v986_v48 = vld [vmem:[%s13339_s3 + $0xe8] sm:$0xff] }
 0x1ea   : > { %10982 = vmatmul.mubr.msk.bf16.vlgmr.msra.gmra.mrb[0].mxu1 %vm1205_vm0, %v13542_v33  ;;  %v13586_v18 = vpack.c.bf16 %v1060_v56, %v1059_v35  ;;  %v916_v49 = vadd.f32 1.0, %v884_v45  ;;  %v1048_v35 = vmul.f32 0.5, %v1016_v28  ;;  %v1018_v3 = vadd.f32 1.0, %v986_v48  ;;  %v885_v28 = vld [vmem:[%s13332_s4 + $0xc0] sm:$0xff]  ;;  %v887_v45 = vld [vmem:[%s13332_s4 + $0xd0] sm:$0xff] }
 0x1eb   : > { %10985 = vmatprep.mubr.msk.bf16.mxu1 %vm1205_vm0, %v13550_v37  ;;  %v1290_v51 = vmul.f32 %v1041_v44, %v13592_v29  ;;  %v1291_v53 = vmul.f32 %v1042_v22, %v13590_v13  ;;  %v1047_v56 = vmul.f32 0.5, %v1015_v27  ;;  %v1020_v17 = vadd.f32 1.0, %v988_v4  ;;  %v888_v27 = vld [vmem:[%s13332_s4 + $0xd8] sm:$0xff]  ;;  %v889_v48 = vld [vmem:[%s13332_s4 + $0xe0] sm:$0xff] }
 0x1ec   : > { %v1050_v15 = vmul.f32 0.5, %v1018_v3  ;;  %v919_v3 = vadd.f32 1.0, %v887_v45  ;;  %v921_v4 = vadd.f32 1.0, %v889_v48  ;;  %vm12799_vm4 = vmmov 0  }
 0x1ed   : > { %1143 = vrot.lane.b32.xlu1 %v1038_v60, %s12794_s18  ;;  %1141 = vrot.lane.b32.xlu0 %v1037_v61, %s12794_s18  ;;  %v13576_v61 = vmul.f32 0.5, %v912_v55  ;;  %v13578_v60 = vmul.f32 0.5, %v911_v42  ;;  %v13611_v55 = vmul.f32 0.5, %v916_v49  ;;  %v13615_v41 = vpack.c.bf16 %v1291_v53, %v1290_v51  ;;  %v891_v49 = vld [vmem:[%s13332_s4 + $0xf0] sm:$0xff] }
 0x1ee   : > { %v917_v51 = vadd.f32 1.0, %v885_v28  ;;  %v920_v53 = vadd.f32 1.0, %v888_v27  ;;  %vm6335_vm5 = vcmask 236544   ;;  %vm6904_vm6 = vcmask 130048  }
 0x1ef   : > { %v1288_v19 = vmul.f32 %v1039_v24, %v13578_v60  ;;  %v1289_v14 = vmul.f32 %v1040_v11, %v13576_v61  ;;  %19165 = vst [vmem:[#allocation35_spill] sm:$0xff] %v13611_v55  ;;  %v1293_v8 = vmul.f32 %v1044_v1, %v13611_v55  ;;  %v13651_v55 = vmul.f32 0.5, %v921_v4 }
 0x1f0   : > { %vm8246_vm7 = vcmask 64512   ;;  %vm8306_vm8 = vcmask 1043456   ;;  %vm9291_vm9 = vcmask 31744   ;;  %vm9351_vm10 = vcmask 1041408  }
 0x1f1   : > { %1147 = vrot.lane.b32.xlu1 %v1040_v11, %s12794_s18  ;;  %1145 = vrot.lane.b32.xlu0 %v1039_v24, %s12794_s18  ;;  %v13594_v21 = vpack.c.bf16 %v1289_v14, %v1288_v19  ;;  %v883_v24 = vld [vmem:[%s13332_s4 + $0xb0] sm:$0xff]  ;;  %v985_v11 = vld [vmem:[%s13339_s3 + $0xe0] sm:$0xff]  ;;  %vm10000_vm13 = vcmask 1041409   ;;  %vm7823_vm14 = vcmask 105472   ;;  %vm10002_vm15 = vcmask 1042434  }
 0x1f2   : > { %10986 = vmatmul.mubr.msk.bf16.gmra.mrb[4].mxu1 %vm1205_vm0, %v13586_v18  ;;  %v915_v50 = vadd.f32 1.0, %v883_v24  ;;  %v886_v14 = vld [vmem:[%s13332_s4 + $0xc8] sm:$0xff] }
 0x1f3   : > { %1532 = vmatprep.mubr.bf16.mxu1 %v18849_v39  ;;  %v890_v24 = vld [vmem:[%s13332_s4 + $0xe8] sm:$0xff]  ;;  %v13647_v39 = vmul.f32 0.5, %v919_v3 }
 0x1f4   : > { %v13613_v42 = vmul.f32 0.5, %v915_v50  ;;  %v918_v50 = vadd.f32 1.0, %v886_v14 }
 0x1f5   : > { %1151 = vrot.lane.b32.xlu1 %v1042_v22, %s12794_s18  ;;  %1149 = vrot.lane.b32.xlu0 %v1041_v44, %s12794_s18  ;;  %v1017_v44 = vadd.f32 1.0, %v985_v11  ;;  %v987_v22 = vld [vmem:[%s13339_s3 + $0xf0] sm:$0xff]  ;;  %v892_v11 = vld [vmem:[%s13332_s4 + $0xf8] sm:$0xff]  ;;  %s19989_s4 = sld [smem:[#allocation230_spill]] }
 0x1f6   : > { %19166 = vst [vmem:[#allocation36_spill] sm:$0xff] %v13613_v42  ;;  %v1292_v6 = vmul.f32 %v1043_v7, %v13613_v42  ;;  %v1019_v19 = vadd.f32 1.0, %v987_v22  ;;  %v924_v22 = vadd.f32 1.0, %v892_v11 }
 0x1f7   : > { %v1049_v16 = vmul.f32 0.5, %v1017_v44  ;;  %v922_v44 = vadd.f32 1.0, %v890_v24  ;;  %v1296_v24 = vmul.f32 %v1047_v56, %v13647_v39 }
 0x1f8   : > { %v13625_v12 = vpack.c.bf16 %v1293_v8, %v1292_v6  ;;  %v923_v6 = vadd.f32 1.0, %v891_v49  ;;  %v13641_v8 = vmul.f32 0.5, %v918_v50  ;;  %v13653_v14 = vmul.f32 0.5, %v924_v22 }
 0x1f9   : > { %1155 = vrot.lane.b32.xlu1 %v1044_v1, %s12794_s18  ;;  %1153 = vrot.lane.b32.xlu0 %v1043_v7, %s12794_s18  ;;  %v1052_v1 = vmul.f32 0.5, %v1020_v17  ;;  %v1051_v7 = vmul.f32 0.5, %v1019_v19  ;;  %v13643_v17 = vmul.f32 0.5, %v917_v51  ;;  %v13645_v19 = vmul.f32 0.5, %v920_v53 }
 0x1fa   : > { %v13649_v42 = vmul.f32 0.5, %v922_v44  ;;  %v13655_v28 = vmul.f32 0.5, %v923_v6  ;;  %v1295_v45 = vmul.f32 %v13598_v20, %v13641_v8  ;;  %v1298_v11 = vmul.f32 %v1049_v16, %v13651_v55 }
 0x1fb   : > { %v1294_v27 = vmul.f32 %v13600_v30, %v13643_v17  ;;  %v1297_v48 = vmul.f32 %v1048_v35, %v13645_v19  ;;  %v1301_v51 = vmul.f32 %v1052_v1, %v13653_v14 }
 0x1fc   : > { %v1299_v49 = vmul.f32 %v1050_v15, %v13649_v42  ;;  %v1300_v50 = vmul.f32 %v1051_v7, %v13655_v28 }
 0x1fd   : > { %1159 = vrot.lane.b32.xlu1 %v13598_v20, %s12794_s18  ;;  %1157 = vrot.lane.b32.xlu0 %v13600_v30, %s12794_s18  ;;  %v13667_v53 = vpack.c.bf16 %v1295_v45, %v1294_v27  ;;  %v13669_v3 = vpack.c.bf16 %v1297_v48, %v1296_v24 }
 0x1fe   : > { %v13671_v30 = vpack.c.bf16 %v1299_v49, %v1298_v11  ;;  %v13673_v44 = vpack.c.bf16 %v1301_v51, %v1300_v50 }
 0x201   : > { %1163 = vrot.lane.b32.xlu1 %v1048_v35, %s12794_s18  ;;  %1161 = vrot.lane.b32.xlu0 %v1047_v56, %s12794_s18 }
 0x205   : > { %1167 = vrot.lane.b32.xlu1 %v1050_v15, %s12794_s18  ;;  %1165 = vrot.lane.b32.xlu0 %v1049_v16, %s12794_s18 }
 0x209   : > { %1171 = vrot.lane.b32.xlu1 %v1052_v1, %s12794_s18  ;;  %1169 = vrot.lane.b32.xlu0 %v1051_v7, %s12794_s18 }
 0x23f   : > { %v1114_v20 = vpop.permute.xlu1 %1113  ;;  %v1110_v56 = vpop.permute.xlu0 %1109 }
 0x240   : > { %v1208_v35 = vsel %vm1205_vm0, %v13401_v26, %v1114_v20  ;;  %v1206_v15 = vsel %vm1205_vm0, %v13432_v54, %v1110_v56 }
 0x241   : > { %v1240_v22 = vmul.f32 %v1208_v35, %v1208_v35  ;;  %v1238_v27 = vmul.f32 %v1206_v15, %v1206_v15 }
 0x243   : > { %v1116_v16 = vpop.permute.xlu1 %1115  ;;  %v1112_v7 = vpop.permute.xlu0 %1111 }
 0x244   : > { %v1209_v1 = vsel %vm1205_vm0, %v13434_v57, %v1116_v16  ;;  %v1207_v4 = vsel %vm1205_vm0, %v13436_v58, %v1112_v7 }
 0x245   : > { %v1241_v6 = vmul.f32 %v1209_v1, %v1209_v1  ;;  %v1239_v45 = vmul.f32 %v1207_v4, %v1207_v4  ;;  %v13683_v49 = vpack.c.bf16 %v1207_v4, %v1206_v15  ;;  %v13690_v16 = vpack.c.bf16 %v1209_v1, %v1208_v35 }
 0x247   : > { %v1120_v24 = vpop.permute.xlu1 %1119  ;;  %v1118_v48 = vpop.permute.xlu0 %1117  ;;  %v1303_v11 = vpack.c.bf16 %v1239_v45, %v1238_v27  ;;  %v1306_v51 = vpack.c.bf16 %v1241_v6, %v1240_v22 }
 0x248   : > { %v1211_v26 = vsel %vm1205_vm0, %v13438_v59, %v1120_v24  ;;  %v1210_v54 = vsel %vm1205_vm0, %v13452_v2, %v1118_v48 }
 0x249   : > { %v1243_v50 = vmul.f32 %v1211_v26, %v1211_v26  ;;  %v1242_v57 = vmul.f32 %v1210_v54, %v1210_v54  ;;  %1362 = vmatprep.subr.bf16.mxu0 %v1303_v11  ;;  %v13697_v27 = vpack.c.bf16 %v1211_v26, %v1210_v54 }
 0x24a   : > { %1363 = vmatpush1.bf16.msra.mxu0 %v13683_v49 }
 0x24b   : > { %v1124_v58 = vpop.permute.xlu1 %1123  ;;  %v1122_v20 = vpop.permute.xlu0 %1121  ;;  %1364 = vmatprep.subr.bf16.mxu0 %v1306_v51  ;;  %v1309_v56 = vpack.c.bf16 %v1243_v50, %v1242_v57 }
 0x24c   : > { %v1213_v15 = vsel %vm1205_vm0, %v13459_v9, %v1124_v58  ;;  %v1212_v59 = vsel %vm1205_vm0, %v13461_v10, %v1122_v20 }
 0x24d   : > { %v1245_v7 = vmul.f32 %v1213_v15, %v1213_v15  ;;  %v1244_v2 = vmul.f32 %v1212_v59, %v1212_v59  ;;  %v13706_v50 = vpack.c.bf16 %v1213_v15, %v1212_v59 }
 0x24e   : > { %1365 = vmatpush1.bf16.msra.mxu0 %v13690_v16 }
 0x24f   : > { %v1128_v4 = vpop.permute.xlu1 %1127  ;;  %v1126_v22 = vpop.permute.xlu0 %1125  ;;  %1366 = vmatprep.subr.bf16.mxu0 %v1309_v56  ;;  %v1312_v6 = vpack.c.bf16 %v1245_v7, %v1244_v2  ;;  %v19169_v7 = vmov 0  }
 0x250   : > { %v1215_v35 = vsel %vm1205_vm0, %v13481_v31, %v1128_v4  ;;  %v1214_v1 = vsel %vm1205_vm0, %v13483_v32, %v1126_v22 }
 0x251   : > { %v1247_v9 = vmul.f32 %v1215_v35, %v1215_v35  ;;  %v1246_v45 = vmul.f32 %v1214_v1, %v1214_v1  ;;  %v13703_v24 = vpack.c.bf16 %v1215_v35, %v1214_v1 }
 0x252   : > { %1367 = vmatpush1.bf16.msra.mxu0 %v13697_v27 }
 0x253   : > { %v1132_v10 = vpop.permute.xlu1 %1131  ;;  %v1130_v48 = vpop.permute.xlu0 %1129  ;;  %1368 = vmatprep.subr.bf16.mxu0 %v1312_v6  ;;  %v1315_v11 = vpack.c.bf16 %v1247_v9, %v1246_v45 }
 0x254   : > { %v1217_v26 = vsel %vm1205_vm0, %v13508_v46, %v1132_v10  ;;  %v1216_v31 = vsel %vm1205_vm0, %v13510_v47, %v1130_v48 }
 0x255   : > { %v1249_v54 = vmul.f32 %v1217_v26, %v1217_v26  ;;  %v1248_v32 = vmul.f32 %v1216_v31, %v1216_v31  ;;  %1500 = vmatprep.subr.bf16.mxu1 %v1315_v11  ;;  %v13712_v57 = vpack.c.bf16 %v1217_v26, %v1216_v31 }
 0x256   : > { %1369 = vmatpush1.bf16.msra.mxu0 %v13706_v50  ;;  %1501 = vmatpush1.bf16.msra.mxu1 %v13703_v24 }
 0x257   : > { %19167 = vst [vmem:[#allocation37_spill] sm:$0xff] %v13712_v57  ;;  %v1136_v51 = vpop.permute.xlu1 %1135  ;;  %v1134_v58 = vpop.permute.xlu0 %1133  ;;  %v1318_v20 = vpack.c.bf16 %v1249_v54, %v1248_v32  ;;  %10989 = vmatprep.subr.bf16.mxu0 %v13514_v52 }
 0x258   : > { %v1219_v46 = vsel %vm1205_vm0, %v13527_v5, %v1136_v51  ;;  %v1218_v47 = vsel %vm1205_vm0, %v13529_v0, %v1134_v58 }
 0x259   : > { %v1251_v56 = vmul.f32 %v1219_v46, %v1219_v46  ;;  %v1250_v15 = vmul.f32 %v1218_v47, %v1218_v47  ;;  %10342 = vmatmul.mubr.msk.bf16.vlgmr.msra.gmra.mrb[0].mxu0 %vm1205_vm0, %v13478_v25  ;;  %1502 = vmatprep.subr.bf16.mxu1 %v1318_v20  ;;  %v13723_v59 = vpack.c.bf16 %v1219_v46, %v1218_v47 }
 0x25a   : > { %1503 = vmatpush1.bf16.msra.mxu1 %v13712_v57  ;;  %1404 = vmatprep.mubr.bf16.mxu0 %v19169_v7 }
 0x25b   : > { %19168 = vst [vmem:[#allocation38_spill] sm:$0xff] %v13723_v59  ;;  %v1140_v2 = vpop.permute.xlu1 %1139  ;;  %v1138_v4 = vpop.permute.xlu0 %1137  ;;  %v1321_v22 = vpack.c.bf16 %v1251_v56, %v1250_v15  ;;  %10990 = vmatpush3.bf16.msra.mxu0 %v13514_v52 }
 0x25c   : > { %v1221_v5 = vsel %vm1205_vm0, %v13544_v34, %v1140_v2  ;;  %v1220_v0 = vsel %vm1205_vm0, %v13546_v23, %v1138_v4  ;;  %10991 = vmatprep.subr.bf16.mxu0 %v13531_v63  ;;  %v19172_v4 = vld [vmem:[#allocation35_spill] sm:$0xff] }
 0x25d   : > { %v1253_v6 = vmul.f32 %v1221_v5, %v1221_v5  ;;  %v1252_v35 = vmul.f32 %v1220_v0, %v1220_v0  ;;  %1504 = vmatprep.subr.bf16.mxu1 %v1321_v22  ;;  %v13733_v1 = vpack.c.bf16 %v1221_v5, %v1220_v0 }
 0x25e   : > { %1505 = vmatpush1.bf16.msra.mxu1 %v13723_v59 }
 0x25f   : > { %19170 = vst [vmem:[#allocation39_spill] sm:$0xff] %v13733_v1  ;;  %v1324_v9 = vpack.c.bf16 %v1253_v6, %v1252_v35  ;;  %10992 = vmatpush3.bf16.msra.mxu0 %v13531_v63  ;;  %v1144_v45 = vpop.permute.xlu1 %1143  ;;  %v1142_v52 = vpop.permute.xlu0 %1141 }
 0x260   : > { %v1223_v34 = vsel %vm1205_vm0, %v13552_v38, %v1144_v45  ;;  %v1222_v23 = vsel %vm1205_vm0, %v13554_v43, %v1142_v52  ;;  %10993 = vmatprep.subr.bf16.mxu0 %v13548_v36 }
 0x261   : > { %10343 = vmatmul.mubr.msk.bf16.gmra.mrb[4].mxu0 %vm1205_vm0, %v13542_v33  ;;  %1506 = vmatprep.subr.bf16.mxu1 %v1324_v9  ;;  %v1255_v10 = vmul.f32 %v1223_v34, %v1223_v34  ;;  %v1254_v48 = vmul.f32 %v1222_v23, %v1222_v23  ;;  %v13785_v2 = vpack.c.bf16 %v1223_v34, %v1222_v23 }
 0x262   : > { %1507 = vmatpush1.bf16.msra.mxu1 %v13733_v1  ;;  %1414 = vmatprep.mubr.bf16.mxu0 %v19169_v7 }
 0x263   : > { %10994 = vmatpush3.bf16.msra.mxu0 %v13548_v36  ;;  %11005 = vmatprep.subr.bf16.mxu1 %v13574_v62  ;;  %v1148_v63 = vpop.permute.xlu1 %1147  ;;  %v1146_v38 = vpop.permute.xlu0 %1145  ;;  %v1327_v43 = vpack.c.bf16 %v1255_v10, %v1254_v48  ;;  %19171 = vst [vmem:[#allocation40_spill] sm:$0xff] %v13785_v2 }
 0x264   : > { %10995 = vmatprep.subr.bf16.mxu0 %v13570_v40  ;;  %v1225_v54 = vsel %vm1205_vm0, %v13576_v61, %v1148_v63 }
 0x265   : > { %10350 = vmatmul.mubr.msk.bf16.vlgmr.msra.gmra.mrb[8].mxu1 %vm1205_vm0, %v13478_v25  ;;  %v1257_v61 = vmul.f32 %v1225_v54, %v1225_v54 }
 0x266   : > { %1542 = vmatprep.mubr.bf16.mxu1 %v19169_v7  ;;  %11006 = vmatpush3.bf16.msra.mxu1 %v13574_v62 }
 0x267   : > { %10996 = vmatpush3.bf16.msra.mxu0 %v13570_v40  ;;  %v1152_v11 = vpop.permute.xlu1 %1151  ;;  %v1150_v26 = vpop.permute.xlu0 %1149  ;;  %11007 = vmatprep.subr.bf16.mxu1 %v13594_v21 }
 0x268   : > { %1638 = vmatprep.subr.bf16.mxu0 %v1327_v43 }
 0x269   : > { %10344 = vmatmul.mubr.msk.bf16.gmra.mrb[8].mxu0 %vm1205_vm0, %v13550_v37 }
 0x26a   : > { %1424 = vmatprep.mubr.bf16.mxu0 %v19169_v7  ;;  %11008 = vmatpush3.bf16.msra.mxu1 %v13594_v21  ;;  %v1224_v21 = vsel %vm1205_vm0, %v13578_v60, %v1146_v38  ;;  %v1227_v60 = vsel %vm1205_vm0, %v13590_v13, %v1152_v11  ;;  %v19173_v13 = vld [vmem:[#allocation36_spill] sm:$0xff] }
 0x26b   : > { %v1156_v36 = vpop.permute.xlu1 %1155  ;;  %v1154_v31 = vpop.permute.xlu0 %1153  ;;  %11009 = vmatprep.subr.bf16.mxu1 %v13615_v41  ;;  %v1256_v20 = vmul.f32 %v1224_v21, %v1224_v21  ;;  %v1259_v56 = vmul.f32 %v1227_v60, %v1227_v60  ;;  %v13796_v45 = vpack.c.bf16 %v1225_v54, %v1224_v21 }
 0x26c   : > { %v1229_v22 = vsel %vm1205_vm0, %v19172_v4, %v1156_v36  ;;  %v1228_v5 = vsel %vm1205_vm0, %v19173_v13, %v1154_v31 }
 0x26d   : > { %10351 = vmatmul.mubr.msk.bf16.gmra.mrb[12].mxu1 %vm1205_vm0, %v13542_v33  ;;  %v1260_v0 = vmul.f32 %v1228_v5, %v1228_v5  ;;  %19174 = vst [vmem:[#allocation35_spill] sm:$0xff] %v13796_v45 }
 0x26e   : > { %1552 = vmatprep.mubr.bf16.mxu1 %v19169_v7  ;;  %11010 = vmatpush3.bf16.msra.mxu1 %v13615_v41 }
 0x26f   : > { %v1160_v40 = vpop.permute.xlu1 %1159  ;;  %v1158_v62 = vpop.permute.xlu0 %1157  ;;  %11011 = vmatprep.subr.bf16.mxu1 %v13625_v12 }
 0x270   : > { %v1231_v32 = vsel %vm1205_vm0, %v13641_v8, %v1160_v40  ;;  %v1230_v51 = vsel %vm1205_vm0, %v13643_v17, %v1158_v62  ;;  %v1226_v8 = vsel %vm1205_vm0, %v13592_v29, %v1150_v26  ;;  %v1261_v29 = vmul.f32 %v1229_v22, %v1229_v22 }
 0x271   : > { %10345 = vmatmul.mubr.msk.bf16.gmra.mrb[12].mxu0 %vm1205_vm0, %v13586_v18  ;;  %v1263_v41 = vmul.f32 %v1231_v32, %v1231_v32  ;;  %v1262_v58 = vmul.f32 %v1230_v51, %v1230_v51  ;;  %v1258_v15 = vmul.f32 %v1226_v8, %v1226_v8  ;;  %v13807_v63 = vpack.c.bf16 %v1227_v60, %v1226_v8 }
 0x272   : > { %10997 = vmatprep.mubr.msk.bf16.mxu0 %vm1205_vm0, %v13478_v25  ;;  %11012 = vmatpush3.bf16.msra.mxu1 %v13625_v12  ;;  %v1330_v12 = vpack.c.bf16 %v1257_v61, %v1256_v20  ;;  %v1336_v48 = vpack.c.bf16 %v1261_v29, %v1260_v0  ;;  %v13815_v11 = vpack.c.bf16 %v1231_v32, %v1230_v51  ;;  %v1072_v20 = vld [vmem:[#allocation7 + $0x38] sm:$0xff] }
 0x273   : > { %v1339_v46 = vpack.c.bf16 %v1263_v41, %v1262_v58  ;;  %v1164_v17 = vpop.permute.xlu1 %1163  ;;  %v1162_v47 = vpop.permute.xlu0 %1161  ;;  %v1333_v6 = vpack.c.bf16 %v1259_v56, %v1258_v15  ;;  %19175 = vst [vmem:[#allocation36_spill] sm:$0xff] %v13807_v63  ;;  %v13819_v40 = vpack.c.bf16 %v1229_v22, %v1228_v5  ;;  %v1065_v41 = vld [vmem:[#allocation7] sm:$0xff]  ;;  %v1066_v58 = vld [vmem:[#allocation7 + $0x8] sm:$0xff] }
 0x274   : > { %v1233_v52 = vsel %vm1205_vm0, %v13645_v19, %v1164_v17  ;;  %v1232_v34 = vsel %vm1205_vm0, %v13647_v39, %v1162_v47  ;;  %19176 = vst [vmem:[#allocation41_spill] sm:$0xff] %v13815_v11 }
 0x275   : > { %10352 = vmatmul.mubr.msk.bf16.gmra.mrb[16].mxu1 %vm1205_vm0, %v13550_v37  ;;  %1776 = vmatprep.subr.bf16.mxu1 %v1339_v46  ;;  %v1265_v23 = vmul.f32 %v1233_v52, %v1233_v52  ;;  %v1264_v10 = vmul.f32 %v1232_v34, %v1232_v34  ;;  %19177 = vst [vmem:[#allocation42_spill] sm:$0xff] %v13819_v40 }
 0x276   : > { %1562 = vmatprep.mubr.bf16.mxu1 %v19169_v7  ;;  %v13827_v62 = vpack.c.bf16 %v1233_v52, %v1232_v34 }
 0x277   : > { %v1168_v35 = vpop.permute.xlu1 %1167  ;;  %v1166_v9 = vpop.permute.xlu0 %1165  ;;  %v1342_v31 = vpack.c.bf16 %v1265_v23, %v1264_v10 }
 0x278   : > { %v1235_v19 = vsel %vm1205_vm0, %v13649_v42, %v1168_v35  ;;  %v1234_v39 = vsel %vm1205_vm0, %v13651_v55, %v1166_v9  ;;  %19178 = vst [vmem:[#allocation43_spill] sm:$0xff] %v13827_v62 }
 0x279   : > { %10998 = vmatmul.mubr.msk.bf16.vlgmr.msra.gmra.mrb[16].mxu0 %vm1205_vm0, %v13542_v33  ;;  %v1267_v26 = vmul.f32 %v1235_v19, %v1235_v19  ;;  %v1266_v36 = vmul.f32 %v1234_v39, %v1234_v39 }
 0x27a   : > { %1639 = vmatpush1.bf16.msra.mxu0 %v13785_v2  ;;  %11001 = vmatprep.mubr.msk.bf16.mxu0 %vm1205_vm0, %v13550_v37 }
 0x27b   : > { %1640 = vmatprep.subr.bf16.mxu0 %v1330_v12  ;;  %v1172_v38 = vpop.permute.xlu1 %1171  ;;  %v1170_v43 = vpop.permute.xlu0 %1169  ;;  %v1345_v32 = vpack.c.bf16 %v1267_v26, %v1266_v36 }
 0x27c   : > { %v1237_v55 = vsel %vm1205_vm0, %v13653_v14, %v1172_v38  ;;  %v1236_v42 = vsel %vm1205_vm0, %v13655_v28, %v1170_v43  ;;  %v13836_v14 = vpack.c.bf16 %v1235_v19, %v1234_v39 }
 0x27d   : > { %10353 = vmatmul.mubr.msk.bf16.gmra.mrb[20].mxu1 %vm1205_vm0, %v13586_v18  ;;  %v1269_v54 = vmul.f32 %v1237_v55, %v1237_v55  ;;  %v1268_v21 = vmul.f32 %v1236_v42, %v1236_v42  ;;  %v13844_v51 = vpack.c.bf16 %v1237_v55, %v1236_v42 }
 0x27e   : > { %1641 = vmatpush1.bf16.msra.mxu0 %v13796_v45  ;;  %11013 = vmatprep.mubr.msk.bf16.mxu1 %vm1205_vm0, %v13478_v25  ;;  %19179 = vst [vmem:[#allocation44_spill] sm:$0xff] %v13836_v14 }
 0x27f   : > { %1642 = vmatprep.subr.bf16.mxu0 %v1333_v6  ;;  %v1348_v28 = vpack.c.bf16 %v1269_v54, %v1268_v21  ;;  %19180 = vst [vmem:[#allocation45_spill] sm:$0xff] %v13844_v51 }
 0x281   : > { %11002 = vmatmul.mubr.msk.bf16.gmra.mrb[20].mxu0 %vm1205_vm0, %v13586_v18 }
 0x282   : > { %1643 = vmatpush1.bf16.msra.mxu0 %v13807_v63  ;;  %1670 = vmatprep.mubr.bf16.mxu0 %v19169_v7 }
 0x283   : > { %1644 = vmatprep.subr.bf16.mxu0 %v1336_v48 }
 0x285   : > { %11014 = vmatmul.mubr.msk.bf16.vlgmr.msra.gmra.mrb[24].mxu1 %vm1205_vm0, %v13542_v33 }
 0x286   : > { %1645 = vmatpush1.bf16.msra.mxu0 %v13819_v40  ;;  %1777 = vmatpush1.bf16.msra.mxu1 %v13815_v11 }
 0x287   : > { %1778 = vmatprep.subr.bf16.mxu1 %v1342_v31  ;;  %11017 = vmatprep.mubr.msk.bf16.mxu1 %vm1205_vm0, %v13550_v37 }
 0x288   : > { %11021 = vmatprep.subr.bf16.mxu0 %v13667_v53 }
 0x289   : > { %10358 = vmatmul.mubr.msk.bf16.vlgmr.msra.gmra.mrb[24].mxu0 %vm1205_vm0, %v13478_v25 }
 0x28a   : > { %1779 = vmatpush1.bf16.msra.mxu1 %v13827_v62  ;;  %1680 = vmatprep.mubr.bf16.mxu0 %v19169_v7 }
 0x28b   : > { %1780 = vmatprep.subr.bf16.mxu1 %v1345_v32  ;;  %11022 = vmatpush3.bf16.msra.mxu0 %v13667_v53  ;;  %v13852_v53 = vpack.c.bf16 %v1066_v58, %v1065_v41 }
 0x28c   : > { %11023 = vmatprep.subr.bf16.mxu0 %v13669_v3 }
 0x28d   : > { %11018 = vmatmul.mubr.msk.bf16.gmra.mrb[28].mxu1 %vm1205_vm0, %v13586_v18 }
 0x28e   : > { %1781 = vmatpush1.bf16.msra.mxu1 %v13836_v14  ;;  %1808 = vmatprep.mubr.bf16.mxu1 %v19169_v7 }
 0x28f   : > { %1782 = vmatprep.subr.bf16.mxu1 %v1348_v28  ;;  %11024 = vmatpush3.bf16.msra.mxu0 %v13669_v3  ;;  %v1067_v3 = vld [vmem:[#allocation7 + $0x10] sm:$0xff] }
 0x290   : > { %11025 = vmatprep.subr.bf16.mxu0 %v13671_v30 }
 0x291   : > { %10359 = vmatmul.mubr.msk.bf16.gmra.mrb[28].mxu0 %vm1205_vm0, %v13542_v33 }
 0x292   : > { %1783 = vmatpush1.bf16.msra.mxu1 %v13844_v51  ;;  %1690 = vmatprep.mubr.bf16.mxu0 %v19169_v7 }
 0x293   : > { %11026 = vmatpush3.bf16.msra.mxu0 %v13671_v30  ;;  %11077 = vmatprep.subr.bf16.mxu1 %v13852_v53  ;;  %v1068_v30 = vld [vmem:[#allocation7 + $0x18] sm:$0xff] }
 0x294   : > { %11027 = vmatprep.subr.bf16.mxu0 %v13673_v44 }
 0x295   : > { %10366 = vmatmul.mubr.msk.bf16.vlgmr.msra.gmra.mrb[32].mxu1 %vm1205_vm0, %v13478_v25 }
 0x296   : > { %1818 = vmatprep.mubr.bf16.mxu1 %v19169_v7  ;;  %11078 = vmatpush3.bf16.msra.mxu1 %v13852_v53 }
 0x297   : > { %11028 = vmatpush3.bf16.msra.mxu0 %v13673_v44  ;;  %v13883_v44 = vpack.c.bf16 %v1068_v30, %v1067_v3 }
 0x298   : > { %11037 = vmatprep.subr.bf16.mxu0 %v13852_v53 }
 0x299   : > { %10360 = vmatmul.mubr.msk.bf16.gmra.mrb[32].mxu0 %vm1205_vm0, %v13550_v37  ;;  %11079 = vmatprep.subr.bf16.mxu1 %v13883_v44 }
 0x29a   : > { %1700 = vmatprep.mubr.bf16.mxu0 %v19169_v7  ;;  %11080 = vmatpush3.bf16.msra.mxu1 %v13883_v44 }
 0x29d   : > { %10367 = vmatmul.mubr.msk.bf16.gmra.mrb[36].mxu1 %vm1205_vm0, %v13542_v33 }
 0x29e   : > { %1828 = vmatprep.mubr.bf16.mxu1 %v19169_v7 }
 0x2a1   : > { %10361 = vmatmul.mubr.msk.bf16.gmra.mrb[36].mxu0 %vm1205_vm0, %v13586_v18 }
 0x2a2   : > { %11029 = vmatprep.mubr.msk.bf16.mxu0 %vm1205_vm0, %v13478_v25  ;;  %v1069_v25 = vld [vmem:[#allocation7 + $0x20] sm:$0xff] }
 0x2a5   : > { %10368 = vmatmul.mubr.msk.bf16.gmra.mrb[40].mxu1 %vm1205_vm0, %v13550_v37 }
 0x2a6   : > { %1838 = vmatprep.mubr.bf16.mxu1 %v19169_v7 }
 0x2a9   : > { %11030 = vmatmul.mubr.msk.bf16.vlgmr.msra.gmra.mrb[40].mxu0 %vm1205_vm0, %v13542_v33  ;;  %v1070_v33 = vld [vmem:[#allocation7 + $0x28] sm:$0xff] }
 0x2aa   : > { %11038 = vmatpush3.bf16.msra.mxu0 %v13852_v53  ;;  %11033 = vmatprep.mubr.msk.bf16.mxu0 %vm1205_vm0, %v13550_v37  ;;  %v13891_v61 = vpack.c.bf16 %v1070_v33, %v1069_v25  ;;  %v1071_v37 = vld [vmem:[#allocation7 + $0x30] sm:$0xff] }
 0x2ab   : > { %11039 = vmatprep.subr.bf16.mxu0 %v13883_v44  ;;  %v13899_v46 = vpack.c.bf16 %v1072_v20, %v1071_v37 }
 0x2ac   : > { %11081 = vmatprep.subr.bf16.mxu1 %v13891_v61 }
 0x2ad   : > { %10369 = vmatmul.mubr.msk.bf16.gmra.mrb[44].mxu1 %vm1205_vm0, %v13586_v18 }
 0x2ae   : > { %11040 = vmatpush3.bf16.msra.mxu0 %v13883_v44  ;;  %11082 = vmatpush3.bf16.msra.mxu1 %v13891_v61 }
 0x2af   : > { %11041 = vmatprep.subr.bf16.mxu0 %v13891_v61  ;;  %11083 = vmatprep.subr.bf16.mxu1 %v13899_v46 }
 0x2b1   : > { %11034 = vmatmul.mubr.msk.bf16.gmra.mrb[44].mxu0 %vm1205_vm0, %v13586_v18 }
 0x2b2   : > { %11042 = vmatpush3.bf16.msra.mxu0 %v13891_v61  ;;  %11084 = vmatpush3.bf16.msra.mxu1 %v13899_v46 }
 0x2b3   : > { %11043 = vmatprep.subr.bf16.mxu0 %v13899_v46  ;;  %11157 = vmatprep.subr.bf16.mxu1 %v13852_v53 }
 0x2b6   : > { %11044 = vmatpush3.bf16.msra.mxu0 %v13899_v46 }
 0x2b7   : > { %11117 = vmatprep.subr.bf16.mxu0 %v13852_v53 }
 0x2bd   : > { %v13907_v18 = vpop.f32.mrb[0].mxu1 }
 0x2be   : > { %v13909_v60 = vpop.f32.mrb[1].mxu1 }
 0x2bf   : > { %v13911_v8 = vpop.f32.mrb[2].mxu1 }
 0x2c0   : > { %v13915_v47 = vpop.f32.mrb[3].mxu1 }
 0x2c5   : > { %v13919_v15 = vpop.f32.mrb[4].mxu1 }
 0x2c6   : > { %v13921_v12 = vpop.f32.mrb[5].mxu1 }
 0x2c7   : > { %v13923_v4 = vpop.f32.mrb[6].mxu1 }
 0x2c8   : > { %v13927_v13 = vpop.f32.mrb[7].mxu1 }
 0x32c   : > { %v1396_v29 = vpop.f32.mrb[0].mxu0 }
 0x32d   : > { %v1398_v0 = vpop.f32.mrb[1].mxu0 }
 0x32e   : > { %v1400_v6 = vpop.f32.mrb[2].mxu0 }
 0x32f   : > { %v1914_v35 = vpack.c.bf16 %v1400_v6, %v1396_v29  ;;  %v1402_v9 = vpop.f32.mrb[3].mxu0 }
 0x330   : > { %v13931_v52 = vpack.c.bf16 %v1402_v9, %v1398_v0 }
 0x331   : > { %2155 = vrot.lane.b32.xlu0 %v1914_v35, %s12794_s18  ;;  %11045 = vmatprep.mubr.msk.bf16.mxu0 %vm1205_vm0, %v1914_v35 }
 0x334   : > { %v1406_v34 = vpop.f32.mrb[4].mxu0 }
 0x335   : > { %v1408_v23 = vpop.f32.mrb[5].mxu0 }
 0x336   : > { %v1410_v10 = vpop.f32.mrb[6].mxu0 }
 0x337   : > { %v1915_v48 = vpack.c.bf16 %v1410_v10, %v1406_v34  ;;  %v1412_v19 = vpop.f32.mrb[7].mxu0 }
 0x338   : > { %v13935_v39 = vpack.c.bf16 %v1412_v19, %v1408_v23  ;;  %v1534_v38 = vpop.f32.mrb[8].mxu1 }
 0x339   : > { %2157 = vrot.lane.b32.xlu1 %v1915_v48, %s12794_s18  ;;  %11046 = vmatmul.mubr.msk.bf16.vlgmr.msra.gmra.mrb[48].mxu0 %vm1205_vm0, %v1915_v48  ;;  %v1536_v43 = vpop.f32.mrb[9].mxu1 }
 0x33a   : > { %v1538_v26 = vpop.f32.mrb[10].mxu1  ;;  %11118 = vmatpush3.bf16.msra.mxu0 %v13852_v53 }
 0x33b   : > { %v1918_v36 = vpack.c.bf16 %v1538_v26, %v1534_v38  ;;  %v1540_v31 = vpop.f32.mrb[11].mxu1  ;;  %11119 = vmatprep.subr.bf16.mxu0 %v13883_v44 }
 0x33c   : > { %v1416_v55 = vpop.f32.mrb[8].mxu0  ;;  %v13941_v42 = vpack.c.bf16 %v1540_v31, %v1536_v43 }
 0x33d   : > { %v1418_v54 = vpop.f32.mrb[9].mxu0 }
 0x33e   : > { %v1420_v21 = vpop.f32.mrb[10].mxu0  ;;  %11120 = vmatpush3.bf16.msra.mxu0 %v13883_v44 }
 0x33f   : > { %v1916_v32 = vpack.c.bf16 %v1420_v21, %v1416_v55  ;;  %v1422_v28 = vpop.f32.mrb[11].mxu0  ;;  %11121 = vmatprep.subr.bf16.mxu0 %v13891_v61 }
 0x340   : > { %v13945_v41 = vpack.c.bf16 %v1422_v28, %v1418_v54  ;;  %v1544_v58 = vpop.f32.mrb[12].mxu1 }
 0x341   : > { %2159 = vrot.lane.b32.xlu0 %v1916_v32, %s12794_s18  ;;  %11049 = vmatprep.mubr.msk.bf16.mxu0 %vm1205_vm0, %v1916_v32  ;;  %v1546_v3 = vpop.f32.mrb[13].mxu1 }
 0x342   : > { %v1548_v30 = vpop.f32.mrb[14].mxu1  ;;  %11122 = vmatpush3.bf16.msra.mxu0 %v13891_v61 }
 0x343   : > { %v1919_v25 = vpack.c.bf16 %v1548_v30, %v1544_v58  ;;  %v1550_v33 = vpop.f32.mrb[15].mxu1  ;;  %11123 = vmatprep.subr.bf16.mxu0 %v13899_v46 }
 0x344   : > { %v1426_v37 = vpop.f32.mrb[12].mxu0  ;;  %v13951_v20 = vpack.c.bf16 %v1550_v33, %v1546_v3 }
 0x345   : > { %2163 = vrot.lane.b32.xlu0 %v1918_v36, %s12794_s18  ;;  %v1428_v29 = vpop.f32.mrb[13].mxu0 }
 0x346   : > { %v1430_v0 = vpop.f32.mrb[14].mxu0  ;;  %11124 = vmatpush3.bf16.msra.mxu0 %v13899_v46 }
 0x347   : > { %v1917_v6 = vpack.c.bf16 %v1430_v0, %v1426_v37  ;;  %v1432_v35 = vpop.f32.mrb[15].mxu0  ;;  %11197 = vmatprep.subr.bf16.mxu0 %v13852_v53 }
 0x348   : > { %v13956_v9 = vpack.c.bf16 %v1432_v35, %v1428_v29  ;;  %v1554_v34 = vpop.f32.mrb[16].mxu1 }
 0x349   : > { %2161 = vrot.lane.b32.xlu1 %v1917_v6, %s12794_s18  ;;  %11050 = vmatmul.mubr.msk.bf16.gmra.mrb[52].mxu0 %vm1205_vm0, %v1917_v6  ;;  %v1556_v23 = vpop.f32.mrb[17].mxu1 }
 0x34a   : > { %11053 = vmatprep.mubr.msk.bf16.mxu0 %vm1205_vm0, %v1918_v36  ;;  %v1558_v10 = vpop.f32.mrb[18].mxu1 }
 0x34b   : > { %v1920_v48 = vpack.c.bf16 %v1558_v10, %v1554_v34  ;;  %v1560_v19 = vpop.f32.mrb[19].mxu1 }
 0x34c   : > { %v13961_v38 = vpack.c.bf16 %v1560_v19, %v1556_v23  ;;  %v13963_v43 = vpop.f32.mrb[16].mxu0 }
 0x34d   : > { %2165 = vrot.lane.b32.xlu1 %v1919_v25, %s12794_s18  ;;  %v13966_v26 = vpop.f32.mrb[17].mxu0  ;;  %2167 = vrot.lane.b32.xlu0 %v1920_v48, %s12794_s18 }
 0x34e   : > { %v13969_v31 = vpop.f32.mrb[18].mxu0 }
 0x34f   : > { %v13973_v54 = vpop.f32.mrb[19].mxu0 }
 0x350   : > { %v1564_v21 = vpop.f32.mrb[20].mxu1 }
 0x351   : > { %11054 = vmatmul.mubr.msk.bf16.gmra.mrb[56].mxu0 %vm1205_vm0, %v1919_v25  ;;  %v1566_v32 = vpop.f32.mrb[21].mxu1 }
 0x352   : > { %11057 = vmatprep.mubr.msk.bf16.mxu0 %vm1205_vm0, %v1920_v48  ;;  %v1568_v28 = vpop.f32.mrb[22].mxu1 }
 0x353   : > { %v1921_v58 = vpack.c.bf16 %v1568_v28, %v1564_v21  ;;  %v1570_v3 = vpop.f32.mrb[23].mxu1 }
 0x354   : > { %v13979_v30 = vpack.c.bf16 %v1570_v3, %v1566_v32  ;;  %v13981_v33 = vpop.f32.mrb[20].mxu0 }
 0x355   : > { %v13983_v37 = vpop.f32.mrb[21].mxu0  ;;  %2169 = vrot.lane.b32.xlu1 %v1921_v58, %s12794_s18 }
 0x356   : > { %v13986_v29 = vpop.f32.mrb[22].mxu0 }
 0x357   : > { %v13990_v25 = vpop.f32.mrb[23].mxu0 }
 0x358   : > { %v13994_v35 = vpop.f32.mrb[24].mxu1 }
 0x359   : > { %11058 = vmatmul.mubr.msk.bf16.gmra.mrb[60].mxu0 %vm1205_vm0, %v1921_v58  ;;  %v13997_v34 = vpop.f32.mrb[25].mxu1 }
 0x35a   : > { %v13999_v23 = vpop.f32.mrb[26].mxu1 }
 0x35b   : > { %v14003_v48 = vpop.f32.mrb[27].mxu1 }
 0x35c   : > { %v1672_v19 = vpop.f32.mrb[24].mxu0 }
 0x35d   : > { %v1674_v32 = vpop.f32.mrb[25].mxu0 }
 0x35e   : > { %v1676_v28 = vpop.f32.mrb[26].mxu0 }
 0x35f   : > { %v1922_v3 = vpack.c.bf16 %v1676_v28, %v1672_v19  ;;  %v1678_v0 = vpop.f32.mrb[27].mxu0 }
 0x360   : > { %v14007_v6 = vpack.c.bf16 %v1678_v0, %v1674_v32  ;;  %v14009_v58 = vpop.f32.mrb[28].mxu1 }
 0x361   : > { %2171 = vrot.lane.b32.xlu0 %v1922_v3, %s12794_s18  ;;  %11061 = vmatprep.mubr.msk.bf16.mxu0 %vm1205_vm0, %v1922_v3  ;;  %v14013_v55 = vpop.f32.mrb[29].mxu1 }
 0x362   : > { %v14015_v10 = vpop.f32.mrb[30].mxu1 }
 0x363   : > { %v14019_v21 = vpop.f32.mrb[31].mxu1 }
 0x364   : > { %v1682_v22 = vpop.f32.mrb[28].mxu0 }
 0x365   : > { %v1684_v19 = vpop.f32.mrb[29].mxu0 }
 0x366   : > { %v1686_v32 = vpop.f32.mrb[30].mxu0 }
 0x367   : > { %v1923_v28 = vpack.c.bf16 %v1686_v32, %v1682_v22  ;;  %v1688_v5 = vpop.f32.mrb[31].mxu0 }
 0x368   : > { %v14023_v17 = vpack.c.bf16 %v1688_v5, %v1684_v19  ;;  %v1810_v3 = vpop.f32.mrb[32].mxu1 }
 0x369   : > { %2173 = vrot.lane.b32.xlu1 %v1923_v28, %s12794_s18  ;;  %11062 = vmatmul.mubr.msk.bf16.gmra.mrb[64].mxu0 %vm1205_vm0, %v1923_v28  ;;  %v1812_v56 = vpop.f32.mrb[33].mxu1 }
 0x36a   : > { %v1814_v7 = vpop.f32.mrb[34].mxu1 }
 0x36b   : > { %v1926_v36 = vpack.c.bf16 %v1814_v7, %v1810_v3  ;;  %v1816_v51 = vpop.f32.mrb[35].mxu1 }
 0x36c   : > { %v1692_v14 = vpop.f32.mrb[32].mxu0  ;;  %v14027_v62 = vpack.c.bf16 %v1816_v51, %v1812_v56 }
 0x36d   : > { %v1694_v11 = vpop.f32.mrb[33].mxu0 }
 0x36e   : > { %v1696_v0 = vpop.f32.mrb[34].mxu0 }
 0x36f   : > { %v1924_v40 = vpack.c.bf16 %v1696_v0, %v1692_v14  ;;  %v1698_v63 = vpop.f32.mrb[35].mxu0 }
 0x370   : > { %v14029_v22 = vpack.c.bf16 %v1698_v63, %v1694_v11  ;;  %v1820_v5 = vpop.f32.mrb[36].mxu1 }
 0x371   : > { %2175 = vrot.lane.b32.xlu0 %v1924_v40, %s12794_s18  ;;  %11065 = vmatprep.mubr.msk.bf16.mxu0 %vm1205_vm0, %v1924_v40  ;;  %v1822_v19 = vpop.f32.mrb[37].mxu1 }
 0x372   : > { %v1824_v32 = vpop.f32.mrb[38].mxu1 }
 0x373   : > { %v1927_v28 = vpack.c.bf16 %v1824_v32, %v1820_v5  ;;  %v1826_v45 = vpop.f32.mrb[39].mxu1 }
 0x374   : > { %v1702_v7 = vpop.f32.mrb[36].mxu0  ;;  %v14033_v3 = vpack.c.bf16 %v1826_v45, %v1822_v19 }
 0x375   : > { %2179 = vrot.lane.b32.xlu0 %v1926_v36, %s12794_s18  ;;  %v1704_v51 = vpop.f32.mrb[37].mxu0 }
 0x376   : > { %v1706_v56 = vpop.f32.mrb[38].mxu0 }
 0x377   : > { %v1925_v14 = vpack.c.bf16 %v1706_v56, %v1702_v7  ;;  %v1708_v0 = vpop.f32.mrb[39].mxu0 }
 0x378   : > { %v14036_v63 = vpack.c.bf16 %v1708_v0, %v1704_v51  ;;  %v1830_v11 = vpop.f32.mrb[40].mxu1 }
 0x379   : > { %v1832_v2 = vpop.f32.mrb[41].mxu1  ;;  %2177 = vrot.lane.b32.xlu1 %v1925_v14, %s12794_s18  ;;  %11066 = vmatmul.mubr.msk.bf16.gmra.mrb[68].mxu0 %vm1205_vm0, %v1925_v14 }
 0x37a   : > { %v1834_v40 = vpop.f32.mrb[42].mxu1  ;;  %11069 = vmatprep.mubr.msk.bf16.mxu0 %vm1205_vm0, %v1926_v36 }
 0x37b   : > { %v1928_v5 = vpack.c.bf16 %v1834_v40, %v1830_v11  ;;  %v1836_v45 = vpop.f32.mrb[43].mxu1 }
 0x37c   : > { %v14041_v19 = vpack.c.bf16 %v1836_v45, %v1832_v2  ;;  %v14043_v32 = vpop.f32.mrb[40].mxu0 }
 0x37d   : > { %2183 = vrot.lane.b32.xlu0 %v1928_v5, %s12794_s18  ;;  %2181 = vrot.lane.b32.xlu1 %v1927_v28, %s12794_s18  ;;  %v14047_v7 = vpop.f32.mrb[41].mxu0 }
 0x37e   : > { %v14049_v51 = vpop.f32.mrb[42].mxu0 }
 0x37f   : > { %v14053_v14 = vpop.f32.mrb[43].mxu0 }
 0x380   : > { %v1840_v36 = vpop.f32.mrb[44].mxu1 }
 0x381   : > { %v1842_v0 = vpop.f32.mrb[45].mxu1  ;;  %2637 = vrot.lane.b32.xlu0 %v13931_v52, %s12794_s18  ;;  %11070 = vmatmul.mubr.msk.bf16.gmra.mrb[72].mxu0 %vm1205_vm0, %v1927_v28 }
 0x382   : > { %v1844_v11 = vpop.f32.mrb[46].mxu1  ;;  %11073 = vmatprep.mubr.msk.bf16.mxu0 %vm1205_vm0, %v1928_v5 }
 0x383   : > { %v1929_v40 = vpack.c.bf16 %v1844_v11, %v1840_v36  ;;  %v1846_v45 = vpop.f32.mrb[47].mxu1 }
 0x384   : > { %v14061_v1 = vpack.c.bf16 %v1846_v45, %v1842_v0  ;;  %v14063_v56 = vpop.f32.mrb[44].mxu0 }
 0x385   : > { %2641 = vrot.lane.b32.xlu0 %v13945_v41, %s12794_s18  ;;  %2185 = vrot.lane.b32.xlu1 %v1929_v40, %s12794_s18  ;;  %v14068_v2 = vpop.f32.mrb[45].mxu0 }
 0x386   : > { %v14070_v59 = vpop.f32.mrb[46].mxu0 }
 0x387   : > { %v2893_v28 = vpack.c.bf16 %v14070_v59, %v14063_v56  ;;  %v14074_v57 = vpop.f32.mrb[47].mxu0 }
 0x388   : > { %v2892_v5 = vpack.c.bf16 %v14074_v57, %v14068_v2 }
 0x389   : > { %2645 = vrot.lane.b32.xlu0 %v13941_v42, %s12794_s18  ;;  %2639 = vrot.lane.b32.xlu1 %v13935_v39, %s12794_s18 }
 0x38a   : > { %11074 = vmatmul.mubr.msk.bf16.gmra.mrb[76].mxu0 %vm1205_vm0, %v1929_v40 }
 0x38b   : > { %11125 = vmatprep.mubr.msk.bf16.mxu0 %vm1205_vm0, %v13931_v52 }
 0x38d   : > { %2649 = vrot.lane.b32.xlu0 %v13961_v38, %s12794_s18  ;;  %2643 = vrot.lane.b32.xlu1 %v13956_v9, %s12794_s18 }
 0x391   : > { %2653 = vrot.lane.b32.xlu0 %v14007_v6, %s12794_s18  ;;  %2647 = vrot.lane.b32.xlu1 %v13951_v20, %s12794_s18 }
 0x392   : > { %11126 = vmatmul.mubr.msk.bf16.vlgmr.msra.gmra.mrb[80].mxu0 %vm1205_vm0, %v13935_v39 }
 0x393   : > { %11129 = vmatprep.mubr.msk.bf16.mxu0 %vm1205_vm0, %v13945_v41  ;;  %11198 = vmatpush3.bf16.msra.mxu0 %v13852_v53  ;;  %v19182_v41 = vpack.c.bf16 %v13911_v8, %v13907_v18  ;;  %v19186_v8 = vpack.c.bf16 %v13969_v31, %v13963_v43  ;;  %v19190_v43 = vpack.c.bf16 %v13999_v23, %v13994_v35 }
 0x394   : > { %11199 = vmatprep.subr.bf16.mxu0 %v13883_v44  ;;  %v19191_v31 = vpack.c.bf16 %v14019_v21, %v14013_v55  ;;  %v19194_v55 = vpack.c.bf16 %v14049_v51, %v14043_v32 }
 0x395   : > { %2657 = vrot.lane.b32.xlu0 %v14029_v22, %s12794_s18  ;;  %2651 = vrot.lane.b32.xlu1 %v13979_v30, %s12794_s18 }
 0x397   : > { %11200 = vmatpush3.bf16.msra.mxu0 %v13883_v44 }
 0x398   : > { %11201 = vmatprep.subr.bf16.mxu0 %v13891_v61 }
 0x399   : > { %2661 = vrot.lane.b32.xlu0 %v14027_v62, %s12794_s18  ;;  %2655 = vrot.lane.b32.xlu1 %v14023_v17, %s12794_s18 }
 0x39a   : > { %11130 = vmatmul.mubr.msk.bf16.gmra.mrb[84].mxu0 %vm1205_vm0, %v13956_v9 }
 0x39b   : > { %11133 = vmatprep.mubr.msk.bf16.mxu0 %vm1205_vm0, %v13941_v42  ;;  %11202 = vmatpush3.bf16.msra.mxu0 %v13891_v61 }
 0x39c   : > { %11203 = vmatprep.subr.bf16.mxu0 %v13899_v46 }
 0x39d   : > { %2665 = vrot.lane.b32.xlu0 %v14041_v19, %s12794_s18  ;;  %2659 = vrot.lane.b32.xlu1 %v14036_v63, %s12794_s18 }
 0x39f   : > { %11204 = vmatpush3.bf16.msra.mxu0 %v13899_v46 }
 0x3a1   : > { %2663 = vrot.lane.b32.xlu1 %v14033_v3, %s12794_s18 }
 0x3a2   : > { %11134 = vmatmul.mubr.msk.bf16.gmra.mrb[88].mxu0 %vm1205_vm0, %v13951_v20  ;;  %v19183_v20 = vpack.c.bf16 %v13927_v13, %v13921_v12  ;;  %v19188_v12 = vpack.c.bf16 %v13986_v29, %v13981_v33 }
 0x3a3   : > { %11137 = vmatprep.mubr.msk.bf16.mxu0 %vm1205_vm0, %v13961_v38  ;;  %v2156_v52 = vpop.permute.xlu0 %2155 }
 0x3a4   : > { %11085 = vmatprep.mubr.msk.bf16.mxu1 %vm1205_vm0, %v2156_v52 }
 0x3a5   : > { %2667 = vrot.lane.b32.xlu1 %v14061_v1, %s12794_s18 }
 0x3aa   : > { %11138 = vmatmul.mubr.msk.bf16.gmra.mrb[92].mxu0 %vm1205_vm0, %v13979_v30  ;;  %v19192_v30 = vpack.c.bf16 %v14015_v10, %v14009_v58 }
 0x3ab   : > { %11141 = vmatprep.mubr.msk.bf16.mxu0 %vm1205_vm0, %v14007_v6  ;;  %v2158_v39 = vpop.permute.xlu1 %2157 }
 0x3ac   : > { %11086 = vmatmul.mubr.msk.bf16.vlgmr.msra.gmra.mrb[48].mxu1 %vm1205_vm0, %v2158_v39 }
 0x3ad   : > { %11158 = vmatpush3.bf16.msra.mxu1 %v13852_v53 }
 0x3ae   : > { %11159 = vmatprep.subr.bf16.mxu1 %v13883_v44 }
 0x3b1   : > { %11160 = vmatpush3.bf16.msra.mxu1 %v13883_v44 }
 0x3b2   : > { %11142 = vmatmul.mubr.msk.bf16.gmra.mrb[96].mxu0 %vm1205_vm0, %v14023_v17  ;;  %11161 = vmatprep.subr.bf16.mxu1 %v13891_v61  ;;  %v19181_v17 = vpack.c.bf16 %v13915_v47, %v13909_v60  ;;  %v19185_v60 = vpack.c.bf16 %v13973_v54, %v13966_v26  ;;  %v19187_v47 = vpack.c.bf16 %v13990_v25, %v13983_v37 }
 0x3b3   : > { %11145 = vmatprep.mubr.msk.bf16.mxu0 %vm1205_vm0, %v14029_v22  ;;  %v2160_v42 = vpop.permute.xlu0 %2159  ;;  %v19193_v37 = vpack.c.bf16 %v14053_v14, %v14047_v7 }
 0x3b4   : > { %11089 = vmatprep.mubr.msk.bf16.mxu1 %vm1205_vm0, %v2160_v42 }
 0x3b5   : > { %11162 = vmatpush3.bf16.msra.mxu1 %v13891_v61 }
 0x3b6   : > { %11163 = vmatprep.subr.bf16.mxu1 %v13899_v46 }
 0x3b7   : > { %v2164_v44 = vpop.permute.xlu0 %2163 }
 0x3b9   : > { %11164 = vmatpush3.bf16.msra.mxu1 %v13899_v46 }
 0x3ba   : > { %11146 = vmatmul.mubr.msk.bf16.gmra.mrb[100].mxu0 %vm1205_vm0, %v14036_v63  ;;  %11237 = vmatprep.subr.bf16.mxu1 %v13683_v49 }
 0x3bb   : > { %11149 = vmatprep.mubr.msk.bf16.mxu0 %vm1205_vm0, %v14027_v62  ;;  %v2162_v53 = vpop.permute.xlu1 %2161 }
 0x3bc   : > { %11090 = vmatmul.mubr.msk.bf16.gmra.mrb[52].mxu1 %vm1205_vm0, %v2162_v53 }
 0x3bd   : > { %11093 = vmatprep.mubr.msk.bf16.mxu1 %vm1205_vm0, %v2164_v44  ;;  %v4291_v44 = vld [vmem:[#allocation9 + $0x10] sm:$0xff] }
 0x3bf   : > { %v2166_v61 = vpop.permute.xlu1 %2165  ;;  %v2168_v46 = vpop.permute.xlu0 %2167 }
 0x3c2   : > { %11150 = vmatmul.mubr.msk.bf16.gmra.mrb[104].mxu0 %vm1205_vm0, %v14033_v3 }
 0x3c3   : > { %11153 = vmatprep.mubr.msk.bf16.mxu0 %vm1205_vm0, %v14041_v19 }
 0x3c4   : > { %11094 = vmatmul.mubr.msk.bf16.gmra.mrb[56].mxu1 %vm1205_vm0, %v2166_v61  ;;  %v4292_v61 = vld [vmem:[#allocation9 + $0x18] sm:$0xff] }
 0x3c5   : > { %11097 = vmatprep.mubr.msk.bf16.mxu1 %vm1205_vm0, %v2168_v46 }
 0x3c7   : > { %v2170_v62 = vpop.permute.xlu1 %2169 }
 0x3ca   : > { %11154 = vmatmul.mubr.msk.bf16.gmra.mrb[108].mxu0 %vm1205_vm0, %v14061_v1  ;;  %v19184_v1 = vpack.c.bf16 %v13923_v4, %v13919_v15  ;;  %v19189_v4 = vpack.c.bf16 %v14003_v48, %v13997_v34 }
 0x3cb   : > { %11205 = vmatprep.mubr.msk.bf16.mxu0 %vm1205_vm0, %v19181_v17  ;;  %v14299_v17 = vpack.c.bf16 %v4292_v61, %v4291_v44 }
 0x3cc   : > { %11098 = vmatmul.mubr.msk.bf16.gmra.mrb[60].mxu1 %vm1205_vm0, %v2170_v62 }
 0x3d2   : > { %11206 = vmatmul.mubr.msk.bf16.vlgmr.msra.gmra.mrb[112].mxu0 %vm1205_vm0, %v19182_v41  ;;  %v19195_v41 = vld [vmem:[#allocation37_spill] sm:$0xff] }
 0x3d3   : > { %11209 = vmatprep.mubr.msk.bf16.mxu0 %vm1205_vm0, %v19183_v20  ;;  %v2172_v9 = vpop.permute.xlu0 %2171  ;;  %v19196_v20 = vld [vmem:[#allocation38_spill] sm:$0xff] }
 0x3d4   : > { %11101 = vmatprep.mubr.msk.bf16.mxu1 %vm1205_vm0, %v2172_v9 }
 0x3da   : > { %11210 = vmatmul.mubr.msk.bf16.gmra.mrb[116].mxu0 %vm1205_vm0, %v19184_v1 }
 0x3db   : > { %11213 = vmatprep.mubr.msk.bf16.mxu0 %vm1205_vm0, %v19185_v60  ;;  %v2174_v18 = vpop.permute.xlu1 %2173  ;;  %v19198_v60 = vld [vmem:[#allocation39_spill] sm:$0xff] }
 0x3dc   : > { %11102 = vmatmul.mubr.msk.bf16.gmra.mrb[64].mxu1 %vm1205_vm0, %v2174_v18 }
 0x3e2   : > { %11214 = vmatmul.mubr.msk.bf16.gmra.mrb[120].mxu0 %vm1205_vm0, %v19186_v8 }
 0x3e3   : > { %11217 = vmatprep.mubr.msk.bf16.mxu0 %vm1205_vm0, %v19187_v47  ;;  %v2176_v15 = vpop.permute.xlu0 %2175 }
 0x3e4   : > { %11105 = vmatprep.mubr.msk.bf16.mxu1 %vm1205_vm0, %v2176_v15 }
 0x3e7   : > { %v2180_v38 = vpop.permute.xlu0 %2179 }
 0x3ea   : > { %11218 = vmatmul.mubr.msk.bf16.gmra.mrb[124].mxu0 %vm1205_vm0, %v19188_v12  ;;  %v19204_v12 = vld [vmem:[#allocation35_spill] sm:$0xff] }
 0x3eb   : > { %11221 = vmatprep.mubr.msk.bf16.mxu0 %vm1205_vm0, %v19189_v4  ;;  %v2178_v13 = vpop.permute.xlu1 %2177 }
 0x3ec   : > { %11106 = vmatmul.mubr.msk.bf16.gmra.mrb[68].mxu1 %vm1205_vm0, %v2178_v13 }
 0x3ed   : > { %11109 = vmatprep.mubr.msk.bf16.mxu1 %vm1205_vm0, %v2180_v38  ;;  %v19207_v38 = vld [vmem:[#allocation36_spill] sm:$0xff] }
 0x3ef   : > { %v2182_v26 = vpop.permute.xlu1 %2181  ;;  %v2184_v54 = vpop.permute.xlu0 %2183 }
 0x3f2   : > { %11222 = vmatmul.mubr.msk.bf16.gmra.mrb[128].mxu0 %vm1205_vm0, %v19190_v43 }
 0x3f3   : > { %11225 = vmatprep.mubr.msk.bf16.mxu0 %vm1205_vm0, %v19191_v31  ;;  %v2638_v29 = vpop.permute.xlu0 %2637  ;;  %v19210_v31 = vld [vmem:[#allocation42_spill] sm:$0xff] }
 0x3f4   : > { %11110 = vmatmul.mubr.msk.bf16.gmra.mrb[72].mxu1 %vm1205_vm0, %v2182_v26 }
 0x3f5   : > { %11113 = vmatprep.mubr.msk.bf16.mxu1 %vm1205_vm0, %v2184_v54 }
 0x3f7   : > { %v2186_v33 = vpop.permute.xlu1 %2185  ;;  %v2642_v6 = vpop.permute.xlu0 %2641 }
 0x3fa   : > { %11226 = vmatmul.mubr.msk.bf16.gmra.mrb[132].mxu0 %vm1205_vm0, %v19192_v30 }
 0x3fb   : > { %11229 = vmatprep.mubr.msk.bf16.mxu0 %vm1205_vm0, %v19193_v37  ;;  %v2640_v25 = vpop.permute.xlu1 %2639  ;;  %v2646_v35 = vpop.permute.xlu0 %2645 }
 0x3fc   : > { %11114 = vmatmul.mubr.msk.bf16.gmra.mrb[76].mxu1 %vm1205_vm0, %v2186_v33  ;;  %v19213_v33 = vld [vmem:[#allocation41_spill] sm:$0xff] }
 0x3fd   : > { %11165 = vmatprep.mubr.msk.bf16.mxu1 %vm1205_vm0, %v2638_v29 }
 0x3ff   : > { %v2644_v57 = vpop.permute.xlu1 %2643  ;;  %v2650_v10 = vpop.permute.xlu0 %2649 }
 0x402   : > { %11230 = vmatmul.mubr.msk.bf16.gmra.mrb[136].mxu0 %vm1205_vm0, %v19194_v55 }
 0x403   : > { %11233 = vmatprep.mubr.msk.bf16.mxu0 %vm1205_vm0, %v2892_v5  ;;  %v2648_v23 = vpop.permute.xlu1 %2647  ;;  %v2654_v48 = vpop.permute.xlu0 %2653  ;;  %v4290_v5 = vld [vmem:[#allocation9 + $0x8] sm:$0xff] }
 0x404   : > { %11166 = vmatmul.mubr.msk.bf16.vlgmr.msra.gmra.mrb[80].mxu1 %vm1205_vm0, %v2640_v25 }
 0x405   : > { %11238 = vmatpush3.bf16.msra.mxu1 %v13683_v49  ;;  %11169 = vmatprep.mubr.msk.bf16.mxu1 %vm1205_vm0, %v2642_v6 }
 0x406   : > { %11239 = vmatprep.subr.bf16.mxu1 %v13690_v16 }
 0x407   : > { %v2658_v63 = vpop.permute.xlu0 %2657 }
 0x409   : > { %11240 = vmatpush3.bf16.msra.mxu1 %v13690_v16 }
 0x40a   : > { %11234 = vmatmul.mubr.msk.bf16.gmra.mrb[140].mxu0 %vm1205_vm0, %v2893_v28  ;;  %11241 = vmatprep.subr.bf16.mxu1 %v13697_v27  ;;  %v4289_v28 = vld [vmem:[#allocation9] sm:$0xff] }
 0x40b   : > { %v2662_v14 = vpop.permute.xlu0 %2661  ;;  %v4293_v52 = vpack.c.bf16 %v4290_v5, %v4289_v28 }
 0x40c   : > { %v14241_v34 = vpop.f32.mrb[48].mxu0  ;;  %11170 = vmatmul.mubr.msk.bf16.gmra.mrb[84].mxu1 %vm1205_vm0, %v2644_v57  ;;  %v19218_v57 = vld [vmem:[#allocation43_spill] sm:$0xff] }
 0x40d   : > { %11242 = vmatpush3.bf16.msra.mxu1 %v13697_v27  ;;  %v14245_v49 = vpop.f32.mrb[49].mxu0  ;;  %11173 = vmatprep.mubr.msk.bf16.mxu1 %vm1205_vm0, %v2646_v35  ;;  %v2652_v27 = vpop.permute.xlu1 %2651  ;;  %v14351_v37 = vmul.f32 %v14241_v34, %v14241_v34 }
 0x40e   : > { %11243 = vmatprep.subr.bf16.mxu1 %v13706_v50  ;;  %v14249_v16 = vpop.f32.mrb[50].mxu0  ;;  %v14358_v55 = vmul.f32 %v14245_v49, %v14245_v49 }
 0x40f   : > { %v14251_v59 = vpop.f32.mrb[51].mxu0  ;;  %v2666_v45 = vpop.permute.xlu0 %2665  ;;  %19214 = vst [vmem:[#allocation41_spill] sm:$0xff] %v14351_v37  ;;  %v14368_v35 = vmul.f32 %v14249_v16, %v14249_v16 }
 0x410   : > { %19216 = vst [vmem:[#allocation51_spill] sm:$0xff] %v14358_v55 }
 0x411   : > { %11244 = vmatpush3.bf16.msra.mxu1 %v13706_v50  ;;  %v2656_v3 = vpop.permute.xlu1 %2655  ;;  %19219 = vst [vmem:[#allocation43_spill] sm:$0xff] %v14368_v35 }
 0x412   : > { %11249 = vmatprep.subr.bf16.mxu1 %v13703_v24 }
 0x414   : > { %11174 = vmatmul.mubr.msk.bf16.gmra.mrb[88].mxu1 %vm1205_vm0, %v2648_v23 }
 0x415   : > { %11177 = vmatprep.mubr.msk.bf16.mxu1 %vm1205_vm0, %v2650_v10  ;;  %v2660_v56 = vpop.permute.xlu1 %2659 }
 0x419   : > { %v2664_v40 = vpop.permute.xlu1 %2663 }
 0x41c   : > { %v14257_v21 = vpop.f32.mrb[52].mxu0  ;;  %11178 = vmatmul.mubr.msk.bf16.gmra.mrb[92].mxu1 %vm1205_vm0, %v2652_v27  ;;  %v14376_v27 = vmul.f32 %v14251_v59, %v14251_v59 }
 0x41d   : > { %v14260_v58 = vpop.f32.mrb[53].mxu0  ;;  %11181 = vmatprep.mubr.msk.bf16.mxu1 %vm1205_vm0, %v2654_v48  ;;  %v2668_v39 = vpop.permute.xlu1 %2667 }
 0x41e   : > { %v14263_v22 = vpop.f32.mrb[54].mxu0  ;;  %19221 = vst [vmem:[#allocation54_spill] sm:$0xff] %v14376_v27 }
 0x41f   : > { %v14265_v50 = vpop.f32.mrb[55].mxu0 }
 0x424   : > { %v14267_v19 = vpop.f32.mrb[56].mxu0  ;;  %11182 = vmatmul.mubr.msk.bf16.gmra.mrb[96].mxu1 %vm1205_vm0, %v2656_v3 }
 0x425   : > { %v14270_v32 = vpop.f32.mrb[57].mxu0  ;;  %11185 = vmatprep.mubr.msk.bf16.mxu1 %vm1205_vm0, %v2658_v63 }
 0x426   : > { %v14273_v7 = vpop.f32.mrb[58].mxu0 }
 0x427   : > { %v14275_v51 = vpop.f32.mrb[59].mxu0 }
 0x42c   : > { %v14277_v36 = vpop.f32.mrb[60].mxu0  ;;  %11186 = vmatmul.mubr.msk.bf16.gmra.mrb[100].mxu1 %vm1205_vm0, %v2660_v56  ;;  %v19223_v56 = vld [vmem:[#allocation44_spill] sm:$0xff] }
 0x42d   : > { %v14280_v2 = vpop.f32.mrb[61].mxu0  ;;  %11189 = vmatprep.mubr.msk.bf16.mxu1 %vm1205_vm0, %v2662_v14  ;;  %v14388_v14 = vmul.f32 %v14257_v21, %v14257_v21  ;;  %v14457_v28 = vmul.f32 %v14277_v36, %v14277_v36 }
 0x42e   : > { %v14283_v0 = vpop.f32.mrb[62].mxu0 }
 0x42f   : > { %v14285_v11 = vpop.f32.mrb[63].mxu0  ;;  %19224 = vst [vmem:[#allocation44_spill] sm:$0xff] %v14388_v14  ;;  %19241 = vst [vmem:[#allocation70_spill] sm:$0xff] %v14457_v28 }
 0x434   : > { %11190 = vmatmul.mubr.msk.bf16.gmra.mrb[104].mxu1 %vm1205_vm0, %v2664_v40 }
 0x435   : > { %11193 = vmatprep.mubr.msk.bf16.mxu1 %vm1205_vm0, %v2666_v45  ;;  %v14395_v45 = vmul.f32 %v14260_v58, %v14260_v58 }
 0x437   : > { %19226 = vst [vmem:[#allocation57_spill] sm:$0xff] %v14395_v45 }
 0x43c   : > { %v14289_v42 = vpop.f32.mrb[64].mxu0  ;;  %11194 = vmatmul.mubr.msk.bf16.gmra.mrb[108].mxu1 %vm1205_vm0, %v2668_v39  ;;  %v14404_v39 = vmul.f32 %v14263_v22, %v14263_v22 }
 0x43d   : > { %v14292_v53 = vpop.f32.mrb[65].mxu0  ;;  %11245 = vmatprep.mubr.msk.bf16.mxu1 %vm1205_vm0, %v4293_v52 }
 0x43e   : > { %v14295_v46 = vpop.f32.mrb[66].mxu0 }
 0x43f   : > { %v14297_v62 = vpop.f32.mrb[67].mxu0 }
 0x444   : > { %11246 = vmatmul.mubr.msk.bf16.vlgmr.msra.gmra.mrb[112].mxu1 %vm1205_vm0, %v14299_v17 }
 0x445   : > { %11250 = vmatpush3.bf16.msra.mxu1 %v13703_v24  ;;  %11257 = vmatprep.mubr.msk.bf16.mxu1 %vm1205_vm0, %v4293_v52  ;;  %v19201_v24 = vld [vmem:[#allocation40_spill] sm:$0xff] }
 0x446   : > { %11251 = vmatprep.subr.bf16.mxu1 %v19195_v41 }
 0x449   : > { %11252 = vmatpush3.bf16.msra.mxu1 %v19195_v41  ;;  %v14412_v41 = vmul.f32 %v14265_v50, %v14265_v50 }
 0x44a   : > { %11253 = vmatprep.subr.bf16.mxu1 %v19196_v20 }
 0x44b   : > { %19231 = vst [vmem:[#allocation60_spill] sm:$0xff] %v14412_v41 }
 0x44c   : > { %v14308_v9 = vpop.f32.mrb[68].mxu0 }
 0x44d   : > { %11254 = vmatpush3.bf16.msra.mxu1 %v19196_v20  ;;  %v14311_v1 = vpop.f32.mrb[69].mxu0  ;;  %v14471_v20 = vmul.f32 %v14283_v0, %v14283_v0 }
 0x44e   : > { %19197 = vst [vmem:[#allocation37_spill] sm:$0xff] %v14311_v1  ;;  %11255 = vmatprep.subr.bf16.mxu1 %v19198_v60  ;;  %v14314_v18 = vpop.f32.mrb[70].mxu0 }
 0x44f   : > { %19199 = vst [vmem:[#allocation38_spill] sm:$0xff] %v14314_v18  ;;  %v14316_v8 = vpop.f32.mrb[71].mxu0  ;;  %19245 = vst [vmem:[#allocation74_spill] sm:$0xff] %v14471_v20 }
 0x450   : > { %19200 = vst [vmem:[#allocation39_spill] sm:$0xff] %v14316_v8 }
 0x451   : > { %11256 = vmatpush3.bf16.msra.mxu1 %v19198_v60 }
 0x452   : > { %11261 = vmatprep.subr.bf16.mxu1 %v19201_v24 }
 0x454   : > { %11258 = vmatmul.mubr.msk.bf16.vlgmr.msra.gmra.mrb[116].mxu1 %vm1205_vm0, %v14299_v17  ;;  %v14322_v47 = vpop.f32.mrb[72].mxu0 }
 0x455   : > { %19202 = vst [vmem:[#allocation40_spill] sm:$0xff] %v14322_v47  ;;  %11262 = vmatpush3.bf16.msra.mxu1 %v19201_v24  ;;  %v14325_v15 = vpop.f32.mrb[73].mxu0  ;;  %11269 = vmatprep.mubr.msk.bf16.mxu1 %vm1205_vm0, %v4293_v52  ;;  %v14447_v24 = vmul.f32 %v14275_v51, %v14275_v51 }
 0x456   : > { %19203 = vst [vmem:[#allocation46_spill] sm:$0xff] %v14325_v15  ;;  %11263 = vmatprep.subr.bf16.mxu1 %v19204_v12  ;;  %v14329_v4 = vpop.f32.mrb[74].mxu0 }
 0x457   : > { %19205 = vst [vmem:[#allocation35_spill] sm:$0xff] %v14329_v4  ;;  %v14331_v13 = vpop.f32.mrb[75].mxu0  ;;  %19239 = vst [vmem:[#allocation68_spill] sm:$0xff] %v14447_v24 }
 0x458   : > { %19206 = vst [vmem:[#allocation47_spill] sm:$0xff] %v14331_v13 }
 0x459   : > { %11264 = vmatpush3.bf16.msra.mxu1 %v19204_v12  ;;  %v14425_v12 = vmul.f32 %v14267_v19, %v14267_v19 }
 0x45a   : > { %11265 = vmatprep.subr.bf16.mxu1 %v19207_v38 }
 0x45b   : > { %19233 = vst [vmem:[#allocation62_spill] sm:$0xff] %v14425_v12 }
 0x45d   : > { %v14335_v43 = vpop.f32.mrb[76].mxu0  ;;  %11266 = vmatpush3.bf16.msra.mxu1 %v19207_v38 }
 0x45e   : > { %19208 = vst [vmem:[#allocation36_spill] sm:$0xff] %v14335_v43  ;;  %v14338_v26 = vpop.f32.mrb[77].mxu0  ;;  %11267 = vmatprep.subr.bf16.mxu1 %v19210_v31 }
 0x45f   : > { %19209 = vst [vmem:[#allocation48_spill] sm:$0xff] %v14338_v26  ;;  %v14341_v54 = vpop.f32.mrb[78].mxu0 }
 0x460   : > { %19211 = vst [vmem:[#allocation42_spill] sm:$0xff] %v14341_v54  ;;  %v14343_v30 = vpop.f32.mrb[79].mxu0 }
 0x461   : > { %19212 = vst [vmem:[#allocation49_spill] sm:$0xff] %v14343_v30  ;;  %11268 = vmatpush3.bf16.msra.mxu1 %v19210_v31  ;;  %v14431_v31 = vmul.f32 %v14270_v32, %v14270_v32 }
 0x462   : > { %11273 = vmatprep.subr.bf16.mxu1 %v19213_v33 }
 0x463   : > { %19235 = vst [vmem:[#allocation64_spill] sm:$0xff] %v14431_v31 }
 0x464   : > { %11270 = vmatmul.mubr.msk.bf16.vlgmr.msra.gmra.mrb[120].mxu1 %vm1205_vm0, %v14299_v17 }
 0x465   : > { %v14353_v29 = vpop.f32.mrb[80].mxu0  ;;  %11274 = vmatpush3.bf16.msra.mxu1 %v19213_v33  ;;  %11281 = vmatprep.mubr.msk.bf16.mxu1 %vm1205_vm0, %v4293_v52  ;;  %v19228_v52 = vld [vmem:[#allocation45_spill] sm:$0xff] }
 0x466   : > { %19215 = vst [vmem:[#allocation50_spill] sm:$0xff] %v14353_v29  ;;  %v14363_v6 = vpop.f32.mrb[81].mxu0  ;;  %11275 = vmatprep.subr.bf16.mxu1 %v19218_v57  ;;  %19229 = vst [vmem:[#allocation45_spill] sm:$0xff] %v14404_v39 }
 0x467   : > { %19217 = vst [vmem:[#allocation52_spill] sm:$0xff] %v14363_v6  ;;  %v14372_v10 = vpop.f32.mrb[82].mxu0 }
 0x468   : > { %19220 = vst [vmem:[#allocation53_spill] sm:$0xff] %v14372_v10  ;;  %v14380_v3 = vpop.f32.mrb[83].mxu0 }
 0x469   : > { %19222 = vst [vmem:[#allocation55_spill] sm:$0xff] %v14380_v3  ;;  %11276 = vmatpush3.bf16.msra.mxu1 %v19218_v57 }
 0x46a   : > { %11277 = vmatprep.subr.bf16.mxu1 %v19223_v56 }
 0x46d   : > { %v14390_v40 = vpop.f32.mrb[84].mxu0  ;;  %11278 = vmatpush3.bf16.msra.mxu1 %v19223_v56  ;;  %v14439_v56 = vmul.f32 %v14273_v7, %v14273_v7 }
 0x46e   : > { %19225 = vst [vmem:[#allocation56_spill] sm:$0xff] %v14390_v40  ;;  %v14399_v5 = vpop.f32.mrb[85].mxu0  ;;  %11279 = vmatprep.subr.bf16.mxu1 %v19228_v52 }
 0x46f   : > { %19227 = vst [vmem:[#allocation58_spill] sm:$0xff] %v14399_v5  ;;  %v14408_v61 = vpop.f32.mrb[86].mxu0  ;;  %19237 = vst [vmem:[#allocation66_spill] sm:$0xff] %v14439_v56 }
 0x470   : > { %19230 = vst [vmem:[#allocation59_spill] sm:$0xff] %v14408_v61  ;;  %v14416_v60 = vpop.f32.mrb[87].mxu0 }
 0x471   : > { %19232 = vst [vmem:[#allocation61_spill] sm:$0xff] %v14416_v60  ;;  %11280 = vmatpush3.bf16.msra.mxu1 %v19228_v52 }
 0x474   : > { %11282 = vmatmul.mubr.msk.bf16.vlgmr.msra.gmra.mrb[124].mxu1 %vm1205_vm0, %v14299_v17  ;;  %v14463_v17 = vmul.f32 %v14280_v2, %v14280_v2 }
 0x475   : > { %v14427_v38 = vpop.f32.mrb[88].mxu0 }
 0x476   : > { %19234 = vst [vmem:[#allocation63_spill] sm:$0xff] %v14427_v38  ;;  %v14435_v57 = vpop.f32.mrb[89].mxu0  ;;  %19243 = vst [vmem:[#allocation72_spill] sm:$0xff] %v14463_v17 }
 0x477   : > { %19236 = vst [vmem:[#allocation65_spill] sm:$0xff] %v14435_v57  ;;  %v14443_v52 = vpop.f32.mrb[90].mxu0 }
 0x478   : > { %19238 = vst [vmem:[#allocation67_spill] sm:$0xff] %v14443_v52  ;;  %v14451_v44 = vpop.f32.mrb[91].mxu0  ;;  %v14479_v52 = vmul.f32 %v14285_v11, %v14285_v11 }
 0x479   : > { %19240 = vst [vmem:[#allocation69_spill] sm:$0xff] %v14451_v44 }
 0x47a   : > { %19247 = vst [vmem:[#allocation76_spill] sm:$0xff] %v14479_v52 }
 0x47d   : > { %v14459_v63 = vpop.f32.mrb[92].mxu0 }
 0x47e   : > { %19242 = vst [vmem:[#allocation71_spill] sm:$0xff] %v14459_v63  ;;  %v14467_v23 = vpop.f32.mrb[93].mxu0 }
 0x47f   : > { %19244 = vst [vmem:[#allocation73_spill] sm:$0xff] %v14467_v23  ;;  %v14475_v25 = vpop.f32.mrb[94].mxu0  ;;  %v11087_v44 = vpop.f32.mrb[48].mxu1 }
 0x480   : > { %19246 = vst [vmem:[#allocation75_spill] sm:$0xff] %v14475_v25  ;;  %v14484_v48 = vmul.f32 %v11087_v44, %v14241_v34  ;;  %v14486_v63 = vmul.f32 %v11087_v44, %v11087_v44  ;;  %v14488_v38 = vpop.f32.mrb[95].mxu0  ;;  %v2269_v60 = vpop.f32.mrb[49].mxu1 }
 0x481   : > { %19249 = vst [vmem:[#allocation78_spill] sm:$0xff] %v14488_v38  ;;  %v14493_v23 = vmul.f32 %v2269_v60, %v14245_v49  ;;  %v14495_v61 = vmul.f32 %v2269_v60, %v2269_v60  ;;  %v11088_v5 = vpop.f32.mrb[50].mxu1  ;;  %v14513_v60 = vmul.f32 %v14289_v42, %v14289_v42 }
 0x482   : > { %19248 = vst [vmem:[#allocation77_spill] sm:$0xff] %v14486_v63  ;;  %v3649_v57 = vadd.f32 %v14486_v63, %v14351_v37  ;;  %v14500_v34 = vmul.f32 %v11088_v5, %v14249_v16  ;;  %v14502_v44 = vmul.f32 %v11088_v5, %v11088_v5  ;;  %v2272_v25 = vpop.f32.mrb[51].mxu1  ;;  %v14519_v16 = vmul.f32 %v14292_v53, %v14292_v53 }
 0x483   : > { %19250 = vst [vmem:[#allocation79_spill] sm:$0xff] %v14495_v61  ;;  %v3647_v40 = vadd.f32 %v14495_v61, %v14358_v55  ;;  %v14507_v33 = vmul.f32 %v2272_v25, %v14251_v59  ;;  %v14509_v49 = vmul.f32 %v2272_v25, %v2272_v25  ;;  %19253 = vst [vmem:[#allocation82_spill] sm:$0xff] %v14513_v60 }
 0x484   : > { %19251 = vst [vmem:[#allocation80_spill] sm:$0xff] %v14502_v44  ;;  %v3650_v38 = vadd.f32 %v14502_v44, %v14368_v35  ;;  %19254 = vst [vmem:[#allocation83_spill] sm:$0xff] %v14519_v16  ;;  %v14527_v59 = vmul.f32 %v14295_v46, %v14295_v46  ;;  %v14535_v35 = vmul.f32 %v14297_v62, %v14297_v62 }
 0x485   : > { %19252 = vst [vmem:[#allocation81_spill] sm:$0xff] %v14509_v49  ;;  %v3648_v5 = vadd.f32 %v14509_v49, %v14376_v27  ;;  %v14523_v3 = vpop.f32.mrb[96].mxu0  ;;  %v14549_v25 = vmul.f32 %v14308_v9, %v14308_v9  ;;  %v14559_v44 = vmul.f32 %v14314_v18, %v14314_v18  ;;  %v14561_v27 = vadd.f32 0.0001, %v3649_v57 }
 0x486   : > { %19255 = vst [vmem:[#allocation84_spill] sm:$0xff] %v14523_v3  ;;  %v14531_v10 = vpop.f32.mrb[97].mxu0  ;;  %v14553_v3 = vmul.f32 %v14311_v1, %v14311_v1  ;;  %v14575_v63 = vadd.f32 0.0001, %v3647_v40  ;;  %v14594_v57 = vadd.f32 0.0001, %v3650_v38 }
 0x487   : > { %19256 = vst [vmem:[#allocation85_spill] sm:$0xff] %v14531_v10  ;;  %v14539_v55 = vpop.f32.mrb[98].mxu0  ;;  %19259 = vst [vmem:[#allocation88_spill] sm:$0xff] %v14549_v25  ;;  %12058 = vrcp.f32 %v14561_v27 }
 0x488   : > { %19257 = vst [vmem:[#allocation86_spill] sm:$0xff] %v14539_v55  ;;  %v14543_v49 = vpop.f32.mrb[99].mxu0  ;;  %19260 = vst [vmem:[#allocation89_spill] sm:$0xff] %v14553_v3  ;;  %12060 = vrcp.f32 %v14575_v63 }
 0x489   : > { %19258 = vst [vmem:[#allocation87_spill] sm:$0xff] %v14543_v49  ;;  %19262 = vst [vmem:[#allocation91_spill] sm:$0xff] %v14559_v44  ;;  %v14569_v49 = vmul.f32 %v14316_v8, %v14316_v8  ;;  %12062 = vrcp.f32 %v14594_v57 }
 0x48b   : > { %19264 = vst [vmem:[#allocation93_spill] sm:$0xff] %v14569_v49  ;;  %v3583_v49 = vmul.f32 2.0, %v14493_v23 }
 0x48d   : > { %v14555_v37 = vpop.f32.mrb[100].mxu0 }
 0x48e   : > { %19261 = vst [vmem:[#allocation90_spill] sm:$0xff] %v14555_v37  ;;  %v14565_v6 = vpop.f32.mrb[101].mxu0 }
 0x48f   : > { %19263 = vst [vmem:[#allocation92_spill] sm:$0xff] %v14565_v6  ;;  %v14573_v29 = vpop.f32.mrb[102].mxu0  ;;  %v11091_v61 = vpop.f32.mrb[52].mxu1 }
 0x490   : > { %19265 = vst [vmem:[#allocation94_spill] sm:$0xff] %v14573_v29  ;;  %v14580_v18 = vmul.f32 %v11091_v61, %v14257_v21  ;;  %v14582_v55 = vmul.f32 %v11091_v61, %v11091_v61  ;;  %v14584_v37 = vpop.f32.mrb[103].mxu0  ;;  %v2285_v8 = vpop.f32.mrb[53].mxu1 }
 0x491   : > { %19267 = vst [vmem:[#allocation96_spill] sm:$0xff] %v14584_v37  ;;  %v14589_v10 = vmul.f32 %v2285_v8, %v14260_v58  ;;  %v14591_v6 = vmul.f32 %v2285_v8, %v2285_v8  ;;  %v11092_v40 = vpop.f32.mrb[54].mxu1  ;;  %v14606_v58 = vmul.f32 %v14322_v47, %v14322_v47  ;;  %v14610_v8 = vmul.f32 %v14325_v15, %v14325_v15 }
 0x492   : > { %19266 = vst [vmem:[#allocation95_spill] sm:$0xff] %v14582_v55  ;;  %v3653_v21 = vadd.f32 %v14582_v55, %v14388_v14  ;;  %v14599_v61 = vmul.f32 %v11092_v40, %v14263_v22  ;;  %v2288_v29 = vpop.f32.mrb[55].mxu1  ;;  %v14612_v38 = vmul.f32 %v11092_v40, %v11092_v40  ;;  %v14618_v22 = vmul.f32 %v14329_v4, %v14329_v4 }
 0x493   : > { %19268 = vst [vmem:[#allocation97_spill] sm:$0xff] %v14591_v6  ;;  %v3651_v1 = vadd.f32 %v14591_v6, %v14395_v45  ;;  %19269 = vst [vmem:[#allocation98_spill] sm:$0xff] %v14606_v58  ;;  %v14621_v45 = vadd.f32 0.0001, %v3648_v5  ;;  %v14624_v6 = vmul.f32 %v2288_v29, %v14265_v50  ;;  %v14630_v55 = vmul.f32 %v14331_v13, %v14331_v13 }
 0x494   : > { %19270 = vst [vmem:[#allocation99_spill] sm:$0xff] %v14610_v8  ;;  %19271 = vst [vmem:[#allocation100_spill] sm:$0xff] %v14612_v38  ;;  %v3654_v40 = vadd.f32 %v14612_v38, %v14404_v39  ;;  %v14634_v15 = vmul.f32 %v2288_v29, %v2288_v29  ;;  %v3585_v50 = vmul.f32 2.0, %v14484_v48 }
 0x495   : > { %v14614_v37 = vpop.f32.mrb[104].mxu0  ;;  %19273 = vst [vmem:[#allocation102_spill] sm:$0xff] %v14618_v22  ;;  %19275 = vst [vmem:[#allocation104_spill] sm:$0xff] %v14630_v55  ;;  %12064 = vrcp.f32 %v14621_v45 }
 0x496   : > { %19272 = vst [vmem:[#allocation101_spill] sm:$0xff] %v14614_v37  ;;  %v14626_v14 = vpop.f32.mrb[105].mxu0  ;;  %19276 = vst [vmem:[#allocation105_spill] sm:$0xff] %v14634_v15  ;;  %v14648_v39 = vadd.f32 0.0001, %v3654_v40  ;;  %v3652_v4 = vadd.f32 %v14634_v15, %v14412_v41  ;;  %v3584_v41 = vmul.f32 2.0, %v14507_v33  ;;  %v14685_v15 = vmul.f32 %v14338_v26, %v14338_v26 }
 0x497   : > { %19274 = vst [vmem:[#allocation103_spill] sm:$0xff] %v14626_v14  ;;  %v14638_v47 = vpop.f32.mrb[106].mxu0  ;;  %v11095_v5 = vpop.f32.mrb[56].mxu1  ;;  %v3586_v14 = vmul.f32 2.0, %v14500_v34 }
 0x498   : > { %19277 = vst [vmem:[#allocation106_spill] sm:$0xff] %v14638_v47  ;;  %v14646_v3 = vpop.f32.mrb[107].mxu0  ;;  %v2301_v29 = vpop.f32.mrb[57].mxu1  ;;  %v14653_v37 = vmul.f32 %v11095_v5, %v14267_v19  ;;  %v14655_v38 = vmul.f32 %v11095_v5, %v11095_v5  ;;  %12066 = vrcp.f32 %v14648_v39  ;;  %19284 = vst [vmem:[#allocation113_spill] sm:$0xff] %v14685_v15 }
 0x499   : > { %19278 = vst [vmem:[#allocation107_spill] sm:$0xff] %v14646_v3  ;;  %v11096_v58 = vpop.f32.mrb[58].mxu1  ;;  %v14661_v13 = vmul.f32 %v2301_v29, %v14270_v32  ;;  %v14663_v47 = vmul.f32 %v2301_v29, %v2301_v29  ;;  %v14669_v5 = vpop.eup %12058  ;;  %v14681_v3 = vmul.f32 %v14335_v43, %v14335_v43 }
 0x49a   : > { %19279 = vst [vmem:[#allocation108_spill] sm:$0xff] %v14655_v38  ;;  %v2304_v40 = vpop.f32.mrb[59].mxu1  ;;  %v3657_v19 = vadd.f32 %v14655_v38, %v14425_v12  ;;  %19281 = vst [vmem:[#allocation110_spill] sm:$0xff] %v14669_v5  ;;  %v14675_v32 = vmul.f32 %v11096_v58, %v14273_v7  ;;  %v14677_v29 = vmul.f32 %v11096_v58, %v11096_v58  ;;  %v14687_v12 = vadd.f32 0.0001, %v3585_v50 }
 0x49b   : > { %19280 = vst [vmem:[#allocation109_spill] sm:$0xff] %v14663_v47  ;;  %v3655_v44 = vadd.f32 %v14663_v47, %v14431_v31  ;;  %19283 = vst [vmem:[#allocation112_spill] sm:$0xff] %v14681_v3  ;;  %v14690_v38 = vmul.f32 %v2304_v40, %v14275_v51  ;;  %v14694_v31 = vpop.eup %12060  ;;  %v14698_v7 = vmul.f32 %v14341_v54, %v14341_v54  ;;  %v14700_v58 = vadd.f32 0.0001, %v3583_v49 }
 0x49c   : > { %19282 = vst [vmem:[#allocation111_spill] sm:$0xff] %v14677_v29  ;;  %19285 = vst [vmem:[#allocation114_spill] sm:$0xff] %v14687_v12  ;;  %v14702_v47 = vadd.f32 0.0001, %v3653_v21  ;;  %v3658_v26 = vadd.f32 %v14677_v29, %v14439_v56  ;;  %v14710_v51 = vmul.f32 %v14669_v5, %v14561_v27  ;;  %v14712_v12 = vadd.f32 0.0001, %v3586_v14 }
 0x49d   : > { %v14692_v55 = vpop.f32.mrb[108].mxu0  ;;  %19287 = vst [vmem:[#allocation116_spill] sm:$0xff] %v14694_v31  ;;  %19288 = vst [vmem:[#allocation117_spill] sm:$0xff] %v14698_v7  ;;  %v14714_v43 = vmul.f32 %v2304_v40, %v2304_v40  ;;  %v14724_v56 = vmul.f32 %v14343_v30, %v14343_v30  ;;  %v14726_v29 = vadd.f32 0.0001, %v3584_v41  ;;  %v14736_v54 = vmul.f32 %v14694_v31, %v14575_v63 }
 0x49e   : > { %19286 = vst [vmem:[#allocation115_spill] sm:$0xff] %v14692_v55  ;;  %19289 = vst [vmem:[#allocation118_spill] sm:$0xff] %v14700_v58  ;;  %v14706_v50 = vpop.f32.mrb[109].mxu0  ;;  %v14720_v58 = vpop.eup %12062  ;;  %v14728_v27 = vadd.f32 0.0001, %v3651_v1  ;;  %v3589_v5 = vmul.f32 2.0, %v14580_v18  ;;  %12068 = vrcp.f32 %v14702_v47 }
 0x49f   : > { %19290 = vst [vmem:[#allocation119_spill] sm:$0xff] %v14706_v50  ;;  %19291 = vst [vmem:[#allocation120_spill] sm:$0xff] %v14710_v51  ;;  %v14718_v49 = vpop.f32.mrb[110].mxu0  ;;  %v11099_v21 = vpop.f32.mrb[60].mxu1  ;;  %v3656_v55 = vadd.f32 %v14714_v43, %v14447_v24  ;;  %v14754_v30 = vmul.f32 %v14720_v58, %v14594_v57  ;;  %v3587_v57 = vmul.f32 2.0, %v14589_v10 }
 0x4a0   : > { %19292 = vst [vmem:[#allocation121_spill] sm:$0xff] %v14712_v12  ;;  %19293 = vst [vmem:[#allocation122_spill] sm:$0xff] %v14714_v43  ;;  %v14732_v40 = vpop.f32.mrb[111].mxu0  ;;  %v2317_v12 = vpop.f32.mrb[61].mxu1  ;;  %v14747_v14 = vmul.f32 %v11099_v21, %v14277_v36  ;;  %v14749_v50 = vmul.f32 %v11099_v21, %v11099_v21  ;;  %12070 = vrcp.f32 %v14728_v27  ;;  %v3590_v36 = vmul.f32 2.0, %v14599_v61 }
 0x4a1   : > { %19294 = vst [vmem:[#allocation123_spill] sm:$0xff] %v14718_v49  ;;  %19295 = vst [vmem:[#allocation124_spill] sm:$0xff] %v14720_v58  ;;  %v11100_v1 = vpop.f32.mrb[62].mxu1  ;;  %v14759_v49 = vmul.f32 %v2317_v12, %v14280_v2  ;;  %v14767_v31 = vmul.f32 %v2317_v12, %v2317_v12  ;;  %v14770_v58 = vadd.f32 0.0001, %v3657_v19 }
 0x4a2   : > { %19296 = vst [vmem:[#allocation125_spill] sm:$0xff] %v14724_v56  ;;  %19297 = vst [vmem:[#allocation126_spill] sm:$0xff] %v14726_v29  ;;  %v14744_v29 = vadd.f32 0.0001, %v3652_v4  ;;  %v2320_v63 = vpop.f32.mrb[63].mxu1  ;;  %v14761_v4 = vpop.eup %12064  ;;  %v3661_v21 = vadd.f32 %v14749_v50, %v14457_v28  ;;  %v14773_v41 = vmul.f32 %v11100_v1, %v14283_v0  ;;  %v14775_v2 = vmul.f32 %v11100_v1, %v11100_v1 }
 0x4a3   : > { %19298 = vst [vmem:[#allocation127_spill] sm:$0xff] %v14732_v40  ;;  %19299 = vst [vmem:[#allocation128_spill] sm:$0xff] %v14736_v54  ;;  %v12067_v51 = vpop.eup %12066  ;;  %v14781_v43 = vadd.f32 0.0001, %v3655_v44  ;;  %v3659_v12 = vadd.f32 %v14767_v31, %v14463_v17  ;;  %v14793_v1 = vmul.f32 %v2320_v63, %v14285_v11  ;;  %v14799_v44 = vmul.f32 %v14761_v4, %v14621_v45 }
 0x4a4   : > { %19300 = vst [vmem:[#allocation129_spill] sm:$0xff] %v14749_v50  ;;  %19301 = vst [vmem:[#allocation130_spill] sm:$0xff] %v14754_v30  ;;  %v3750_v24 = vmul.f32 %v12067_v51, %v14648_v39  ;;  %12072 = vrcp.f32 %v14744_v29  ;;  %v14788_v50 = vadd.f32 0.0001, %v3589_v5  ;;  %v3662_v0 = vadd.f32 %v14775_v2, %v14471_v20 }
 0x4a5   : > { %19302 = vst [vmem:[#allocation131_spill] sm:$0xff] %v14761_v4  ;;  %19303 = vst [vmem:[#allocation132_spill] sm:$0xff] %v14767_v31  ;;  %v14777_v40 = vpop.f32.mrb[112].mxu0  ;;  %v3622_v56 = vadd.f32 0.0001, %v3590_v36  ;;  %v3588_v31 = vmul.f32 2.0, %v14624_v6  ;;  %12074 = vrcp.f32 %v14770_v58  ;;  %v14809_v11 = vmul.f32 %v2320_v63, %v2320_v63 }
 0x4a6   : > { %19304 = vst [vmem:[#allocation133_spill] sm:$0xff] %v14775_v2  ;;  %v14785_v28 = vpop.f32.mrb[113].mxu0  ;;  %19305 = vst [vmem:[#allocation134_spill] sm:$0xff] %v14788_v50  ;;  %v3782_v17 = vsub.f32 2.0, %v3750_v24  ;;  %v14805_v5 = vadd.f32 0.0001, %v3658_v26  ;;  %12076 = vrcp.f32 %v14781_v43  ;;  %v19330_v22 = vsub.f32 %v14777_v40, %v14484_v48 }
 0x4a7   : > { %v14795_v39 = vpop.f32.mrb[114].mxu0  ;;  %19306 = vst [vmem:[#allocation135_spill] sm:$0xff] %v14799_v44  ;;  %v14807_v19 = vadd.f32 0.0001, %v3662_v0  ;;  %19307 = vst [vmem:[#allocation136_spill] sm:$0xff] %v14809_v11  ;;  %v3593_v54 = vmul.f32 2.0, %v14653_v37  ;;  %v3660_v26 = vadd.f32 %v14809_v11, %v14479_v52 }
 0x4a8   : > { %v14802_v7 = vpop.f32.mrb[115].mxu0  ;;  %v3814_v50 = vmul.f32 %v12067_v51, %v3782_v17  ;;  %v14813_v45 = vadd.f32 0.0001, %v3656_v55  ;;  %v14816_v36 = vadd.f32 0.0001, %v3587_v57  ;;  %v14821_v0 = vpop.eup %12068  ;;  %v3591_v17 = vmul.f32 2.0, %v14661_v13 }
 0x4a9   : > { %12078 = vrcp.f32 %v14807_v19  ;;  %19309 = vst [vmem:[#allocation138_spill] sm:$0xff] %v14821_v0  ;;  %v14830_v24 = vadd.f32 0.0001, %v3588_v31  ;;  %v3594_v57 = vmul.f32 2.0, %v14675_v32  ;;  %v14864_v20 = vadd.f32 0.0001, %v3661_v21 }
 0x4aa   : > { %19308 = vst [vmem:[#allocation137_spill] sm:$0xff] %v14816_v36  ;;  %v14823_v63 = vmul.f32 %v3814_v50, %v3622_v56  ;;  %12080 = vrcp.f32 %v14805_v5  ;;  %v14838_v56 = vpop.eup %12070  ;;  %v14840_v50 = vadd.f32 0.0001, %v3593_v54  ;;  %v3592_v36 = vmul.f32 2.0, %v14690_v38 }
 0x4ab   : > { %19311 = vst [vmem:[#allocation140_spill] sm:$0xff] %v14830_v24  ;;  %19312 = vst [vmem:[#allocation141_spill] sm:$0xff] %v14838_v56  ;;  %12082 = vrcp.f32 %v14813_v45  ;;  %v3597_v24 = vmul.f32 2.0, %v14747_v14  ;;  %v14862_v52 = vadd.f32 0.0001, %v3591_v17  ;;  %v3595_v31 = vmul.f32 2.0, %v14759_v49 }
 0x4ac   : > { %19310 = vst [vmem:[#allocation139_spill] sm:$0xff] %v14823_v63  ;;  %19313 = vst [vmem:[#allocation142_spill] sm:$0xff] %v14840_v50  ;;  %v14851_v63 = vmul.f32 %v14821_v0, %v14702_v47  ;;  %v14870_v0 = vmul.f32 %v14838_v56, %v14728_v27  ;;  %v14872_v11 = vadd.f32 0.0001, %v3594_v57  ;;  %v14874_v54 = vadd.f32 0.0001, %v3659_v12 }
 0x4ad   : > { %v14836_v4 = vpop.f32.mrb[116].mxu0  ;;  %19316 = vst [vmem:[#allocation145_spill] sm:$0xff] %v14862_v52  ;;  %v3598_v17 = vmul.f32 2.0, %v14773_v41  ;;  %v14892_v2 = vadd.f32 0.0001, %v3592_v36  ;;  %12084 = vrcp.f32 %v14864_v20  ;;  %v19333_v48 = vsub.f32 %v14795_v39, %v14500_v34 }
 0x4ae   : > { %v14847_v51 = vpop.f32.mrb[117].mxu0  ;;  %19314 = vst [vmem:[#allocation143_spill] sm:$0xff] %v14851_v63  ;;  %v14859_v55 = vpop.eup %12072  ;;  %19317 = vst [vmem:[#allocation146_spill] sm:$0xff] %v14870_v0  ;;  %12086 = vrcp.f32 %v14874_v54  ;;  %v14908_v36 = vadd.f32 0.0001, %v3660_v26  ;;  %v19338_v39 = vsub.f32 %v14802_v7, %v14507_v33 }
 0x4af   : > { %v14857_v50 = vpop.f32.mrb[118].mxu0  ;;  %v11103_v30 = vpop.f32.mrb[64].mxu1  ;;  %19315 = vst [vmem:[#allocation144_spill] sm:$0xff] %v14859_v55  ;;  %19318 = vst [vmem:[#allocation147_spill] sm:$0xff] %v14872_v11  ;;  %v14890_v12 = vmul.f32 %v14859_v55, %v14744_v29  ;;  %v14894_v11 = vadd.f32 0.0001, %v3597_v24 }
 0x4b0   : > { %v14866_v47 = vpop.f32.mrb[119].mxu0  ;;  %v2333_v15 = vpop.f32.mrb[65].mxu1  ;;  %v14881_v21 = vmul.f32 %v11103_v30, %v14289_v42  ;;  %v14883_v52 = vmul.f32 %v11103_v30, %v11103_v30  ;;  %19322 = vst [vmem:[#allocation151_spill] sm:$0xff] %v14892_v2  ;;  %v3596_v24 = vmul.f32 2.0, %v14793_v1  ;;  %v14915_v55 = vadd.f32 0.0001, %v3595_v31 }
 0x4b1   : > { %v11104_v44 = vpop.f32.mrb[66].mxu1  ;;  %v14885_v27 = vpop.eup %12074  ;;  %19321 = vst [vmem:[#allocation150_spill] sm:$0xff] %v14890_v12  ;;  %19323 = vst [vmem:[#allocation152_spill] sm:$0xff] %v14894_v11  ;;  %v14904_v57 = vmul.f32 %v2333_v15, %v14292_v53  ;;  %v14910_v11 = vmul.f32 %v2333_v15, %v2333_v15  ;;  %12088 = vrcp.f32 %v14908_v36 }
 0x4b2   : > { %19319 = vst [vmem:[#allocation148_spill] sm:$0xff] %v14883_v52  ;;  %19320 = vst [vmem:[#allocation149_spill] sm:$0xff] %v14885_v27  ;;  %v2336_v56 = vpop.f32.mrb[67].mxu1  ;;  %v14896_v3 = vpop.eup %12076  ;;  %v3665_v42 = vadd.f32 %v14883_v52, %v14513_v60  ;;  %v3630_v60 = vadd.f32 0.0001, %v3598_v17  ;;  %v14925_v26 = vmul.f32 %v14885_v27, %v14770_v58  ;;  %v14930_v63 = vmul.f32 %v11104_v44, %v14295_v46 }
 0x4b3   : > { %19324 = vst [vmem:[#allocation153_spill] sm:$0xff] %v14896_v3  ;;  %v12079_v29 = vpop.eup %12078  ;;  %19325 = vst [vmem:[#allocation154_spill] sm:$0xff] %v14915_v55  ;;  %v3663_v15 = vadd.f32 %v14910_v11, %v14519_v16  ;;  %v3297_v58 = vmul.f32 2.0, %v19330_v22  ;;  %v14943_v27 = vmul.f32 %v11104_v44, %v11104_v44  ;;  %v14947_v12 = vadd.f32 0.0001, %v3596_v24 }
 0x4b4   : > { %v3758_v30 = vmul.f32 %v12079_v29, %v14807_v19  ;;  %v14920_v52 = vpop.eup %12080  ;;  %19327 = vst [vmem:[#allocation156_spill] sm:$0xff] %v14925_v26  ;;  %v14938_v19 = vmul.f32 %v14896_v3, %v14781_v43  ;;  %v19332_v46 = vsub.f32 %v14785_v28, %v14493_v23  ;;  %v14954_v43 = vmul.f32 %v2336_v56, %v14297_v62 }
 0x4b5   : > { %v14912_v2 = vpop.f32.mrb[120].mxu0  ;;  %19326 = vst [vmem:[#allocation155_spill] sm:$0xff] %v14920_v52  ;;  %v14934_v17 = vpop.eup %12082  ;;  %19331 = vst [vmem:[#allocation159_spill] sm:$0xff] %v14947_v12  ;;  %v3298_v22 = vmul.f32 2.0, %v19333_v48  ;;  %v3666_v40 = vadd.f32 %v14943_v27, %v14527_v59  ;;  %v14961_v44 = vmul.f32 %v2336_v56, %v2336_v56  ;;  %v14966_v12 = vmul.f32 %v14920_v52, %v14805_v5 }
 0x4b6   : > { %v14918_v53 = vpop.f32.mrb[121].mxu0  ;;  %19328 = vst [vmem:[#allocation157_spill] sm:$0xff] %v14934_v17  ;;  %19329 = vst [vmem:[#allocation158_spill] sm:$0xff] %v14938_v19  ;;  %v3790_v55 = vsub.f32 2.0, %v3758_v30  ;;  %v3295_v16 = vmul.f32 2.0, %v19332_v46  ;;  %v14970_v62 = vmul.f32 %v14934_v17, %v14813_v45  ;;  %v19340_v45 = vsub.f32 %v14836_v4, %v14580_v18 }
 0x4b7   : > { %v14932_v31 = vpop.f32.mrb[122].mxu0  ;;  %19334 = vst [vmem:[#allocation160_spill] sm:$0xff] %v14966_v12  ;;  %v14976_v34 = vadd.f32 0.0009, %v3297_v58  ;;  %v3664_v56 = vadd.f32 %v14961_v44, %v14535_v35  ;;  %v3271_v46 = vsub.f32 %v14918_v53, %v14661_v13  ;;  %v14996_v33 = vadd.f32 0.0009, %v3298_v22 }
 0x4b8   : > { %v14945_v0 = vpop.f32.mrb[123].mxu0  ;;  %v3822_v30 = vmul.f32 %v12079_v29, %v3790_v55  ;;  %19335 = vst [vmem:[#allocation161_spill] sm:$0xff] %v14970_v62  ;;  %v3296_v55 = vmul.f32 2.0, %v19338_v39  ;;  %v14983_v5 = vadd.f32 0.0009, %v3295_v16  ;;  %v3301_v29 = vmul.f32 2.0, %v19340_v45 }
 0x4b9   : > { %19337 = vst [vmem:[#allocation163_spill] sm:$0xff] %v14976_v34  ;;  %19342 = vst [vmem:[#allocation166_spill] sm:$0xff] %v14996_v33  ;;  %v14998_v7 = vadd.f32 0.0001, %v3665_v42  ;;  %v19344_v48 = vsub.f32 %v14847_v51, %v14589_v10  ;;  %v15012_v22 = vadd.f32 0.0001, %v3663_v15 }
 0x4ba   : > { %v14974_v28 = vmul.f32 %v3822_v30, %v3630_v60  ;;  %19339 = vst [vmem:[#allocation164_spill] sm:$0xff] %v14983_v5  ;;  %v14994_v30 = vpop.eup %12084  ;;  %v15020_v60 = vadd.f32 0.0009, %v3296_v55  ;;  %v15030_v15 = vadd.f32 0.0009, %v3301_v29  ;;  %v3601_v42 = vmul.f32 2.0, %v14881_v21 }
 0x4bb   : > { %19341 = vst [vmem:[#allocation165_spill] sm:$0xff] %v14994_v30  ;;  %v15006_v13 = vpop.eup %12086  ;;  %v3299_v39 = vmul.f32 2.0, %v19344_v48  ;;  %v15028_v51 = vmul.f32 %v14994_v30, %v14864_v20  ;;  %v19348_v48 = vsub.f32 %v14857_v50, %v14599_v61  ;;  %12090 = vrcp.f32 %v14998_v7  ;;  %v19362_v12 = vld [vmem:[#allocation39_spill] sm:$0xff] }
 0x4bc   : > { %19336 = vst [vmem:[#allocation162_spill] sm:$0xff] %v14974_v28  ;;  %19343 = vst [vmem:[#allocation167_spill] sm:$0xff] %v15006_v13  ;;  %v15040_v53 = vmul.f32 %v15006_v13, %v14874_v54  ;;  %v15046_v30 = vpop.eup %12088  ;;  %12092 = vrcp.f32 %v15012_v22  ;;  %v15056_v54 = vadd.f32 0.0001, %v3666_v40  ;;  %v15075_v19 = vadd.f32 0.0001, %v3601_v42 }
 0x4bd   : > { %v14992_v58 = vpop.f32.mrb[124].mxu0  ;;  %19345 = vst [vmem:[#allocation168_spill] sm:$0xff] %v15020_v60  ;;  %19346 = vst [vmem:[#allocation169_spill] sm:$0xff] %v15028_v51  ;;  %v3302_v18 = vmul.f32 2.0, %v19348_v48  ;;  %v15048_v28 = vadd.f32 0.0009, %v3299_v39 }
 0x4be   : > { %v15004_v4 = vpop.f32.mrb[125].mxu0  ;;  %19347 = vst [vmem:[#allocation170_spill] sm:$0xff] %v15030_v15  ;;  %19349 = vst [vmem:[#allocation171_spill] sm:$0xff] %v15040_v53  ;;  %v19354_v48 = vld [vmem:[#allocation37_spill] sm:$0xff]  ;;  %v15077_v52 = vadd.f32 0.0001, %v3664_v56  ;;  %12094 = vrcp.f32 %v15056_v54 }
 0x4bf   : > { %v15016_v45 = vpop.f32.mrb[126].mxu0  ;;  %v11107_v24 = vpop.f32.mrb[68].mxu1  ;;  %19351 = vst [vmem:[#allocation173_spill] sm:$0xff] %v15046_v30  ;;  %19352 = vst [vmem:[#allocation174_spill] sm:$0xff] %v15048_v28  ;;  %v15066_v3 = vadd.f32 0.0009, %v3302_v18  ;;  %v15087_v18 = vmul.f32 %v15046_v30, %v14908_v36  ;;  %v19364_v36 = vsub.f32 %v14912_v2, %v14653_v37  ;;  %v19377_v37 = vsub.f32 %v14992_v58, %v14747_v14 }
 0x4c0   : > { %v15024_v23 = vpop.f32.mrb[127].mxu0  ;;  %v2349_v10 = vpop.f32.mrb[69].mxu1  ;;  %v15036_v16 = vmul.f32 %v11107_v24, %v14308_v9  ;;  %v15044_v20 = vmul.f32 %v11107_v24, %v11107_v24  ;;  %v19353_v9 = vsub.f32 %v14866_v47, %v14624_v6  ;;  %v3599_v6 = vmul.f32 2.0, %v14904_v57  ;;  %v19357_v47 = vld [vmem:[#allocation38_spill] sm:$0xff] }
 0x4c1   : > { %v11108_v55 = vpop.f32.mrb[70].mxu1  ;;  %v15061_v13 = vmul.f32 %v2349_v10, %v19354_v48  ;;  %v15063_v26 = vmul.f32 %v2349_v10, %v2349_v10  ;;  %19356 = vst [vmem:[#allocation175_spill] sm:$0xff] %v15066_v3  ;;  %19358 = vst [vmem:[#allocation38_spill] sm:$0xff] %v15075_v19  ;;  %v19359_v48 = vld [vmem:[#allocation89_spill] sm:$0xff]  ;;  %v3600_v53 = vmul.f32 2.0, %v14954_v43  ;;  %v3305_v30 = vmul.f32 2.0, %v19364_v36 }
 0x4c2   : > { %19350 = vst [vmem:[#allocation172_spill] sm:$0xff] %v15044_v20  ;;  %v2352_v29 = vpop.f32.mrb[71].mxu1  ;;  %v3300_v61 = vmul.f32 2.0, %v19353_v9  ;;  %v3669_v24 = vadd.f32 %v15044_v20, %v14549_v25  ;;  %v15070_v9 = vmul.f32 %v11108_v55, %v19357_v47  ;;  %19360 = vst [vmem:[#allocation176_spill] sm:$0xff] %v15087_v18  ;;  %v3602_v47 = vmul.f32 2.0, %v14930_v63  ;;  %v19496_v20 = vld [vmem:[#allocation122_spill] sm:$0xff] }
 0x4c3   : > { %19355 = vst [vmem:[#allocation37_spill] sm:$0xff] %v15063_v26  ;;  %v15081_v10 = vadd.f32 %v15063_v26, %v19359_v48  ;;  %v15090_v51 = vmul.f32 %v11108_v55, %v11108_v55  ;;  %v15093_v40 = vmul.f32 %v2352_v29, %v19362_v12  ;;  %v15106_v55 = vadd.f32 0.0001, %v3599_v6  ;;  %v19366_v12 = vld [vmem:[#allocation91_spill] sm:$0xff]  ;;  %v19430_v48 = vld [vmem:[#allocation125_spill] sm:$0xff] }
 0x4c4   : > { %v15097_v19 = vadd.f32 0.0009, %v3300_v61  ;;  %v3303_v17 = vmul.f32 2.0, %v3271_v46  ;;  %v15110_v28 = vmul.f32 %v2352_v29, %v2352_v29  ;;  %12096 = vrcp.f32 %v15077_v52 }
 0x4c5   : > { %v15072_v50 = vpop.f32.mrb[128].mxu0  ;;  %19361 = vst [vmem:[#allocation177_spill] sm:$0xff] %v15090_v51  ;;  %19365 = vst [vmem:[#allocation178_spill] sm:$0xff] %v15106_v55  ;;  %v3670_v62 = vadd.f32 %v15090_v51, %v19366_v12  ;;  %v19368_v3 = vsub.f32 %v14932_v31, %v14675_v32  ;;  %v15121_v36 = vadd.f32 0.0001, %v3602_v47  ;;  %v19370_v55 = vld [vmem:[#allocation93_spill] sm:$0xff]  ;;  %v15127_v34 = vpop.eup %12090  ;;  %v19374_v31 = vsub.f32 %v14945_v0, %v14690_v38 }
 0x4c6   : > { %v15083_v39 = vpop.f32.mrb[129].mxu0  ;;  %19363 = vst [vmem:[#allocation39_spill] sm:$0xff] %v15097_v19  ;;  %19367 = vst [vmem:[#allocation179_spill] sm:$0xff] %v15110_v28  ;;  %v3668_v19 = vadd.f32 %v15110_v28, %v19370_v55  ;;  %v15131_v32 = vadd.f32 0.0009, %v3305_v30  ;;  %v15138_v46 = vpop.eup %12092  ;;  %v19380_v0 = vsub.f32 %v15004_v4, %v14759_v49  ;;  %v15165_v58 = vmul.f32 %v15127_v34, %v14998_v7  ;;  %v19387_v7 = vld [vmem:[#allocation35_spill] sm:$0xff] }
 0x4c7   : > { %v15095_v42 = vpop.f32.mrb[130].mxu0  ;;  %v11111_v56 = vpop.f32.mrb[72].mxu1  ;;  %v3306_v60 = vmul.f32 2.0, %v19368_v3  ;;  %19369 = vst [vmem:[#allocation180_spill] sm:$0xff] %v15121_v36  ;;  %v15123_v29 = vadd.f32 0.0001, %v3670_v62 }
 0x4c8   : > { %v15104_v15 = vpop.f32.mrb[131].mxu0  ;;  %v2365_v61 = vpop.f32.mrb[73].mxu1  ;;  %19371 = vst [vmem:[#allocation181_spill] sm:$0xff] %v15127_v34  ;;  %v15129_v3 = vadd.f32 0.0001, %v3600_v53  ;;  %19373 = vst [vmem:[#allocation183_spill] sm:$0xff] %v15131_v32  ;;  %v15159_v32 = vmul.f32 %v11111_v56, %v11111_v56 }
 0x4c9   : > { %v11112_v6 = vpop.f32.mrb[74].mxu1  ;;  %v3304_v2 = vmul.f32 2.0, %v19374_v31  ;;  %19375 = vst [vmem:[#allocation184_spill] sm:$0xff] %v15138_v46  ;;  %v15140_v62 = vadd.f32 0.0009, %v3303_v17  ;;  %v3309_v36 = vmul.f32 2.0, %v19377_v37  ;;  %12098 = vrcp.f32 %v15123_v29 }
 0x4ca   : > { %v2368_v33 = vpop.f32.mrb[75].mxu1  ;;  %19372 = vst [vmem:[#allocation182_spill] sm:$0xff] %v15129_v3  ;;  %v19378_v53 = vld [vmem:[#allocation40_spill] sm:$0xff]  ;;  %v15151_v38 = vadd.f32 0.0009, %v3306_v60  ;;  %v3307_v31 = vmul.f32 2.0, %v19380_v0  ;;  %v19381_v17 = vsub.f32 %v15016_v45, %v14773_v41  ;;  %v15184_v34 = vmul.f32 %v11112_v6, %v19387_v7  ;;  %v15203_v7 = vpop.eup %12094 }
 0x4cb   : > { %19376 = vst [vmem:[#allocation185_spill] sm:$0xff] %v15140_v62  ;;  %v15147_v30 = vmul.f32 %v11111_v56, %v19378_v53  ;;  %19382 = vst [vmem:[#allocation186_spill] sm:$0xff] %v15159_v32  ;;  %v3605_v37 = vmul.f32 2.0, %v15036_v16  ;;  %v19384_v53 = vld [vmem:[#allocation46_spill] sm:$0xff]  ;;  %v15175_v45 = vadd.f32 0.0001, %v3669_v24  ;;  %v19390_v24 = vsub.f32 %v15024_v23, %v14793_v1 }
 0x4cc   : > { %19379 = vst [vmem:[#allocation40_spill] sm:$0xff] %v15151_v38  ;;  %v3310_v47 = vmul.f32 2.0, %v19381_v17  ;;  %19383 = vst [vmem:[#allocation187_spill] sm:$0xff] %v15165_v58  ;;  %v15171_v49 = vmul.f32 %v2365_v61, %v19384_v53  ;;  %v19385_v56 = vld [vmem:[#allocation98_spill] sm:$0xff]  ;;  %v15181_v17 = vmul.f32 %v2365_v61, %v2365_v61  ;;  %v15192_v53 = vmul.f32 %v15138_v46, %v15012_v22  ;;  %v19395_v46 = vld [vmem:[#allocation47_spill] sm:$0xff] }
 0x4cd   : > { %v15149_v3 = vpop.f32.mrb[132].mxu0  ;;  %v15179_v0 = vadd.f32 %v15159_v32, %v19385_v56  ;;  %v15194_v62 = vadd.f32 0.0009, %v3304_v2  ;;  %v3308_v38 = vmul.f32 2.0, %v19390_v24  ;;  %v15199_v5 = vmul.f32 %v11112_v6, %v11112_v6  ;;  %19392 = vst [vmem:[#allocation190_spill] sm:$0xff] %v15203_v7  ;;  %v19398_v24 = vld [vmem:[#allocation102_spill] sm:$0xff] }
 0x4ce   : > { %v15161_v14 = vpop.f32.mrb[133].mxu0  ;;  %19386 = vst [vmem:[#allocation46_spill] sm:$0xff] %v15181_v17  ;;  %19388 = vst [vmem:[#allocation35_spill] sm:$0xff] %v15192_v53  ;;  %v15205_v56 = vadd.f32 0.0009, %v3309_v36  ;;  %v3671_v22 = vadd.f32 %v15181_v17, %v14610_v8  ;;  %v15212_v2 = vmul.f32 %v2368_v33, %v19395_v46  ;;  %12100 = vrcp.f32 %v15175_v45 }
 0x4cf   : > { %v15173_v4 = vpop.f32.mrb[134].mxu0  ;;  %v11115_v41 = vpop.f32.mrb[76].mxu1  ;;  %19389 = vst [vmem:[#allocation188_spill] sm:$0xff] %v15194_v62  ;;  %19391 = vst [vmem:[#allocation189_spill] sm:$0xff] %v15199_v5  ;;  %v15207_v55 = vadd.f32 0.0009, %v3307_v31  ;;  %v3674_v36 = vadd.f32 %v15199_v5, %v19398_v24  ;;  %v19431_v28 = vsub.f32 %v15161_v14, %v15061_v13 }
 0x4d0   : > { %v15186_v18 = vpop.f32.mrb[135].mxu0  ;;  %v15188_v60 = vpop.f32.mrb[77].mxu1  ;;  %19393 = vst [vmem:[#allocation191_spill] sm:$0xff] %v15205_v56  ;;  %v15217_v23 = vadd.f32 0.0009, %v3310_v47  ;;  %v3603_v31 = vmul.f32 2.0, %v15061_v13  ;;  %v15235_v47 = vmul.f32 %v15203_v7, %v15056_v54  ;;  %v15280_v17 = vmul.f32 %v11115_v41, %v11115_v41 }
 0x4d1   : > { %v15201_v61 = vpop.f32.mrb[78].mxu1  ;;  %19394 = vst [vmem:[#allocation192_spill] sm:$0xff] %v15207_v55  ;;  %v15219_v6 = vadd.f32 0.0001, %v3605_v37  ;;  %v15223_v56 = vpop.eup %12096  ;;  %v15228_v46 = vadd.f32 0.0001, %v15081_v10  ;;  %v15230_v55 = vmul.f32 %v2368_v33, %v2368_v33 }
 0x4d2   : > { %v15214_v62 = vpop.f32.mrb[79].mxu1  ;;  %19396 = vst [vmem:[#allocation47_spill] sm:$0xff] %v15217_v23  ;;  %19399 = vst [vmem:[#allocation194_spill] sm:$0xff] %v15223_v56  ;;  %v15237_v37 = vadd.f32 0.0009, %v3308_v38  ;;  %v19403_v24 = vld [vmem:[#allocation104_spill] sm:$0xff]  ;;  %v15254_v38 = vmul.f32 %v15223_v56, %v15077_v52  ;;  %v19407_v56 = vsub.f32 %v15083_v39, %v14904_v57  ;;  %v19410_v57 = vsub.f32 %v15095_v42, %v14930_v63 }
 0x4d3   : > { %19397 = vst [vmem:[#allocation193_spill] sm:$0xff] %v15219_v6  ;;  %19400 = vst [vmem:[#allocation195_spill] sm:$0xff] %v15230_v55  ;;  %v3606_v6 = vmul.f32 2.0, %v15070_v9  ;;  %v15242_v23 = vadd.f32 0.0001, %v3668_v19  ;;  %v3672_v10 = vadd.f32 %v15230_v55, %v19403_v24  ;;  %v12099_v54 = vpop.eup %12098  ;;  %v3604_v7 = vmul.f32 2.0, %v15093_v40 }
 0x4d4   : > { %19401 = vst [vmem:[#allocation196_spill] sm:$0xff] %v15235_v47  ;;  %19402 = vst [vmem:[#allocation197_spill] sm:$0xff] %v15237_v37  ;;  %v19405_v19 = vsub.f32 %v15072_v50, %v14881_v21  ;;  %v15266_v1 = vadd.f32 0.0001, %v3603_v31  ;;  %12102 = vrcp.f32 %v15228_v46  ;;  %v3766_v52 = vmul.f32 %v12099_v54, %v15123_v29  ;;  %v19413_v31 = vld [vmem:[#allocation112_spill] sm:$0xff] }
 0x4d5   : > { %v15240_v58 = vpop.f32.mrb[136].mxu0  ;;  %19404 = vst [vmem:[#allocation198_spill] sm:$0xff] %v15254_v38  ;;  %v3311_v5 = vmul.f32 2.0, %v19407_v56  ;;  %v3638_v50 = vadd.f32 0.0001, %v3606_v6  ;;  %12104 = vrcp.f32 %v15242_v23  ;;  %v3314_v39 = vmul.f32 2.0, %v19410_v57 }
 0x4d6   : > { %v15250_v53 = vpop.f32.mrb[137].mxu0  ;;  %v3313_v37 = vmul.f32 2.0, %v19405_v19  ;;  %19406 = vst [vmem:[#allocation199_spill] sm:$0xff] %v15266_v1  ;;  %v19408_v19 = vld [vmem:[#allocation36_spill] sm:$0xff]  ;;  %v3798_v32 = vsub.f32 2.0, %v3766_v52  ;;  %v15300_v12 = vadd.f32 %v15280_v17, %v19413_v31  ;;  %v3609_v57 = vmul.f32 2.0, %v15147_v30 }
 0x4d7   : > { %v15262_v33 = vpop.f32.mrb[138].mxu0  ;;  %v15264_v55 = vpop.f32.mrb[80].mxu1  ;;  %v15278_v24 = vmul.f32 %v11115_v41, %v19408_v19  ;;  %19409 = vst [vmem:[#allocation36_spill] sm:$0xff] %v15280_v17  ;;  %v15294_v41 = vadd.f32 0.0001, %v3604_v7  ;;  %v19415_v63 = vld [vmem:[#allocation48_spill] sm:$0xff] }
 0x4d8   : > { %v15273_v8 = vpop.f32.mrb[139].mxu0  ;;  %v15275_v21 = vpop.f32.mrb[81].mxu1  ;;  %v15296_v19 = vadd.f32 0.0009, %v3313_v37  ;;  %v3830_v29 = vmul.f32 %v12099_v54, %v3798_v32  ;;  %v15302_v52 = vadd.f32 0.0009, %v3311_v5  ;;  %v15309_v42 = vmul.f32 %v15188_v60, %v19415_v63 }
 0x4d9   : > { %v15284_v1 = vpop.f32.mrb[82].mxu1  ;;  %19411 = vst [vmem:[#allocation200_spill] sm:$0xff] %v15294_v41  ;;  %v15305_v47 = vadd.f32 0.0001, %v15179_v0  ;;  %v15312_v7 = vadd.f32 0.0001, %v3671_v22  ;;  %v15316_v37 = vmul.f32 %v15188_v60, %v15188_v60  ;;  %v15324_v0 = vpop.eup %12100  ;;  %v15334_v22 = vmul.f32 %v15201_v61, %v15201_v61 }
 0x4da   : > { %v15291_v56 = vpop.f32.mrb[83].mxu1  ;;  %19412 = vst [vmem:[#allocation201_spill] sm:$0xff] %v15296_v19  ;;  %19414 = vst [vmem:[#allocation202_spill] sm:$0xff] %v15302_v52  ;;  %v19417_v6 = vld [vmem:[#allocation42_spill] sm:$0xff]  ;;  %v15326_v54 = vmul.f32 %v3830_v29, %v3638_v50  ;;  %v15328_v63 = vadd.f32 0.0009, %v3314_v39 }
 0x4db   : > { %19416 = vst [vmem:[#allocation48_spill] sm:$0xff] %v15316_v37  ;;  %v15320_v32 = vmul.f32 %v15201_v61, %v19417_v6  ;;  %19418 = vst [vmem:[#allocation42_spill] sm:$0xff] %v15324_v0  ;;  %v15330_v41 = vadd.f32 0.0001, %v3674_v36  ;;  %v19422_v6 = vsub.f32 %v15104_v15, %v14954_v43  ;;  %v3607_v52 = vmul.f32 2.0, %v15171_v49  ;;  %v19423_v50 = vld [vmem:[#allocation113_spill] sm:$0xff] }
 0x4dc   : > { %19419 = vst [vmem:[#allocation203_spill] sm:$0xff] %v15326_v54  ;;  %19420 = vst [vmem:[#allocation204_spill] sm:$0xff] %v15328_v63  ;;  %v15342_v38 = vadd.f32 0.0001, %v3672_v10  ;;  %v3675_v29 = vadd.f32 %v15316_v37, %v19423_v50  ;;  %12106 = vrcp.f32 %v15305_v47  ;;  %v19424_v61 = vld [vmem:[#allocation117_spill] sm:$0xff]  ;;  %v15359_v15 = vmul.f32 %v15214_v62, %v15214_v62 }
 0x4dd   : > { %v15322_v5 = vpop.f32.mrb[140].mxu0  ;;  %19421 = vst [vmem:[#allocation205_spill] sm:$0xff] %v15334_v22  ;;  %v3312_v19 = vmul.f32 2.0, %v19422_v6  ;;  %v3678_v54 = vadd.f32 %v15334_v22, %v19424_v61  ;;  %v19425_v63 = vld [vmem:[#allocation49_spill] sm:$0xff]  ;;  %v15367_v50 = vmul.f32 %v15324_v0, %v15175_v45  ;;  %12108 = vrcp.f32 %v15312_v7 }
 0x4de   : > { %v15336_v60 = vpop.f32.mrb[141].mxu0  ;;  %v15355_v43 = vmul.f32 %v15214_v62, %v19425_v63  ;;  %19426 = vst [vmem:[#allocation49_spill] sm:$0xff] %v15359_v15  ;;  %v3610_v61 = vmul.f32 2.0, %v15184_v34  ;;  %v3608_v31 = vmul.f32 2.0, %v15212_v2  ;;  %v15374_v22 = vpop.eup %12102  ;;  %12110 = vrcp.f32 %v15330_v41 }
 0x4df   : > { %v15346_v39 = vpop.f32.mrb[142].mxu0  ;;  %v15348_v36 = vpop.f32.mrb[84].mxu1  ;;  %19427 = vst [vmem:[#allocation206_spill] sm:$0xff] %v15367_v50  ;;  %19428 = vst [vmem:[#allocation207_spill] sm:$0xff] %v15374_v22  ;;  %v19429_v62 = vsub.f32 %v15149_v3, %v15036_v16  ;;  %v3710_v17 = vadd.f32 0.0001, %v3678_v54  ;;  %v3676_v45 = vadd.f32 %v15359_v15, %v19430_v48  ;;  %12112 = vrcp.f32 %v15342_v38 }
 0x4e0   : > { %v15361_v10 = vpop.f32.mrb[143].mxu0  ;;  %v15363_v6 = vpop.f32.mrb[85].mxu1  ;;  %v3315_v25 = vmul.f32 2.0, %v19431_v28  ;;  %v15394_v3 = vadd.f32 0.0001, %v3609_v57  ;;  %v15403_v28 = vmul.f32 %v15374_v22, %v15228_v46  ;;  %v19438_v57 = vsub.f32 %v15173_v4, %v15070_v9  ;;  %v19440_v48 = vld [vmem:[#allocation79_spill] sm:$0xff] }
 0x4e1   : > { %v15372_v63 = vpop.f32.mrb[86].mxu1  ;;  %v3317_v37 = vmul.f32 2.0, %v19429_v62  ;;  %v15392_v16 = vpop.eup %12104  ;;  %v15396_v54 = vadd.f32 0.0009, %v3312_v19  ;;  %v15398_v62 = vadd.f32 0.0001, %v3607_v52  ;;  %12114 = vrcp.f32 %v3710_v17 }
 0x4e2   : > { %v15382_v0 = vpop.f32.mrb[87].mxu1  ;;  %19432 = vst [vmem:[#allocation208_spill] sm:$0xff] %v15392_v16  ;;  %19433 = vst [vmem:[#allocation209_spill] sm:$0xff] %v15394_v3  ;;  %v15405_v13 = vadd.f32 0.0001, %v3610_v61  ;;  %v3318_v26 = vmul.f32 2.0, %v19438_v57  ;;  %v3231_v3 = vsub.f32 %v15275_v21, %v19440_v48  ;;  %v15420_v46 = vmul.f32 %v15392_v16, %v15242_v23 }
 0x4e3   : > { %19434 = vst [vmem:[#allocation210_spill] sm:$0xff] %v15396_v54  ;;  %19435 = vst [vmem:[#allocation211_spill] sm:$0xff] %v15398_v62  ;;  %v19439_v19 = vld [vmem:[#allocation77_spill] sm:$0xff]  ;;  %v15422_v61 = vadd.f32 0.0001, %v3608_v31  ;;  %v19445_v9 = vsub.f32 %v15186_v18, %v15093_v40  ;;  %v19446_v4 = vld [vmem:[#allocation50_spill] sm:$0xff] }
 0x4e4   : > { %19436 = vst [vmem:[#allocation212_spill] sm:$0xff] %v15403_v28  ;;  %19437 = vst [vmem:[#allocation213_spill] sm:$0xff] %v15405_v13  ;;  %v3233_v52 = vsub.f32 %v15264_v55, %v19439_v19  ;;  %v15424_v14 = vadd.f32 0.0009, %v3317_v37  ;;  %v15426_v62 = vadd.f32 0.0009, %v3315_v25 }
 0x4e5   : > { %19441 = vst [vmem:[#allocation77_spill] sm:$0xff] %v15420_v46  ;;  %19442 = vst [vmem:[#allocation79_spill] sm:$0xff] %v15422_v61  ;;  %v3316_v55 = vmul.f32 2.0, %v19445_v9  ;;  %v19447_v57 = vld [vmem:[#allocation41_spill] sm:$0xff]  ;;  %v19449_v13 = vld [vmem:[#allocation52_spill] sm:$0xff] }
 0x4e6   : > { %19443 = vst [vmem:[#allocation214_spill] sm:$0xff] %v15424_v14  ;;  %19444 = vst [vmem:[#allocation215_spill] sm:$0xff] %v15426_v62  ;;  %v19448_v19 = vsub.f32 %v19446_v4, %v19447_v57  ;;  %v19450_v48 = vld [vmem:[#allocation51_spill] sm:$0xff]  ;;  %v19452_v23 = vld [vmem:[#allocation80_spill] sm:$0xff]  ;;  %v15440_v37 = vadd.f32 0.0001, %v15300_v12 }
 0x4e7   : > { %v19451_v21 = vsub.f32 %v19449_v13, %v19450_v48  ;;  %v3234_v31 = vsub.f32 %v15284_v1, %v19452_v23  ;;  %v11175_v61 = vpop.f32.mrb[88].mxu1  ;;  %v19453_v25 = vld [vmem:[#allocation81_spill] sm:$0xff]  ;;  %v15450_v13 = vpop.eup %12106  ;;  %v15453_v1 = vadd.f32 0.0009, %v3318_v26  ;;  %v15455_v9 = vadd.f32 0.0001, %v3675_v29 }
 0x4e8   : > { %v3361_v51 = vadd.f32 %v3233_v52, %v19448_v19  ;;  %v3232_v14 = vsub.f32 %v15291_v56, %v19453_v25  ;;  %v15448_v52 = vpop.f32.mrb[89].mxu1  ;;  %19454 = vst [vmem:[#allocation50_spill] sm:$0xff] %v15450_v13  ;;  %v3614_v12 = vmul.f32 2.0, %v15320_v32  ;;  %v15458_v4 = vpop.eup %12108  ;;  %v15462_v57 = vmul.f32 2.0, %v15278_v24  ;;  %v19458_v19 = vld [vmem:[#allocation53_spill] sm:$0xff]  ;;  %v19459_v48 = vld [vmem:[#allocation43_spill] sm:$0xff] }
 0x4e9   : > { %v3359_v50 = vadd.f32 %v3231_v3, %v19451_v21  ;;  %19455 = vst [vmem:[#allocation41_spill] sm:$0xff] %v15453_v1  ;;  %19456 = vst [vmem:[#allocation52_spill] sm:$0xff] %v15458_v4  ;;  %v19460_v21 = vsub.f32 %v19458_v19, %v19459_v48  ;;  %v19461_v25 = vld [vmem:[#allocation55_spill] sm:$0xff]  ;;  %v19462_v18 = vld [vmem:[#allocation54_spill] sm:$0xff]  ;;  %v11176_v40 = vpop.f32.mrb[90].mxu1  ;;  %v15470_v29 = vpop.eup %12110  ;;  %12116 = vrcp.f32 %v15440_v37 }
 0x4ea   : > { %19457 = vst [vmem:[#allocation51_spill] sm:$0xff] %v15462_v57  ;;  %v19463_v3 = vsub.f32 %v19461_v25, %v19462_v18  ;;  %19464 = vst [vmem:[#allocation80_spill] sm:$0xff] %v15470_v29  ;;  %v15472_v22 = vadd.f32 0.0009, %v3316_v55  ;;  %v15474_v28 = vadd.f32 0.0001, %v3676_v45  ;;  %v15480_v19 = vpop.eup %12112  ;;  %v15494_v18 = vmul.f32 %v15458_v4, %v15312_v7 }
 0x4eb   : > { %v3362_v23 = vadd.f32 %v3234_v31, %v19460_v21  ;;  %v19466_v62 = vld [vmem:[#allocation95_spill] sm:$0xff]  ;;  %v2786_v1 = vpop.f32.mrb[91].mxu1  ;;  %19467 = vst [vmem:[#allocation53_spill] sm:$0xff] %v15480_v19  ;;  %v15484_v31 = vmul.f32 %v15450_v13, %v15305_v47  ;;  %v15490_v45 = vadd.f32 0.0009, %v3361_v51  ;;  %v12115_v55 = vpop.eup %12114  ;;  %12118 = vrcp.f32 %v15455_v9  ;;  %v19474_v51 = vld [vmem:[#allocation97_spill] sm:$0xff] }
 0x4ec   : > { %v3360_v26 = vadd.f32 %v3232_v14, %v19463_v3  ;;  %19465 = vst [vmem:[#allocation81_spill] sm:$0xff] %v15472_v22  ;;  %v3237_v57 = vsub.f32 %v15348_v36, %v19466_v62  ;;  %v15488_v14 = vmul.f32 2.0, %v15309_v42  ;;  %19470 = vst [vmem:[#allocation54_spill] sm:$0xff] %v15494_v18  ;;  %v3646_v36 = vadd.f32 0.0001, %v3614_v12  ;;  %v19471_v62 = vld [vmem:[#allocation56_spill] sm:$0xff] }
 0x4ed   : > { %19468 = vst [vmem:[#allocation43_spill] sm:$0xff] %v15484_v31  ;;  %v19472_v3 = vld [vmem:[#allocation44_spill] sm:$0xff]  ;;  %v3774_v21 = vmul.f32 %v12115_v55, %v3710_v17  ;;  %v15500_v25 = vadd.f32 0.0009, %v3359_v50  ;;  %v15508_v7 = vmul.f32 %v15470_v29, %v15330_v41  ;;  %v15512_v12 = vmul.f32 %v15480_v19, %v15342_v38  ;;  %v19481_v29 = vld [vmem:[#allocation105_spill] sm:$0xff] }
 0x4ee   : > { %19469 = vst [vmem:[#allocation55_spill] sm:$0xff] %v15488_v14  ;;  %v19473_v48 = vsub.f32 %v19471_v62, %v19472_v3  ;;  %v3235_v14 = vsub.f32 %v15363_v6, %v19474_v51  ;;  %12120 = vrcp.f32 %v15474_v28  ;;  %v15517_v62 = vadd.f32 0.0009, %v3362_v23  ;;  %v19477_v6 = vld [vmem:[#allocation58_spill] sm:$0xff]  ;;  %v19478_v3 = vld [vmem:[#allocation57_spill] sm:$0xff]  ;;  %v19480_v38 = vld [vmem:[#allocation100_spill] sm:$0xff] }
 0x4ef   : > { %v11179_v13 = vpop.f32.mrb[92].mxu1  ;;  %19475 = vst [vmem:[#allocation95_spill] sm:$0xff] %v15508_v7  ;;  %19476 = vst [vmem:[#allocation56_spill] sm:$0xff] %v15512_v12  ;;  %v3806_v50 = vsub.f32 2.0, %v3774_v21  ;;  %12122 = vrcp.f32 %v15490_v45  ;;  %v15524_v56 = vadd.f32 0.0009, %v3360_v26  ;;  %v3238_v4 = vsub.f32 %v15372_v63, %v19480_v38 }
 0x4f0   : > { %v3365_v47 = vadd.f32 %v3237_v57, %v19473_v48  ;;  %v3612_v57 = vmul.f32 2.0, %v15355_v43  ;;  %v2799_v17 = vpop.f32.mrb[93].mxu1  ;;  %v19479_v48 = vsub.f32 %v19477_v6, %v19478_v3  ;;  %v3236_v19 = vsub.f32 %v15382_v0, %v19481_v29  ;;  %v19482_v16 = vld [vmem:[#allocation108_spill] sm:$0xff]  ;;  %v19484_v26 = vld [vmem:[#allocation59_spill] sm:$0xff]  ;;  %v19485_v3 = vld [vmem:[#allocation45_spill] sm:$0xff] }
 0x4f1   : > { %v15522_v41 = vpop.f32.mrb[94].mxu1  ;;  %v3241_v21 = vsub.f32 %v11175_v61, %v19482_v16  ;;  %v3838_v23 = vmul.f32 %v12115_v55, %v3806_v50  ;;  %v19483_v22 = vsub.f32 %v15240_v58, %v15147_v30  ;;  %12124 = vrcp.f32 %v15500_v25  ;;  %v19487_v38 = vld [vmem:[#allocation61_spill] sm:$0xff]  ;;  %v19488_v54 = vld [vmem:[#allocation60_spill] sm:$0xff]  ;;  %v19490_v16 = vld [vmem:[#allocation63_spill] sm:$0xff] }
 0x4f2   : > { %v3363_v51 = vadd.f32 %v3235_v14, %v19479_v48  ;;  %v15531_v46 = vpop.f32.mrb[95].mxu1  ;;  %v15537_v14 = vadd.f32 0.0009, %v3365_v47  ;;  %v19486_v48 = vsub.f32 %v19484_v26, %v19485_v3  ;;  %v19489_v0 = vsub.f32 %v19487_v38, %v19488_v54  ;;  %v19491_v61 = vld [vmem:[#allocation62_spill] sm:$0xff]  ;;  %v19493_v50 = vld [vmem:[#allocation109_spill] sm:$0xff] }
 0x4f3   : > { %v3321_v6 = vmul.f32 2.0, %v19483_v22  ;;  %v19492_v15 = vsub.f32 %v19490_v16, %v19491_v61  ;;  %v3239_v30 = vsub.f32 %v15448_v52, %v19493_v50  ;;  %v15550_v58 = vmul.f32 %v3838_v23, %v3646_v36  ;;  %v19495_v22 = vld [vmem:[#allocation111_spill] sm:$0xff]  ;;  %v19500_v52 = vld [vmem:[#allocation64_spill] sm:$0xff]  ;;  %v15565_v23 = vpop.eup %12116 }
 0x4f4   : > { %v3366_v63 = vadd.f32 %v3238_v4, %v19486_v48  ;;  %v3364_v29 = vadd.f32 %v3236_v19, %v19489_v0  ;;  %12126 = vrcp.f32 %v15517_v62  ;;  %v3242_v47 = vsub.f32 %v11176_v40, %v19495_v22  ;;  %19502 = vst [vmem:[#allocation97_spill] sm:$0xff] %v15565_v23  ;;  %v19503_v40 = vld [vmem:[#allocation67_spill] sm:$0xff] }
 0x4f5   : > { %v3369_v55 = vadd.f32 %v3241_v21, %v19492_v15  ;;  %19494 = vst [vmem:[#allocation44_spill] sm:$0xff] %v15550_v58  ;;  %v3240_v26 = vsub.f32 %v2786_v1, %v19496_v20  ;;  %v19497_v4 = vsub.f32 %v15250_v53, %v15171_v49  ;;  %v19498_v19 = vsub.f32 %v15262_v33, %v15184_v34  ;;  %v19499_v15 = vld [vmem:[#allocation65_spill] sm:$0xff]  ;;  %v19504_v20 = vld [vmem:[#allocation66_spill] sm:$0xff]  ;;  %v19507_v53 = vld [vmem:[#allocation68_spill] sm:$0xff]  ;;  %v15576_v50 = vpop.eup %12118 }
 0x4f6   : > { %12128 = vrcp.f32 %v15524_v56  ;;  %v19501_v36 = vsub.f32 %v19499_v15, %v19500_v52  ;;  %v15567_v48 = vadd.f32 0.0009, %v3363_v51  ;;  %v19505_v1 = vsub.f32 %v19503_v40, %v19504_v20  ;;  %v19506_v49 = vld [vmem:[#allocation69_spill] sm:$0xff]  ;;  %19510 = vst [vmem:[#allocation58_spill] sm:$0xff] %v15576_v50  ;;  %v19516_v20 = vld [vmem:[#allocation71_spill] sm:$0xff] }
 0x4f7   : > { %v3319_v54 = vmul.f32 2.0, %v19497_v4  ;;  %v3322_v3 = vmul.f32 2.0, %v19498_v19  ;;  %v19508_v0 = vsub.f32 %v19506_v49, %v19507_v53  ;;  %v19509_v34 = vld [vmem:[#allocation129_spill] sm:$0xff]  ;;  %v11183_v61 = vpop.f32.mrb[96].mxu1  ;;  %12130 = vrcp.f32 %v15537_v14  ;;  %v19512_v4 = vld [vmem:[#allocation132_spill] sm:$0xff] }
 0x4f8   : > { %v3367_v21 = vadd.f32 %v3239_v30, %v19501_v36  ;;  %v3370_v38 = vadd.f32 %v3242_v47, %v19505_v1  ;;  %v3245_v33 = vsub.f32 %v11179_v13, %v19509_v34  ;;  %v19511_v30 = vsub.f32 %v15273_v8, %v15212_v2  ;;  %v2815_v47 = vpop.f32.mrb[97].mxu1  ;;  %v15590_v40 = vpop.eup %12120 }
 0x4f9   : > { %v3368_v16 = vadd.f32 %v3240_v26, %v19508_v0  ;;  %v15582_v51 = vadd.f32 0.0009, %v3366_v63  ;;  %v3243_v19 = vsub.f32 %v2799_v17, %v19512_v4  ;;  %v15588_v52 = vadd.f32 0.0009, %v3364_v29  ;;  %v11184_v36 = vpop.f32.mrb[98].mxu1  ;;  %19513 = vst [vmem:[#allocation57_spill] sm:$0xff] %v15590_v40  ;;  %v15600_v0 = vpop.eup %12122 }
 0x4fa   : > { %v3320_v22 = vmul.f32 2.0, %v19511_v30  ;;  %v15593_v2 = vadd.f32 0.0001, %v3612_v57  ;;  %v15595_v63 = vadd.f32 0.0009, %v3321_v6  ;;  %v19517_v17 = vld [vmem:[#allocation70_spill] sm:$0xff]  ;;  %12132 = vrcp.f32 %v15567_v48 }
 0x4fb   : > { %v19518_v1 = vsub.f32 %v19516_v20, %v19517_v17  ;;  %v2818_v53 = vpop.f32.mrb[99].mxu1  ;;  %v15602_v34 = vadd.f32 0.0009, %v3319_v54  ;;  %v15605_v29 = vadd.f32 0.0009, %v3369_v55  ;;  %v19520_v30 = vld [vmem:[#allocation73_spill] sm:$0xff]  ;;  %v15612_v6 = vmul.f32 %v15565_v23, %v15440_v37  ;;  %v15619_v54 = vpop.eup %12124 }
 0x4fc   : > { %19514 = vst [vmem:[#allocation100_spill] sm:$0xff] %v15593_v2  ;;  %19515 = vst [vmem:[#allocation105_spill] sm:$0xff] %v15595_v63  ;;  %v19521_v4 = vld [vmem:[#allocation72_spill] sm:$0xff]  ;;  %v15614_v26 = vadd.f32 0.0009, %v3322_v3  ;;  %12134 = vrcp.f32 %v15582_v51  ;;  %v15623_v55 = vmul.f32 %v15576_v50, %v15455_v9  ;;  %v19527_v20 = vsub.f32 %v15322_v5, %v15278_v24  ;;  %v19542_v23 = vld [vmem:[#allocation82_spill] sm:$0xff] }
 0x4fd   : > { %v3373_v49 = vadd.f32 %v3245_v33, %v19518_v1  ;;  %19519 = vst [vmem:[#allocation108_spill] sm:$0xff] %v15602_v34  ;;  %v19522_v15 = vsub.f32 %v19520_v30, %v19521_v4  ;;  %19523 = vst [vmem:[#allocation59_spill] sm:$0xff] %v15612_v6  ;;  %v15616_v33 = vadd.f32 0.0009, %v3320_v22  ;;  %v19529_v37 = vsub.f32 %v15336_v60, %v15309_v42  ;;  %v19531_v1 = vld [vmem:[#allocation133_spill] sm:$0xff]  ;;  %v19532_v30 = vld [vmem:[#allocation136_spill] sm:$0xff] }
 0x4fe   : > { %19524 = vst [vmem:[#allocation45_spill] sm:$0xff] %v15614_v26  ;;  %19526 = vst [vmem:[#allocation60_spill] sm:$0xff] %v15623_v55  ;;  %12136 = vrcp.f32 %v15588_v52  ;;  %v19530_v22 = vsub.f32 %v15346_v39, %v15320_v32  ;;  %v15637_v17 = vadd.f32 0.0009, %v3367_v21  ;;  %v3246_v9 = vsub.f32 %v15522_v41, %v19531_v1  ;;  %v15643_v5 = vpop.eup %12126  ;;  %v19534_v32 = vld [vmem:[#allocation148_spill] sm:$0xff]  ;;  %v19538_v1 = vld [vmem:[#allocation78_spill] sm:$0xff] }
 0x4ff   : > { %v3371_v57 = vadd.f32 %v3243_v19, %v19522_v15  ;;  %19525 = vst [vmem:[#allocation61_spill] sm:$0xff] %v15616_v33  ;;  %v15628_v19 = vmul.f32 2.0, %v19527_v20  ;;  %v3323_v3 = vmul.f32 2.0, %v19529_v37  ;;  %v3244_v24 = vsub.f32 %v15531_v46, %v19532_v30  ;;  %v15653_v21 = vpop.f32.mrb[100].mxu1  ;;  %v19535_v46 = vld [vmem:[#allocation75_spill] sm:$0xff]  ;;  %v19536_v20 = vld [vmem:[#allocation74_spill] sm:$0xff] }
 0x500   : > { %v3326_v15 = vmul.f32 2.0, %v19530_v22  ;;  %v15647_v42 = vmul.f32 %v15590_v40, %v15474_v28  ;;  %12138 = vrcp.f32 %v15605_v29  ;;  %v15650_v60 = vadd.f32 0.0009, %v3370_v38  ;;  %v15655_v4 = vpop.eup %12128  ;;  %v19539_v28 = vld [vmem:[#allocation76_spill] sm:$0xff]  ;;  %v15666_v8 = vpop.f32.mrb[101].mxu1  ;;  %v19561_v6 = vld [vmem:[#allocation179_spill] sm:$0xff] }
 0x501   : > { %19528 = vst [vmem:[#allocation63_spill] sm:$0xff] %v15628_v19  ;;  %v3249_v39 = vsub.f32 %v11183_v61, %v19534_v32  ;;  %v3457_v41 = vmul.f32 %v15600_v0, %v15490_v45  ;;  %v19537_v37 = vsub.f32 %v19535_v46, %v19536_v20  ;;  %v19540_v30 = vsub.f32 %v19538_v1, %v19539_v28  ;;  %v19541_v32 = vld [vmem:[#allocation84_spill] sm:$0xff]  ;;  %v11188_v46 = vpop.f32.mrb[102].mxu1  ;;  %v19566_v2 = vld [vmem:[#allocation91_spill] sm:$0xff]  ;;  %v19589_v34 = vld [vmem:[#allocation205_spill] sm:$0xff] }
 0x502   : > { %19533 = vst [vmem:[#allocation62_spill] sm:$0xff] %v15647_v42  ;;  %v3247_v38 = vsub.f32 %v2815_v47, %v14910_v11  ;;  %v15668_v61 = vadd.f32 0.0009, %v3368_v16  ;;  %v19543_v58 = vsub.f32 %v19541_v32, %v19542_v23  ;;  %v3250_v45 = vsub.f32 %v11184_v36, %v14943_v27  ;;  %v19545_v16 = vld [vmem:[#allocation85_spill] sm:$0xff]  ;;  %v19546_v47 = vld [vmem:[#allocation83_spill] sm:$0xff] }
 0x503   : > { %v3374_v22 = vadd.f32 %v3246_v9, %v19537_v37  ;;  %v3372_v13 = vadd.f32 %v3244_v24, %v19540_v30  ;;  %v3248_v19 = vsub.f32 %v2818_v53, %v14961_v44  ;;  %v15675_v9 = vpop.eup %12130  ;;  %v19544_v24 = vsub.f32 %v15361_v10, %v15355_v43  ;;  %v19548_v44 = vld [vmem:[#allocation86_spill] sm:$0xff]  ;;  %v19595_v26 = vld [vmem:[#allocation113_spill] sm:$0xff] }
 0x504   : > { %v3377_v50 = vadd.f32 %v3249_v39, %v19543_v58  ;;  %12140 = vrcp.f32 %v15637_v17  ;;  %v15681_v11 = vadd.f32 0.0009, %v3373_v49  ;;  %v19547_v37 = vsub.f32 %v19545_v16, %v19546_v47  ;;  %v2834_v58 = vpop.f32.mrb[103].mxu1  ;;  %v19550_v39 = vld [vmem:[#allocation87_spill] sm:$0xff] }
 0x505   : > { %v3324_v20 = vmul.f32 2.0, %v19544_v24  ;;  %12142 = vrcp.f32 %v15650_v60  ;;  %v15687_v27 = vadd.f32 0.0009, %v3371_v57  ;;  %v19549_v36 = vsub.f32 %v19548_v44, %v14527_v59  ;;  %v15705_v57 = vpop.eup %12132 }
 0x506   : > { %v3375_v23 = vadd.f32 %v3247_v38, %v19547_v37  ;;  %v19551_v43 = vsub.f32 %v19550_v39, %v14535_v35  ;;  %v3489_v1 = vsub.f32 2.0, %v3457_v41  ;;  %v15697_v49 = vmul.f32 %v15619_v54, %v15500_v25  ;;  %v19555_v39 = vld [vmem:[#allocation172_spill] sm:$0xff] }
 0x507   : > { %v3378_v53 = vadd.f32 %v3250_v45, %v19549_v36  ;;  %v15701_v28 = vmul.f32 %v15643_v5, %v15517_v62  ;;  %v15703_v30 = vadd.f32 0.0009, %v3374_v22  ;;  %v15709_v59 = vmul.f32 %v15655_v4, %v15524_v56  ;;  %v11191_v32 = vpop.f32.mrb[104].mxu1  ;;  %v19559_v38 = vld [vmem:[#allocation88_spill] sm:$0xff] }
 0x508   : > { %v3376_v10 = vadd.f32 %v3248_v19, %v19551_v43  ;;  %v15713_v35 = vmul.f32 %v15675_v9, %v15537_v14  ;;  %12144 = vrcp.f32 %v15668_v61  ;;  %v15716_v25 = vadd.f32 0.0009, %v3372_v13  ;;  %v15718_v19 = vpop.eup %12134  ;;  %v2847_v16 = vpop.f32.mrb[105].mxu1 }
 0x509   : > { %v15722_v22 = vadd.f32 0.0009, %v3323_v3  ;;  %12146 = vrcp.f32 %v15681_v11  ;;  %v15725_v56 = vpop.eup %12136  ;;  %v15728_v14 = vadd.f32 0.0009, %v3326_v15  ;;  %v15731_v13 = vadd.f32 0.0009, %v3377_v50 }
 0x50a   : > { %12148 = vrcp.f32 %v15687_v27  ;;  %v15734_v45 = vmul.f32 %v15600_v0, %v3489_v1  ;;  %v3487_v24 = vsub.f32 2.0, %v15697_v49  ;;  %v15737_v3 = vadd.f32 0.0009, %v3324_v20  ;;  %v12139_v47 = vpop.eup %12138  ;;  %v15744_v50 = vpop.f32.mrb[106].mxu1 }
 0x50b   : > { %19552 = vst [vmem:[#allocation109_spill] sm:$0xff] %v15722_v22  ;;  %19553 = vst [vmem:[#allocation111_spill] sm:$0xff] %v15728_v14  ;;  %12150 = vrcp.f32 %v15703_v30  ;;  %v3490_v37 = vsub.f32 2.0, %v15701_v28  ;;  %v3488_v15 = vsub.f32 2.0, %v15709_v59  ;;  %v3493_v44 = vsub.f32 2.0, %v15713_v35  ;;  %v15754_v1 = vpop.f32.mrb[107].mxu1 }
 0x50c   : > { %19554 = vst [vmem:[#allocation122_spill] sm:$0xff] %v15737_v3  ;;  %12152 = vrcp.f32 %v15716_v25  ;;  %v3459_v0 = vmul.f32 %v15705_v57, %v15567_v48  ;;  %v3462_v20 = vmul.f32 %v15718_v19, %v15582_v51  ;;  %v3460_v36 = vmul.f32 %v15725_v56, %v15588_v52  ;;  %v19556_v28 = vld [vmem:[#allocation37_spill] sm:$0xff]  ;;  %v19558_v52 = vld [vmem:[#allocation90_spill] sm:$0xff]  ;;  %v19562_v14 = vld [vmem:[#allocation92_spill] sm:$0xff] }
 0x50d   : > { %v3253_v43 = vsub.f32 %v15653_v21, %v19555_v39  ;;  %12154 = vrcp.f32 %v15731_v13  ;;  %v15757_v49 = vadd.f32 0.0009, %v3375_v23  ;;  %v3251_v59 = vsub.f32 %v15666_v8, %v19556_v28  ;;  %v19557_v35 = vld [vmem:[#allocation177_spill] sm:$0xff] }
 0x50e   : > { %v3254_v48 = vsub.f32 %v11188_v46, %v19557_v35  ;;  %v15762_v62 = vpop.eup %12140  ;;  %v3465_v51 = vmul.f32 %v12139_v47, %v15605_v29  ;;  %v15765_v41 = vadd.f32 0.0009, %v3378_v53  ;;  %v19560_v21 = vsub.f32 %v19558_v52, %v19559_v38  ;;  %v19563_v8 = vld [vmem:[#allocation89_spill] sm:$0xff]  ;;  %v19565_v35 = vld [vmem:[#allocation94_spill] sm:$0xff]  ;;  %v19569_v38 = vld [vmem:[#allocation96_spill] sm:$0xff] }
 0x50f   : > { %v3252_v55 = vsub.f32 %v2834_v58, %v19561_v6  ;;  %v15771_v22 = vpop.eup %12142  ;;  %v15773_v23 = vadd.f32 0.0009, %v3376_v10  ;;  %v19564_v28 = vsub.f32 %v19562_v14, %v19563_v8  ;;  %v19567_v31 = vsub.f32 %v19565_v35, %v19566_v2  ;;  %v19568_v53 = vld [vmem:[#allocation186_spill] sm:$0xff] }
 0x510   : > { %v3381_v39 = vadd.f32 %v3253_v43, %v19560_v21  ;;  %v3257_v63 = vsub.f32 %v11191_v32, %v19568_v53  ;;  %v3491_v40 = vsub.f32 2.0, %v3459_v0  ;;  %v3494_v42 = vsub.f32 2.0, %v3462_v20  ;;  %v19570_v43 = vld [vmem:[#allocation93_spill] sm:$0xff]  ;;  %v19572_v58 = vld [vmem:[#allocation46_spill] sm:$0xff]  ;;  %v11195_v20 = vpop.f32.mrb[108].mxu1 }
 0x511   : > { %v3379_v46 = vadd.f32 %v3251_v59, %v19564_v28  ;;  %v3382_v29 = vadd.f32 %v3254_v48, %v19567_v31  ;;  %v19571_v52 = vsub.f32 %v19569_v38, %v19570_v43  ;;  %v3255_v21 = vsub.f32 %v2847_v16, %v19572_v58  ;;  %v19573_v31 = vld [vmem:[#allocation101_spill] sm:$0xff]  ;;  %v19574_v2 = vld [vmem:[#allocation98_spill] sm:$0xff]  ;;  %v2863_v28 = vpop.f32.mrb[109].mxu1 }
 0x512   : > { %v15786_v10 = vpop.eup %12144  ;;  %v3492_v3 = vsub.f32 2.0, %v3460_v36  ;;  %v15790_v14 = vmul.f32 %v15762_v62, %v15637_v17  ;;  %12156 = vrcp.f32 %v15757_v49  ;;  %v19575_v32 = vsub.f32 %v19573_v31, %v19574_v2  ;;  %v19576_v36 = vld [vmem:[#allocation103_spill] sm:$0xff]  ;;  %v4297_v2 = vld [vmem:[#allocation10 + $0x10] sm:$0xff] }
 0x513   : > { %v3380_v6 = vadd.f32 %v3252_v55, %v19571_v52  ;;  %v15798_v59 = vpop.eup %12146  ;;  %v3497_v55 = vsub.f32 2.0, %v3465_v51  ;;  %v15802_v16 = vmul.f32 %v15771_v22, %v15650_v60  ;;  %12158 = vrcp.f32 %v15765_v41  ;;  %v19577_v17 = vld [vmem:[#allocation99_spill] sm:$0xff]  ;;  %v11196_v51 = vpop.f32.mrb[110].mxu1 }
 0x514   : > { %v15796_v0 = vadd.f32 %v3257_v63, %v19575_v32  ;;  %v19578_v48 = vsub.f32 %v19576_v36, %v19577_v17  ;;  %v15810_v35 = vpop.eup %12148  ;;  %v15813_v63 = vmul.f32 %v15619_v54, %v3487_v24  ;;  %v15816_v53 = vmul.f32 %v15643_v5, %v3490_v37  ;;  %v2866_v5 = vpop.f32.mrb[111].mxu1  ;;  %v19581_v32 = vld [vmem:[#allocation106_spill] sm:$0xff]  ;;  %v19584_v36 = vld [vmem:[#allocation36_spill] sm:$0xff] }
 0x515   : > { %12160 = vrcp.f32 %v15773_v23  ;;  %v15819_v60 = vadd.f32 0.0009, %v3381_v39  ;;  %v15821_v38 = vpop.eup %12150  ;;  %v15824_v43 = vmul.f32 %v15655_v4, %v3488_v15  ;;  %v15827_v52 = vmul.f32 %v15675_v9, %v3493_v44  ;;  %v4295_v15 = vld [vmem:[#allocation10] sm:$0xff]  ;;  %v19579_v44 = vld [vmem:[#allocation189_spill] sm:$0xff]  ;;  %v19585_v17 = vld [vmem:[#allocation48_spill] sm:$0xff] }
 0x516   : > { %v15808_v8 = vadd.f32 %v3255_v21, %v19578_v48  ;;  %v15830_v58 = vmul.f32 %v15705_v57, %v3491_v40  ;;  %v15833_v54 = vmul.f32 %v15718_v19, %v3494_v42  ;;  %v15835_v24 = vpop.eup %12152  ;;  %v15838_v37 = vmul.f32 %v15725_v56, %v3492_v3  ;;  %v4296_v40 = vld [vmem:[#allocation10 + $0x8] sm:$0xff] }
 0x517   : > { %v3495_v39 = vsub.f32 2.0, %v15790_v14  ;;  %v15843_v4 = vmul.f32 %v15786_v10, %v15668_v61  ;;  %v15845_v9 = vadd.f32 0.0009, %v3379_v46  ;;  %v15847_v57 = vmul.f32 %v12139_v47, %v3497_v55  ;;  %v15858_v3 = vpop.eup %12154 }
 0x518   : > { %v3498_v42 = vsub.f32 2.0, %v15802_v16  ;;  %v15852_v19 = vmul.f32 %v15798_v59, %v15681_v11  ;;  %v15856_v56 = vmul.f32 %v15810_v35, %v15687_v27  ;;  %v15862_v61 = vmul.f32 %v15821_v38, %v15703_v30  ;;  %v19580_v27 = vld [vmem:[#allocation195_spill] sm:$0xff]  ;;  %v4298_v30 = vld [vmem:[#allocation10 + $0x18] sm:$0xff] }
 0x519   : > { %12162 = vrcp.f32 %v15819_v60  ;;  %v15865_v47 = vadd.f32 0.0009, %v3382_v29  ;;  %v3258_v46 = vsub.f32 %v15744_v50, %v19579_v44  ;;  %v15871_v11 = vmul.f32 %v15835_v24, %v15716_v25  ;;  %v19582_v29 = vld [vmem:[#allocation102_spill] sm:$0xff]  ;;  %v4300_v44 = vld [vmem:[#allocation10 + $0x28] sm:$0xff] }
 0x51a   : > { %v15873_v21 = vadd.f32 0.0009, %v3380_v6  ;;  %v3256_v14 = vsub.f32 %v15754_v1, %v19580_v27  ;;  %v4303_v31 = vpack.c.bf16 %v4296_v40, %v4295_v15  ;;  %12164 = vrcp.f32 %v15845_v9  ;;  %v4299_v25 = vld [vmem:[#allocation10 + $0x20] sm:$0xff]  ;;  %v11247_v6 = vpop.f32.mrb[112].mxu1  ;;  %v19586_v1 = vld [vmem:[#allocation107_spill] sm:$0xff]  ;;  %v19587_v15 = vld [vmem:[#allocation104_spill] sm:$0xff] }
 0x51b   : > { %v19583_v55 = vsub.f32 %v19581_v32, %v19582_v29  ;;  %v3261_v50 = vsub.f32 %v11195_v20, %v19584_v36  ;;  %v3259_v48 = vsub.f32 %v2863_v28, %v19585_v17  ;;  %v3473_v18 = vmul.f32 %v15858_v3, %v15731_v13  ;;  %v19590_v32 = vld [vmem:[#allocation49_spill] sm:$0xff]  ;;  %v4347_v29 = vpop.f32.mrb[113].mxu1  ;;  %v19591_v28 = vld [vmem:[#allocation115_spill] sm:$0xff] }
 0x51c   : > { %v19588_v40 = vsub.f32 %v19586_v1, %v19587_v15  ;;  %11285 = vmatprep.subr.bf16.mxu0 %v4303_v31  ;;  %v3262_v7 = vsub.f32 %v11196_v51, %v19589_v34  ;;  %v15892_v20 = vpop.eup %12156  ;;  %12166 = vrcp.f32 %v15865_v47  ;;  %v19594_v13 = vld [vmem:[#allocation119_spill] sm:$0xff]  ;;  %v4304_v15 = vpack.c.bf16 %v4298_v30, %v4297_v2  ;;  %11309 = vmatprep.subr.bf16.mxu1 %v4303_v31 }
 0x51d   : > { %v3386_v16 = vadd.f32 %v3258_v46, %v19583_v55  ;;  %v3260_v46 = vsub.f32 %v2866_v5, %v19590_v32  ;;  %v19592_v55 = vld [vmem:[#allocation112_spill] sm:$0xff]  ;;  %11286 = vmatpush3.bf16.msra.mxu0 %v4303_v31  ;;  %v19596_v1 = vsub.f32 %v19594_v13, %v19595_v26  ;;  %v15903_v34 = vpop.eup %12158  ;;  %v15906_v51 = vadd.f32 0.0009, %v15796_v0  ;;  %v19597_v5 = vld [vmem:[#allocation123_spill] sm:$0xff]  ;;  %v19598_v32 = vld [vmem:[#allocation117_spill] sm:$0xff]  ;;  %11310 = vmatpush3.bf16.msra.mxu1 %v4303_v31 }
 0x51e   : > { %v15888_v27 = vadd.f32 %v3256_v14, %v19588_v40  ;;  %v19593_v36 = vsub.f32 %v19591_v28, %v19592_v55  ;;  %v11248_v40 = vpop.f32.mrb[114].mxu1  ;;  %v19599_v12 = vsub.f32 %v19597_v5, %v19598_v32  ;;  %v19601_v28 = vld [vmem:[#allocation125_spill] sm:$0xff]  ;;  %v4305_v26 = vpack.c.bf16 %v4300_v44, %v4299_v25  ;;  %11287 = vmatprep.subr.bf16.mxu0 %v4304_v15  ;;  %v19606_v5 = vld [vmem:[#allocation116_spill] sm:$0xff] }
 0x51f   : > { %v15901_v14 = vadd.f32 %v3259_v48, %v19596_v1  ;;  %v4350_v48 = vpop.f32.mrb[115].mxu1  ;;  %v15918_v2 = vpop.eup %12160  ;;  %v3496_v30 = vsub.f32 2.0, %v15843_v4  ;;  %v3501_v0 = vsub.f32 2.0, %v15852_v19  ;;  %v3499_v13 = vsub.f32 2.0, %v15856_v56  ;;  %11311 = vmatprep.subr.bf16.mxu1 %v4304_v15 }
 0x520   : > { %v3389_v17 = vadd.f32 %v3261_v50, %v19593_v36  ;;  %v15911_v33 = vadd.f32 %v3262_v7, %v19599_v12  ;;  %v19600_v50 = vld [vmem:[#allocation127_spill] sm:$0xff]  ;;  %v15924_v1 = vadd.f32 0.0009, %v15808_v8  ;;  %v3502_v7 = vsub.f32 2.0, %v15862_v61 }
 0x521   : > { %v19602_v55 = vsub.f32 %v19600_v50, %v19601_v28  ;;  %v3500_v12 = vsub.f32 2.0, %v15871_v11  ;;  %v15930_v31 = vmul.f32 %v15892_v20, %v15757_v49  ;;  %12168 = vrcp.f32 %v15873_v21  ;;  %11288 = vmatpush3.bf16.msra.mxu0 %v4304_v15  ;;  %11312 = vmatpush3.bf16.msra.mxu1 %v4304_v15 }
 0x522   : > { %v15934_v4 = vmul.f32 %v15762_v62, %v3495_v39  ;;  %v3505_v19 = vsub.f32 2.0, %v3473_v18  ;;  %v15938_v8 = vmul.f32 %v15903_v34, %v15765_v41  ;;  %v15940_v56 = vpack.c.bf16 %v11248_v40, %v11247_v6  ;;  %11289 = vmatprep.subr.bf16.mxu0 %v4305_v26  ;;  %v4301_v39 = vld [vmem:[#allocation10 + $0x30] sm:$0xff]  ;;  %v4302_v18 = vld [vmem:[#allocation10 + $0x38] sm:$0xff]  ;;  %11313 = vmatprep.subr.bf16.mxu1 %v4305_v26 }
 0x523   : > { %v15916_v36 = vadd.f32 %v3260_v46, %v19602_v55  ;;  %v15943_v61 = vmul.f32 %v15771_v22, %v3498_v42  ;;  %v15947_v49 = vmul.f32 %v15918_v2, %v15773_v23  ;;  %12170 = vrcp.f32 %v15906_v51  ;;  %v15950_v11 = vpop.eup %12162  ;;  %v19604_v40 = vld [vmem:[#allocation128_spill] sm:$0xff] }
 0x524   : > { %v4509_v62 = vpack.c.bf16 %v4350_v48, %v4347_v29  ;;  %v15953_v41 = vmul.f32 %v15786_v10, %v3496_v30  ;;  %v15956_v25 = vmul.f32 %v15798_v59, %v3501_v0  ;;  %12172 = vrcp.f32 %v15924_v1  ;;  %4648 = vrot.lane.b32.xlu1 %v15940_v56, %s12794_s18  ;;  %v19611_v0 = vld [vmem:[#allocation118_spill] sm:$0xff] }
 0x525   : > { %v15959_v22 = vadd.f32 0.0009, %v3386_v16  ;;  %v15964_v23 = vmul.f32 %v15810_v35, %v3499_v13  ;;  %v15967_v42 = vmul.f32 %v15821_v38, %v3502_v7  ;;  %v15970_v10 = vmul.f32 %v15835_v24, %v3500_v12  ;;  %v15975_v16 = vpop.eup %12164  ;;  %11290 = vmatpush3.bf16.msra.mxu0 %v4305_v26  ;;  %v19603_v38 = vld [vmem:[#allocation164_spill] sm:$0xff]  ;;  %11314 = vmatpush3.bf16.msra.mxu1 %v4305_v26  ;;  %v19612_v7 = vld [vmem:[#allocation166_spill] sm:$0xff] }
 0x526   : > { %v3503_v59 = vsub.f32 2.0, %v15930_v31  ;;  %4646 = vrot.lane.b32.xlu0 %v4509_v62, %s12794_s18  ;;  %11293 = vmatprep.mubr.msk.bf16.mxu0 %vm1205_vm0, %v4509_v62  ;;  %v15978_v44 = vmul.f32 %v15858_v3, %v3505_v19  ;;  %v3506_v35 = vsub.f32 2.0, %v15938_v8  ;;  %v4306_v6 = vpack.c.bf16 %v4302_v18, %v4301_v39  ;;  %v12167_v50 = vpop.eup %12166  ;;  %v19615_v19 = vld [vmem:[#allocation124_spill] sm:$0xff]  ;;  %v19617_v62 = vld [vmem:[#allocation39_spill] sm:$0xff]  ;;  %v19618_v18 = vld [vmem:[#allocation150_spill] sm:$0xff] }
 0x527   : > { %v15983_v46 = vmul.f32 %v15813_v63, %v19603_v38  ;;  %v3504_v24 = vsub.f32 2.0, %v15947_v49  ;;  %v3477_v29 = vmul.f32 %v15950_v11, %v15819_v60  ;;  %v15989_v15 = vadd.f32 0.0009, %v15888_v27  ;;  %v19607_v63 = vld [vmem:[#allocation163_spill] sm:$0xff]  ;;  %v19608_v60 = vld [vmem:[#allocation120_spill] sm:$0xff]  ;;  %v19610_v27 = vld [vmem:[#allocation110_spill] sm:$0xff] }
 0x528   : > { %v19605_v3 = vsub.f32 2.0, %v19604_v40  ;;  %12174 = vrcp.f32 %v15959_v22  ;;  %v15995_v28 = vadd.f32 0.0009, %v3389_v17  ;;  %11291 = vmatprep.subr.bf16.mxu0 %v4306_v6  ;;  %11315 = vmatprep.subr.bf16.mxu1 %v4306_v6  ;;  %v15999_v55 = vmul.f32 %v15734_v45, %v19607_v63  ;;  %v19613_v17 = vld [vmem:[#allocation130_spill] sm:$0xff] }
 0x529   : > { %v19609_v48 = vsub.f32 2.0, %v19608_v60  ;;  %v3475_v26 = vmul.f32 %v15975_v16, %v15845_v9  ;;  %v16009_v12 = vmul.f32 %v15816_v53, %v19612_v7  ;;  %v19614_v31 = vsub.f32 2.0, %v19613_v17  ;;  %11292 = vmatpush3.bf16.msra.mxu0 %v4306_v6  ;;  %v19616_v45 = vld [vmem:[#allocation114_spill] sm:$0xff]  ;;  %v19620_v9 = vld [vmem:[#allocation144_spill] sm:$0xff]  ;;  %11316 = vmatpush3.bf16.msra.mxu1 %v4306_v6  ;;  %v19626_v7 = vld [vmem:[#allocation175_spill] sm:$0xff] }
 0x52a   : > { %v3807_v32 = vmul.f32 %v19606_v5, %v19605_v3  ;;  %v16017_v39 = vmul.f32 %v15838_v37, %v19617_v62  ;;  %v19619_v38 = vsub.f32 2.0, %v19618_v18  ;;  %v19621_v3 = vld [vmem:[#allocation168_spill] sm:$0xff]  ;;  %12176 = vrcp.f32 %v15989_v15  ;;  %v19623_v37 = vld [vmem:[#allocation121_spill] sm:$0xff] }
 0x52b   : > { %v3809_v30 = vmul.f32 %v19610_v27, %v19609_v48  ;;  %v3810_v8 = vmul.f32 %v19615_v19, %v19614_v31  ;;  %v16024_v5 = vmul.f32 %v15824_v43, %v19621_v3  ;;  %v16026_v53 = vpop.eup %12168  ;;  %v16035_v48 = vadd.f32 0.0009, %v15901_v14  ;;  %v11259_v27 = vpop.f32.mrb[116].mxu1  ;;  %v19625_v43 = vld [vmem:[#allocation140_spill] sm:$0xff] }
 0x52c   : > { %v3839_v13 = vmul.f32 %v3807_v32, %v19611_v0  ;;  %v3812_v40 = vmul.f32 %v19620_v9, %v19619_v38  ;;  %v3478_v32 = vmul.f32 %v12167_v50, %v15865_v47  ;;  %v16043_v47 = vmul.f32 %v15833_v54, %v19626_v7  ;;  %11294 = vmatmul.mubr.msk.bf16.vlgmr.msra.gmra.mrb[144].mxu0 %vm1205_vm0, %v15940_v56  ;;  %v4396_v14 = vpop.f32.mrb[117].mxu1 }
 0x52d   : > { %v3841_v49 = vmul.f32 %v3809_v30, %v19616_v45  ;;  %v3842_v60 = vmul.f32 %v3810_v8, %v19623_v37  ;;  %v16045_v17 = vpop.eup %12170  ;;  %v3509_v6 = vsub.f32 2.0, %v3477_v29  ;;  %12178 = vrcp.f32 %v15995_v28  ;;  %v11260_v45 = vpop.f32.mrb[118].mxu1 }
 0x52e   : > { %v16031_v63 = vmul.f32 %v3839_v13, %v15983_v46  ;;  %v3844_v0 = vmul.f32 %v3812_v40, %v19625_v43  ;;  %v16049_v13 = vadd.f32 0.0009, %v15911_v33  ;;  %v12173_v19 = vpop.eup %12172  ;;  %v3507_v8 = vsub.f32 2.0, %v3475_v26  ;;  %v19631_v33 = vld [vmem:[#allocation131_spill] sm:$0xff]  ;;  %v4399_v26 = vpop.f32.mrb[119].mxu1 }
 0x52f   : > { %v16038_v30 = vmul.f32 %v3841_v49, %v15999_v55  ;;  %v16054_v31 = vmul.f32 %v3842_v60, %v16009_v12  ;;  %v3476_v54 = vmul.f32 %v16026_v53, %v15873_v21  ;;  %v19629_v49 = vld [vmem:[#allocation135_spill] sm:$0xff]  ;;  %v16065_v38 = vmul.f32 %v15892_v20, %v3503_v59 }
 0x530   : > { %19622 = vst [vmem:[#allocation65_spill] sm:$0xff] %v16031_v63  ;;  %v16059_v29 = vmul.f32 %v3844_v0, %v16017_v39  ;;  %v19630_v62 = vsub.f32 2.0, %v19629_v49  ;;  %v3510_v56 = vsub.f32 2.0, %v3478_v32  ;;  %v16068_v9 = vadd.f32 0.0009, %v15916_v36  ;;  %v19635_v32 = vld [vmem:[#allocation174_spill] sm:$0xff] }
 0x531   : > { %19624 = vst [vmem:[#allocation64_spill] sm:$0xff] %v16038_v30  ;;  %19627 = vst [vmem:[#allocation67_spill] sm:$0xff] %v16054_v31  ;;  %v4512_v40 = vpack.c.bf16 %v11260_v45, %v11259_v27  ;;  %v16071_v3 = vmul.f32 %v15903_v34, %v3506_v35  ;;  %v16075_v21 = vmul.f32 %v16045_v17, %v15906_v51  ;;  %12180 = vrcp.f32 %v16035_v48  ;;  %v19638_v0 = vld [vmem:[#allocation141_spill] sm:$0xff] }
 0x532   : > { %19628 = vst [vmem:[#allocation66_spill] sm:$0xff] %v16059_v29  ;;  %v3808_v18 = vmul.f32 %v19631_v33, %v19630_v62  ;;  %v4511_v37 = vpack.c.bf16 %v4399_v26, %v4396_v14  ;;  %v16079_v60 = vmul.f32 %v15918_v2, %v3504_v24  ;;  %v16082_v20 = vmul.f32 %v15950_v11, %v3509_v6  ;;  %v16087_v34 = vpop.eup %12174  ;;  %v19632_v2 = vld [vmem:[#allocation126_spill] sm:$0xff]  ;;  %v19633_v11 = vld [vmem:[#allocation139_spill] sm:$0xff]  ;;  %v19643_v49 = vld [vmem:[#allocation157_spill] sm:$0xff] }
 0x533   : > { %v3479_v36 = vmul.f32 %v12173_v19, %v15924_v1  ;;  %12182 = vrcp.f32 %v16049_v13  ;;  %4652 = vrot.lane.b32.xlu1 %v4512_v40, %s12794_s18  ;;  %v16090_v51 = vmul.f32 %v15975_v16, %v3507_v8  ;;  %v3508_v59 = vsub.f32 2.0, %v3476_v54  ;;  %v19636_v16 = vld [vmem:[#allocation146_spill] sm:$0xff]  ;;  %v19640_v8 = vld [vmem:[#allocation188_spill] sm:$0xff] }
 0x534   : > { %4650 = vrot.lane.b32.xlu0 %v4511_v37, %s12794_s18  ;;  %11297 = vmatprep.mubr.msk.bf16.mxu0 %vm1205_vm0, %v4511_v37  ;;  %v3840_v35 = vmul.f32 %v3808_v18, %v19632_v2  ;;  %v16097_v24 = vmul.f32 %v19633_v11, %v16043_v47  ;;  %v16099_v1 = vmul.f32 %v12167_v50, %v3510_v56  ;;  %12184 = vrcp.f32 %v16068_v9  ;;  %v19641_v50 = vld [vmem:[#allocation161_spill] sm:$0xff]  ;;  %v12177_v33 = vpop.eup %12176  ;;  %v19645_v26 = vld [vmem:[#allocation170_spill] sm:$0xff]  ;;  %v19646_v2 = vld [vmem:[#allocation143_spill] sm:$0xff] }
 0x535   : > { %v16104_v27 = vmul.f32 %v15830_v58, %v19635_v32  ;;  %v19637_v43 = vsub.f32 2.0, %v19636_v16  ;;  %v16115_v54 = vmul.f32 %v15953_v41, %v19640_v8  ;;  %v19642_v45 = vsub.f32 2.0, %v19641_v50  ;;  %11298 = vmatmul.mubr.msk.bf16.gmra.mrb[148].mxu0 %vm1205_vm0, %v4512_v40  ;;  %v19644_v18 = vld [vmem:[#allocation137_spill] sm:$0xff]  ;;  %v19648_v11 = vld [vmem:[#allocation138_spill] sm:$0xff]  ;;  %v19649_v16 = vld [vmem:[#allocation151_spill] sm:$0xff] }
 0x536   : > { %19634 = vst [vmem:[#allocation69_spill] sm:$0xff] %v16097_v24  ;;  %v16111_v14 = vmul.f32 %v3840_v35, %v16024_v5  ;;  %v3511_v58 = vsub.f32 2.0, %v3479_v36  ;;  %v16124_v37 = vmul.f32 %v15827_v52, %v19645_v26  ;;  %v19647_v35 = vsub.f32 2.0, %v19646_v2  ;;  %v19651_v40 = vld [vmem:[#allocation160_spill] sm:$0xff]  ;;  %v19653_v8 = vld [vmem:[#allocation155_spill] sm:$0xff]  ;;  %v19656_v26 = vld [vmem:[#allocation185_spill] sm:$0xff] }
 0x537   : > { %v3811_v7 = vmul.f32 %v19638_v0, %v19637_v43  ;;  %v3816_v62 = vmul.f32 %v19643_v49, %v19642_v45  ;;  %v16131_v41 = vmul.f32 %v16087_v34, %v15959_v22  ;;  %v19650_v0 = vld [vmem:[#allocation40_spill] sm:$0xff]  ;;  %v16141_v52 = vpop.eup %12178  ;;  %v16144_v45 = vmul.f32 %v16026_v53, %v3508_v59  ;;  %v19655_v22 = vld [vmem:[#allocation134_spill] sm:$0xff]  ;;  %v19661_v53 = vld [vmem:[#allocation153_spill] sm:$0xff] }
 0x538   : > { %19639 = vst [vmem:[#allocation68_spill] sm:$0xff] %v16111_v14  ;;  %v3813_v32 = vmul.f32 %v19648_v11, %v19647_v35  ;;  %v16136_v36 = vmul.f32 %v15943_v61, %v19650_v0  ;;  %v3480_v61 = vmul.f32 %v12177_v33, %v15989_v15  ;;  %v19658_v35 = vld [vmem:[#allocation147_spill] sm:$0xff]  ;;  %v19676_v6 = vld [vmem:[#allocation192_spill] sm:$0xff] }
 0x539   : > { %v3843_v56 = vmul.f32 %v3811_v7, %v19644_v18  ;;  %v3848_v43 = vmul.f32 %v3816_v62, %v19649_v16  ;;  %v19652_v7 = vsub.f32 2.0, %v19651_v40  ;;  %v16152_v62 = vmul.f32 %v15934_v4, %v19656_v26  ;;  %v19659_v16 = vld [vmem:[#allocation158_spill] sm:$0xff]  ;;  %v19663_v4 = vld [vmem:[#allocation197_spill] sm:$0xff] }
 0x53a   : > { %v3845_v18 = vmul.f32 %v3813_v32, %v19655_v22  ;;  %v19660_v0 = vsub.f32 2.0, %v19659_v16  ;;  %v16162_v40 = vmul.f32 %v12173_v19, %v3511_v58  ;;  %v19666_v19 = vld [vmem:[#allocation176_spill] sm:$0xff]  ;;  %v19668_v26 = vld [vmem:[#allocation173_spill] sm:$0xff] }
 0x53b   : > { %v3818_v50 = vmul.f32 %v19653_v8, %v19652_v7  ;;  %v16147_v49 = vmul.f32 %v3843_v56, %v16104_v27  ;;  %v16156_v2 = vmul.f32 %v3848_v43, %v16115_v54  ;;  %v16169_v7 = vmul.f32 %v15970_v10, %v19663_v4  ;;  %v16171_v15 = vpop.eup %12180  ;;  %v19669_v10 = vld [vmem:[#allocation183_spill] sm:$0xff] }
 0x53c   : > { %v3815_v59 = vmul.f32 %v19661_v53, %v19660_v0  ;;  %v16165_v32 = vmul.f32 %v3845_v18, %v16124_v37  ;;  %v3514_v43 = vsub.f32 2.0, %v16131_v41  ;;  %v19667_v58 = vsub.f32 2.0, %v19666_v19  ;;  %v19670_v41 = vld [vmem:[#allocation156_spill] sm:$0xff]  ;;  %v19673_v56 = vld [vmem:[#allocation47_spill] sm:$0xff]  ;;  %v11271_v19 = vpop.f32.mrb[120].mxu1 }
 0x53d   : > { %19654 = vst [vmem:[#allocation129_spill] sm:$0xff] %v16147_v49  ;;  %19657 = vst [vmem:[#allocation132_spill] sm:$0xff] %v16156_v2  ;;  %v3850_v11 = vmul.f32 %v3818_v50, %v19658_v35  ;;  %v19665_v50 = vld [vmem:[#allocation145_spill] sm:$0xff]  ;;  %v16181_v16 = vpop.eup %12182  ;;  %v16185_v18 = vmul.f32 %v16141_v52, %v15995_v28  ;;  %v16189_v0 = vmul.f32 %v15847_v57, %v19669_v10  ;;  %v19671_v53 = vsub.f32 2.0, %v19670_v41  ;;  %v4445_v10 = vpop.f32.mrb[121].mxu1  ;;  %v19677_v41 = vld [vmem:[#allocation142_spill] sm:$0xff] }
 0x53e   : > { %19662 = vst [vmem:[#allocation71_spill] sm:$0xff] %v16165_v32  ;;  %v3847_v22 = vmul.f32 %v3815_v59, %v19665_v50  ;;  %v3820_v35 = vmul.f32 %v19668_v26, %v19667_v58  ;;  %v16196_v59 = vmul.f32 %v15967_v42, %v19673_v56  ;;  %v3512_v50 = vsub.f32 2.0, %v3480_v61  ;;  %v19675_v26 = vld [vmem:[#allocation159_spill] sm:$0xff]  ;;  %v12185_v57 = vpop.eup %12184 }
 0x53f   : > { %v16175_v8 = vmul.f32 %v3850_v11, %v16136_v36  ;;  %v19672_v11 = vld [vmem:[#allocation149_spill] sm:$0xff]  ;;  %v19680_v42 = vld [vmem:[#allocation171_spill] sm:$0xff] }
 0x540   : > { %v3817_v4 = vmul.f32 %v19672_v11, %v19671_v53  ;;  %v16199_v58 = vmul.f32 %v3847_v22, %v16152_v62  ;;  %v3852_v28 = vmul.f32 %v3820_v35, %v19675_v26  ;;  %v19678_v53 = vld [vmem:[#allocation162_spill] sm:$0xff]  ;;  %v19681_v61 = vsub.f32 2.0, %v19680_v42  ;;  %v19682_v56 = vld [vmem:[#allocation167_spill] sm:$0xff] }
 0x541   : > { %19664 = vst [vmem:[#allocation70_spill] sm:$0xff] %v16175_v8  ;;  %v16204_v8 = vmul.f32 %v15964_v23, %v19676_v6  ;;  %v16209_v11 = vmul.f32 %v19678_v53, %v16196_v59  ;;  %v19683_v22 = vld [vmem:[#allocation210_spill] sm:$0xff]  ;;  %v3483_v23 = vmul.f32 %v16171_v15, %v16035_v48  ;;  %v11272_v6 = vpop.f32.mrb[122].mxu1  ;;  %v3544_v24 = vmul.f32 %v12177_v33, %v3512_v50 }
 0x542   : > { %19674 = vst [vmem:[#allocation73_spill] sm:$0xff] %v16199_v58  ;;  %v3849_v32 = vmul.f32 %v3817_v4, %v19677_v41  ;;  %v3819_v2 = vmul.f32 %v19682_v56, %v19681_v61  ;;  %v16216_v58 = vmul.f32 %v16079_v60, %v19683_v22  ;;  %v16221_v35 = vmul.f32 %v3852_v28, %v16169_v7  ;;  %v19685_v4 = vld [vmem:[#allocation198_spill] sm:$0xff]  ;;  %v4448_v60 = vpop.f32.mrb[123].mxu1 }
 0x543   : > { %19679 = vst [vmem:[#allocation72_spill] sm:$0xff] %v16209_v11  ;;  %v19686_v26 = vsub.f32 2.0, %v19685_v4  ;;  %v19687_v41 = vld [vmem:[#allocation194_spill] sm:$0xff]  ;;  %v19688_v11 = vld [vmem:[#allocation191_spill] sm:$0xff]  ;;  %v3517_v61 = vsub.f32 2.0, %v16185_v18  ;;  %v4514_v56 = vpack.c.bf16 %v11272_v6, %v11271_v19  ;;  %v3486_v28 = vmul.f32 %v16181_v16, %v16049_v13  ;;  %v19693_v18 = vld [vmem:[#allocation169_spill] sm:$0xff] }
 0x544   : > { %19684 = vst [vmem:[#allocation133_spill] sm:$0xff] %v16221_v35  ;;  %v16228_v42 = vmul.f32 %v15956_v25, %v19688_v11  ;;  %v16232_v22 = vmul.f32 %v3849_v32, %v16189_v0  ;;  %v19690_v48 = vld [vmem:[#allocation154_spill] sm:$0xff]  ;;  %v3484_v4 = vmul.f32 %v12185_v57, %v16068_v9  ;;  %v4513_v35 = vpack.c.bf16 %v4448_v60, %v4445_v10  ;;  %v19695_v32 = vld [vmem:[#allocation165_spill] sm:$0xff]  ;;  %v19696_v6 = vld [vmem:[#allocation204_spill] sm:$0xff] }
 0x545   : > { %v3824_v53 = vmul.f32 %v19687_v41, %v19686_v26  ;;  %v3851_v49 = vmul.f32 %v3819_v2, %v19690_v48  ;;  %v19691_v26 = vld [vmem:[#allocation182_spill] sm:$0xff]  ;;  %4656 = vrot.lane.b32.xlu1 %v4514_v56, %s12794_s18  ;;  %v19694_v19 = vsub.f32 2.0, %v19693_v18  ;;  %v16248_v2 = vmul.f32 %v16071_v3, %v19696_v6  ;;  %v19698_v9 = vld [vmem:[#allocation196_spill] sm:$0xff] }
 0x546   : > { %19689 = vst [vmem:[#allocation136_spill] sm:$0xff] %v16232_v22  ;;  %4654 = vrot.lane.b32.xlu0 %v4513_v35, %s12794_s18  ;;  %11301 = vmatprep.mubr.msk.bf16.mxu0 %vm1205_vm0, %v4513_v35  ;;  %v19699_v33 = vsub.f32 2.0, %v19698_v9  ;;  %v19700_v50 = vld [vmem:[#allocation190_spill] sm:$0xff]  ;;  %v16264_v60 = vsel %vm3984_vm1, %v16024_v5, 0.0  ;;  %v3515_v3 = vsub.f32 2.0, %v3483_v23  ;;  %v19703_v48 = vld [vmem:[#allocation152_spill] sm:$0xff] }
 0x547   : > { %v3856_v41 = vmul.f32 %v3824_v53, %v19691_v26  ;;  %v16241_v25 = vmul.f32 %v3851_v49, %v16204_v8  ;;  %v3821_v11 = vmul.f32 %v19695_v32, %v19694_v19  ;;  %v19701_v10 = vld [vmem:[#allocation202_spill] sm:$0xff]  ;;  %19702 = vst [vmem:[#allocation74_spill] sm:$0xff] %v16264_v60  ;;  %11302 = vmatmul.mubr.msk.bf16.gmra.mrb[152].mxu0 %vm1205_vm0, %v4514_v56  ;;  %v19704_v26 = vld [vmem:[#allocation35_spill] sm:$0xff]  ;;  %v19706_v18 = vld [vmem:[#allocation184_spill] sm:$0xff]  ;;  %v3516_v9 = vsub.f32 2.0, %v3484_v4 }
 0x548   : > { %v3826_v49 = vmul.f32 %v19700_v50, %v19699_v33  ;;  %v16260_v53 = vmul.f32 %v16065_v38, %v19701_v10  ;;  %v19707_v32 = vld [vmem:[#allocation81_spill] sm:$0xff]  ;;  %v19708_v38 = vld [vmem:[#allocation180_spill] sm:$0xff] }
 0x549   : > { %19692 = vst [vmem:[#allocation148_spill] sm:$0xff] %v16241_v25  ;;  %v16253_v13 = vmul.f32 %v3856_v41, %v16216_v58  ;;  %v3853_v35 = vmul.f32 %v3821_v11, %v19703_v48  ;;  %v19705_v41 = vsub.f32 2.0, %v19704_v26  ;;  %v16273_v6 = vmul.f32 %v16144_v45, %v19707_v32  ;;  %v19709_v50 = vld [vmem:[#allocation77_spill] sm:$0xff]  ;;  %v19711_v5 = vld [vmem:[#allocation208_spill] sm:$0xff]  ;;  %v19714_v48 = vld [vmem:[#allocation178_spill] sm:$0xff] }
 0x54a   : > { %v3858_v33 = vmul.f32 %v3826_v49, %v19708_v38  ;;  %v19710_v10 = vsub.f32 2.0, %v19709_v50  ;;  %v19712_v23 = vld [vmem:[#allocation201_spill] sm:$0xff]  ;;  %v19720_v50 = vld [vmem:[#allocation200_spill] sm:$0xff] }
 0x54b   : > { %19697 = vst [vmem:[#allocation75_spill] sm:$0xff] %v16253_v13  ;;  %v3823_v19 = vmul.f32 %v19706_v18, %v19705_v41  ;;  %v16281_v56 = vmul.f32 %v15978_v44, %v19712_v23  ;;  %v16284_v11 = vmul.f32 %v3853_v35, %v16228_v42  ;;  %v19715_v41 = vld [vmem:[#allocation187_spill] sm:$0xff]  ;;  %v19717_v45 = vld [vmem:[#allocation181_spill] sm:$0xff]  ;;  %v19722_v35 = vld [vmem:[#allocation212_spill] sm:$0xff] }
 0x54c   : > { %v3828_v60 = vmul.f32 %v19711_v5, %v19710_v10  ;;  %v19716_v18 = vsub.f32 2.0, %v19715_v41  ;;  %v19718_v4 = vld [vmem:[#allocation41_spill] sm:$0xff]  ;;  %v16295_v38 = vmul.f32 %v3858_v33, %v16248_v2  ;;  %v19721_v44 = vld [vmem:[#allocation215_spill] sm:$0xff]  ;;  %v19723_v23 = vsub.f32 2.0, %v19722_v35 }
 0x54d   : > { %19713 = vst [vmem:[#allocation78_spill] sm:$0xff] %v16284_v11  ;;  %v3855_v26 = vmul.f32 %v3823_v19, %v19714_v48  ;;  %v16292_v49 = vmul.f32 %v16099_v1, %v19718_v4  ;;  %v16300_v5 = vmul.f32 %v16090_v51, %v19721_v44  ;;  %v19724_v19 = vld [vmem:[#allocation207_spill] sm:$0xff]  ;;  %v3546_v41 = vmul.f32 %v16087_v34, %v3514_v43  ;;  %v19726_v1 = vld [vmem:[#allocation38_spill] sm:$0xff]  ;;  %v19731_v35 = vld [vmem:[#allocation61_spill] sm:$0xff] }
 0x54e   : > { %v3825_v32 = vmul.f32 %v19717_v45, %v19716_v18  ;;  %19719 = vst [vmem:[#allocation76_spill] sm:$0xff] %v16295_v38  ;;  %v3860_v10 = vmul.f32 %v3828_v60, %v19720_v50  ;;  %v3827_v48 = vmul.f32 %v19724_v19, %v19723_v23  ;;  %v19727_v33 = vld [vmem:[#allocation203_spill] sm:$0xff]  ;;  %v3518_v60 = vsub.f32 2.0, %v3486_v28  ;;  %v19734_v23 = vld [vmem:[#allocation56_spill] sm:$0xff] }
 0x54f   : > { %v16307_v18 = vmul.f32 %v3855_v26, %v16260_v53  ;;  %v16312_v4 = vmul.f32 %v19727_v33, %v16292_v49  ;;  %v19730_v51 = vld [vmem:[#allocation199_spill] sm:$0xff]  ;;  %v16319_v38 = vmul.f32 %v3544_v24, %v19731_v35  ;;  %v19732_v34 = vsub.f32 2.0, %v16075_v21  ;;  %v19738_v24 = vld [vmem:[#allocation214_spill] sm:$0xff] }
 0x550   : > { %v3857_v45 = vmul.f32 %v3825_v32, %v19726_v1  ;;  %v16315_v50 = vmul.f32 %v3860_v10, %v16273_v6  ;;  %v3859_v44 = vmul.f32 %v3827_v48, %v19730_v51  ;;  %v3548_v26 = vmul.f32 %v12185_v57, %v3516_v9  ;;  %v19736_v1 = vld [vmem:[#allocation53_spill] sm:$0xff]  ;;  %v19741_v9 = vld [vmem:[#allocation79_spill] sm:$0xff]  ;;  %v19742_v51 = vld [vmem:[#allocation206_spill] sm:$0xff] }
 0x551   : > { %19725 = vst [vmem:[#allocation84_spill] sm:$0xff] %v16307_v18  ;;  %19728 = vst [vmem:[#allocation82_spill] sm:$0xff] %v16312_v4  ;;  %v3545_v43 = vmul.f32 %v16045_v17, %v19732_v34  ;;  %v19735_v19 = vsub.f32 2.0, %v19734_v23  ;;  %v3549_v10 = vmul.f32 %v16141_v52, %v3517_v61  ;;  %v3547_v33 = vmul.f32 %v16171_v15, %v3515_v3  ;;  %v19744_v34 = vld [vmem:[#allocation42_spill] sm:$0xff]  ;;  %v11283_v61 = vpop.f32.mrb[124].mxu1  ;;  %v19746_v3 = vld [vmem:[#allocation95_spill] sm:$0xff] }
 0x552   : > { %19729 = vst [vmem:[#allocation85_spill] sm:$0xff] %v16315_v50  ;;  %v16325_v32 = vmul.f32 %v3857_v45, %v16281_v56  ;;  %v16333_v48 = vmul.f32 %v3859_v44, %v16300_v5  ;;  %v16337_v21 = vmul.f32 %v16082_v20, %v19738_v24  ;;  %v19739_v17 = vlaneseq  ;;  %v19749_v24 = vld [vmem:[#allocation108_spill] sm:$0xff]  ;;  %v4494_v4 = vpop.f32.mrb[125].mxu1  ;;  %v19760_v50 = vld [vmem:[#allocation211_spill] sm:$0xff]  ;;  %v19761_v18 = vld [vmem:[#allocation105_spill] sm:$0xff] }
 0x553   : > { %v3832_v28 = vmul.f32 %v19736_v1, %v19735_v19  ;;  %v19743_v35 = vsub.f32 2.0, %v19742_v51  ;;  %v19745_v19 = vld [vmem:[#allocation45_spill] sm:$0xff]  ;;  %v3550_v15 = vmul.f32 %v16181_v16, %v3518_v60  ;;  %v19747_v44 = vsub.f32 2.0, %v19746_v3  ;;  %v19748_v1 = vld [vmem:[#allocation80_spill] sm:$0xff]  ;;  %v19755_v16 = vld [vmem:[#allocation122_spill] sm:$0xff] }
 0x554   : > { %19733 = vst [vmem:[#allocation83_spill] sm:$0xff] %v16325_v32  ;;  %19737 = vst [vmem:[#allocation86_spill] sm:$0xff] %v16333_v48  ;;  %v16340_v57 = vshrl.u32 %v19739_v17, 7  ;;  %v16347_v52 = vmul.f32 %v3546_v41, %v19745_v19  ;;  %v16355_v17 = vmul.f32 %v16162_v40, %v19749_v24  ;;  %v19750_v48 = vld [vmem:[#allocation54_spill] sm:$0xff]  ;;  %v19754_v41 = vld [vmem:[#allocation193_spill] sm:$0xff]  ;;  %v16365_v60 = vmul.f32 %v3548_v26, %v19755_v16  ;;  %v11284_v32 = vpop.f32.mrb[126].mxu1 }
 0x555   : > { %v3864_v45 = vmul.f32 %v3832_v28, %v19741_v9  ;;  %v3829_v23 = vmul.f32 %v19744_v34, %v19743_v35  ;;  %v3834_v20 = vmul.f32 %v19748_v1, %v19747_v44  ;;  %v19751_v28 = vsub.f32 2.0, %v19750_v48  ;;  %v19752_v9 = vld [vmem:[#allocation52_spill] sm:$0xff]  ;;  %v19756_v19 = vld [vmem:[#allocation62_spill] sm:$0xff]  ;;  %v19758_v44 = vld [vmem:[#allocation57_spill] sm:$0xff] }
 0x556   : > { %19740 = vst [vmem:[#allocation87_spill] sm:$0xff] %v16340_v57  ;;  %v19757_v3 = vsub.f32 2.0, %v19756_v19  ;;  %v19759_v40 = vld [vmem:[#allocation213_spill] sm:$0xff]  ;;  %v16379_v26 = vadd.s32 56, %v16340_v57  ;;  %v19767_v19 = vld [vmem:[#allocation100_spill] sm:$0xff] }
 0x557   : > { %v3831_v51 = vmul.f32 %v19752_v9, %v19751_v28  ;;  %v16361_v35 = vmul.f32 %v3864_v45, %v16319_v38  ;;  %v3861_v34 = vmul.f32 %v3829_v23, %v19754_v41  ;;  %v3866_v24 = vmul.f32 %v3834_v20, %v19759_v40  ;;  %v19762_v9 = vld [vmem:[#allocation43_spill] sm:$0xff]  ;;  %v4497_v41 = vpop.f32.mrb[127].mxu1  ;;  %v19774_v40 = vld [vmem:[#allocation109_spill] sm:$0xff] }
 0x558   : > { %v3836_v1 = vmul.f32 %v19758_v44, %v19757_v3  ;;  %v16373_v28 = vmul.f32 %v3545_v43, %v19761_v18  ;;  %v19763_v45 = vsub.f32 2.0, %v19762_v9  ;;  %v4516_v23 = vpack.c.bf16 %v11284_v32, %v11283_v61  ;;  %19765 = vst [vmem:[#allocation37_spill] sm:$0xff] %v16379_v26  ;;  %v19770_v43 = vld [vmem:[#allocation209_spill] sm:$0xff] }
 0x559   : > { %19753 = vst [vmem:[#allocation172_spill] sm:$0xff] %v16361_v35  ;;  %v3863_v48 = vmul.f32 %v3831_v51, %v19760_v50  ;;  %v19764_v35 = vld [vmem:[#allocation50_spill] sm:$0xff]  ;;  %v16382_v16 = vmul.f32 %v3861_v34, %v16337_v21  ;;  %v4515_v20 = vpack.c.bf16 %v4497_v41, %v4494_v4  ;;  %v16386_v50 = vmul.f32 %v3866_v24, %v16347_v52  ;;  %v19773_v34 = vld [vmem:[#allocation111_spill] sm:$0xff] }
 0x55a   : > { %v3833_v11 = vmul.f32 %v19764_v35, %v19763_v45  ;;  %v3868_v3 = vmul.f32 %v3836_v1, %v19767_v19  ;;  %v19771_v35 = vld [vmem:[#allocation63_spill] sm:$0xff]  ;;  %4660 = vrot.lane.b32.xlu1 %v4516_v23, %s12794_s18  ;;  %v3582_v44 = vmul.f32 %v3550_v15, %v19773_v34  ;;  %v3579_v1 = vmul.f32 %v3547_v33, %v19774_v40  ;;  %v19780_v19 = vld [vmem:[#allocation58_spill] sm:$0xff]  ;;  %v19781_v33 = vld [vmem:[#allocation44_spill] sm:$0xff] }
 0x55b   : > { %19766 = vst [vmem:[#allocation177_spill] sm:$0xff] %v16382_v16  ;;  %19768 = vst [vmem:[#allocation90_spill] sm:$0xff] %v16386_v50  ;;  %v16389_v18 = vmul.f32 %v3863_v48, %v16355_v17  ;;  %v3357_v32 = vadd.f32 0.0009, %v19771_v35  ;;  %v19775_v4 = vld [vmem:[#allocation51_spill] sm:$0xff]  ;;  %4658 = vrot.lane.b32.xlu0 %v4515_v20, %s12794_s18  ;;  %11305 = vmatprep.mubr.msk.bf16.mxu0 %vm1205_vm0, %v4515_v20  ;;  %v19778_v48 = vld [vmem:[#allocation60_spill] sm:$0xff] }
 0x55c   : > { %v3865_v51 = vmul.f32 %v3833_v11, %v19770_v43  ;;  %v16395_v61 = vmul.f32 %v3868_v3, %v16365_v60  ;;  %v3645_v9 = vadd.f32 0.0001, %v19775_v4  ;;  %v19776_v24 = vld [vmem:[#allocation55_spill] sm:$0xff]  ;;  %v19779_v41 = vsub.f32 2.0, %v19778_v48  ;;  %11306 = vmatmul.mubr.msk.bf16.gmra.mrb[156].mxu0 %vm1205_vm0, %v4516_v23  ;;  %v19784_v40 = vld [vmem:[#allocation97_spill] sm:$0xff] }
 0x55d   : > { %19769 = vst [vmem:[#allocation88_spill] sm:$0xff] %v16389_v18  ;;  %v3643_v45 = vadd.f32 0.0001, %v19776_v24  ;;  %vm3919_vm2 = vcmp.lt.s32.totalorder %v16379_v26, 61  ;;  %v3902_v15 = vmul.f32 %v19781_v33, %v3582_v44  ;;  %v3581_v43 = vmul.f32 %v3549_v10, %v3357_v32  ;;  %v19782_v35 = vld [vmem:[#allocation59_spill] sm:$0xff] }
 0x55e   : > { %19772 = vst [vmem:[#allocation179_spill] sm:$0xff] %v16395_v61  ;;  %v16404_v11 = vmul.f32 %v3865_v51, %v16373_v28  ;;  %v3835_v3 = vmul.f32 %v19780_v19, %v19779_v41  ;;  %v19783_v34 = vsub.f32 2.0, %v19782_v35  ;;  %v19785_v24 = vmov 0  }
 0x55f   : > { %5042 = vmatprep.mubr.bf16.mxu0 %v19785_v24  ;;  %v16418_v51 = vsel %vm3984_vm1, %v16009_v12, 0.0  ;;  %v16422_v48 = vsel %vm3984_vm1, %v15983_v46, 0.0  ;;  %v3951_v23 = vsel %vm3919_vm2, %v3902_v15, 0.0  ;;  %v16428_v10 = vsel %vm3984_vm1, %v16017_v39, 0.0 }
 0x560   : > { %19777 = vst [vmem:[#allocation92_spill] sm:$0xff] %v16404_v11  ;;  %v3837_v4 = vmul.f32 %v19784_v40, %v19783_v34  ;;  %v3867_v20 = vmul.f32 %v3835_v3, %v3643_v45  ;;  %19786 = vst [vmem:[#allocation89_spill] sm:$0xff] %v16418_v51  ;;  %v16432_v32 = vsel %vm3984_vm1, %v15999_v55, 0.0  ;;  %v16435_v45 = vsel %vm3984_vm1, %v3951_v23, 0.0 }
 0x561   : > { %19787 = vst [vmem:[#allocation94_spill] sm:$0xff] %v16422_v48  ;;  %19788 = vst [vmem:[#allocation91_spill] sm:$0xff] %v16428_v10  ;;  %v3959_v46 = vsel %vm3919_vm2, %v16043_v47, 0.0  ;;  %v16442_v19 = vsel %vm3984_vm1, %v16104_v27, 0.0  ;;  %v16449_v55 = vsel %vm3984_vm1, %v16115_v54, 0.0  ;;  %v16453_v3 = vsel %vm3984_vm1, %v16124_v37, 0.0 }
 0x562   : > { %v3869_v41 = vmul.f32 %v3837_v4, %v3645_v9  ;;  %19789 = vst [vmem:[#allocation186_spill] sm:$0xff] %v16432_v32  ;;  %19790 = vst [vmem:[#allocation96_spill] sm:$0xff] %v16435_v45  ;;  %v3899_v12 = vmul.f32 %v3867_v20, %v3579_v1  ;;  %v16445_v39 = vsel %vm3984_vm1, %v3959_v46, 0.0  ;;  %v16460_v47 = vsel %vm3984_vm1, %v16136_v36, 0.0  ;;  %v4784_v32 = vld [vmem:[#allocation12 + $0x8] sm:$0xff] }
 0x563   : > { %19791 = vst [vmem:[#allocation93_spill] sm:$0xff] %v16442_v19  ;;  %19792 = vst [vmem:[#allocation46_spill] sm:$0xff] %v16445_v39  ;;  %v16464_v27 = vsel %vm3984_vm1, %v16152_v62, 0.0  ;;  %v16468_v15 = vsel %vm3984_vm1, %v16169_v7, 0.0  ;;  %v16475_v37 = vsel %vm3984_vm1, %v16189_v0, 0.0  ;;  %v3967_v36 = vsel %vm3919_vm2, %v16196_v59, 0.0 }
 0x564   : > { %v3901_v9 = vmul.f32 %v3869_v41, %v3581_v43  ;;  %19793 = vst [vmem:[#allocation101_spill] sm:$0xff] %v16449_v55  ;;  %19794 = vst [vmem:[#allocation98_spill] sm:$0xff] %v16453_v3  ;;  %v16456_v33 = vsel %vm3984_vm1, %v3899_v12, 0.0  ;;  %v16482_v35 = vsel %vm3984_vm1, %v16204_v8, 0.0  ;;  %v16485_v62 = vsel %vm3984_vm1, %v3967_v36, 0.0  ;;  %v4783_v39 = vld [vmem:[#allocation12] sm:$0xff] }
 0x565   : > { %19795 = vst [vmem:[#allocation103_spill] sm:$0xff] %v16456_v33  ;;  %19796 = vst [vmem:[#allocation99_spill] sm:$0xff] %v16460_v47  ;;  %v16489_v7 = vsel %vm3984_vm1, %v16216_v58, 0.0  ;;  %v16493_v34 = vsel %vm3984_vm1, %v16228_v42, 0.0  ;;  %v16497_v0 = vsel %vm3984_vm1, %v16248_v2, 0.0  ;;  %v16501_v59 = vsel %vm3984_vm1, %v16260_v53, 0.0 }
 0x566   : > { %19797 = vst [vmem:[#allocation189_spill] sm:$0xff] %v16464_v27  ;;  %19798 = vst [vmem:[#allocation195_spill] sm:$0xff] %v16468_v15  ;;  %v16471_v54 = vsel %vm3984_vm1, %v3901_v9, 0.0  ;;  %v16505_v8 = vsel %vm3984_vm1, %v16273_v6, 0.0  ;;  %v16509_v58 = vsel %vm3984_vm1, %v16281_v56, 0.0  ;;  %v3975_v42 = vsel %vm3919_vm2, %v16292_v49, 0.0 }
 0x567   : > { %19799 = vst [vmem:[#allocation106_spill] sm:$0xff] %v16471_v54  ;;  %19800 = vst [vmem:[#allocation102_spill] sm:$0xff] %v16475_v37  ;;  %v16515_v40 = vsel %vm3984_vm1, %v3975_v42, 0.0  ;;  %v16519_v2 = vsel %vm3984_vm1, %v16300_v5, 0.0  ;;  %v16523_v53 = vsel %vm3984_vm1, %v16319_v38, 0.0  ;;  %v16527_v6 = vsel %vm3984_vm1, %v16337_v21, 0.0 }
 0x568   : > { %19801 = vst [vmem:[#allocation36_spill] sm:$0xff] %v16482_v35  ;;  %19802 = vst [vmem:[#allocation48_spill] sm:$0xff] %v16485_v62  ;;  %v16531_v56 = vsel %vm3984_vm1, %v16347_v52, 0.0  ;;  %v16535_v49 = vsel %vm3984_vm1, %v16355_v17, 0.0  ;;  %v16539_v5 = vsel %vm3984_vm1, %v16365_v60, 0.0  ;;  %v16543_v38 = vsel %vm3984_vm1, %v16373_v28, 0.0 }
 0x569   : > { %19803 = vst [vmem:[#allocation107_spill] sm:$0xff] %v16489_v7  ;;  %19804 = vst [vmem:[#allocation104_spill] sm:$0xff] %v16493_v34  ;;  %v3983_v21 = vsel %vm3919_vm2, %v3582_v44, 0.0  ;;  %v16548_v4 = vsel %vm3984_vm1, %v3579_v1, 0.0  ;;  %v16551_v52 = vsel %vm3984_vm1, %v3581_v43, 0.0 }
 0x56a   : > { %19805 = vst [vmem:[#allocation205_spill] sm:$0xff] %v16497_v0  ;;  %19806 = vst [vmem:[#allocation49_spill] sm:$0xff] %v16501_v59  ;;  %v16554_v17 = vsel %vm3984_vm1, %v3983_v21, 0.0 }
 0x56b   : > { %19807 = vst [vmem:[#allocation115_spill] sm:$0xff] %v16505_v8  ;;  %19808 = vst [vmem:[#allocation112_spill] sm:$0xff] %v16509_v58 }
 0x56c   : > { %19809 = vst [vmem:[#allocation119_spill] sm:$0xff] %v16515_v40  ;;  %19810 = vst [vmem:[#allocation113_spill] sm:$0xff] %v16519_v2 }
 0x56d   : > { %19811 = vst [vmem:[#allocation123_spill] sm:$0xff] %v16523_v53  ;;  %19812 = vst [vmem:[#allocation117_spill] sm:$0xff] %v16527_v6 }
 0x56e   : > { %19813 = vst [vmem:[#allocation127_spill] sm:$0xff] %v16531_v56  ;;  %19814 = vst [vmem:[#allocation125_spill] sm:$0xff] %v16535_v49 }
 0x56f   : > { %19815 = vst [vmem:[#allocation164_spill] sm:$0xff] %v16539_v5  ;;  %19816 = vst [vmem:[#allocation128_spill] sm:$0xff] %v16543_v38 }
 0x570   : > { %19817 = vst [vmem:[#allocation116_spill] sm:$0xff] %v16548_v4  ;;  %19818 = vst [vmem:[#allocation163_spill] sm:$0xff] %v16551_v52 }
 0x571   : > { %19819 = vst [vmem:[#allocation120_spill] sm:$0xff] %v16554_v17 }
 0x596   : > { %v4649_v23 = vpop.permute.xlu1 %4648 }
 0x598   : > { %v4647_v20 = vpop.permute.xlu0 %4646 }
 0x599   : > { %11317 = vmatprep.mubr.msk.bf16.mxu1 %vm1205_vm0, %v4647_v20 }
 0x59a   : > { %11318 = vmatmul.mubr.msk.bf16.vlgmr.msra.gmra.mrb[128].mxu1 %vm1205_vm0, %v4649_v23 }
 0x5a5   : > { %v4653_v28 = vpop.permute.xlu1 %4652 }
 0x5a6   : > { %v4651_v60 = vpop.permute.xlu0 %4650 }
 0x5a7   : > { %11321 = vmatprep.mubr.msk.bf16.mxu1 %vm1205_vm0, %v4651_v60 }
 0x5a8   : > { %11322 = vmatmul.mubr.msk.bf16.gmra.mrb[132].mxu1 %vm1205_vm0, %v4653_v28 }
 0x5b7   : > { %v4657_v1 = vpop.permute.xlu1 %4656 }
 0x5b8   : > { %v4655_v44 = vpop.permute.xlu0 %4654 }
 0x5b9   : > { %11325 = vmatprep.mubr.msk.bf16.mxu1 %vm1205_vm0, %v4655_v44 }
 0x5ba   : > { %11326 = vmatmul.mubr.msk.bf16.gmra.mrb[136].mxu1 %vm1205_vm0, %v4657_v1 }
 0x5cc   : > { %v4661_v41 = vpop.permute.xlu1 %4660 }
 0x5cd   : > { %v4659_v43 = vpop.permute.xlu0 %4658 }
 0x5ce   : > { %11329 = vmatprep.mubr.msk.bf16.mxu1 %vm1205_vm0, %v4659_v43 }
 0x5cf   : > { %11330 = vmatmul.mubr.msk.bf16.gmra.mrb[140].mxu1 %vm1205_vm0, %v4661_v41 }
 0x5d0   : > { %5095 = vmatprep.mubr.bf16.mxu1 %v19785_v24 }
 0x5ff   : > { %v16565_v12 = vpop.f32.mrb[144].mxu0 }
 0x600   : > { %v16567_v46 = vpop.f32.mrb[145].mxu0 }
 0x601   : > { %v16569_v9 = vpop.f32.mrb[146].mxu0 }
 0x602   : > { %v16571_v36 = vpop.f32.mrb[147].mxu0 }
 0x608   : > { %v16573_v42 = vpop.f32.mrb[148].mxu0 }
 0x609   : > { %v16575_v21 = vpop.f32.mrb[149].mxu0 }
 0x60a   : > { %v16577_v20 = vpop.f32.mrb[150].mxu0 }
 0x60b   : > { %v16579_v23 = vpop.f32.mrb[151].mxu0 }
 0x61a   : > { %v16581_v60 = vpop.f32.mrb[152].mxu0 }
 0x61b   : > { %v16583_v28 = vpop.f32.mrb[153].mxu0 }
 0x61c   : > { %v16585_v44 = vpop.f32.mrb[154].mxu0 }
 0x61d   : > { %v16587_v1 = vpop.f32.mrb[155].mxu0 }
 0x62f   : > { %v16589_v43 = vpop.f32.mrb[156].mxu0 }
 0x630   : > { %v16591_v41 = vpop.f32.mrb[157].mxu0 }
 0x631   : > { %v16593_v52 = vpop.f32.mrb[158].mxu0 }
 0x632   : > { %v16595_v4 = vpop.f32.mrb[159].mxu0 }
 0x66d   : > { %v11319_v17 = vpop.f32.mrb[128].mxu1 }
 0x66e   : > { %v16598_v57 = vmul.f32 %v11319_v17, %v16565_v12  ;;  %v4720_v38 = vpop.f32.mrb[129].mxu1 }
 0x66f   : > { %v4892_v5 = vmul.f32 %v4720_v38, %v16567_v46  ;;  %v11320_v49 = vpop.f32.mrb[130].mxu1  ;;  %4811 = vrot.lane.b32.xlu0 %v4720_v38, %s12796_s6 }
 0x670   : > { %v16603_v56 = vmul.f32 %v11320_v49, %v16569_v9  ;;  %v4723_v6 = vpop.f32.mrb[131].mxu1 }
 0x671   : > { %v4893_v53 = vmul.f32 %v4723_v6, %v16571_v36  ;;  %4813 = vrot.lane.b32.xlu1 %v4723_v6, %s12796_s6 }
 0x673   : > { %v4989_v40 = vpack.c.bf16 %v4893_v53, %v4892_v5  ;;  %4815 = vrot.lane.b32.xlu0 %v11319_v17, %s12796_s6 }
 0x675   : > { %4817 = vrot.lane.b32.xlu1 %v11320_v49, %s12796_s6  ;;  %5010 = vmatprep.subr.bf16.mxu0 %v4989_v40 }
 0x67b   : > { %v11323_v58 = vpop.f32.mrb[132].mxu1 }
 0x67c   : > { %v16612_v38 = vmul.f32 %v11323_v58, %v16573_v42  ;;  %v4736_v8 = vpop.f32.mrb[133].mxu1 }
 0x67d   : > { %v4896_v59 = vmul.f32 %v4736_v8, %v16575_v21  ;;  %v11324_v0 = vpop.f32.mrb[134].mxu1  ;;  %4819 = vrot.lane.b32.xlu0 %v4736_v8, %s12796_s6 }
 0x67e   : > { %v16617_v6 = vmul.f32 %v11324_v0, %v16577_v20  ;;  %v4739_v2 = vpop.f32.mrb[135].mxu1 }
 0x67f   : > { %v4897_v53 = vmul.f32 %v4739_v2, %v16579_v23  ;;  %4821 = vrot.lane.b32.xlu1 %v4739_v2, %s12796_s6 }
 0x681   : > { %v4993_v49 = vpack.c.bf16 %v4897_v53, %v4896_v59  ;;  %4823 = vrot.lane.b32.xlu0 %v11323_v58, %s12796_s6 }
 0x683   : > { %4825 = vrot.lane.b32.xlu1 %v11324_v0, %s12796_s6  ;;  %5063 = vmatprep.subr.bf16.mxu1 %v4993_v49 }
 0x68d   : > { %v11327_v5 = vpop.f32.mrb[136].mxu1 }
 0x68e   : > { %v16626_v8 = vmul.f32 %v11327_v5, %v16581_v60  ;;  %v4752_v17 = vpop.f32.mrb[137].mxu1 }
 0x68f   : > { %v16629_v34 = vmul.f32 %v4752_v17, %v16583_v28  ;;  %v11328_v7 = vpop.f32.mrb[138].mxu1  ;;  %4827 = vrot.lane.b32.xlu0 %v4752_v17, %s12796_s6 }
 0x690   : > { %v16633_v2 = vmul.f32 %v11328_v7, %v16585_v44  ;;  %v4755_v59 = vpop.f32.mrb[139].mxu1 }
 0x691   : > { %v16636_v58 = vmul.f32 %v4755_v59, %v16587_v1  ;;  %4829 = vrot.lane.b32.xlu1 %v4755_v59, %s12796_s6 }
 0x693   : > { %4831 = vrot.lane.b32.xlu0 %v11327_v5, %s12796_s6 }
 0x695   : > { %4833 = vrot.lane.b32.xlu1 %v11328_v7, %s12796_s6 }
 0x6a2   : > { %v11331_v49 = vpop.f32.mrb[140].mxu1 }
 0x6a3   : > { %v16646_v17 = vmul.f32 %v11331_v49, %v16589_v43  ;;  %v4768_v40 = vpop.f32.mrb[141].mxu1 }
 0x6a4   : > { %v16649_v35 = vmul.f32 %v4768_v40, %v16591_v41  ;;  %4835 = vrot.lane.b32.xlu0 %v4768_v40, %s12796_s6  ;;  %v11332_v59 = vpop.f32.mrb[142].mxu1 }
 0x6a5   : > { %v16653_v0 = vmul.f32 %v11332_v59, %v16593_v52  ;;  %v4771_v62 = vpop.f32.mrb[143].mxu1 }
 0x6a6   : > { %v16656_v53 = vmul.f32 %v4771_v62, %v16595_v4  ;;  %4837 = vrot.lane.b32.xlu1 %v4771_v62, %s12796_s6 }
 0x6a8   : > { %4839 = vrot.lane.b32.xlu0 %v11331_v49, %s12796_s6 }
 0x6aa   : > { %4841 = vrot.lane.b32.xlu1 %v11332_v59, %s12796_s6 }
 0x6e1   : > { %v4812_v40 = vpop.permute.xlu0 %4811 }
 0x6e2   : > { %v16667_v37 = vsel %vm4859_vm3, %v16567_v46, %v4812_v40 }
 0x6e3   : > { %v4814_v15 = vpop.permute.xlu1 %4813  ;;  %v4876_v7 = vmul.f32 %v16667_v37, %v16667_v37 }
 0x6e4   : > { %v16671_v62 = vsel %vm4859_vm3, %v16571_v36, %v4814_v15 }
 0x6e5   : > { %v4877_v5 = vmul.f32 %v16671_v62, %v16671_v62  ;;  %v4816_v49 = vpop.permute.xlu0 %4815 }
 0x6e6   : > { %v16679_v59 = vsel %vm4859_vm3, %v16565_v12, %v4816_v49 }
 0x6e7   : > { %v4818_v27 = vpop.permute.xlu1 %4817  ;;  %v11938_v47 = vpack.i.bf16 %v4877_v5, %v4876_v7  ;;  %v4878_v15 = vmul.f32 %v16679_v59, %v16679_v59 }
 0x6e8   : > { %v16683_v46 = vsel %vm4859_vm3, %v16569_v9, %v4818_v27 }
 0x6e9   : > { %v4879_v36 = vmul.f32 %v16683_v46, %v16683_v46  ;;  %11939 = vrot.lane.b32.xlu0 %v11938_v47, %s12794_s18 }
 0x6eb   : > { %v11943_v40 = vpack.i.bf16 %v4879_v36, %v4878_v15 }
 0x6ed   : > { %11944 = vrot.lane.b32.xlu1 %v11943_v40, %s12794_s18 }
 0x6ef   : > { %v4820_v3 = vpop.permute.xlu0 %4819 }
 0x6f0   : > { %v16693_v12 = vsel %vm4859_vm3, %v16575_v21, %v4820_v3 }
 0x6f1   : > { %v4822_v7 = vpop.permute.xlu1 %4821  ;;  %v4880_v9 = vmul.f32 %v16693_v12, %v16693_v12 }
 0x6f2   : > { %v16697_v27 = vsel %vm4859_vm3, %v16579_v23, %v4822_v7 }
 0x6f3   : > { %v4881_v5 = vmul.f32 %v16697_v27, %v16697_v27  ;;  %v4824_v47 = vpop.permute.xlu0 %4823 }
 0x6f4   : > { %v16705_v49 = vsel %vm4859_vm3, %v16573_v42, %v4824_v47 }
 0x6f5   : > { %v4826_v15 = vpop.permute.xlu1 %4825  ;;  %v11948_v36 = vpack.i.bf16 %v4881_v5, %v4880_v9  ;;  %v4882_v21 = vmul.f32 %v16705_v49, %v16705_v49 }
 0x6f6   : > { %v16709_v3 = vsel %vm4859_vm3, %v16577_v20, %v4826_v15 }
 0x6f7   : > { %v4883_v23 = vmul.f32 %v16709_v3, %v16709_v3  ;;  %11949 = vrot.lane.b32.xlu0 %v11948_v36, %s12794_s18 }
 0x6f9   : > { %v11953_v40 = vpack.i.bf16 %v4883_v23, %v4882_v21 }
 0x6fb   : > { %11954 = vrot.lane.b32.xlu1 %v11953_v40, %s12794_s18 }
 0x701   : > { %v4828_v7 = vpop.permute.xlu0 %4827 }
 0x702   : > { %v16719_v42 = vsel %vm4859_vm3, %v16583_v28, %v4828_v7 }
 0x703   : > { %v4830_v9 = vpop.permute.xlu1 %4829  ;;  %v4884_v5 = vmul.f32 %v16719_v42, %v16719_v42 }
 0x704   : > { %v16723_v20 = vsel %vm4859_vm3, %v16587_v1, %v4830_v9 }
 0x705   : > { %v4885_v47 = vmul.f32 %v16723_v20, %v16723_v20  ;;  %v4832_v15 = vpop.permute.xlu0 %4831 }
 0x706   : > { %v16731_v36 = vsel %vm4859_vm3, %v16581_v60, %v4832_v15 }
 0x707   : > { %v4834_v21 = vpop.permute.xlu1 %4833  ;;  %v11958_v23 = vpack.i.bf16 %v4885_v47, %v4884_v5  ;;  %v4886_v1 = vmul.f32 %v16731_v36, %v16731_v36 }
 0x708   : > { %v16735_v28 = vsel %vm4859_vm3, %v16585_v44, %v4834_v21 }
 0x709   : > { %v4887_v40 = vmul.f32 %v16735_v28, %v16735_v28  ;;  %11959 = vrot.lane.b32.xlu0 %v11958_v23, %s12794_s18 }
 0x70b   : > { %v11963_v7 = vpack.i.bf16 %v4887_v40, %v4886_v1 }
 0x70d   : > { %11964 = vrot.lane.b32.xlu1 %v11963_v7, %s12794_s18 }
 0x716   : > { %v4836_v9 = vpop.permute.xlu0 %4835 }
 0x717   : > { %v16745_v60 = vsel %vm4859_vm3, %v16591_v41, %v4836_v9 }
 0x718   : > { %v4838_v5 = vpop.permute.xlu1 %4837  ;;  %v4888_v47 = vmul.f32 %v16745_v60, %v16745_v60 }
 0x719   : > { %v16749_v44 = vsel %vm4859_vm3, %v16595_v4, %v4838_v5 }
 0x71a   : > { %v4889_v15 = vmul.f32 %v16749_v44, %v16749_v44  ;;  %v4840_v21 = vpop.permute.xlu0 %4839 }
 0x71b   : > { %v16757_v23 = vsel %vm4859_vm3, %v16589_v43, %v4840_v21 }
 0x71c   : > { %v4842_v1 = vpop.permute.xlu1 %4841  ;;  %v11968_v40 = vpack.i.bf16 %v4889_v15, %v4888_v47  ;;  %v4890_v4 = vmul.f32 %v16757_v23, %v16757_v23 }
 0x71d   : > { %v16761_v41 = vsel %vm4859_vm3, %v16593_v52, %v4842_v1 }
 0x71e   : > { %v4891_v7 = vmul.f32 %v16761_v41, %v16761_v41  ;;  %11969 = vrot.lane.b32.xlu0 %v11968_v40, %s12794_s18 }
 0x720   : > { %v11973_v9 = vpack.i.bf16 %v4891_v7, %v4890_v4  ;;  %v19820_v7 = vpack.c.bf16 %v16603_v56, %v16598_v57 }
 0x722   : > { %11974 = vrot.lane.b32.xlu1 %v11973_v9, %s12794_s18 }
 0x75b   : > { %v11940_v5 = vpop.permute.xlu0 %11939 }
 0x75c   : > { %v11942_v43 = vunpack.i.h.bf16 %v11940_v5  ;;  %v11941_v21 = vunpack.i.l.bf16 %v11940_v5  ;;  %v16780_v5 = vpack.c.bf16 %v4784_v32, %v4783_v39 }
 0x75e   : > { %v4973_v47 = vsel %vm1205_vm0, %v16671_v62, %v11942_v43  ;;  %v4972_v52 = vsel %vm1205_vm0, %v16667_v37, %v11941_v21  ;;  %v19821_v43 = vpack.c.bf16 %v16636_v58, %v16629_v34 }
 0x75f   : > { %v11945_v15 = vpop.permute.xlu1 %11944  ;;  %v4988_v1 = vpack.c.bf16 %v4973_v47, %v4972_v52  ;;  %v4786_v52 = vld [vmem:[#allocation12 + $0x18] sm:$0xff] }
 0x760   : > { %v11947_v55 = vunpack.i.h.bf16 %v11945_v15  ;;  %v11946_v19 = vunpack.i.l.bf16 %v11945_v15 }
 0x761   : > { %5011 = vmatpush1.bf16.msra.mxu0 %v4988_v1 }
 0x762   : > { %v4975_v40 = vsel %vm1205_vm0, %v16683_v46, %v11947_v55  ;;  %v4974_v4 = vsel %vm1205_vm0, %v16679_v59, %v11946_v19  ;;  %5012 = vmatprep.subr.bf16.mxu0 %v19820_v7  ;;  %v4785_v19 = vld [vmem:[#allocation12 + $0x10] sm:$0xff] }
 0x763   : > { %v4990_v9 = vpack.c.bf16 %v4975_v40, %v4974_v4  ;;  %v4788_v56 = vpack.c.bf16 %v4786_v52, %v4785_v19  ;;  %v19822_v4 = vpack.c.bf16 %v16617_v6, %v16612_v38 }
 0x765   : > { %5013 = vmatpush1.bf16.msra.mxu0 %v4990_v9  ;;  %v19823_v9 = vpack.c.bf16 %v16656_v53, %v16649_v35 }
 0x766   : > { %5116 = vmatprep.subr.bf16.mxu0 %v19821_v43 }
 0x768   : > { %10478 = vmatmul.mubr.msk.bf16.vlgmr.msra.gmra.mrb[160].mxu0 %vm4859_vm3, %v16780_v5 }
 0x769   : > { %v11950_v21 = vpop.permute.xlu0 %11949  ;;  %5052 = vmatprep.mubr.bf16.mxu0 %v19785_v24 }
 0x76a   : > { %v11952_v55 = vunpack.i.h.bf16 %v11950_v21  ;;  %v11951_v47 = vunpack.i.l.bf16 %v11950_v21 }
 0x76c   : > { %v4977_v57 = vsel %vm1205_vm0, %v16697_v27, %v11952_v55  ;;  %v4976_v32 = vsel %vm1205_vm0, %v16693_v12, %v11951_v47 }
 0x76d   : > { %v11955_v39 = vpop.permute.xlu1 %11954  ;;  %v4992_v34 = vpack.c.bf16 %v4977_v57, %v4976_v32  ;;  %v19824_v32 = vpack.c.bf16 %v16633_v2, %v16626_v8 }
 0x76e   : > { %v11957_v58 = vunpack.i.h.bf16 %v11955_v39  ;;  %v11956_v15 = vunpack.i.l.bf16 %v11955_v39 }
 0x76f   : > { %5064 = vmatpush1.bf16.msra.mxu1 %v4992_v34 }
 0x770   : > { %v4979_v1 = vsel %vm1205_vm0, %v16709_v3, %v11957_v58  ;;  %v4978_v40 = vsel %vm1205_vm0, %v16705_v49, %v11956_v15  ;;  %5065 = vmatprep.subr.bf16.mxu1 %v19822_v4  ;;  %10479 = vmatmul.mubr.msk.bf16.gmra.mrb[164].mxu0 %vm4859_vm3, %v4788_v56 }
 0x771   : > { %v4994_v7 = vpack.c.bf16 %v4979_v1, %v4978_v40  ;;  %5148 = vmatprep.mubr.bf16.mxu0 %v19785_v24 }
 0x773   : > { %5066 = vmatpush1.bf16.msra.mxu1 %v4994_v7 }
 0x774   : > { %5169 = vmatprep.subr.bf16.mxu1 %v19823_v9 }
 0x776   : > { %10480 = vmatmul.mubr.msk.bf16.vlgmr.msra.gmra.mrb[144].mxu1 %vm4859_vm3, %v16780_v5 }
 0x777   : > { %5105 = vmatprep.mubr.bf16.mxu1 %v19785_v24 }
 0x77b   : > { %v11960_v43 = vpop.permute.xlu0 %11959 }
 0x77c   : > { %v11962_v21 = vunpack.i.h.bf16 %v11960_v43  ;;  %v11961_v55 = vunpack.i.l.bf16 %v11960_v43 }
 0x77e   : > { %v4981_v38 = vsel %vm1205_vm0, %v16723_v20, %v11962_v21  ;;  %v4980_v6 = vsel %vm1205_vm0, %v16719_v42, %v11961_v55  ;;  %10481 = vmatmul.mubr.msk.bf16.gmra.mrb[148].mxu1 %vm4859_vm3, %v4788_v56  ;;  %v19825_v21 = vpack.c.bf16 %v16653_v0, %v16646_v17 }
 0x77f   : > { %v11965_v47 = vpop.permute.xlu1 %11964  ;;  %v4996_v19 = vpack.c.bf16 %v4981_v38, %v4980_v6  ;;  %5201 = vmatprep.mubr.bf16.mxu1 %v19785_v24  ;;  %v4789_v38 = vld [vmem:[#allocation13] sm:$0xff]  ;;  %v4790_v6 = vld [vmem:[#allocation13 + $0x8] sm:$0xff] }
 0x780   : > { %v11967_v52 = vunpack.i.h.bf16 %v11965_v47  ;;  %v11966_v57 = vunpack.i.l.bf16 %v11965_v47  ;;  %v16839_v47 = vpack.c.bf16 %v4790_v6, %v4789_v38 }
 0x781   : > { %5117 = vmatpush1.bf16.msra.mxu0 %v4996_v19  ;;  %v4791_v19 = vld [vmem:[#allocation13 + $0x10] sm:$0xff] }
 0x782   : > { %v4983_v35 = vsel %vm1205_vm0, %v16735_v28, %v11967_v52  ;;  %v4982_v53 = vsel %vm1205_vm0, %v16731_v36, %v11966_v57  ;;  %5118 = vmatprep.subr.bf16.mxu0 %v19824_v32  ;;  %v4792_v52 = vld [vmem:[#allocation13 + $0x18] sm:$0xff] }
 0x783   : > { %v4998_v39 = vpack.c.bf16 %v4983_v35, %v4982_v53  ;;  %v16842_v57 = vpack.c.bf16 %v4792_v52, %v4791_v19 }
 0x785   : > { %5119 = vmatpush1.bf16.msra.mxu0 %v4998_v39 }
 0x786   : > { %11333 = vmatprep.subr.bf16.mxu0 %v16839_v47 }
 0x788   : > { %10482 = vmatmul.mubr.msk.bf16.vlgmr.msra.gmra.mrb[168].mxu0 %vm4859_vm3, %v16780_v5 }
 0x789   : > { %5158 = vmatprep.mubr.bf16.mxu0 %v19785_v24  ;;  %11334 = vmatpush3.bf16.msra.mxu0 %v16839_v47 }
 0x78a   : > { %11335 = vmatprep.subr.bf16.mxu0 %v16842_v57 }
 0x78d   : > { %11336 = vmatpush3.bf16.msra.mxu0 %v16842_v57 }
 0x78e   : > { %11373 = vmatprep.subr.bf16.mxu0 %v16839_v47 }
 0x790   : > { %v11970_v34 = vpop.permute.xlu0 %11969  ;;  %10483 = vmatmul.mubr.msk.bf16.gmra.mrb[172].mxu0 %vm4859_vm3, %v4788_v56 }
 0x791   : > { %v11972_v58 = vunpack.i.h.bf16 %v11970_v34  ;;  %v11971_v15 = vunpack.i.l.bf16 %v11970_v34 }
 0x793   : > { %v4985_v1 = vsel %vm1205_vm0, %v16749_v44, %v11972_v58  ;;  %v4984_v40 = vsel %vm1205_vm0, %v16745_v60, %v11971_v15 }
 0x794   : > { %v11975_v4 = vpop.permute.xlu1 %11974  ;;  %v5000_v7 = vpack.c.bf16 %v4985_v1, %v4984_v40 }
 0x795   : > { %v11977_v8 = vunpack.i.h.bf16 %v11975_v4  ;;  %v11976_v2 = vunpack.i.l.bf16 %v11975_v4 }
 0x796   : > { %5170 = vmatpush1.bf16.msra.mxu1 %v5000_v7 }
 0x797   : > { %v4987_v9 = vsel %vm1205_vm0, %v16761_v41, %v11977_v8  ;;  %v4986_v43 = vsel %vm1205_vm0, %v16757_v23, %v11976_v2  ;;  %5171 = vmatprep.subr.bf16.mxu1 %v19825_v21 }
 0x798   : > { %v5002_v55 = vpack.c.bf16 %v4987_v9, %v4986_v43 }
 0x79a   : > { %5172 = vmatpush1.bf16.msra.mxu1 %v5002_v55 }
 0x79b   : > { %11353 = vmatprep.subr.bf16.mxu1 %v16839_v47 }
 0x79d   : > { %10484 = vmatmul.mubr.msk.bf16.vlgmr.msra.gmra.mrb[152].mxu1 %vm4859_vm3, %v16780_v5 }
 0x79e   : > { %5211 = vmatprep.mubr.bf16.mxu1 %v19785_v24  ;;  %11354 = vmatpush3.bf16.msra.mxu1 %v16839_v47 }
 0x79f   : > { %11355 = vmatprep.subr.bf16.mxu1 %v16842_v57 }
 0x7a2   : > { %11356 = vmatpush3.bf16.msra.mxu1 %v16842_v57 }
 0x7a3   : > { %11393 = vmatprep.subr.bf16.mxu1 %v16839_v47 }
 0x7a5   : > { %10485 = vmatmul.mubr.msk.bf16.gmra.mrb[156].mxu1 %vm4859_vm3, %v4788_v56 }
 0x83b   : > { %v5044_v24 = vpop.f32.mrb[160].mxu0 }
 0x83c   : > { %v16853_v0 = vpop.f32.mrb[161].mxu0 }
 0x83d   : > { %19826 = vst [vmem:[#allocation110_spill] sm:$0xff] %v16853_v0  ;;  %v5048_v17 = vpop.f32.mrb[162].mxu0 }
 0x83e   : > { %v16855_v5 = vpack.c.bf16 %v5048_v17, %v5044_v24  ;;  %v16857_v56 = vpop.f32.mrb[163].mxu0 }
 0x83f   : > { %19827 = vst [vmem:[#allocation118_spill] sm:$0xff] %v16857_v56 }
 0x840   : > { %5359 = vrot.lane.b32.xlu0 %v16855_v5, %s12797_s8  ;;  %11337 = vmatprep.mubr.msk.bf16.mxu0 %vm4859_vm3, %v16855_v5 }
 0x843   : > { %v5054_v53 = vpop.f32.mrb[164].mxu0 }
 0x844   : > { %v16865_v32 = vpop.f32.mrb[165].mxu0 }
 0x845   : > { %19828 = vst [vmem:[#allocation166_spill] sm:$0xff] %v16865_v32  ;;  %v5058_v39 = vpop.f32.mrb[166].mxu0 }
 0x846   : > { %v16867_v34 = vpack.c.bf16 %v5058_v39, %v5054_v53  ;;  %v16869_v58 = vpop.f32.mrb[167].mxu0 }
 0x847   : > { %19829 = vst [vmem:[#allocation130_spill] sm:$0xff] %v16869_v58 }
 0x848   : > { %5361 = vrot.lane.b32.xlu1 %v16867_v34, %s12797_s8  ;;  %11338 = vmatmul.mubr.msk.bf16.vlgmr.msra.gmra.mrb[176].mxu0 %vm4859_vm3, %v16867_v34 }
 0x849   : > { %v5097_v1 = vpop.f32.mrb[144].mxu1  ;;  %11374 = vmatpush3.bf16.msra.mxu0 %v16839_v47 }
 0x84a   : > { %v16877_v40 = vpop.f32.mrb[145].mxu1  ;;  %11375 = vmatprep.subr.bf16.mxu0 %v16842_v57 }
 0x84b   : > { %19830 = vst [vmem:[#allocation124_spill] sm:$0xff] %v16877_v40  ;;  %v5101_v4 = vpop.f32.mrb[146].mxu1 }
 0x84c   : > { %v16881_v7 = vpack.c.bf16 %v5101_v4, %v5097_v1  ;;  %v16883_v8 = vpop.f32.mrb[147].mxu1 }
 0x84d   : > { %19831 = vst [vmem:[#allocation114_spill] sm:$0xff] %v16883_v8  ;;  %11376 = vmatpush3.bf16.msra.mxu0 %v16842_v57 }
 0x84e   : > { %5363 = vrot.lane.b32.xlu0 %v16881_v7, %s12797_s8  ;;  %11341 = vmatprep.mubr.msk.bf16.mxu0 %vm4859_vm3, %v16881_v7 }
 0x84f   : > { %11413 = vmatprep.subr.bf16.mxu0 %v16839_v47 }
 0x851   : > { %v5107_v9 = vpop.f32.mrb[148].mxu1 }
 0x852   : > { %v16893_v43 = vpop.f32.mrb[149].mxu1 }
 0x853   : > { %19832 = vst [vmem:[#allocation39_spill] sm:$0xff] %v16893_v43  ;;  %v5111_v21 = vpop.f32.mrb[150].mxu1 }
 0x854   : > { %v16895_v55 = vpack.c.bf16 %v5111_v21, %v5107_v9  ;;  %v16897_v38 = vpop.f32.mrb[151].mxu1 }
 0x855   : > { %19833 = vst [vmem:[#allocation150_spill] sm:$0xff] %v16897_v38 }
 0x856   : > { %5365 = vrot.lane.b32.xlu1 %v16895_v55, %s12797_s8  ;;  %11342 = vmatmul.mubr.msk.bf16.gmra.mrb[180].mxu0 %vm4859_vm3, %v16895_v55 }
 0x85b   : > { %v5150_v19 = vpop.f32.mrb[168].mxu0 }
 0x85c   : > { %v16905_v52 = vpop.f32.mrb[169].mxu0 }
 0x85d   : > { %19834 = vst [vmem:[#allocation144_spill] sm:$0xff] %v16905_v52  ;;  %v5154_v24 = vpop.f32.mrb[170].mxu0 }
 0x85e   : > { %v16907_v17 = vpack.c.bf16 %v5154_v24, %v5150_v19  ;;  %v16909_v53 = vpop.f32.mrb[171].mxu0 }
 0x85f   : > { %19836 = vst [vmem:[#allocation121_spill] sm:$0xff] %v16909_v53 }
 0x860   : > { %19835 = vst [vmem:[#allocation168_spill] sm:$0xff] %v16907_v17  ;;  %5367 = vrot.lane.b32.xlu0 %v16907_v17, %s12797_s8  ;;  %11345 = vmatprep.mubr.msk.bf16.mxu0 %vm4859_vm3, %v16907_v17 }
 0x863   : > { %v5160_v1 = vpop.f32.mrb[172].mxu0 }
 0x864   : > { %v16917_v4 = vpop.f32.mrb[173].mxu0 }
 0x865   : > { %19837 = vst [vmem:[#allocation140_spill] sm:$0xff] %v16917_v4  ;;  %v5164_v9 = vpop.f32.mrb[174].mxu0 }
 0x866   : > { %v16919_v21 = vpack.c.bf16 %v5164_v9, %v5160_v1  ;;  %v16921_v6 = vpop.f32.mrb[175].mxu0  ;;  %v19046_v1 = vmov 0.0  }
 0x867   : > { %19839 = vst [vmem:[#allocation135_spill] sm:$0xff] %v16921_v6 }
 0x868   : > { %19838 = vst [vmem:[#allocation175_spill] sm:$0xff] %v16919_v21  ;;  %5369 = vrot.lane.b32.xlu1 %v16919_v21, %s12797_s8  ;;  %11346 = vmatmul.mubr.msk.bf16.gmra.mrb[184].mxu0 %vm4859_vm3, %v16919_v21 }
 0x870   : > { %v5203_v24 = vpop.f32.mrb[152].mxu1 }
 0x871   : > { %v16929_v39 = vpop.f32.mrb[153].mxu1 }
 0x872   : > { %19840 = vst [vmem:[#allocation131_spill] sm:$0xff] %v16929_v39  ;;  %v5207_v2 = vpop.f32.mrb[154].mxu1 }
 0x873   : > { %v16931_v15 = vpack.c.bf16 %v5207_v2, %v5203_v24  ;;  %v16933_v35 = vpop.f32.mrb[155].mxu1 }
 0x874   : > { %19842 = vst [vmem:[#allocation139_spill] sm:$0xff] %v16933_v35 }
 0x875   : > { %19841 = vst [vmem:[#allocation126_spill] sm:$0xff] %v16931_v15  ;;  %5371 = vrot.lane.b32.xlu0 %v16931_v15, %s12797_s8  ;;  %11349 = vmatprep.mubr.msk.bf16.mxu0 %vm4859_vm3, %v16931_v15 }
 0x878   : > { %v5213_v9 = vpop.f32.mrb[156].mxu1 }
 0x879   : > { %5633 = vrot.lane.b32.xlu0 %v16855_v5, %s12796_s6  ;;  %v16943_v19 = vpop.f32.mrb[157].mxu1 }
 0x87a   : > { %19843 = vst [vmem:[#allocation174_spill] sm:$0xff] %v16943_v19  ;;  %v5217_v10 = vpop.f32.mrb[158].mxu1 }
 0x87b   : > { %v16945_v2 = vpack.c.bf16 %v5217_v10, %v5213_v9  ;;  %v16947_v24 = vpop.f32.mrb[159].mxu1 }
 0x87c   : > { %19845 = vst [vmem:[#allocation141_spill] sm:$0xff] %v16947_v24 }
 0x87d   : > { %19844 = vst [vmem:[#allocation146_spill] sm:$0xff] %v16945_v2  ;;  %5637 = vrot.lane.b32.xlu0 %v16881_v7, %s12796_s6  ;;  %5373 = vrot.lane.b32.xlu1 %v16945_v2, %s12797_s8 }
 0x87e   : > { %11350 = vmatmul.mubr.msk.bf16.gmra.mrb[188].mxu0 %vm4859_vm3, %v16945_v2 }
 0x881   : > { %5641 = vrot.lane.b32.xlu0 %v16907_v17, %s12796_s6  ;;  %5635 = vrot.lane.b32.xlu1 %v16867_v34, %s12796_s6 }
 0x885   : > { %5645 = vrot.lane.b32.xlu0 %v16931_v15, %s12796_s6  ;;  %5639 = vrot.lane.b32.xlu1 %v16895_v55, %s12796_s6 }
 0x889   : > { %5496 = vrot.lane.b32.xlu0 %v16855_v5, %s12794_s18  ;;  %5643 = vrot.lane.b32.xlu1 %v16919_v21, %s12796_s6 }
 0x88d   : > { %5647 = vrot.lane.b32.xlu1 %v16945_v2, %s12796_s6 }
 0x891   : > { %5498 = vrot.lane.b32.xlu1 %v16867_v34, %s12794_s18 }
 0x8b2   : > { %v5360_v10 = vpop.permute.xlu0 %5359 }
 0x8b3   : > { %11357 = vmatprep.mubr.msk.bf16.mxu1 %vm4859_vm3, %v5360_v10 }
 0x8ba   : > { %v5362_v9 = vpop.permute.xlu1 %5361 }
 0x8bb   : > { %11358 = vmatmul.mubr.msk.bf16.vlgmr.msra.gmra.mrb[160].mxu1 %vm4859_vm3, %v5362_v9 }
 0x8bc   : > { %11394 = vmatpush3.bf16.msra.mxu1 %v16839_v47 }
 0x8bd   : > { %11395 = vmatprep.subr.bf16.mxu1 %v16842_v57 }
 0x8c0   : > { %v5364_v5 = vpop.permute.xlu0 %5363  ;;  %11396 = vmatpush3.bf16.msra.mxu1 %v16842_v57 }
 0x8c1   : > { %11361 = vmatprep.mubr.msk.bf16.mxu1 %vm4859_vm3, %v5364_v5  ;;  %11433 = vmatprep.subr.bf16.mxu1 %v19046_v1 }
 0x8c8   : > { %v5366_v48 = vpop.permute.xlu1 %5365 }
 0x8c9   : > { %11362 = vmatmul.mubr.msk.bf16.gmra.mrb[164].mxu1 %vm4859_vm3, %v5366_v48  ;;  %v6521_v48 = vpack.c.bf16 %v16671_v62, %v16667_v37  ;;  %v6513_v37 = vld [vmem:[#allocation15 + $0x8] sm:$0xff] }
 0x8d2   : > { %v5368_v34 = vpop.permute.xlu0 %5367 }
 0x8d3   : > { %11365 = vmatprep.mubr.msk.bf16.mxu1 %vm4859_vm3, %v5368_v34 }
 0x8da   : > { %v5370_v10 = vpop.permute.xlu1 %5369 }
 0x8db   : > { %11366 = vmatmul.mubr.msk.bf16.gmra.mrb[168].mxu1 %vm4859_vm3, %v5370_v10  ;;  %v19846_v10 = vmov 0.0  }
 0x8e7   : > { %v5372_v9 = vpop.permute.xlu0 %5371 }
 0x8e8   : > { %11369 = vmatprep.mubr.msk.bf16.mxu1 %vm4859_vm3, %v5372_v9  ;;  %v6522_v9 = vpack.c.bf16 %v16683_v46, %v16679_v59  ;;  %v6523_v59 = vpack.c.bf16 %v16697_v27, %v16693_v12  ;;  %v6526_v46 = vpack.c.bf16 %v16735_v28, %v16731_v36 }
 0x8eb   : > { %v5634_v51 = vpop.permute.xlu0 %5633 }
 0x8ef   : > { %v5638_v54 = vpop.permute.xlu0 %5637  ;;  %v5374_v5 = vpop.permute.xlu1 %5373 }
 0x8f0   : > { %11370 = vmatmul.mubr.msk.bf16.gmra.mrb[172].mxu1 %vm4859_vm3, %v5374_v5 }
 0x8f1   : > { %11397 = vmatprep.mubr.msk.bf16.mxu1 %vm4859_vm3, %v5634_v51 }
 0x8f3   : > { %v5642_v1 = vpop.permute.xlu0 %5641  ;;  %v5636_v33 = vpop.permute.xlu1 %5635 }
 0x8f7   : > { %v5646_v45 = vpop.permute.xlu0 %5645  ;;  %v5640_v34 = vpop.permute.xlu1 %5639 }
 0x8f8   : > { %11398 = vmatmul.mubr.msk.bf16.vlgmr.msra.gmra.mrb[176].mxu1 %vm4859_vm3, %v5636_v33 }
 0x8f9   : > { %11434 = vmatpush3.bf16.msra.mxu1 %v6521_v48  ;;  %11401 = vmatprep.mubr.msk.bf16.mxu1 %vm4859_vm3, %v5638_v54  ;;  %v6512_v54 = vld [vmem:[#allocation15] sm:$0xff] }
 0x8fa   : > { %11435 = vmatprep.subr.bf16.mxu1 %v19846_v10  ;;  %v6514_v62 = vpack.c.bf16 %v6513_v37, %v6512_v54 }
 0x8fb   : > { %v5497_v5 = vpop.permute.xlu0 %5496  ;;  %v5644_v11 = vpop.permute.xlu1 %5643 }
 0x8fc   : > { %11377 = vmatprep.mubr.msk.bf16.mxu0 %vm4859_vm3, %v5497_v5 }
 0x8fd   : > { %11436 = vmatpush3.bf16.msra.mxu1 %v6522_v9 }
 0x8fe   : > { %11441 = vmatprep.subr.bf16.mxu1 %v19846_v10 }
 0x8ff   : > { %v5648_v51 = vpop.permute.xlu1 %5647 }
 0x900   : > { %11402 = vmatmul.mubr.msk.bf16.gmra.mrb[180].mxu1 %vm4859_vm3, %v5640_v34 }
 0x901   : > { %11405 = vmatprep.mubr.msk.bf16.mxu1 %vm4859_vm3, %v5642_v1 }
 0x903   : > { %v5499_v33 = vpop.permute.xlu1 %5498 }
 0x904   : > { %11378 = vmatmul.mubr.msk.bf16.vlgmr.msra.gmra.mrb[192].mxu0 %vm4859_vm3, %v5499_v33 }
 0x905   : > { %11414 = vmatpush3.bf16.msra.mxu0 %v16839_v47 }
 0x906   : > { %11415 = vmatprep.subr.bf16.mxu0 %v16842_v57 }
 0x908   : > { %11406 = vmatmul.mubr.msk.bf16.gmra.mrb[184].mxu1 %vm4859_vm3, %v5644_v11  ;;  %v6524_v11 = vpack.c.bf16 %v16709_v3, %v16705_v49 }
 0x909   : > { %11409 = vmatprep.mubr.msk.bf16.mxu1 %vm4859_vm3, %v5646_v45  ;;  %11416 = vmatpush3.bf16.msra.mxu0 %v16842_v57  ;;  %v6525_v45 = vpack.c.bf16 %v16723_v20, %v16719_v42  ;;  %v6527_v42 = vpack.c.bf16 %v16749_v44, %v16745_v60  ;;  %v6528_v20 = vpack.c.bf16 %v16761_v41, %v16757_v23 }
 0x910   : > { %11410 = vmatmul.mubr.msk.bf16.gmra.mrb[188].mxu1 %vm4859_vm3, %v5648_v51 }
 0x911   : > { %11437 = vmatprep.mubr.msk.bf16.mxu1 %vm12799_vm4, %v19846_v10 }
 0x918   : > { %11438 = vmatmul.mubr.msk.bf16.vlgmr.msra.gmra.mrb[192].mxu1 %vm4859_vm3, %v6514_v62 }
 0x919   : > { %11442 = vmatpush3.bf16.msra.mxu1 %v6523_v59  ;;  %11445 = vmatprep.mubr.msk.bf16.mxu1 %vm12799_vm4, %v19846_v10 }
 0x91a   : > { %11443 = vmatprep.subr.bf16.mxu1 %v19846_v10 }
 0x91b   : > { %v11339_v12 = vpop.f32.mrb[176].mxu0 }
 0x91c   : > { %v5288_v27 = vpop.f32.mrb[177].mxu0  ;;  %v17049_v51 = vmul.f32 %v11339_v12, %v11339_v12 }
 0x91d   : > { %11444 = vmatpush3.bf16.msra.mxu1 %v6524_v11  ;;  %v11340_v49 = vpop.f32.mrb[178].mxu0 }
 0x91e   : > { %11449 = vmatprep.subr.bf16.mxu1 %v19846_v10  ;;  %v5291_v3 = vpop.f32.mrb[179].mxu0 }
 0x920   : > { %11446 = vmatmul.mubr.msk.bf16.vlgmr.msra.gmra.mrb[196].mxu1 %vm4859_vm3, %v6514_v62 }
 0x921   : > { %11450 = vmatpush3.bf16.msra.mxu1 %v6525_v45  ;;  %11453 = vmatprep.mubr.msk.bf16.mxu1 %vm12799_vm4, %v19846_v10 }
 0x922   : > { %11451 = vmatprep.subr.bf16.mxu1 %v19846_v10 }
 0x925   : > { %11452 = vmatpush3.bf16.msra.mxu1 %v6526_v46  ;;  %v17061_v46 = vmul.f32 %v11340_v49, %v11340_v49 }
 0x926   : > { %11457 = vmatprep.subr.bf16.mxu1 %v19846_v10 }
 0x928   : > { %11454 = vmatmul.mubr.msk.bf16.vlgmr.msra.gmra.mrb[200].mxu1 %vm4859_vm3, %v6514_v62 }
 0x929   : > { %11458 = vmatpush3.bf16.msra.mxu1 %v6527_v42  ;;  %11461 = vmatprep.mubr.msk.bf16.mxu1 %vm12799_vm4, %v19846_v10  ;;  %v11343_v36 = vpop.f32.mrb[180].mxu0 }
 0x92a   : > { %11459 = vmatprep.subr.bf16.mxu1 %v19846_v10  ;;  %v5304_v28 = vpop.f32.mrb[181].mxu0  ;;  %v17081_v25 = vmul.f32 %v11343_v36, %v11343_v36 }
 0x92b   : > { %v11344_v47 = vpop.f32.mrb[182].mxu0 }
 0x92c   : > { %v5307_v57 = vpop.f32.mrb[183].mxu0  ;;  %19851 = vst [vmem:[#allocation170_spill] sm:$0xff] %v17081_v25 }
 0x92d   : > { %11460 = vmatpush3.bf16.msra.mxu1 %v6528_v20  ;;  %v17109_v24 = vmul.f32 %v5307_v57, %v5307_v57 }
 0x92f   : > { %19858 = vst [vmem:[#allocation134_spill] sm:$0xff] %v17109_v24 }
 0x930   : > { %11462 = vmatmul.mubr.msk.bf16.vlgmr.msra.gmra.mrb[204].mxu1 %vm4859_vm3, %v6514_v62  ;;  %v17055_v62 = vmul.f32 %v5288_v27, %v5288_v27 }
 0x93b   : > { %v17033_v1 = vpop.f32.mrb[184].mxu0 }
 0x93c   : > { %v17035_v60 = vpop.f32.mrb[185].mxu0 }
 0x93d   : > { %v17037_v44 = vpop.f32.mrb[186].mxu0 }
 0x93e   : > { %v17039_v48 = vpop.f32.mrb[187].mxu0 }
 0x93f   : > { %v17140_v40 = vmul.f32 %v17039_v48, %v17039_v48 }
 0x941   : > { %19863 = vst [vmem:[#allocation197_spill] sm:$0xff] %v17140_v40 }
 0x951   : > { %v17041_v34 = vpop.f32.mrb[188].mxu0 }
 0x952   : > { %v17043_v9 = vpop.f32.mrb[189].mxu0 }
 0x953   : > { %v17045_v23 = vpop.f32.mrb[190].mxu0 }
 0x954   : > { %v17047_v41 = vpop.f32.mrb[191].mxu0 }
 0x98e   : > { %v11359_v5 = vpop.f32.mrb[160].mxu1 }
 0x98f   : > { %v17051_v33 = vmul.f32 %v11359_v5, %v11339_v12  ;;  %v17053_v54 = vmul.f32 %v11359_v5, %v11359_v5  ;;  %v5433_v37 = vpop.f32.mrb[161].mxu1  ;;  %v17069_v5 = vmul.f32 %v5291_v3, %v5291_v3 }
 0x990   : > { %v17057_v59 = vmul.f32 %v5433_v37, %v5288_v27  ;;  %v17059_v11 = vmul.f32 %v5433_v37, %v5433_v37  ;;  %v11360_v45 = vpop.f32.mrb[162].mxu1 }
 0x991   : > { %19847 = vst [vmem:[#allocation188_spill] sm:$0xff] %v17051_v33  ;;  %v6173_v42 = vadd.f32 %v17053_v54, %v17049_v51  ;;  %v17065_v20 = vmul.f32 %v11360_v45, %v11340_v49  ;;  %v17067_v61 = vmul.f32 %v11360_v45, %v11360_v45  ;;  %v5436_v12 = vpop.f32.mrb[163].mxu1 }
 0x992   : > { %19848 = vst [vmem:[#allocation161_spill] sm:$0xff] %v17057_v59  ;;  %v6171_v18 = vadd.f32 %v17059_v11, %v17055_v62  ;;  %v17073_v27 = vmul.f32 %v5436_v12, %v5291_v3  ;;  %v17075_v37 = vmul.f32 %v5436_v12, %v5436_v12  ;;  %v17087_v12 = vmul.f32 %v5304_v28, %v5304_v28 }
 0x993   : > { %19849 = vst [vmem:[#allocation157_spill] sm:$0xff] %v17065_v20  ;;  %v6174_v50 = vadd.f32 %v17067_v61, %v17061_v46  ;;  %v6189_v45 = vadd.f32 0.0001, %v6173_v42 }
 0x994   : > { %19850 = vst [vmem:[#allocation137_spill] sm:$0xff] %v17073_v27  ;;  %v6172_v16 = vadd.f32 %v17075_v37, %v17069_v5  ;;  %v6187_v22 = vadd.f32 0.0001, %v6171_v18  ;;  %19853 = vst [vmem:[#allocation138_spill] sm:$0xff] %v17087_v12 }
 0x995   : > { %v6190_v49 = vadd.f32 0.0001, %v6174_v50 }
 0x996   : > { %v6188_v63 = vadd.f32 0.0001, %v6172_v16 }
 0x997   : > { %12186 = vrcp.f32 %v6190_v49 }
 0x998   : > { %12188 = vrcp.f32 %v6189_v45 }
 0x999   : > { %12190 = vrcp.f32 %v6187_v22 }
 0x99a   : > { %12192 = vrcp.f32 %v6188_v63 }
 0x99c   : > { %v11363_v13 = vpop.f32.mrb[164].mxu1 }
 0x99d   : > { %v17083_v26 = vmul.f32 %v11363_v13, %v11343_v36  ;;  %v17085_v14 = vmul.f32 %v11363_v13, %v11363_v13  ;;  %v5449_v3 = vpop.f32.mrb[165].mxu1  ;;  %v17099_v36 = vmul.f32 %v11344_v47, %v11344_v47 }
 0x99e   : > { %v17089_v29 = vmul.f32 %v5449_v3, %v5304_v28  ;;  %v17091_v31 = vmul.f32 %v5449_v3, %v5449_v3  ;;  %v11364_v30 = vpop.f32.mrb[166].mxu1 }
 0x99f   : > { %19852 = vst [vmem:[#allocation143_spill] sm:$0xff] %v17083_v26  ;;  %v6177_v50 = vadd.f32 %v17085_v14, %v17081_v25  ;;  %v17095_v42 = vmul.f32 %v11364_v30, %v11344_v47  ;;  %v17097_v19 = vmul.f32 %v11364_v30, %v11364_v30  ;;  %v5452_v18 = vpop.f32.mrb[167].mxu1  ;;  %19856 = vst [vmem:[#allocation160_spill] sm:$0xff] %v17099_v36  ;;  %v6142_v30 = vmul.f32 2.0, %v17065_v20 }
 0x9a0   : > { %19854 = vst [vmem:[#allocation151_spill] sm:$0xff] %v17089_v29  ;;  %v6175_v13 = vadd.f32 %v17091_v31, %v17087_v12  ;;  %v17103_v28 = vmul.f32 %v5452_v18, %v5307_v57  ;;  %v17105_v3 = vmul.f32 %v5452_v18, %v5452_v18  ;;  %v17118_v57 = vmul.f32 %v17033_v1, %v17033_v1 }
 0x9a1   : > { %19855 = vst [vmem:[#allocation40_spill] sm:$0xff] %v17095_v42  ;;  %v12187_v16 = vpop.eup %12186  ;;  %v6178_v25 = vadd.f32 %v17097_v19, %v17099_v36  ;;  %v6158_v4 = vadd.f32 0.0001, %v6142_v30 }
 0x9a2   : > { %19857 = vst [vmem:[#allocation155_spill] sm:$0xff] %v17103_v28  ;;  %v6222_v39 = vmul.f32 %v12187_v16, %v6190_v49  ;;  %v6176_v12 = vadd.f32 %v17105_v3, %v17109_v24  ;;  %v12189_v52 = vpop.eup %12188  ;;  %19860 = vst [vmem:[#allocation147_spill] sm:$0xff] %v17118_v57  ;;  %v17122_v49 = vmul.f32 %v17035_v60, %v17035_v60  ;;  %v6193_v24 = vadd.f32 0.0001, %v6177_v50 }
 0x9a3   : > { %v6194_v47 = vadd.f32 0.0001, %v6178_v25  ;;  %v12191_v53 = vpop.eup %12190  ;;  %v17126_v25 = vmul.f32 %v17037_v44, %v17037_v44  ;;  %v6221_v30 = vmul.f32 %v12189_v52, %v6189_v45  ;;  %v6141_v50 = vmul.f32 2.0, %v17051_v33 }
 0x9a4   : > { %v6238_v35 = vsub.f32 2.0, %v6222_v39  ;;  %19861 = vst [vmem:[#allocation158_spill] sm:$0xff] %v17122_v49  ;;  %v12193_v20 = vpop.eup %12192  ;;  %v6192_v45 = vadd.f32 0.0001, %v6176_v12  ;;  %v6146_v12 = vmul.f32 2.0, %v17095_v42 }
 0x9a5   : > { %12194 = vrcp.f32 %v6194_v47  ;;  %19862 = vst [vmem:[#allocation153_spill] sm:$0xff] %v17126_v25  ;;  %v6237_v32 = vsub.f32 2.0, %v6221_v30  ;;  %v6140_v30 = vmul.f32 2.0, %v17073_v27 }
 0x9a6   : > { %v6254_v6 = vmul.f32 %v12187_v16, %v6238_v35  ;;  %v6191_v35 = vadd.f32 0.0001, %v6175_v13 }
 0x9a8   : > { %v17114_v18 = vmul.f32 %v6254_v6, %v6158_v4  ;;  %12196 = vrcp.f32 %v6191_v35 }
 0x9a9   : > { %12198 = vrcp.f32 %v6193_v24 }
 0x9aa   : > { %19859 = vst [vmem:[#allocation185_spill] sm:$0xff] %v17114_v18  ;;  %v6219_v18 = vmul.f32 %v12191_v53, %v6187_v22  ;;  %12200 = vrcp.f32 %v6192_v45 }
 0x9ac   : > { %v6235_v0 = vsub.f32 2.0, %v6219_v18 }
 0x9ae   : > { %v11367_v39 = vpop.f32.mrb[168].mxu1 }
 0x9af   : > { %v17129_v6 = vmul.f32 %v11367_v39, %v17033_v1  ;;  %v17131_v4 = vmul.f32 %v11367_v39, %v11367_v39  ;;  %v5465_v16 = vpop.f32.mrb[169].mxu1  ;;  %v12195_v22 = vpop.eup %12194 }
 0x9b0   : > { %v17134_v36 = vmul.f32 %v5465_v16, %v17035_v60  ;;  %v17136_v43 = vmul.f32 %v5465_v16, %v5465_v16  ;;  %v11368_v38 = vpop.f32.mrb[170].mxu1  ;;  %v6220_v60 = vmul.f32 %v12193_v20, %v6188_v63  ;;  %v6226_v58 = vmul.f32 %v12195_v22, %v6194_v47 }
 0x9b1   : > { %v6181_v1 = vadd.f32 %v17131_v4, %v17118_v57  ;;  %v17145_v13 = vmul.f32 %v11368_v38, %v17037_v44  ;;  %v5468_v39 = vpop.f32.mrb[171].mxu1  ;;  %v17150_v8 = vmul.f32 %v11368_v38, %v11368_v38  ;;  %v6139_v57 = vmul.f32 2.0, %v17057_v59 }
 0x9b2   : > { %v6179_v16 = vadd.f32 %v17136_v43, %v17122_v49  ;;  %v6242_v56 = vsub.f32 2.0, %v6226_v58  ;;  %v17157_v63 = vmul.f32 %v5468_v39, %v17039_v48  ;;  %v17159_v33 = vmul.f32 %v5468_v39, %v5468_v39 }
 0x9b3   : > { %19864 = vst [vmem:[#allocation145_spill] sm:$0xff] %v17145_v13  ;;  %v6182_v44 = vadd.f32 %v17150_v8, %v17126_v25  ;;  %v6157_v38 = vadd.f32 0.0001, %v6141_v50  ;;  %v6236_v49 = vsub.f32 2.0, %v6220_v60  ;;  %v6162_v47 = vadd.f32 0.0001, %v6146_v12  ;;  %v12197_v60 = vpop.eup %12196 }
 0x9b4   : > { %v6258_v2 = vmul.f32 %v12195_v22, %v6242_v56  ;;  %v6180_v18 = vadd.f32 %v17159_v33, %v17140_v40  ;;  %v6253_v59 = vmul.f32 %v12189_v52, %v6237_v32  ;;  %v6155_v21 = vadd.f32 0.0001, %v6139_v57  ;;  %v12199_v12 = vpop.eup %12198 }
 0x9b5   : > { %v6198_v42 = vadd.f32 0.0001, %v6182_v44  ;;  %v6251_v58 = vmul.f32 %v12191_v53, %v6235_v0  ;;  %v6156_v39 = vadd.f32 0.0001, %v6140_v30  ;;  %v6252_v15 = vmul.f32 %v12193_v20, %v6236_v49  ;;  %v12201_v53 = vpop.eup %12200 }
 0x9b6   : > { %v17164_v25 = vmul.f32 %v6258_v2, %v6162_v47  ;;  %v17166_v48 = vmul.f32 %v6253_v59, %v6157_v38  ;;  %v17174_v56 = vmul.f32 %v17041_v34, %v17041_v34  ;;  %v17178_v32 = vmul.f32 %v17043_v9, %v17043_v9 }
 0x9b7   : > { %12202 = vrcp.f32 %v6198_v42  ;;  %v17168_v50 = vmul.f32 %v6251_v58, %v6155_v21  ;;  %v17170_v27 = vmul.f32 %v6252_v15, %v6156_v39  ;;  %v17180_v0 = vadd.f32 0.0001, %v6181_v1 }
 0x9b8   : > { %19865 = vst [vmem:[#allocation176_spill] sm:$0xff] %v17164_v25  ;;  %19866 = vst [vmem:[#allocation173_spill] sm:$0xff] %v17166_v48  ;;  %v17184_v21 = vmul.f32 %v17045_v23, %v17045_v23  ;;  %v17188_v15 = vmul.f32 %v17047_v41, %v17047_v41  ;;  %v6223_v57 = vmul.f32 %v12197_v60, %v6191_v35  ;;  %v17195_v49 = vadd.f32 0.0001, %v6179_v16 }
 0x9b9   : > { %19867 = vst [vmem:[#allocation183_spill] sm:$0xff] %v17168_v50  ;;  %19868 = vst [vmem:[#allocation156_spill] sm:$0xff] %v17170_v27  ;;  %v6225_v38 = vmul.f32 %v12199_v12, %v6193_v24  ;;  %v17202_v30 = vadd.f32 0.0001, %v6180_v18  ;;  %v6224_v35 = vmul.f32 %v12201_v53, %v6192_v45  ;;  %12204 = vrcp.f32 %v17180_v0 }
 0x9ba   : > { %19869 = vst [vmem:[#allocation149_spill] sm:$0xff] %v17174_v56  ;;  %19870 = vst [vmem:[#allocation47_spill] sm:$0xff] %v17178_v32  ;;  %v6145_v24 = vmul.f32 2.0, %v17083_v26  ;;  %v6143_v18 = vmul.f32 2.0, %v17089_v29  ;;  %v6239_v25 = vsub.f32 2.0, %v6223_v57  ;;  %12206 = vrcp.f32 %v17195_v49 }
 0x9bb   : > { %19871 = vst [vmem:[#allocation159_spill] sm:$0xff] %v17184_v21  ;;  %19872 = vst [vmem:[#allocation192_spill] sm:$0xff] %v17188_v15  ;;  %12208 = vrcp.f32 %v17202_v30  ;;  %v6241_v48 = vsub.f32 2.0, %v6225_v38  ;;  %v6240_v29 = vsub.f32 2.0, %v6224_v35 }
 0x9bc   : > { %v6255_v40 = vmul.f32 %v12197_v60, %v6239_v25 }
 0x9c1   : > { %v12203_v39 = vpop.eup %12202 }
 0x9c3   : > { %v11371_v52 = vpop.f32.mrb[172].mxu1 }
 0x9c4   : > { %v17191_v2 = vmul.f32 %v11371_v52, %v17041_v34  ;;  %v17193_v59 = vmul.f32 %v11371_v52, %v11371_v52  ;;  %v5481_v20 = vpop.f32.mrb[173].mxu1  ;;  %v6150_v52 = vmul.f32 2.0, %v17145_v13 }
 0x9c5   : > { %v17198_v1 = vmul.f32 %v5481_v20, %v17043_v9  ;;  %v17200_v22 = vmul.f32 %v5481_v20, %v5481_v20  ;;  %v11372_v44 = vpop.f32.mrb[174].mxu1  ;;  %v6230_v20 = vmul.f32 %v12203_v39, %v6198_v42 }
 0x9c6   : > { %v6185_v47 = vadd.f32 %v17193_v59, %v17174_v56  ;;  %v17207_v34 = vmul.f32 %v11372_v44, %v17045_v23  ;;  %v5484_v58 = vpop.f32.mrb[175].mxu1  ;;  %v17212_v16 = vmul.f32 %v11372_v44, %v11372_v44  ;;  %v6144_v23 = vmul.f32 2.0, %v17103_v28 }
 0x9c7   : > { %v6183_v9 = vadd.f32 %v17200_v22, %v17178_v32  ;;  %v6246_v27 = vsub.f32 2.0, %v6230_v20  ;;  %v17223_v44 = vmul.f32 %v5484_v58, %v17047_v41  ;;  %v17225_v50 = vmul.f32 %v5484_v58, %v5484_v58 }
 0x9c8   : > { %v6186_v45 = vadd.f32 %v17212_v16, %v17184_v21  ;;  %v6166_v57 = vadd.f32 0.0001, %v6150_v52  ;;  %v6159_v20 = vadd.f32 0.0001, %v6143_v18  ;;  %v6161_v58 = vadd.f32 0.0001, %v6145_v24 }
 0x9c9   : > { %v6262_v26 = vmul.f32 %v12203_v39, %v6246_v27  ;;  %v6184_v28 = vadd.f32 %v17225_v50, %v17188_v15  ;;  %v6160_v17 = vadd.f32 0.0001, %v6144_v23  ;;  %v6256_v39 = vmul.f32 %v12201_v53, %v6240_v29 }
 0x9ca   : > { %v6202_v13 = vadd.f32 0.0001, %v6186_v45  ;;  %v17235_v45 = vmul.f32 %v6255_v40, %v6159_v20  ;;  %v17243_v60 = vadd.f32 0.0001, %v6183_v9 }
 0x9cb   : > { %v11399_v42 = vpop.f32.mrb[176].mxu1  ;;  %v17231_v38 = vmul.f32 %v6262_v26, %v6166_v57  ;;  %v17237_v18 = vmul.f32 %v6256_v39, %v6160_v17  ;;  %v6148_v39 = vmul.f32 2.0, %v17157_v63 }
 0x9cc   : > { %v5965_v32 = vsub.f32 %v11399_v42, %v17053_v54  ;;  %v5707_v21 = vpop.f32.mrb[177].mxu1  ;;  %12210 = vrcp.f32 %v6202_v13  ;;  %19874 = vst [vmem:[#allocation162_spill] sm:$0xff] %v17235_v45  ;;  %v6257_v54 = vmul.f32 %v12199_v12, %v6241_v48  ;;  %v12205_v42 = vpop.eup %12204 }
 0x9cd   : > { %v5963_v56 = vsub.f32 %v5707_v21, %v17059_v11  ;;  %v11400_v41 = vpop.f32.mrb[178].mxu1  ;;  %19873 = vst [vmem:[#allocation142_spill] sm:$0xff] %v17231_v38  ;;  %19875 = vst [vmem:[#allocation171_spill] sm:$0xff] %v17237_v18  ;;  %v17241_v11 = vadd.f32 0.0001, %v6185_v47  ;;  %v12207_v25 = vpop.eup %12206  ;;  %v6229_v21 = vmul.f32 %v12205_v42, %v17180_v0 }
 0x9ce   : > { %v5966_v35 = vsub.f32 %v11400_v41, %v17067_v61  ;;  %v5710_v52 = vpop.f32.mrb[179].mxu1  ;;  %v17239_v15 = vmul.f32 %v6257_v54, %v6161_v58  ;;  %v12209_v61 = vpop.eup %12208  ;;  %v6227_v12 = vmul.f32 %v12207_v25, %v17195_v49  ;;  %v6149_v49 = vmul.f32 2.0, %v17129_v6 }
 0x9cf   : > { %v5964_v27 = vsub.f32 %v5710_v52, %v17075_v37  ;;  %v17252_v37 = vadd.f32 0.0001, %v6184_v28  ;;  %12212 = vrcp.f32 %v17241_v11  ;;  %v6228_v9 = vmul.f32 %v12209_v61, %v17202_v30 }
 0x9d0   : > { %19876 = vst [vmem:[#allocation167_spill] sm:$0xff] %v17239_v15  ;;  %12214 = vrcp.f32 %v17243_v60  ;;  %v6154_v28 = vmul.f32 2.0, %v17207_v34  ;;  %v6245_v57 = vsub.f32 2.0, %v6229_v21  ;;  %v6147_v52 = vmul.f32 2.0, %v17134_v36 }
 0x9d1   : > { %12216 = vrcp.f32 %v17252_v37  ;;  %v6243_v53 = vsub.f32 2.0, %v6227_v12 }
 0x9d2   : > { %v6170_v38 = vadd.f32 0.0001, %v6154_v28  ;;  %v6163_v28 = vadd.f32 0.0001, %v6147_v52 }
 0x9d3   : > { %v17245_v26 = vpop.f32.mrb[180].mxu1 }
 0x9d4   : > { %v17250_v40 = vpop.f32.mrb[181].mxu1 }
 0x9d5   : > { %v17256_v48 = vpop.f32.mrb[182].mxu1 }
 0x9d6   : > { %v17262_v0 = vpop.f32.mrb[183].mxu1  ;;  %v12211_v47 = vpop.eup %12210 }
 0x9d7   : > { %v11379_v23 = vpop.f32.mrb[192].mxu0  ;;  %v6234_v20 = vmul.f32 %v12211_v47, %v6202_v13  ;;  %v6244_v13 = vsub.f32 2.0, %v6228_v9  ;;  %v6165_v9 = vadd.f32 0.0001, %v6149_v49 }
 0x9d8   : > { %v5933_v41 = vsub.f32 %v11379_v23, %v17049_v51  ;;  %v5570_v58 = vpop.f32.mrb[193].mxu0 }
 0x9d9   : > { %v5931_v30 = vsub.f32 %v5570_v58, %v17055_v62  ;;  %v11380_v54 = vpop.f32.mrb[194].mxu0  ;;  %v6250_v17 = vsub.f32 2.0, %v6234_v20 }
 0x9da   : > { %v17275_v24 = vadd.f32 %v5965_v32, %v5933_v41  ;;  %v5934_v29 = vsub.f32 %v11380_v54, %v17061_v46  ;;  %v5573_v21 = vpop.f32.mrb[195].mxu0  ;;  %v6261_v32 = vmul.f32 %v12205_v42, %v6245_v57  ;;  %v6260_v42 = vmul.f32 %v12209_v61, %v6244_v13 }
 0x9db   : > { %v17278_v51 = vadd.f32 %v5963_v56, %v5931_v30  ;;  %v5932_v23 = vsub.f32 %v5573_v21, %v17069_v5  ;;  %v17281_v18 = vpop.f32.mrb[184].mxu1  ;;  %v6266_v45 = vmul.f32 %v12211_v47, %v6250_v17  ;;  %v6164_v17 = vadd.f32 0.0001, %v6148_v39 }
 0x9dc   : > { %v17283_v15 = vadd.f32 %v5966_v35, %v5934_v29  ;;  %v17287_v12 = vpop.f32.mrb[185].mxu1  ;;  %v6259_v57 = vmul.f32 %v12207_v25, %v6243_v53  ;;  %v17303_v41 = vmul.f32 %v6261_v32, %v6165_v9  ;;  %v6153_v9 = vmul.f32 2.0, %v17191_v2 }
 0x9dd   : > { %v17289_v20 = vadd.f32 %v5964_v27, %v5932_v23  ;;  %v17293_v56 = vpop.f32.mrb[186].mxu1  ;;  %v17295_v5 = vmul.f32 %v6266_v45, %v6170_v38  ;;  %v12213_v27 = vpop.eup %12212  ;;  %v17305_v30 = vmul.f32 %v6260_v42, %v6164_v17  ;;  %v6515_v38 = vld [vmem:[%s19879_s5] sm:$0xff]  ;;  %v6516_v45 = vld [vmem:[%s19879_s5 + $0x8] sm:$0xff]  ;;  %v6152_v32 = vmul.f32 2.0, %v17223_v44 }
 0x9de   : > { %v17299_v29 = vpop.f32.mrb[187].mxu1  ;;  %v12215_v58 = vpop.eup %12214  ;;  %v17313_v49 = vmul.f32 %v6259_v57, %v6163_v28  ;;  %v6233_v61 = vmul.f32 %v12213_v27, %v17241_v11  ;;  %v17318_v25 = vpack.c.bf16 %v6516_v45, %v6515_v38  ;;  %v6517_v28 = vld [vmem:[%s19879_s5 + $0x10] sm:$0xff]  ;;  %v6151_v45 = vmul.f32 2.0, %v17198_v1 }
 0x9df   : > { %19877 = vst [vmem:[#allocation210_spill] sm:$0xff] %v17295_v5  ;;  %19878 = vst [vmem:[#allocation198_spill] sm:$0xff] %v17305_v30  ;;  %v12217_v39 = vpop.eup %12216  ;;  %v6231_v53 = vmul.f32 %v12215_v58, %v17243_v60 }
 0x9e0   : > { %11477 = vmatprep.subr.bf16.mxu1 %v17318_v25  ;;  %11465 = vmatprep.subr.bf16.mxu0 %v17318_v25  ;;  %v6232_v11 = vmul.f32 %v12217_v39, %v17252_v37  ;;  %v6249_v17 = vsub.f32 2.0, %v6233_v61  ;;  %v6518_v37 = vld [vmem:[%s19879_s5 + $0x18] sm:$0xff]  ;;  %v6169_v61 = vadd.f32 0.0001, %v6153_v9  ;;  %v6167_v46 = vadd.f32 0.0001, %v6151_v45 }
 0x9e1   : > { %11478 = vmatpush3.bf16.msra.mxu1 %v17318_v25  ;;  %v6247_v57 = vsub.f32 2.0, %v6231_v53  ;;  %v17346_v38 = vpack.c.bf16 %v6518_v37, %v6517_v28  ;;  %v6168_v37 = vadd.f32 0.0001, %v6152_v32 }
 0x9e2   : > { %v6248_v13 = vsub.f32 2.0, %v6232_v11  ;;  %v6265_v54 = vmul.f32 %v12213_v27, %v6249_v17 }
 0x9e3   : > { %v17316_v52 = vpop.f32.mrb[188].mxu1  ;;  %11479 = vmatprep.subr.bf16.mxu1 %v17346_v38  ;;  %v6263_v35 = vmul.f32 %v12215_v58, %v6247_v57 }
 0x9e4   : > { %v17323_v21 = vpop.f32.mrb[189].mxu1  ;;  %v17353_v28 = vmul.f32 %v6265_v54, %v6169_v61  ;;  %v6264_v11 = vmul.f32 %v12217_v39, %v6248_v13 }
 0x9e5   : > { %v17327_v23 = vpop.f32.mrb[190].mxu1  ;;  %11480 = vmatpush3.bf16.msra.mxu1 %v17346_v38  ;;  %v17357_v30 = vmul.f32 %v6263_v35, %v6167_v46 }
 0x9e6   : > { %v17334_v60 = vpop.f32.mrb[191].mxu1  ;;  %11495 = vmatprep.subr.bf16.mxu1 %v19846_v10  ;;  %v17361_v9 = vmul.f32 %v6264_v11, %v6168_v37  ;;  %v19883_v37 = vld [vmem:[#allocation146_spill] sm:$0xff] }
 0x9eb   : > { %v6566_v42 = vpop.f32.mrb[192].mxu1 }
 0x9ec   : > { %v11439_v47 = vpop.f32.mrb[193].mxu1 }
 0x9ed   : > { %v6569_v53 = vpop.f32.mrb[194].mxu1 }
 0x9ee   : > { %v17355_v62 = vpack.c.bf16 %v6569_v53, %v6566_v42  ;;  %v11440_v5 = vpop.f32.mrb[195].mxu1  ;;  %v19880_v42 = vld [vmem:[#allocation168_spill] sm:$0xff]  ;;  %v19881_v53 = vld [vmem:[#allocation126_spill] sm:$0xff] }
 0x9f0   : > { %6781 = vrot.lane.b32.xlu0 %v17355_v62, %s12797_s8 }
 0x9f3   : > { %v6607_v47 = vpop.f32.mrb[196].mxu1 }
 0x9f4   : > { %5500 = vrot.lane.b32.xlu0 %v16881_v7, %s12794_s18  ;;  %v11447_v27 = vpop.f32.mrb[197].mxu1 }
 0x9f5   : > { %v6610_v58 = vpop.f32.mrb[198].mxu1 }
 0x9f6   : > { %v6697_v54 = vpack.c.bf16 %v6610_v58, %v6607_v47  ;;  %v11448_v17 = vpop.f32.mrb[199].mxu1 }
 0x9f8   : > { %6783 = vrot.lane.b32.xlu1 %v6697_v54, %s12797_s8 }
 0x9fb   : > { %v6648_v32 = vpop.f32.mrb[200].mxu1 }
 0x9fc   : > { %5502 = vrot.lane.b32.xlu1 %v16895_v55, %s12794_s18  ;;  %v11455_v46 = vpop.f32.mrb[201].mxu1  ;;  %v19882_v55 = vld [vmem:[#allocation175_spill] sm:$0xff] }
 0x9fd   : > { %v6651_v5 = vpop.f32.mrb[202].mxu1 }
 0x9fe   : > { %v6698_v35 = vpack.c.bf16 %v6651_v5, %v6648_v32  ;;  %v11456_v39 = vpop.f32.mrb[203].mxu1 }
 0xa00   : > { %6785 = vrot.lane.b32.xlu0 %v6698_v35, %s12797_s8 }
 0xa03   : > { %v6689_v13 = vpop.f32.mrb[204].mxu1 }
 0xa04   : > { %5504 = vrot.lane.b32.xlu0 %v19880_v42, %s12794_s18  ;;  %v11463_v7 = vpop.f32.mrb[205].mxu1  ;;  %v19884_v42 = vld [vmem:[#allocation118_spill] sm:$0xff] }
 0xa05   : > { %v6692_v57 = vpop.f32.mrb[206].mxu1  ;;  %v19885_v7 = vld [vmem:[#allocation110_spill] sm:$0xff] }
 0xa06   : > { %v6699_v45 = vpack.c.bf16 %v6692_v57, %v6689_v13  ;;  %v11464_v61 = vpop.f32.mrb[207].mxu1  ;;  %v19886_v57 = vpack.c.bf16 %v19884_v42, %v19885_v7  ;;  %v19903_v7 = vld [vmem:[#allocation131_spill] sm:$0xff] }
 0xa07   : > { %v19887_v61 = vld [vmem:[#allocation130_spill] sm:$0xff] }
 0xa08   : > { %5508 = vrot.lane.b32.xlu0 %v19881_v53, %s12794_s18  ;;  %6787 = vrot.lane.b32.xlu1 %v6699_v45, %s12797_s8  ;;  %v19888_v53 = vld [vmem:[#allocation166_spill] sm:$0xff] }
 0xa0c   : > { %5506 = vrot.lane.b32.xlu1 %v19882_v55, %s12794_s18  ;;  %v19889_v55 = vpack.c.bf16 %v19887_v61, %v19888_v53  ;;  %v19906_v61 = vld [vmem:[#allocation174_spill] sm:$0xff] }
 0xa10   : > { %5510 = vrot.lane.b32.xlu1 %v19883_v37, %s12794_s18  ;;  %v19890_v37 = vld [vmem:[#allocation114_spill] sm:$0xff] }
 0xa62   : > { %v6782_v11 = vpop.permute.xlu0 %6781 }
 0xa63   : > { %11481 = vmatprep.mubr.msk.bf16.mxu1 %vm4859_vm3, %v6782_v11  ;;  %v19891_v11 = vld [vmem:[#allocation124_spill] sm:$0xff] }
 0xa66   : > { %v5501_v47 = vpop.permute.xlu0 %5500 }
 0xa67   : > { %11381 = vmatprep.mubr.msk.bf16.mxu0 %vm4859_vm3, %v5501_v47  ;;  %v19892_v47 = vpack.c.bf16 %v19890_v37, %v19891_v11 }
 0xa6a   : > { %v6784_v27 = vpop.permute.xlu1 %6783 }
 0xa6b   : > { %11482 = vmatmul.mubr.msk.bf16.vlgmr.msra.gmra.mrb[208].mxu1 %vm4859_vm3, %v6784_v27  ;;  %v19893_v27 = vld [vmem:[#allocation150_spill] sm:$0xff] }
 0xa6e   : > { %v5503_v58 = vpop.permute.xlu1 %5502 }
 0xa6f   : > { %11382 = vmatmul.mubr.msk.bf16.gmra.mrb[196].mxu0 %vm4859_vm3, %v5503_v58  ;;  %v19894_v58 = vld [vmem:[#allocation39_spill] sm:$0xff] }
 0xa72   : > { %v6786_v17 = vpop.permute.xlu0 %6785 }
 0xa73   : > { %11485 = vmatprep.mubr.msk.bf16.mxu1 %vm4859_vm3, %v6786_v17  ;;  %v19895_v17 = vpack.c.bf16 %v19893_v27, %v19894_v58  ;;  %v19909_v27 = vld [vmem:[#allocation138_spill] sm:$0xff] }
 0xa76   : > { %v5505_v32 = vpop.permute.xlu0 %5504 }
 0xa77   : > { %11385 = vmatprep.mubr.msk.bf16.mxu0 %vm4859_vm3, %v5505_v32  ;;  %v19896_v32 = vld [vmem:[#allocation121_spill] sm:$0xff] }
 0xa7a   : > { %v6788_v46 = vpop.permute.xlu1 %6787  ;;  %v5509_v39 = vpop.permute.xlu0 %5508 }
 0xa7b   : > { %11486 = vmatmul.mubr.msk.bf16.gmra.mrb[212].mxu1 %vm4859_vm3, %v6788_v46  ;;  %v19897_v46 = vld [vmem:[#allocation144_spill] sm:$0xff] }
 0xa7c   : > { %11497 = vmatprep.mubr.msk.bf16.mxu1 %vm12799_vm4, %v19846_v10 }
 0xa7e   : > { %v5507_v5 = vpop.permute.xlu1 %5506 }
 0xa7f   : > { %11386 = vmatmul.mubr.msk.bf16.gmra.mrb[200].mxu0 %vm4859_vm3, %v5507_v5  ;;  %v19898_v5 = vpack.c.bf16 %v19896_v32, %v19897_v46  ;;  %v19910_v32 = vsub.f32 %v17245_v26, %v17085_v14  ;;  %v19915_v14 = vsub.f32 %v17262_v0, %v17105_v3 }
 0xa80   : > { %11389 = vmatprep.mubr.msk.bf16.mxu0 %vm4859_vm3, %v5509_v39  ;;  %v19899_v39 = vld [vmem:[#allocation135_spill] sm:$0xff] }
 0xa82   : > { %v5511_v13 = vpop.permute.xlu1 %5510 }
 0xa87   : > { %11390 = vmatmul.mubr.msk.bf16.gmra.mrb[204].mxu0 %vm4859_vm3, %v5511_v13  ;;  %v19900_v13 = vld [vmem:[#allocation140_spill] sm:$0xff] }
 0xa88   : > { %11417 = vmatprep.mubr.msk.bf16.mxu0 %vm4859_vm3, %v19886_v57  ;;  %v19901_v42 = vpack.c.bf16 %v19899_v39, %v19900_v13  ;;  %v19905_v57 = vld [vmem:[#allocation141_spill] sm:$0xff] }
 0xa89   : > { %v19907_v53 = vpack.c.bf16 %v19905_v57, %v19906_v61  ;;  %v19914_v57 = vsub.f32 %v17256_v48, %v17097_v19 }
 0xa8f   : > { %11418 = vmatmul.mubr.msk.bf16.vlgmr.msra.gmra.mrb[208].mxu0 %vm4859_vm3, %v19889_v55 }
 0xa90   : > { %11421 = vmatprep.mubr.msk.bf16.mxu0 %vm4859_vm3, %v19892_v47  ;;  %11466 = vmatpush3.bf16.msra.mxu0 %v17318_v25  ;;  %v19902_v25 = vld [vmem:[#allocation139_spill] sm:$0xff] }
 0xa91   : > { %11467 = vmatprep.subr.bf16.mxu0 %v17346_v38 }
 0xa94   : > { %11468 = vmatpush3.bf16.msra.mxu0 %v17346_v38  ;;  %v19904_v38 = vpack.c.bf16 %v19902_v25, %v19903_v7  ;;  %v19913_v7 = vld [vmem:[#allocation134_spill] sm:$0xff] }
 0xa95   : > { %11489 = vmatprep.subr.bf16.mxu0 %v19846_v10 }
 0xa97   : > { %11422 = vmatmul.mubr.msk.bf16.gmra.mrb[212].mxu0 %vm4859_vm3, %v19895_v17 }
 0xa98   : > { %11425 = vmatprep.mubr.msk.bf16.mxu0 %vm4859_vm3, %v19898_v5  ;;  %v19911_v5 = vld [vmem:[#allocation160_spill] sm:$0xff] }
 0xa9f   : > { %11426 = vmatmul.mubr.msk.bf16.gmra.mrb[216].mxu0 %vm4859_vm3, %v19901_v42  ;;  %v19912_v42 = vsub.f32 %v17250_v40, %v17091_v31  ;;  %v6046_v31 = vadd.f32 0.0009, %v17283_v15  ;;  %v6044_v40 = vadd.f32 0.0009, %v17289_v20  ;;  %v19916_v15 = vld [vmem:[#allocation147_spill] sm:$0xff] }
 0xaa0   : > { %11429 = vmatprep.mubr.msk.bf16.mxu0 %vm4859_vm3, %v19904_v38 }
 0xaa7   : > { %11430 = vmatmul.mubr.msk.bf16.gmra.mrb[220].mxu0 %vm4859_vm3, %v19907_v53  ;;  %v6045_v53 = vadd.f32 0.0009, %v17275_v24 }
 0xaa8   : > { %11469 = vmatprep.mubr.msk.bf16.mxu0 %vm4859_vm3, %v17355_v62 }
 0xaa9   : > { %12218 = vrcp.f32 %v6045_v53 }
 0xaaf   : > { %11470 = vmatmul.mubr.msk.bf16.vlgmr.msra.gmra.mrb[224].mxu0 %vm4859_vm3, %v6697_v54 }
 0xab0   : > { %11473 = vmatprep.mubr.msk.bf16.mxu0 %vm4859_vm3, %v6698_v35  ;;  %v19908_v35 = vld [vmem:[#allocation170_spill] sm:$0xff] }
 0xab7   : > { %11474 = vmatmul.mubr.msk.bf16.gmra.mrb[228].mxu0 %vm4859_vm3, %v6699_v45 }
 0xab8   : > { %11491 = vmatprep.mubr.msk.bf16.mxu0 %vm12799_vm4, %v19846_v10 }
 0xb3e   : > { %v17433_v55 = vpop.f32.mrb[208].mxu1 }
 0xb3f   : > { %v17435_v37 = vpop.f32.mrb[209].mxu1 }
 0xb40   : > { %6880 = vrot.lane.b32.xlu0 %v17435_v37, %s12800_s13  ;;  %v17439_v11 = vpop.f32.mrb[210].mxu1 }
 0xb41   : > { %v17441_v62 = vpop.f32.mrb[211].mxu1 }
 0xb42   : > { %v11383_v54 = vpop.f32.mrb[196].mxu0  ;;  %6882 = vrot.lane.b32.xlu1 %v17441_v62, %s12800_s13 }
 0xb43   : > { %v5937_v45 = vsub.f32 %v11383_v54, %v19908_v35  ;;  %v5586_v47 = vpop.f32.mrb[197].mxu0  ;;  %v6043_v54 = vadd.f32 0.0009, %v17278_v51  ;;  %v19917_v51 = vld [vmem:[#allocation158_spill] sm:$0xff] }
 0xb44   : > { %v5935_v58 = vsub.f32 %v5586_v47, %v19909_v27  ;;  %v11384_v17 = vpop.f32.mrb[198].mxu0  ;;  %6884 = vrot.lane.b32.xlu0 %v17433_v55, %s12800_s13  ;;  %v19918_v27 = vsub.f32 %v17281_v18, %v17131_v4  ;;  %v19922_v4 = vsub.f32 %v17293_v56, %v17150_v8 }
 0xb45   : > { %v6033_v46 = vadd.f32 %v19910_v32, %v5937_v45  ;;  %v5938_v39 = vsub.f32 %v11384_v17, %v19911_v5  ;;  %v5589_v13 = vpop.f32.mrb[199].mxu0  ;;  %12220 = vrcp.f32 %v6043_v54  ;;  %v19919_v17 = vld [vmem:[#allocation153_spill] sm:$0xff] }
 0xb46   : > { %v6031_v25 = vadd.f32 %v19912_v42, %v5935_v58  ;;  %v5936_v38 = vsub.f32 %v5589_v13, %v19913_v7  ;;  %6886 = vrot.lane.b32.xlu1 %v17439_v11, %s12800_s13  ;;  %12222 = vrcp.f32 %v6046_v31  ;;  %v19920_v13 = vsub.f32 %v17287_v12, %v17136_v43  ;;  %v19921_v7 = vld [vmem:[#allocation197_spill] sm:$0xff] }
 0xb47   : > { %v6034_v61 = vadd.f32 %v19914_v57, %v5938_v39  ;;  %12224 = vrcp.f32 %v6044_v40  ;;  %v17489_v39 = vadd.f32 0.0009, %v6033_v46  ;;  %v19923_v46 = vsub.f32 %v17299_v29, %v17159_v33 }
 0xb48   : > { %v6032_v26 = vadd.f32 %v19915_v14, %v5936_v38  ;;  %v17497_v57 = vadd.f32 0.0009, %v6031_v25  ;;  %v12219_v14 = vpop.eup %12218 }
 0xb49   : > { %12226 = vrcp.f32 %v17489_v39 }
 0xb4a   : > { %v17507_v12 = vadd.f32 0.0009, %v6032_v26  ;;  %12228 = vrcp.f32 %v17497_v57  ;;  %v19926_v26 = vsub.f32 %v17316_v52, %v17193_v59 }
 0xb4e   : > { %v17469_v35 = vpop.f32.mrb[212].mxu1 }
 0xb4f   : > { %v17471_v45 = vpop.f32.mrb[213].mxu1  ;;  %v12221_v43 = vpop.eup %12220 }
 0xb50   : > { %6888 = vrot.lane.b32.xlu0 %v17471_v45, %s12800_s13  ;;  %v17475_v19 = vpop.f32.mrb[214].mxu1 }
 0xb51   : > { %v17477_v3 = vpop.f32.mrb[215].mxu1 }
 0xb52   : > { %v11387_v48 = vpop.f32.mrb[200].mxu0  ;;  %6890 = vrot.lane.b32.xlu1 %v17477_v3, %s12800_s13 }
 0xb53   : > { %v5941_v0 = vsub.f32 %v11387_v48, %v19916_v15  ;;  %v5602_v24 = vpop.f32.mrb[201].mxu0  ;;  %v17502_v48 = vadd.f32 0.0009, %v6034_v61  ;;  %v6075_v61 = vmul.f32 %v12221_v43, %v6043_v54 }
 0xb54   : > { %v5939_v20 = vsub.f32 %v5602_v24, %v19917_v51  ;;  %v11388_v47 = vpop.f32.mrb[202].mxu0  ;;  %6892 = vrot.lane.b32.xlu0 %v17469_v35, %s12800_s13  ;;  %v19924_v51 = vld [vmem:[#allocation149_spill] sm:$0xff] }
 0xb55   : > { %v6037_v58 = vadd.f32 %v19918_v27, %v5941_v0  ;;  %v5942_v32 = vsub.f32 %v11388_v47, %v19919_v17  ;;  %v5605_v5 = vpop.f32.mrb[203].mxu0  ;;  %v12223_v0 = vpop.eup %12222  ;;  %12230 = vrcp.f32 %v17502_v48  ;;  %v19925_v47 = vld [vmem:[#allocation47_spill] sm:$0xff]  ;;  %v6091_v52 = vsub.f32 2.0, %v6075_v61  ;;  %v19933_v61 = vld [vmem:[#allocation161_spill] sm:$0xff] }
 0xb56   : > { %v6035_v42 = vadd.f32 %v19920_v13, %v5939_v20  ;;  %v5940_v38 = vsub.f32 %v5605_v5, %v19921_v7  ;;  %6894 = vrot.lane.b32.xlu1 %v17475_v19, %s12800_s13  ;;  %v12225_v25 = vpop.eup %12224  ;;  %v6077_v20 = vmul.f32 %v12219_v14, %v6045_v53  ;;  %v6078_v27 = vmul.f32 %v12223_v0, %v6046_v31 }
 0xb57   : > { %v6038_v18 = vadd.f32 %v19922_v4, %v5942_v32  ;;  %12232 = vrcp.f32 %v17507_v12  ;;  %v19927_v32 = vld [vmem:[#allocation159_spill] sm:$0xff]  ;;  %v6076_v7 = vmul.f32 %v12225_v25, %v6044_v40  ;;  %v19928_v53 = vsub.f32 %v17323_v21, %v17200_v22  ;;  %v19929_v4 = vld [vmem:[#allocation192_spill] sm:$0xff] }
 0xb58   : > { %v6036_v15 = vadd.f32 %v19923_v46, %v5940_v38  ;;  %v17519_v38 = vadd.f32 0.0009, %v6037_v58  ;;  %v19930_v31 = vsub.f32 %v17327_v23, %v17212_v16  ;;  %v6093_v59 = vsub.f32 2.0, %v6077_v20  ;;  %v12227_v20 = vpop.eup %12226 }
 0xb59   : > { %v19931_v40 = vsub.f32 %v17334_v60, %v17225_v50  ;;  %v6092_v22 = vsub.f32 2.0, %v6076_v7  ;;  %v6107_v50 = vmul.f32 %v12221_v43, %v6091_v52 }
 0xb5a   : > { %v11391_v24 = vpop.f32.mrb[204].mxu0  ;;  %12234 = vrcp.f32 %v17519_v38 }
 0xb5b   : > { %v5945_v8 = vsub.f32 %v11391_v24, %v19924_v51  ;;  %v5618_v56 = vpop.f32.mrb[205].mxu0  ;;  %v17525_v24 = vadd.f32 0.0009, %v6035_v42  ;;  %v19932_v42 = vld [vmem:[#allocation188_spill] sm:$0xff] }
 0xb5c   : > { %v5943_v33 = vsub.f32 %v5618_v56, %v19925_v47  ;;  %v11392_v29 = vpop.f32.mrb[206].mxu0  ;;  %v6094_v56 = vsub.f32 2.0, %v6078_v27  ;;  %v17535_v47 = vadd.f32 0.0009, %v6036_v15  ;;  %v19934_v27 = vld [vmem:[#allocation157_spill] sm:$0xff] }
 0xb5d   : > { %v6041_v17 = vadd.f32 %v19926_v26, %v5945_v8  ;;  %v5946_v5 = vsub.f32 %v11392_v29, %v19927_v32  ;;  %v5621_v13 = vpop.f32.mrb[207].mxu0  ;;  %v17530_v8 = vadd.f32 0.0009, %v6038_v18  ;;  %12236 = vrcp.f32 %v17525_v24  ;;  %v12229_v29 = vpop.eup %12228 }
 0xb5e   : > { %v6039_v54 = vadd.f32 %v19928_v53, %v5943_v33  ;;  %v5944_v46 = vsub.f32 %v5621_v13, %v19929_v4  ;;  %v6109_v18 = vmul.f32 %v12219_v14, %v6093_v59  ;;  %v6110_v32 = vmul.f32 %v12223_v0, %v6094_v56  ;;  %v19935_v4 = vld [vmem:[#allocation137_spill] sm:$0xff] }
 0xb5f   : > { %v6042_v51 = vadd.f32 %v19930_v31, %v5946_v5  ;;  %12238 = vrcp.f32 %v17530_v8  ;;  %v12231_v13 = vpop.eup %12230  ;;  %v17544_v7 = vadd.f32 0.0009, %v6041_v17  ;;  %v6108_v31 = vmul.f32 %v12225_v25, %v6092_v22 }
 0xb60   : > { %v6040_v58 = vadd.f32 %v19931_v40, %v5944_v46  ;;  %12240 = vrcp.f32 %v17535_v47  ;;  %v6081_v59 = vmul.f32 %v12227_v20, %v17489_v39  ;;  %v17548_v43 = vadd.f32 0.0009, %v6039_v54 }
 0xb61   : > { %v12233_v14 = vpop.eup %12232  ;;  %v6082_v17 = vmul.f32 %v12231_v13, %v17502_v48  ;;  %12242 = vrcp.f32 %v17544_v7 }
 0xb62   : > { %v11419_v21 = vpop.f32.mrb[208].mxu0  ;;  %v6080_v22 = vmul.f32 %v12233_v14, %v17507_v12  ;;  %12244 = vrcp.f32 %v17548_v43  ;;  %v19941_v12 = vld [vmem:[#allocation151_spill] sm:$0xff] }
 0xb63   : > { %v5981_v16 = vsub.f32 %v11419_v21, %v19932_v42  ;;  %v5836_v23 = vpop.f32.mrb[209].mxu0  ;;  %v6079_v21 = vmul.f32 %v12229_v29, %v17497_v57  ;;  %v17551_v42 = vadd.f32 0.0009, %v6042_v51  ;;  %v6097_v57 = vsub.f32 2.0, %v6081_v59 }
 0xb64   : > { %v5979_v33 = vsub.f32 %v5836_v23, %v19933_v61  ;;  %v11420_v60 = vpop.f32.mrb[210].mxu0 }
 0xb65   : > { %v5997_v15 = vmul.f32 2.0, %v5981_v16  ;;  %v5982_v26 = vsub.f32 %v11420_v60, %v19934_v27  ;;  %v5839_v5 = vpop.f32.mrb[211].mxu0  ;;  %v17554_v16 = vadd.f32 0.0009, %v6040_v58  ;;  %v12235_v60 = vpop.eup %12234  ;;  %12246 = vrcp.f32 %v17551_v42 }
 0xb66   : > { %v5995_v53 = vmul.f32 2.0, %v5979_v33  ;;  %v5980_v46 = vsub.f32 %v5839_v5, %v19935_v4  ;;  %v19939_v33 = vld [vmem:[#allocation143_spill] sm:$0xff]  ;;  %v6098_v5 = vsub.f32 2.0, %v6082_v17  ;;  %v19942_v4 = vld [vmem:[#allocation40_spill] sm:$0xff] }
 0xb67   : > { %v6013_v52 = vadd.f32 0.0009, %v5997_v15  ;;  %v5998_v40 = vmul.f32 2.0, %v5982_v26  ;;  %v12237_v26 = vpop.eup %12236  ;;  %12248 = vrcp.f32 %v17554_v16 }
 0xb68   : > { %v6011_v0 = vadd.f32 0.0009, %v5995_v53  ;;  %v5996_v56 = vmul.f32 2.0, %v5980_v46 }
 0xb69   : > { %v17556_v23 = vmul.f32 %v6109_v18, %v6013_v52  ;;  %v6014_v25 = vadd.f32 0.0009, %v5998_v40  ;;  %v6095_v18 = vsub.f32 2.0, %v6079_v21  ;;  %v12239_v59 = vpop.eup %12238  ;;  %v6096_v52 = vsub.f32 2.0, %v6080_v22 }
 0xb6a   : > { %v17560_v39 = vmul.f32 %v6107_v50, %v6011_v0  ;;  %v6012_v54 = vadd.f32 0.0009, %v5996_v56  ;;  %v11423_v61 = vpop.f32.mrb[212].mxu0  ;;  %v19943_v0 = vld [vmem:[#allocation155_spill] sm:$0xff]  ;;  %v12241_v56 = vpop.eup %12240  ;;  %v6114_v22 = vmul.f32 %v12231_v13, %v6098_v5 }
 0xb6b   : > { %19936 = vst [vmem:[#allocation194_spill] sm:$0xff] %v17556_v23  ;;  %v17563_v51 = vmul.f32 %v6110_v32, %v6014_v25  ;;  %v5985_v48 = vsub.f32 %v11423_v61, %v19939_v33  ;;  %v5852_v58 = vpop.f32.mrb[213].mxu0  ;;  %v6083_v33 = vmul.f32 %v12237_v26, %v17525_v24 }
 0xb6c   : > { %19937 = vst [vmem:[#allocation191_spill] sm:$0xff] %v17560_v39  ;;  %v17567_v15 = vmul.f32 %v6108_v31, %v6012_v54  ;;  %v5983_v27 = vsub.f32 %v5852_v58, %v19941_v12  ;;  %v11424_v50 = vpop.f32.mrb[214].mxu0  ;;  %v6085_v31 = vmul.f32 %v12235_v60, %v17519_v38  ;;  %v6113_v54 = vmul.f32 %v12227_v20, %v6097_v57 }
 0xb6d   : > { %19938 = vst [vmem:[#allocation154_spill] sm:$0xff] %v17563_v51  ;;  %v6001_v53 = vmul.f32 2.0, %v5985_v48  ;;  %v5986_v32 = vsub.f32 %v11424_v50, %v19942_v4  ;;  %v5855_v46 = vpop.f32.mrb[215].mxu0  ;;  %v6111_v58 = vmul.f32 %v12229_v29, %v6095_v18  ;;  %v6086_v48 = vmul.f32 %v12239_v59, %v17530_v8  ;;  %v12243_v18 = vpop.eup %12242 }
 0xb6e   : > { %19940 = vst [vmem:[#allocation182_spill] sm:$0xff] %v17567_v15  ;;  %v5999_v40 = vmul.f32 2.0, %v5983_v27  ;;  %v5984_v21 = vsub.f32 %v5855_v46, %v19943_v0  ;;  %v6084_v27 = vmul.f32 %v12241_v56, %v17535_v47  ;;  %v6112_v38 = vmul.f32 %v12233_v14, %v6096_v52  ;;  %v12245_v5 = vpop.eup %12244 }
 0xb6f   : > { %v6017_v25 = vadd.f32 0.0009, %v6001_v53  ;;  %v6002_v61 = vmul.f32 2.0, %v5986_v32  ;;  %v6101_v20 = vsub.f32 2.0, %v6085_v31  ;;  %v6099_v32 = vsub.f32 2.0, %v6083_v33  ;;  %v12247_v52 = vpop.eup %12246 }
 0xb70   : > { %v6015_v17 = vadd.f32 0.0009, %v5999_v40  ;;  %v6000_v12 = vmul.f32 2.0, %v5984_v21  ;;  %v6102_v47 = vsub.f32 2.0, %v6086_v48  ;;  %v6100_v31 = vsub.f32 2.0, %v6084_v27 }
 0xb71   : > { %v17576_v50 = vmul.f32 %v6113_v54, %v6017_v25  ;;  %v6018_v4 = vadd.f32 0.0009, %v6002_v61  ;;  %v19948_v25 = vld [vmem:[#allocation145_spill] sm:$0xff] }
 0xb72   : > { %v17579_v46 = vmul.f32 %v6111_v58, %v6015_v17  ;;  %v6016_v0 = vadd.f32 0.0009, %v6000_v12  ;;  %v11427_v53 = vpop.f32.mrb[216].mxu0  ;;  %v6089_v58 = vmul.f32 %v12243_v18, %v17544_v7  ;;  %v6117_v12 = vmul.f32 %v12235_v60, %v6101_v20 }
 0xb73   : > { %19944 = vst [vmem:[#allocation169_spill] sm:$0xff] %v17576_v50  ;;  %v17581_v57 = vmul.f32 %v6114_v22, %v6018_v4  ;;  %v5989_v24 = vsub.f32 %v11427_v53, %v17129_v6  ;;  %v5868_v29 = vpop.f32.mrb[217].mxu0  ;;  %v12249_v6 = vpop.eup %12248  ;;  %v6118_v27 = vmul.f32 %v12239_v59, %v6102_v47  ;;  %v6116_v7 = vmul.f32 %v12241_v56, %v6100_v31  ;;  %v19953_v56 = vld [vmem:[#allocation173_spill] sm:$0xff] }
 0xb74   : > { %19945 = vst [vmem:[#allocation165_spill] sm:$0xff] %v17579_v46  ;;  %v17584_v8 = vmul.f32 %v6112_v38, %v6016_v0  ;;  %v5987_v40 = vsub.f32 %v5868_v29, %v17134_v36  ;;  %v11428_v13 = vpop.f32.mrb[218].mxu0  ;;  %v6087_v36 = vmul.f32 %v12245_v5, %v17548_v43  ;;  %v6115_v0 = vmul.f32 %v12237_v26, %v6099_v32 }
 0xb75   : > { %19946 = vst [vmem:[#allocation204_spill] sm:$0xff] %v17581_v57  ;;  %v6005_v21 = vmul.f32 2.0, %v5989_v24  ;;  %v5990_v54 = vsub.f32 %v11428_v13, %v19948_v25  ;;  %v5871_v14 = vpop.f32.mrb[219].mxu0  ;;  %v6090_v38 = vmul.f32 %v12247_v52, %v17551_v42  ;;  %v6088_v29 = vmul.f32 %v12249_v6, %v17554_v16 }
 0xb76   : > { %19947 = vst [vmem:[#allocation196_spill] sm:$0xff] %v17584_v8  ;;  %v6003_v61 = vmul.f32 2.0, %v5987_v40  ;;  %v5988_v17 = vsub.f32 %v5871_v14, %v17157_v63  ;;  %v6105_v60 = vsub.f32 2.0, %v6089_v58  ;;  %v6103_v32 = vsub.f32 2.0, %v6087_v36 }
 0xb77   : > { %v6021_v33 = vadd.f32 0.0009, %v6005_v21  ;;  %v6006_v4 = vmul.f32 2.0, %v5990_v54  ;;  %v6106_v59 = vsub.f32 2.0, %v6090_v38  ;;  %v17606_v14 = vmul.f32 %v19953_v56, %v17556_v23 }
 0xb78   : > { %v6019_v22 = vadd.f32 0.0009, %v6003_v61  ;;  %v6004_v48 = vmul.f32 2.0, %v5988_v17  ;;  %v6104_v31 = vsub.f32 2.0, %v6088_v29  ;;  %v19954_v17 = vld [vmem:[#allocation183_spill] sm:$0xff] }
 0xb79   : > { %v17592_v53 = vmul.f32 %v6117_v12, %v6021_v33  ;;  %v6022_v24 = vadd.f32 0.0009, %v6006_v4  ;;  %v17611_v58 = vmul.f32 %v19954_v17, %v17560_v39  ;;  %v19955_v4 = vld [vmem:[#allocation185_spill] sm:$0xff] }
 0xb7a   : > { %v17595_v63 = vmul.f32 %v6115_v0, %v6019_v22  ;;  %v6020_v40 = vadd.f32 0.0009, %v6004_v48  ;;  %v11431_v13 = vpop.f32.mrb[220].mxu0  ;;  %v17615_v36 = vmul.f32 %v19955_v4, %v17563_v51  ;;  %v6119_v22 = vmul.f32 %v12245_v5, %v6103_v32  ;;  %v19956_v48 = vld [vmem:[#allocation156_spill] sm:$0xff] }
 0xb7b   : > { %19949 = vst [vmem:[#allocation190_spill] sm:$0xff] %v17592_v53  ;;  %v17597_v20 = vmul.f32 %v6118_v27, %v6022_v24  ;;  %v5993_v43 = vsub.f32 %v11431_v13, %v17191_v2  ;;  %v5884_v26 = vpop.f32.mrb[221].mxu0  ;;  %v17619_v38 = vmul.f32 %v19956_v48, %v17567_v15  ;;  %v6122_v27 = vmul.f32 %v12247_v52, %v6106_v59  ;;  %v19960_v52 = vld [vmem:[#allocation167_spill] sm:$0xff] }
 0xb7c   : > { %19950 = vst [vmem:[#allocation202_spill] sm:$0xff] %v17595_v63  ;;  %v17600_v21 = vmul.f32 %v6116_v7, %v6020_v40  ;;  %v5991_v42 = vsub.f32 %v5884_v26, %v17198_v1  ;;  %v11432_v25 = vpop.f32.mrb[222].mxu0  ;;  %v6121_v1 = vmul.f32 %v12243_v18, %v6105_v60  ;;  %v6120_v7 = vmul.f32 %v12249_v6, %v6104_v31  ;;  %v19963_v31 = vld [vmem:[#allocation171_spill] sm:$0xff] }
 0xb7d   : > { %19951 = vst [vmem:[#allocation152_spill] sm:$0xff] %v17597_v20  ;;  %v6009_v47 = vmul.f32 2.0, %v5993_v43  ;;  %v5994_v16 = vsub.f32 %v11432_v25, %v17207_v34  ;;  %v5887_v54 = vpop.f32.mrb[223].mxu0  ;;  %v17632_v59 = vmul.f32 %v19960_v52, %v17576_v50  ;;  %v17652_v4 = vmul.f32 %v17303_v41, %v17592_v53 }
 0xb7e   : > { %19952 = vst [vmem:[#allocation35_spill] sm:$0xff] %v17600_v21  ;;  %v6007_v61 = vmul.f32 2.0, %v5991_v42  ;;  %v5992_v2 = vsub.f32 %v5887_v54, %v17223_v44  ;;  %v19962_v54 = vld [vmem:[#allocation176_spill] sm:$0xff] }
 0xb7f   : > { %v6025_v33 = vadd.f32 0.0009, %v6009_v47  ;;  %v6010_v12 = vmul.f32 2.0, %v5994_v16  ;;  %v19961_v47 = vld [vmem:[#allocation162_spill] sm:$0xff]  ;;  %v17641_v56 = vmul.f32 %v19962_v54, %v17581_v57  ;;  %19964 = vst [vmem:[#allocation77_spill] sm:$0xff] %v17652_v4 }
 0xb80   : > { %v6023_v34 = vadd.f32 0.0009, %v6007_v61  ;;  %v6008_v0 = vmul.f32 2.0, %v5992_v2  ;;  %v17637_v16 = vmul.f32 %v19961_v47, %v17579_v46 }
 0xb81   : > { %v6137_v24 = vmul.f32 %v6121_v1, %v6025_v33  ;;  %v6026_v44 = vadd.f32 0.0009, %v6010_v12 }
 0xb82   : > { %v17621_v29 = vmul.f32 %v6119_v22, %v6023_v34  ;;  %v6024_v40 = vadd.f32 0.0009, %v6008_v0  ;;  %v11471_v18 = vpop.f32.mrb[224].mxu0  ;;  %v17657_v22 = vmul.f32 %v17313_v49, %v17595_v63 }
 0xb83   : > { %v17623_v13 = vmul.f32 %v6122_v27, %v6026_v44  ;;  %v6923_v60 = vmul.f32 %v17433_v55, %v11471_v18  ;;  %v6746_v43 = vpop.f32.mrb[225].mxu0  ;;  %v19968_v44 = vld [vmem:[#allocation198_spill] sm:$0xff]  ;;  %v17668_v41 = vmul.f32 %v17353_v28, %v6137_v24 }
 0xb84   : > { %19957 = vst [vmem:[#allocation184_spill] sm:$0xff] %v17621_v29  ;;  %v17626_v26 = vmul.f32 %v6120_v7, %v6024_v40  ;;  %v6921_v5 = vmul.f32 %v17435_v37, %v6746_v43  ;;  %v11472_v32 = vpop.f32.mrb[226].mxu0  ;;  %19965 = vst [vmem:[#allocation208_spill] sm:$0xff] %v17657_v22  ;;  %v17675_v49 = vmul.f32 %v17357_v30, %v17621_v29  ;;  %v19972_v27 = vld [vmem:[#allocation210_spill] sm:$0xff] }
 0xb85   : > { %19958 = vst [vmem:[#allocation81_spill] sm:$0xff] %v17623_v13  ;;  %v6924_v42 = vmul.f32 %v17439_v11, %v11472_v32  ;;  %v6749_v25 = vpop.f32.mrb[227].mxu0  ;;  %v17645_v11 = vmul.f32 %v19963_v31, %v17584_v8  ;;  %19969 = vst [vmem:[#allocation178_spill] sm:$0xff] %v17668_v41  ;;  %v17679_v40 = vmul.f32 %v19972_v27, %v17623_v13 }
 0xb86   : > { %19959 = vst [vmem:[#allocation180_spill] sm:$0xff] %v17626_v26  ;;  %v6922_v6 = vmul.f32 %v17441_v62, %v6749_v25  ;;  %19971 = vst [vmem:[#allocation181_spill] sm:$0xff] %v17675_v49  ;;  %v17683_v7 = vmul.f32 %v17361_v9, %v17626_v26 }
 0xb87   : > { %v11993_v55 = vpack.i.bf16 %v6924_v42, %v6923_v60  ;;  %19973 = vst [vmem:[#allocation41_spill] sm:$0xff] %v17679_v40 }
 0xb88   : > { %v11988_v37 = vpack.i.bf16 %v6922_v6, %v6921_v5  ;;  %19974 = vst [vmem:[#allocation200_spill] sm:$0xff] %v17683_v7 }
 0xb8a   : > { %v11475_v61 = vpop.f32.mrb[228].mxu0 }
 0xb8b   : > { %v6927_v2 = vmul.f32 %v17469_v35, %v11475_v61  ;;  %v6762_v17 = vpop.f32.mrb[229].mxu0  ;;  %v19966_v35 = vld [vmem:[#allocation142_spill] sm:$0xff] }
 0xb8c   : > { %v6925_v62 = vmul.f32 %v17471_v45, %v6762_v17  ;;  %v11476_v33 = vpop.f32.mrb[230].mxu0  ;;  %v17661_v48 = vmul.f32 %v19966_v35, %v17597_v20 }
 0xb8d   : > { %v6928_v1 = vmul.f32 %v17475_v19, %v11476_v33  ;;  %v6765_v12 = vpop.f32.mrb[231].mxu0  ;;  %v17665_v19 = vmul.f32 %v19968_v44, %v17600_v21 }
 0xb8e   : > { %v6926_v34 = vmul.f32 %v17477_v3, %v6765_v12  ;;  %19967 = vst [vmem:[#allocation201_spill] sm:$0xff] %v17661_v48  ;;  %v17671_v3 = vsel %vm6335_vm5, %v6137_v24, 0.0 }
 0xb8f   : > { %v12013_v0 = vpack.i.bf16 %v6928_v1, %v6927_v2  ;;  %19970 = vst [vmem:[#allocation187_spill] sm:$0xff] %v17671_v3 }
 0xb90   : > { %v12008_v45 = vpack.i.bf16 %v6926_v34, %v6925_v62 }
 0xbb2   : > { %v6881_v60 = vpop.permute.xlu0 %6880 }
 0xbb3   : > { %v17686_v28 = vsel %vm6904_vm6, %v6746_v43, %v6881_v60 }
 0xbb4   : > { %v6883_v5 = vpop.permute.xlu1 %6882  ;;  %v6913_v30 = vmul.f32 %v17686_v28, %v17686_v28 }
 0xbb5   : > { %v17689_v24 = vsel %vm6904_vm6, %v6749_v25, %v6883_v5 }
 0xbb6   : > { %v6914_v42 = vmul.f32 %v17689_v24, %v17689_v24  ;;  %v6885_v52 = vpop.permute.xlu0 %6884 }
 0xbb7   : > { %v17696_v6 = vsel %vm6904_vm6, %v11471_v18, %v6885_v52 }
 0xbb8   : > { %v11983_v9 = vpack.i.bf16 %v6914_v42, %v6913_v30  ;;  %v6887_v47 = vpop.permute.xlu1 %6886  ;;  %v6915_v43 = vmul.f32 %v17696_v6, %v17696_v6 }
 0xbb9   : > { %v17699_v54 = vsel %vm6904_vm6, %v11472_v32, %v6887_v47 }
 0xbba   : > { %v6916_v25 = vmul.f32 %v17699_v54, %v17699_v54  ;;  %11984 = vrot.lane.b32.xlu0 %v11983_v9, %s12796_s6 }
 0xbbc   : > { %v11978_v31 = vpack.i.bf16 %v6916_v25, %v6915_v43 }
 0xbbe   : > { %11989 = vrot.lane.b32.xlu0 %v11988_v37, %s12794_s18  ;;  %11979 = vrot.lane.b32.xlu1 %v11978_v31, %s12796_s6 }
 0xbc2   : > { %v6889_v18 = vpop.permute.xlu0 %6888  ;;  %11994 = vrot.lane.b32.xlu1 %v11993_v55, %s12794_s18 }
 0xbc3   : > { %v17710_v2 = vsel %vm6904_vm6, %v6762_v17, %v6889_v18  ;;  %v6866_v18 = vld [vmem:[#allocation16] sm:$0xff] }
 0xbc4   : > { %v6891_v32 = vpop.permute.xlu1 %6890  ;;  %v6917_v1 = vmul.f32 %v17710_v2, %v17710_v2 }
 0xbc5   : > { %v17713_v62 = vsel %vm6904_vm6, %v6765_v12, %v6891_v32  ;;  %v6867_v32 = vld [vmem:[#allocation16 + $0x8] sm:$0xff] }
 0xbc6   : > { %v6918_v34 = vmul.f32 %v17713_v62, %v17713_v62  ;;  %v6893_v35 = vpop.permute.xlu0 %6892 }
 0xbc7   : > { %v17720_v37 = vsel %vm6904_vm6, %v11475_v61, %v6893_v35 }
 0xbc8   : > { %v12003_v44 = vpack.i.bf16 %v6918_v34, %v6917_v1  ;;  %v6895_v27 = vpop.permute.xlu1 %6894  ;;  %v6919_v17 = vmul.f32 %v17720_v37, %v17720_v37 }
 0xbc9   : > { %v17723_v55 = vsel %vm6904_vm6, %v11476_v33, %v6895_v27  ;;  %v6868_v27 = vpack.c.bf16 %v6867_v32, %v6866_v18 }
 0xbca   : > { %v6920_v12 = vmul.f32 %v17723_v55, %v17723_v55  ;;  %12004 = vrot.lane.b32.xlu0 %v12003_v44, %s12796_s6 }
 0xbcc   : > { %v11998_v60 = vpack.i.bf16 %v6920_v12, %v6919_v17 }
 0xbce   : > { %11999 = vrot.lane.b32.xlu1 %v11998_v60, %s12796_s6  ;;  %12009 = vrot.lane.b32.xlu0 %v12008_v45, %s12794_s18 }
 0xbd2   : > { %12014 = vrot.lane.b32.xlu1 %v12013_v0, %s12794_s18 }
 0xc2c   : > { %v11985_v61 = vpop.permute.xlu0 %11984 }
 0xc2d   : > { %v11987_v5 = vunpack.i.h.bf16 %v11985_v61  ;;  %v11986_v30 = vunpack.i.l.bf16 %v11985_v61 }
 0xc2f   : > { %v6994_v47 = vsel %vm4859_vm3, %v17689_v24, %v11987_v5  ;;  %v6993_v43 = vsel %vm4859_vm3, %v17686_v28, %v11986_v30 }
 0xc30   : > { %v11990_v33 = vpop.permute.xlu0 %11989  ;;  %v11980_v42 = vpop.permute.xlu1 %11979 }
 0xc31   : > { %v11992_v52 = vunpack.i.h.bf16 %v11990_v33  ;;  %v11991_v9 = vunpack.i.l.bf16 %v11990_v33  ;;  %v11982_v25 = vunpack.i.h.bf16 %v11980_v42  ;;  %v11981_v31 = vunpack.i.l.bf16 %v11980_v42 }
 0xc33   : > { %v7001_v45 = vsel %vm1205_vm0, %v6993_v43, %v11991_v9  ;;  %v7002_v0 = vsel %vm1205_vm0, %v6994_v47, %v11992_v52  ;;  %v6996_v17 = vsel %vm4859_vm3, %v17699_v54, %v11982_v25  ;;  %v6995_v12 = vsel %vm4859_vm3, %v17696_v6, %v11981_v31 }
 0xc34   : > { %v11995_v1 = vpop.permute.xlu1 %11994  ;;  %v7009_v34 = vpack.c.bf16 %v7002_v0, %v7001_v45 }
 0xc35   : > { %v11997_v35 = vunpack.i.h.bf16 %v11995_v1  ;;  %v11996_v44 = vunpack.i.l.bf16 %v11995_v1 }
 0xc36   : > { %11490 = vmatpush3.bf16.msra.mxu0 %v7009_v34 }
 0xc37   : > { %v7003_v60 = vsel %vm1205_vm0, %v6995_v12, %v11996_v44  ;;  %v7004_v61 = vsel %vm1205_vm0, %v6996_v17, %v11997_v35  ;;  %11501 = vmatprep.subr.bf16.mxu0 %v19846_v10 }
 0xc38   : > { %v7010_v5 = vpack.c.bf16 %v7004_v61, %v7003_v60 }
 0xc39   : > { %11492 = vmatmul.mubr.msk.bf16.vlgmr.msra.gmra.mrb[232].mxu0 %vm6904_vm6, %v6868_v27 }
 0xc3a   : > { %11496 = vmatpush3.bf16.msra.mxu1 %v7010_v5  ;;  %11503 = vmatprep.mubr.msk.bf16.mxu0 %vm12799_vm4, %v19846_v10 }
 0xc3b   : > { %11507 = vmatprep.subr.bf16.mxu1 %v19846_v10 }
 0xc3c   : > { %v12005_v30 = vpop.permute.xlu0 %12004 }
 0xc3d   : > { %11498 = vmatmul.mubr.msk.bf16.vlgmr.msra.gmra.mrb[216].mxu1 %vm6904_vm6, %v6868_v27  ;;  %v12007_v33 = vunpack.i.h.bf16 %v12005_v30  ;;  %v12006_v42 = vunpack.i.l.bf16 %v12005_v30  ;;  %v6869_v30 = vld [vmem:[#allocation18] sm:$0xff] }
 0xc3e   : > { %11509 = vmatprep.mubr.msk.bf16.mxu1 %vm12799_vm4, %v19846_v10 }
 0xc3f   : > { %v6998_v25 = vsel %vm4859_vm3, %v17713_v62, %v12007_v33  ;;  %v6997_v31 = vsel %vm4859_vm3, %v17710_v2, %v12006_v42  ;;  %v6870_v33 = vld [vmem:[#allocation18 + $0x8] sm:$0xff] }
 0xc40   : > { %v12000_v52 = vpop.permute.xlu1 %11999  ;;  %v12010_v9 = vpop.permute.xlu0 %12009  ;;  %v17767_v42 = vpack.c.bf16 %v6870_v33, %v6869_v30 }
 0xc41   : > { %v12012_v47 = vunpack.i.h.bf16 %v12010_v9  ;;  %v12011_v43 = vunpack.i.l.bf16 %v12010_v9  ;;  %v12002_v18 = vunpack.i.h.bf16 %v12000_v52  ;;  %v12001_v32 = vunpack.i.l.bf16 %v12000_v52 }
 0xc43   : > { %v7006_v45 = vsel %vm1205_vm0, %v6998_v25, %v12012_v47  ;;  %v7005_v0 = vsel %vm1205_vm0, %v6997_v31, %v12011_v43  ;;  %v7000_v17 = vsel %vm4859_vm3, %v17723_v55, %v12002_v18  ;;  %v6999_v12 = vsel %vm4859_vm3, %v17720_v37, %v12001_v32 }
 0xc44   : > { %v12015_v1 = vpop.permute.xlu1 %12014  ;;  %v7011_v34 = vpack.c.bf16 %v7006_v45, %v7005_v0 }
 0xc45   : > { %v12017_v35 = vunpack.i.h.bf16 %v12015_v1  ;;  %v12016_v44 = vunpack.i.l.bf16 %v12015_v1 }
 0xc46   : > { %11502 = vmatpush3.bf16.msra.mxu0 %v7011_v34 }
 0xc47   : > { %v7007_v60 = vsel %vm1205_vm0, %v6999_v12, %v12016_v44  ;;  %v7008_v61 = vsel %vm1205_vm0, %v7000_v17, %v12017_v35  ;;  %11513 = vmatprep.subr.bf16.mxu0 %v17767_v42 }
 0xc48   : > { %v7012_v5 = vpack.c.bf16 %v7008_v61, %v7007_v60 }
 0xc49   : > { %11504 = vmatmul.mubr.msk.bf16.vlgmr.msra.gmra.mrb[236].mxu0 %vm6904_vm6, %v6868_v27 }
 0xc4a   : > { %11508 = vmatpush3.bf16.msra.mxu1 %v7012_v5  ;;  %11514 = vmatpush3.bf16.msra.mxu0 %v17767_v42 }
 0xc4b   : > { %11523 = vmatprep.subr.bf16.mxu1 %v17767_v42  ;;  %11533 = vmatprep.subr.bf16.mxu0 %v17767_v42 }
 0xc4d   : > { %11510 = vmatmul.mubr.msk.bf16.vlgmr.msra.gmra.mrb[220].mxu1 %vm6904_vm6, %v6868_v27 }
 0xc4e   : > { %11524 = vmatpush3.bf16.msra.mxu1 %v17767_v42 }
 0xc4f   : > { %11543 = vmatprep.subr.bf16.mxu1 %v17767_v42 }
 0xd0c   : > { %v7050_v52 = vpop.f32.mrb[232].mxu0 }
 0xd0d   : > { %v11493_v9 = vpop.f32.mrb[233].mxu0 }
 0xd0e   : > { %v7053_v47 = vpop.f32.mrb[234].mxu0 }
 0xd0f   : > { %v7180_v27 = vpack.c.bf16 %v7053_v47, %v7050_v52  ;;  %v11494_v43 = vpop.f32.mrb[235].mxu0 }
 0xd10   : > { %v7091_v25 = vpop.f32.mrb[216].mxu1 }
 0xd11   : > { %v11499_v31 = vpop.f32.mrb[217].mxu1  ;;  %7265 = vrot.lane.b32.xlu0 %v7180_v27, %s12801_s20  ;;  %11515 = vmatprep.mubr.msk.bf16.mxu0 %vm6904_vm6, %v7180_v27 }
 0xd12   : > { %v7094_v18 = vpop.f32.mrb[218].mxu1 }
 0xd13   : > { %v7181_v32 = vpack.c.bf16 %v7094_v18, %v7091_v25  ;;  %v11500_v45 = vpop.f32.mrb[219].mxu1  ;;  %v7941_v25 = vpack.c.bf16 %v17689_v24, %v17686_v28  ;;  %v7936_v28 = vld [vmem:[#allocation19] sm:$0xff]  ;;  %v7943_v24 = vpack.c.bf16 %v17713_v62, %v17710_v2  ;;  %v7944_v62 = vpack.c.bf16 %v17723_v55, %v17720_v37  ;;  %v7938_v37 = vld [vmem:[%s19975_s17] sm:$0xff]  ;;  %v7939_v55 = vld [vmem:[%s19975_s17 + $0x8] sm:$0xff] }
 0xd15   : > { %7267 = vrot.lane.b32.xlu1 %v7181_v32, %s12801_s20  ;;  %11516 = vmatmul.mubr.msk.bf16.vlgmr.msra.gmra.mrb[240].mxu0 %vm6904_vm6, %v7181_v32 }
 0xd16   : > { %11534 = vmatpush3.bf16.msra.mxu0 %v17767_v42 }
 0xd17   : > { %11553 = vmatprep.subr.bf16.mxu0 %v17767_v42 }
 0xd1c   : > { %v7132_v0 = vpop.f32.mrb[236].mxu0 }
 0xd1d   : > { %v11505_v1 = vpop.f32.mrb[237].mxu0 }
 0xd1e   : > { %v7135_v34 = vpop.f32.mrb[238].mxu0 }
 0xd1f   : > { %v7182_v35 = vpack.c.bf16 %v7135_v34, %v7132_v0  ;;  %v11506_v44 = vpop.f32.mrb[239].mxu0 }
 0xd20   : > { %v7173_v17 = vpop.f32.mrb[220].mxu1  ;;  %v7942_v44 = vpack.c.bf16 %v17699_v54, %v17696_v6 }
 0xd21   : > { %v11511_v12 = vpop.f32.mrb[221].mxu1  ;;  %7269 = vrot.lane.b32.xlu0 %v7182_v35, %s12801_s20  ;;  %11519 = vmatprep.mubr.msk.bf16.mxu0 %vm6904_vm6, %v7182_v35 }
 0xd22   : > { %v7176_v60 = vpop.f32.mrb[222].mxu1 }
 0xd23   : > { %v7183_v61 = vpack.c.bf16 %v7176_v60, %v7173_v17  ;;  %v11512_v5 = vpop.f32.mrb[223].mxu1 }
 0xd25   : > { %7271 = vrot.lane.b32.xlu1 %v7183_v61, %s12801_s20  ;;  %7350 = vrot.lane.b32.xlu0 %v7180_v27, %s12797_s8 }
 0xd26   : > { %11520 = vmatmul.mubr.msk.bf16.gmra.mrb[244].mxu0 %vm6904_vm6, %v7183_v61 }
 0xd29   : > { %7435 = vrot.lane.b32.xlu1 %v7180_v27, %s12802_s19  ;;  %7352 = vrot.lane.b32.xlu0 %v7181_v32, %s12797_s8 }
 0xd2d   : > { %7437 = vrot.lane.b32.xlu1 %v7181_v32, %s12802_s19  ;;  %7354 = vrot.lane.b32.xlu0 %v7182_v35, %s12797_s8 }
 0xd31   : > { %7439 = vrot.lane.b32.xlu1 %v7182_v35, %s12802_s19  ;;  %7356 = vrot.lane.b32.xlu0 %v7183_v61, %s12797_s8 }
 0xd35   : > { %7441 = vrot.lane.b32.xlu1 %v7183_v61, %s12802_s19  ;;  %7520 = vrot.lane.b32.xlu0 %v7180_v27, %s12794_s18 }
 0xd39   : > { %7522 = vrot.lane.b32.xlu1 %v7181_v32, %s12794_s18  ;;  %7524 = vrot.lane.b32.xlu0 %v7182_v35, %s12794_s18  ;;  %v7937_v35 = vpack.c.bf16 %v7936_v28, %v7936_v28 }
 0xd3d   : > { %7526 = vrot.lane.b32.xlu1 %v7183_v61, %s12794_s18  ;;  %s19990_s18 = sld [smem:[#allocation231_spill]] }
 0xd83   : > { %v7266_v30 = vpop.permute.xlu0 %7265 }
 0xd84   : > { %11525 = vmatprep.mubr.msk.bf16.mxu1 %vm6904_vm6, %v7266_v30 }
 0xd87   : > { %v7268_v33 = vpop.permute.xlu1 %7267 }
 0xd88   : > { %11526 = vmatmul.mubr.msk.bf16.vlgmr.msra.gmra.mrb[224].mxu1 %vm6904_vm6, %v7268_v33  ;;  %v7940_v33 = vpack.c.bf16 %v7939_v55, %v7938_v37 }
 0xd89   : > { %11544 = vmatpush3.bf16.msra.mxu1 %v17767_v42 }
 0xd8a   : > { %11563 = vmatprep.subr.bf16.mxu1 %v19846_v10 }
 0xd93   : > { %v7270_v52 = vpop.permute.xlu0 %7269 }
 0xd94   : > { %11529 = vmatprep.mubr.msk.bf16.mxu1 %vm6904_vm6, %v7270_v52 }
 0xd97   : > { %v7272_v9 = vpop.permute.xlu1 %7271  ;;  %v7351_v47 = vpop.permute.xlu0 %7350 }
 0xd98   : > { %11530 = vmatmul.mubr.msk.bf16.gmra.mrb[228].mxu1 %vm6904_vm6, %v7272_v9  ;;  %11535 = vmatprep.mubr.msk.bf16.mxu0 %vm6904_vm6, %v7351_v47 }
 0xd9b   : > { %v7436_v27 = vpop.permute.xlu1 %7435  ;;  %v7353_v43 = vpop.permute.xlu0 %7352 }
 0xd9c   : > { %11536 = vmatmul.mubr.msk.bf16.vlgmr.msra.gmra.mrb[248].mxu0 %vm6904_vm6, %v7353_v43  ;;  %11545 = vmatprep.mubr.msk.bf16.mxu1 %vm6904_vm6, %v7436_v27 }
 0xd9d   : > { %11554 = vmatpush3.bf16.msra.mxu0 %v17767_v42 }
 0xd9e   : > { %11575 = vmatprep.subr.bf16.mxu0 %v19846_v10 }
 0xd9f   : > { %v7438_v31 = vpop.permute.xlu1 %7437  ;;  %v7355_v18 = vpop.permute.xlu0 %7354 }
 0xda0   : > { %11539 = vmatprep.mubr.msk.bf16.mxu0 %vm6904_vm6, %v7355_v18  ;;  %11546 = vmatmul.mubr.msk.bf16.vlgmr.msra.gmra.mrb[232].mxu1 %vm6904_vm6, %v7438_v31 }
 0xda1   : > { %11564 = vmatpush3.bf16.msra.mxu1 %v7941_v25 }
 0xda2   : > { %11569 = vmatprep.subr.bf16.mxu1 %v19846_v10 }
 0xda3   : > { %v7440_v32 = vpop.permute.xlu1 %7439  ;;  %v7357_v45 = vpop.permute.xlu0 %7356 }
 0xda4   : > { %11540 = vmatmul.mubr.msk.bf16.gmra.mrb[252].mxu0 %vm6904_vm6, %v7357_v45  ;;  %11549 = vmatprep.mubr.msk.bf16.mxu1 %vm6904_vm6, %v7440_v32 }
 0xda7   : > { %v7442_v42 = vpop.permute.xlu1 %7441  ;;  %v7521_v0 = vpop.permute.xlu0 %7520 }
 0xda8   : > { %11550 = vmatmul.mubr.msk.bf16.gmra.mrb[236].mxu1 %vm6904_vm6, %v7442_v42  ;;  %11555 = vmatprep.mubr.msk.bf16.mxu0 %vm6904_vm6, %v7521_v0 }
 0xda9   : > { %11565 = vmatprep.mubr.msk.bf16.mxu1 %vm12799_vm4, %v19846_v10 }
 0xdab   : > { %v7523_v1 = vpop.permute.xlu1 %7522  ;;  %v7525_v34 = vpop.permute.xlu0 %7524 }
 0xdac   : > { %11556 = vmatmul.mubr.msk.bf16.vlgmr.msra.gmra.mrb[0].mxu0 %vm6904_vm6, %v7523_v1 }
 0xdad   : > { %11576 = vmatpush3.bf16.msra.mxu0 %v7943_v24  ;;  %11559 = vmatprep.mubr.msk.bf16.mxu0 %vm6904_vm6, %v7525_v34 }
 0xdae   : > { %11587 = vmatprep.subr.bf16.mxu0 %v7940_v33 }
 0xdaf   : > { %v7527_v2 = vpop.permute.xlu1 %7526 }
 0xdb0   : > { %11566 = vmatmul.mubr.msk.bf16.vlgmr.msra.gmra.mrb[240].mxu1 %vm6904_vm6, %v7937_v35 }
 0xdb1   : > { %11570 = vmatpush3.bf16.msra.mxu1 %v7942_v44  ;;  %11571 = vmatprep.mubr.msk.bf16.mxu1 %vm12799_vm4, %v19846_v10 }
 0xdb2   : > { %11581 = vmatprep.subr.bf16.mxu1 %v19846_v10 }
 0xdb4   : > { %11560 = vmatmul.mubr.msk.bf16.gmra.mrb[4].mxu0 %vm6904_vm6, %v7527_v2 }
 0xdb5   : > { %11577 = vmatprep.mubr.msk.bf16.mxu0 %vm12799_vm4, %v19846_v10 }
 0xdb8   : > { %11572 = vmatmul.mubr.msk.bf16.vlgmr.msra.gmra.mrb[244].mxu1 %vm6904_vm6, %v7937_v35 }
 0xdb9   : > { %11582 = vmatpush3.bf16.msra.mxu1 %v7944_v62  ;;  %11583 = vmatprep.mubr.msk.bf16.mxu1 %vm12799_vm4, %v19846_v10 }
 0xdba   : > { %11593 = vmatprep.subr.bf16.mxu1 %v7940_v33 }
 0xdbc   : > { %11578 = vmatmul.mubr.msk.bf16.vlgmr.msra.gmra.mrb[8].mxu0 %vm6904_vm6, %v7937_v35 }
 0xdbd   : > { %11588 = vmatpush3.bf16.msra.mxu0 %v7940_v33 }
 0xdbe   : > { %11599 = vmatprep.subr.bf16.mxu0 %v19846_v10 }
 0xdc0   : > { %11584 = vmatmul.mubr.msk.bf16.vlgmr.msra.gmra.mrb[248].mxu1 %vm6904_vm6, %v7937_v35 }
 0xdc1   : > { %11594 = vmatpush3.bf16.msra.mxu1 %v7940_v33 }
 0xdc2   : > { %11605 = vmatprep.subr.bf16.mxu1 %v19846_v10 }
 0xde8   : > { %v11517_v6 = vpop.f32.mrb[240].mxu0 }
 0xde9   : > { %v7230_v54 = vpop.f32.mrb[241].mxu0  ;;  %v17845_v9 = vmul.f32 %v11517_v6, %v11517_v6 }
 0xdea   : > { %v11518_v17 = vpop.f32.mrb[242].mxu0  ;;  %v17851_v25 = vmul.f32 %v7230_v54, %v7230_v54 }
 0xdeb   : > { %v7233_v12 = vpop.f32.mrb[243].mxu0  ;;  %v17857_v45 = vmul.f32 %v11518_v17, %v11518_v17 }
 0xdec   : > { %v17865_v1 = vmul.f32 %v7233_v12, %v7233_v12 }
 0xdf9   : > { %v11521_v60 = vpop.f32.mrb[244].mxu0 }
 0xdfa   : > { %v7246_v61 = vpop.f32.mrb[245].mxu0 }
 0xdfb   : > { %v11522_v5 = vpop.f32.mrb[246].mxu0 }
 0xdfc   : > { %v17835_v30 = vpop.f32.mrb[247].mxu0  ;;  %v17895_v26 = vmul.f32 %v11522_v5, %v11522_v5 }
 0xdfd   : > { %v17909_v57 = vmul.f32 %v17835_v30, %v17835_v30 }
 0xe5b   : > { %v11527_v52 = vpop.f32.mrb[224].mxu1 }
 0xe5c   : > { %v17847_v47 = vmul.f32 %v11527_v52, %v11517_v6  ;;  %v17849_v27 = vmul.f32 %v11527_v52, %v11527_v52  ;;  %v7319_v43 = vpop.f32.mrb[225].mxu1  ;;  %v17879_v52 = vmul.f32 %v11521_v60, %v11521_v60 }
 0xe5d   : > { %v17853_v31 = vmul.f32 %v7319_v43, %v7230_v54  ;;  %v17855_v18 = vmul.f32 %v7319_v43, %v7319_v43  ;;  %v11528_v32 = vpop.f32.mrb[226].mxu1 }
 0xe5e   : > { %v7743_v42 = vadd.f32 %v17849_v27, %v17845_v9  ;;  %v17861_v0 = vmul.f32 %v11528_v32, %v11518_v17  ;;  %v17863_v28 = vmul.f32 %v11528_v32, %v11528_v32  ;;  %v7322_v24 = vpop.f32.mrb[227].mxu1  ;;  %v7727_v55 = vmul.f32 2.0, %v17847_v47 }
 0xe5f   : > { %v7741_v34 = vadd.f32 %v17855_v18, %v17851_v25  ;;  %v17869_v35 = vmul.f32 %v7322_v24, %v7233_v12  ;;  %v17871_v44 = vmul.f32 %v7322_v24, %v7322_v24  ;;  %v7725_v12 = vmul.f32 2.0, %v17853_v31 }
 0xe60   : > { %v7751_v2 = vadd.f32 0.0001, %v7743_v42  ;;  %v7744_v62 = vadd.f32 %v17863_v28, %v17857_v45  ;;  %v7728_v43 = vmul.f32 2.0, %v17861_v0  ;;  %v17901_v50 = vadd.f32 0.0001, %v7727_v55 }
 0xe61   : > { %v7742_v6 = vadd.f32 %v17871_v44, %v17865_v1  ;;  %v7749_v17 = vadd.f32 0.0001, %v7741_v34  ;;  %v17888_v34 = vmul.f32 %v7246_v61, %v7246_v61  ;;  %v17903_v21 = vadd.f32 0.0001, %v7725_v12 }
 0xe62   : > { %v7752_v54 = vadd.f32 0.0001, %v7744_v62  ;;  %12250 = vrcp.f32 %v7751_v2  ;;  %v7736_v23 = vadd.f32 0.0001, %v7728_v43 }
 0xe63   : > { %v7750_v37 = vadd.f32 0.0001, %v7742_v6  ;;  %v7726_v6 = vmul.f32 2.0, %v17869_v35 }
 0xe64   : > { %12252 = vrcp.f32 %v7752_v54 }
 0xe65   : > { %12254 = vrcp.f32 %v7750_v37  ;;  %v7734_v41 = vadd.f32 0.0001, %v7726_v6 }
 0xe66   : > { %12256 = vrcp.f32 %v7749_v17 }
 0xe6b   : > { %v11531_v33 = vpop.f32.mrb[228].mxu1 }
 0xe6c   : > { %v17882_v32 = vmul.f32 %v11531_v33, %v11521_v60  ;;  %v17884_v42 = vmul.f32 %v11531_v33, %v11531_v33  ;;  %v7335_v24 = vpop.f32.mrb[229].mxu1  ;;  %v17886_v62 = vpop.eup %12250 }
 0xe6d   : > { %v17891_v3 = vmul.f32 %v7335_v24, %v7246_v61  ;;  %v17893_v29 = vmul.f32 %v7335_v24, %v7335_v24  ;;  %v11532_v13 = vpop.f32.mrb[230].mxu1  ;;  %v17920_v49 = vmul.f32 %v17886_v62, %v7751_v2 }
 0xe6e   : > { %v12253_v53 = vpop.eup %12252  ;;  %v7747_v60 = vadd.f32 %v17884_v42, %v17879_v52  ;;  %v17899_v33 = vmul.f32 %v11532_v13, %v11522_v5  ;;  %v7338_v63 = vpop.f32.mrb[231].mxu1 }
 0xe6f   : > { %v12255_v20 = vpop.eup %12254  ;;  %v7768_v46 = vmul.f32 %v12253_v53, %v7752_v54  ;;  %v7745_v61 = vadd.f32 %v17893_v29, %v17888_v34  ;;  %v11537_v24 = vpop.f32.mrb[248].mxu0  ;;  %v17917_v54 = vmul.f32 %v11532_v13, %v11532_v13  ;;  %v17929_v6 = vmul.f32 %v7338_v63, %v7338_v63 }
 0xe70   : > { %v7766_v8 = vmul.f32 %v12255_v20, %v7750_v37  ;;  %v17911_v39 = vadd.f32 0.0001, %v7747_v60  ;;  %v7404_v5 = vpop.f32.mrb[249].mxu0  ;;  %v17913_v51 = vpop.eup %12256  ;;  %v17924_v37 = vmul.f32 %v7338_v63, %v17835_v30  ;;  %v7623_v4 = vsub.f32 %v11537_v24, %v17845_v9 }
 0xe71   : > { %v7776_v55 = vsub.f32 2.0, %v7768_v46  ;;  %v17915_v12 = vadd.f32 0.0001, %v7745_v61  ;;  %v11538_v15 = vpop.f32.mrb[250].mxu0  ;;  %v7748_v46 = vadd.f32 %v17917_v54, %v17895_v26  ;;  %v17932_v61 = vmul.f32 %v17913_v51, %v7749_v17 }
 0xe72   : > { %v7774_v40 = vsub.f32 2.0, %v7766_v8  ;;  %12258 = vrcp.f32 %v17911_v39  ;;  %v7407_v43 = vpop.f32.mrb[251].mxu0  ;;  %v7731_v8 = vmul.f32 2.0, %v17882_v32  ;;  %v7621_v63 = vsub.f32 %v7404_v5, %v17851_v25 }
 0xe73   : > { %v7784_v60 = vmul.f32 %v12253_v53, %v7776_v55  ;;  %12260 = vrcp.f32 %v17915_v12  ;;  %v11547_v13 = vpop.f32.mrb[232].mxu1  ;;  %v17938_v53 = vadd.f32 0.0001, %v7748_v46  ;;  %v7746_v55 = vadd.f32 %v17929_v6, %v17909_v57 }
 0xe74   : > { %v7782_v2 = vmul.f32 %v12255_v20, %v7774_v40  ;;  %v7489_v30 = vpop.f32.mrb[233].mxu1  ;;  %v7624_v20 = vsub.f32 %v11538_v15, %v17857_v45  ;;  %v7622_v40 = vsub.f32 %v7407_v43, %v17865_v1  ;;  %v7639_v24 = vsub.f32 %v11547_v13, %v17849_v27 }
 0xe75   : > { %v17936_v7 = vmul.f32 %v7784_v60, %v7736_v23  ;;  %v11548_v22 = vpop.f32.mrb[234].mxu1  ;;  %12262 = vrcp.f32 %v17938_v53  ;;  %v17949_v23 = vadd.f32 0.0001, %v7746_v55  ;;  %v7637_v60 = vsub.f32 %v7489_v30, %v17855_v18 }
 0xe76   : > { %v17944_v17 = vmul.f32 %v7782_v2, %v7734_v41  ;;  %v7492_v9 = vpop.f32.mrb[235].mxu1  ;;  %v7732_v25 = vmul.f32 2.0, %v17899_v33  ;;  %v7640_v5 = vsub.f32 %v11548_v22, %v17863_v28  ;;  %v7671_v1 = vadd.f32 %v7639_v24, %v7623_v4 }
 0xe77   : > { %v11541_v46 = vpop.f32.mrb[252].mxu0  ;;  %v7638_v41 = vsub.f32 %v7492_v9, %v17871_v44  ;;  %12264 = vrcp.f32 %v17949_v23  ;;  %v7669_v43 = vadd.f32 %v7637_v60, %v7621_v63  ;;  %v7730_v27 = vmul.f32 2.0, %v17924_v37 }
 0xe78   : > { %v7627_v15 = vsub.f32 %v11541_v46, %v17879_v52  ;;  %v7420_v45 = vpop.f32.mrb[253].mxu0  ;;  %v7672_v18 = vadd.f32 %v7640_v5, %v7624_v20  ;;  %v17962_v22 = vmul.f32 2.0, %v17891_v3  ;;  %v17964_v28 = vadd.f32 0.0009, %v7671_v1 }
 0xe79   : > { %v7625_v2 = vsub.f32 %v7420_v45, %v17888_v34  ;;  %v11542_v55 = vpop.f32.mrb[254].mxu0  ;;  %v7670_v13 = vadd.f32 %v7638_v41, %v7622_v40  ;;  %v17966_v44 = vadd.f32 0.0009, %v7669_v43  ;;  %v7773_v34 = vsub.f32 2.0, %v17932_v61 }
 0xe7a   : > { %v7628_v30 = vsub.f32 %v11542_v55, %v17895_v26  ;;  %v7423_v48 = vpop.f32.mrb[255].mxu0  ;;  %v17972_v9 = vadd.f32 0.0009, %v7672_v18  ;;  %v17979_v60 = vadd.f32 0.0001, %v7731_v8  ;;  %12266 = vrcp.f32 %v17964_v28 }
 0xe7b   : > { %v7626_v4 = vsub.f32 %v7423_v48, %v17909_v57  ;;  %v11551_v52 = vpop.f32.mrb[236].mxu1  ;;  %v17974_v20 = vadd.f32 0.0009, %v7670_v13  ;;  %v7740_v46 = vadd.f32 0.0001, %v7732_v25  ;;  %12268 = vrcp.f32 %v17966_v44 }
 0xe7c   : > { %v17969_v63 = vpop.eup %12258  ;;  %v7643_v26 = vsub.f32 %v11551_v52, %v17884_v42  ;;  %v7505_v40 = vpop.f32.mrb[237].mxu1  ;;  %v17983_v5 = vadd.f32 0.0001, %v7730_v27  ;;  %12270 = vrcp.f32 %v17972_v9 }
 0xe7d   : > { %v17977_v24 = vpop.eup %12260  ;;  %v7641_v57 = vsub.f32 %v7505_v40, %v17893_v29  ;;  %v11552_v48 = vpop.f32.mrb[238].mxu1  ;;  %v17989_v42 = vmul.f32 %v17969_v63, %v17911_v39  ;;  %12272 = vrcp.f32 %v17974_v20 }
 0xe7e   : > { %v7675_v61 = vadd.f32 %v7643_v26, %v7627_v15  ;;  %v7644_v41 = vsub.f32 %v11552_v48, %v17917_v54  ;;  %v7508_v45 = vpop.f32.mrb[239].mxu1  ;;  %v17995_v29 = vmul.f32 %v17977_v24, %v17915_v12 }
 0xe7f   : > { %v7673_v8 = vadd.f32 %v7641_v57, %v7625_v2  ;;  %v7642_v25 = vsub.f32 %v7508_v45, %v17929_v6  ;;  %v11557_v1 = vpop.f32.mrb[0].mxu0  ;;  %v12263_v55 = vpop.eup %12262 }
 0xe80   : > { %v17998_v15 = vadd.f32 0.0009, %v7675_v61  ;;  %v7676_v54 = vadd.f32 %v7644_v41, %v7628_v30  ;;  %v7574_v43 = vpop.f32.mrb[1].mxu0  ;;  %v7647_v18 = vsub.f32 %v11557_v1, %v17847_v47  ;;  %v7772_v13 = vmul.f32 %v12263_v55, %v17938_v53 }
 0xe81   : > { %v18000_v27 = vadd.f32 0.0009, %v7673_v8  ;;  %v7674_v39 = vadd.f32 %v7642_v25, %v7626_v4  ;;  %v7645_v2 = vsub.f32 %v7574_v43, %v17853_v31  ;;  %v11558_v6 = vpop.f32.mrb[2].mxu0  ;;  %v12265_v30 = vpop.eup %12264 }
 0xe82   : > { %12274 = vrcp.f32 %v17998_v15  ;;  %v18006_v12 = vadd.f32 0.0009, %v7676_v54  ;;  %v7648_v52 = vsub.f32 %v11558_v6, %v17861_v0  ;;  %v7577_v26 = vpop.f32.mrb[3].mxu0  ;;  %v7655_v4 = vmul.f32 2.0, %v7647_v18 }
 0xe83   : > { %12276 = vrcp.f32 %v18000_v27  ;;  %v18010_v40 = vadd.f32 0.0009, %v7674_v39  ;;  %v7653_v57 = vmul.f32 2.0, %v7645_v2  ;;  %v18012_v47 = vpop.f32.mrb[240].mxu1  ;;  %v7780_v31 = vsub.f32 2.0, %v7772_v13 }
 0xe84   : > { %v7770_v48 = vmul.f32 %v12265_v30, %v17949_v23  ;;  %12278 = vrcp.f32 %v18006_v12  ;;  %v7656_v53 = vmul.f32 2.0, %v7648_v52  ;;  %v11567_v61 = vpop.f32.mrb[241].mxu1  ;;  %v7646_v45 = vsub.f32 %v7577_v26, %v17869_v35  ;;  %v12267_v23 = vpop.eup %12266 }
 0xe85   : > { %12280 = vrcp.f32 %v18010_v40  ;;  %v7985_v8 = vpop.f32.mrb[242].mxu1  ;;  %v7788_v25 = vmul.f32 %v12263_v55, %v7780_v31  ;;  %v7663_v54 = vadd.f32 0.0009, %v7655_v4  ;;  %v7781_v39 = vmul.f32 %v17913_v51, %v7773_v34  ;;  %v12269_v52 = vpop.eup %12268 }
 0xe86   : > { %v7778_v1 = vsub.f32 2.0, %v7770_v48  ;;  %v11568_v43 = vpop.f32.mrb[243].mxu1  ;;  %v7661_v18 = vadd.f32 0.0009, %v7653_v57  ;;  %v7664_v2 = vadd.f32 0.0009, %v7656_v53  ;;  %v7695_v41 = vmul.f32 %v12267_v23, %v17964_v28  ;;  %v12271_v55 = vpop.eup %12270 }
 0xe87   : > { %v7654_v6 = vmul.f32 2.0, %v7646_v45  ;;  %v11561_v13 = vpop.f32.mrb[4].mxu0  ;;  %v18021_v61 = vmul.f32 %v7788_v25, %v7740_v46  ;;  %v7693_v4 = vmul.f32 %v12269_v52, %v17966_v44  ;;  %v18028_v34 = vmul.f32 %v7781_v39, %v17903_v21  ;;  %v12273_v48 = vpop.eup %12272 }
 0xe88   : > { %v7786_v0 = vmul.f32 %v12265_v30, %v7778_v1  ;;  %v7651_v35 = vsub.f32 %v11561_v13, %v17882_v32  ;;  %v7590_v26 = vpop.f32.mrb[5].mxu0  ;;  %v19976_v57 = vsub.f32 2.0, %v17920_v49  ;;  %v7703_v28 = vsub.f32 2.0, %v7695_v41 }
 0xe89   : > { %v7649_v31 = vsub.f32 %v7590_v26, %v17891_v3  ;;  %v11562_v51 = vpop.f32.mrb[6].mxu0  ;;  %v7696_v32 = vmul.f32 %v12271_v55, %v17972_v9  ;;  %v7701_v44 = vsub.f32 2.0, %v7693_v4  ;;  %v7694_v3 = vmul.f32 %v12273_v48, %v17974_v20 }
 0xe8a   : > { %v7783_v46 = vmul.f32 %v17886_v62, %v19976_v57  ;;  %v18034_v30 = vmul.f32 %v7786_v0, %v17983_v5  ;;  %v7659_v53 = vmul.f32 2.0, %v7651_v35  ;;  %v7593_v45 = vpop.f32.mrb[7].mxu0  ;;  %v7662_v8 = vadd.f32 0.0009, %v7654_v6 }
 0xe8b   : > { %v7652_v21 = vsub.f32 %v11562_v51, %v17899_v33  ;;  %v8022_v25 = vpop.f32.mrb[244].mxu1  ;;  %v7704_v49 = vsub.f32 2.0, %v7696_v32  ;;  %v7711_v43 = vmul.f32 %v12267_v23, %v7703_v28  ;;  %v7657_v62 = vmul.f32 2.0, %v7649_v31 }
 0xe8c   : > { %v12275_v1 = vpop.eup %12274  ;;  %v7650_v39 = vsub.f32 %v7593_v45, %v17924_v37  ;;  %v11573_v5 = vpop.f32.mrb[245].mxu1  ;;  %v7702_v41 = vsub.f32 2.0, %v7694_v3  ;;  %v7709_v13 = vmul.f32 %v12269_v52, %v7701_v44  ;;  %v7667_v35 = vadd.f32 0.0009, %v7659_v53 }
 0xe8d   : > { %v12277_v0 = vpop.eup %12276  ;;  %v7699_v9 = vmul.f32 %v12275_v1, %v17998_v15  ;;  %v8025_v26 = vpop.f32.mrb[246].mxu1  ;;  %v18042_v6 = vmul.f32 %v7711_v43, %v7663_v54  ;;  %v7712_v33 = vmul.f32 %v12271_v55, %v7704_v49  ;;  %v7660_v51 = vmul.f32 2.0, %v7652_v21 }
 0xe8e   : > { %v12279_v4 = vpop.eup %12278  ;;  %v7697_v20 = vmul.f32 %v12277_v0, %v18000_v27  ;;  %v11574_v57 = vpop.f32.mrb[247].mxu1  ;;  %v18045_v28 = vmul.f32 %v7709_v13, %v7661_v18  ;;  %v7710_v32 = vmul.f32 %v12273_v48, %v7702_v41  ;;  %v7665_v44 = vadd.f32 0.0009, %v7657_v62 }
 0xe8f   : > { %19977 = vst [vmem:[#allocation215_spill] sm:$0xff] %v18042_v6  ;;  %v12281_v23 = vpop.eup %12280  ;;  %v7707_v31 = vsub.f32 2.0, %v7699_v9  ;;  %v7700_v37 = vmul.f32 %v12279_v4, %v18006_v12  ;;  %v8062_v45 = vpop.f32.mrb[8].mxu0  ;;  %v18048_v53 = vmul.f32 %v7712_v33, %v7664_v2  ;;  %v7658_v21 = vmul.f32 2.0, %v7650_v39 }
 0xe90   : > { %v7705_v15 = vsub.f32 2.0, %v7697_v20  ;;  %v7698_v52 = vmul.f32 %v12281_v23, %v18010_v40  ;;  %v11579_v27 = vpop.f32.mrb[9].mxu0  ;;  %v18050_v3 = vmul.f32 %v7710_v32, %v7662_v8  ;;  %v8108_v12 = vpack.c.bf16 %v8022_v25, %v18012_v47 }
 0xe91   : > { %v7708_v54 = vsub.f32 2.0, %v7700_v37  ;;  %v7715_v55 = vmul.f32 %v12275_v1, %v7707_v31  ;;  %v8065_v49 = vpop.f32.mrb[10].mxu0  ;;  %v7791_v48 = vmul.f32 %v7783_v46, %v17901_v50  ;;  %v7668_v40 = vadd.f32 0.0009, %v7660_v51 }
 0xe92   : > { %v7706_v43 = vsub.f32 2.0, %v7698_v52  ;;  %v7713_v5 = vmul.f32 %v12277_v0, %v7705_v15  ;;  %v11580_v18 = vpop.f32.mrb[11].mxu0  ;;  %v19979_v62 = vsub.f32 2.0, %v17989_v42  ;;  %v7666_v1 = vadd.f32 0.0009, %v7658_v21  ;;  %8167 = vrot.lane.b32.xlu0 %v8108_v12, %s12801_s20  ;;  %11589 = vmatprep.mubr.msk.bf16.mxu0 %vm6904_vm6, %v8108_v12 }
 0xe93   : > { %v18054_v41 = vmul.f32 %v7715_v55, %v7667_v35  ;;  %v7716_v2 = vmul.f32 %v12279_v4, %v7708_v54  ;;  %v8102_v9 = vpop.f32.mrb[248].mxu1  ;;  %v7737_v50 = vadd.f32 0.0001, %v17962_v22  ;;  %v19982_v35 = vsub.f32 2.0, %v17995_v29 }
 0xe94   : > { %v7787_v8 = vmul.f32 %v17969_v63, %v19979_v62  ;;  %v18059_v13 = vmul.f32 %v7713_v5, %v7665_v44  ;;  %v7714_v39 = vmul.f32 %v12281_v23, %v7706_v43  ;;  %v8109_v47 = vpack.c.bf16 %v8102_v9, %v8062_v45  ;;  %v11585_v25 = vpop.f32.mrb[249].mxu1 }
 0xe95   : > { %19978 = vst [vmem:[#allocation212_spill] sm:$0xff] %v18054_v41  ;;  %v18064_v46 = vmul.f32 %v7716_v2, %v7668_v40  ;;  %v8105_v0 = vpop.f32.mrb[250].mxu1  ;;  %v7785_v42 = vmul.f32 %v17977_v24, %v19982_v35  ;;  %v18077_v20 = vmul.f32 %v7791_v48, %v18042_v6  ;;  %v18081_v29 = vmul.f32 %v18028_v34, %v18045_v28 }
 0xe96   : > { %19980 = vst [vmem:[#allocation207_spill] sm:$0xff] %v18059_v13  ;;  %v7795_v63 = vmul.f32 %v7787_v8, %v17979_v60  ;;  %v18070_v26 = vmul.f32 %v7714_v39, %v7666_v1  ;;  %8169 = vrot.lane.b32.xlu1 %v8109_v47, %s12801_s20  ;;  %v11586_v4 = vpop.f32.mrb[251].mxu1  ;;  %11590 = vmatmul.mubr.msk.bf16.vlgmr.msra.gmra.mrb[12].mxu0 %vm6904_vm6, %v8109_v47 }
 0xe97   : > { %19981 = vst [vmem:[#allocation38_spill] sm:$0xff] %v18064_v46  ;;  %11601 = vmatprep.mubr.msk.bf16.mxu0 %vm12799_vm4, %v19846_v10  ;;  %v7793_v22 = vmul.f32 %v7785_v42, %v7737_v50  ;;  %v18085_v24 = vmul.f32 %v17936_v7, %v18048_v53  ;;  %v18089_v60 = vmul.f32 %v17944_v17, %v18050_v3 }
 0xe98   : > { %v18092_v33 = vmul.f32 %v7795_v63, %v18054_v41  ;;  %v18099_v57 = vmul.f32 %v18021_v61, %v18064_v46  ;;  %v18103_v34 = vmul.f32 %v18034_v30, %v18070_v26 }
 0xe99   : > { %v18095_v51 = vmul.f32 %v7793_v22, %v18059_v13 }
 0xf04   : > { %v8168_v7 = vpop.permute.xlu0 %8167 }
 0xf05   : > { %11595 = vmatprep.mubr.msk.bf16.mxu1 %vm6904_vm6, %v8168_v7 }
 0xf08   : > { %v8170_v23 = vpop.permute.xlu1 %8169 }
 0xf09   : > { %11596 = vmatmul.mubr.msk.bf16.vlgmr.msra.gmra.mrb[252].mxu1 %vm6904_vm6, %v8170_v23  ;;  %v8226_v23 = vld [vmem:[#allocation21] sm:$0xff] }
 0xf0a   : > { %11607 = vmatprep.mubr.msk.bf16.mxu1 %vm12799_vm4, %v19846_v10 }
 0xf69   : > { %v11591_v17 = vpop.f32.mrb[12].mxu0 }
 0xf6a   : > { %v8150_v31 = vpop.f32.mrb[13].mxu0 }
 0xf6b   : > { %v11592_v37 = vpop.f32.mrb[14].mxu0 }
 0xf6c   : > { %v8153_v32 = vpop.f32.mrb[15].mxu0 }
 0xfdc   : > { %v11597_v45 = vpop.f32.mrb[252].mxu1 }
 0xfdd   : > { %v8257_v61 = vmul.f32 %v11597_v45, %v11591_v17  ;;  %v8211_v15 = vpop.f32.mrb[253].mxu1 }
 0xfde   : > { %v8255_v52 = vmul.f32 %v8211_v15, %v8150_v31  ;;  %8234 = vrot.lane.b32.xlu0 %v8211_v15, %s12803_s27  ;;  %v11598_v30 = vpop.f32.mrb[254].mxu1 }
 0xfdf   : > { %v8258_v44 = vmul.f32 %v11598_v30, %v11592_v37  ;;  %v8214_v27 = vpop.f32.mrb[255].mxu1 }
 0xfe0   : > { %v8256_v54 = vmul.f32 %v8214_v27, %v8153_v32  ;;  %8236 = vrot.lane.b32.xlu1 %v8214_v27, %s12803_s27 }
 0xfe1   : > { %v12033_v55 = vpack.i.bf16 %v8258_v44, %v8257_v61  ;;  %v8227_v44 = vpack.c.bf16 %v8226_v23, %v8226_v23 }
 0xfe2   : > { %v12023_v21 = vpack.i.bf16 %v8256_v54, %v8255_v52  ;;  %8238 = vrot.lane.b32.xlu0 %v11597_v45, %s12803_s27 }
 0xfe4   : > { %8240 = vrot.lane.b32.xlu1 %v11598_v30, %s12803_s27 }
 0xfe8   : > { %12024 = vrot.lane.b32.xlu1 %v12023_v21, %s12796_s6 }
 0xfec   : > { %12034 = vrot.lane.b32.xlu1 %v12033_v55, %s12796_s6  ;;  %s12804_s6 = smov 120  }
0x1050   : > { %v8235_v49 = vpop.permute.xlu0 %8234 }
0x1051   : > { %v18116_v43 = vsel %vm8246_vm7, %v8150_v31, %v8235_v49 }
0x1052   : > { %v8237_v5 = vpop.permute.xlu1 %8236  ;;  %v8251_v18 = vmul.f32 %v18116_v43, %v18116_v43 }
0x1053   : > { %v18119_v12 = vsel %vm8246_vm7, %v8153_v32, %v8237_v5 }
0x1054   : > { %v8252_v48 = vmul.f32 %v18119_v12, %v18119_v12  ;;  %v8239_v40 = vpop.permute.xlu0 %8238 }
0x1055   : > { %v18126_v2 = vsel %vm8246_vm7, %v11591_v17, %v8239_v40 }
0x1056   : > { %v12018_v9 = vpack.i.bf16 %v8252_v48, %v8251_v18  ;;  %v8241_v62 = vpop.permute.xlu1 %8240  ;;  %v8253_v1 = vmul.f32 %v18126_v2, %v18126_v2 }
0x1057   : > { %v18129_v8 = vsel %vm8246_vm7, %v11592_v37, %v8241_v62  ;;  %v8228_v62 = vld [vmem:[#allocation22] sm:$0xff] }
0x1058   : > { %v8254_v39 = vmul.f32 %v18129_v8, %v18129_v8  ;;  %12019 = vrot.lane.b32.xlu0 %v12018_v9, %s12800_s13 }
0x105a   : > { %v12028_v47 = vpack.i.bf16 %v8254_v39, %v8253_v1  ;;  %v12025_v25 = vpop.permute.xlu1 %12024  ;;  %v8229_v1 = vpack.c.bf16 %v8228_v62, %v8228_v62 }
0x105b   : > { %v12027_v42 = vunpack.i.h.bf16 %v12025_v25  ;;  %v12026_v63 = vunpack.i.l.bf16 %v12025_v25 }
0x105c   : > { %12029 = vrot.lane.b32.xlu0 %v12028_v47, %s12800_s13  ;;  %v8488_v39 = vsel %vm8306_vm8, %v8229_v1, 0 }
0x105e   : > { %v12035_v4 = vpop.permute.xlu1 %12034 }
0x105f   : > { %v12037_v52 = vunpack.i.h.bf16 %v12035_v4  ;;  %v12036_v30 = vunpack.i.l.bf16 %v12035_v4 }
0x10ca   : > { %v12020_v50 = vpop.permute.xlu0 %12019 }
0x10cb   : > { %v12022_v0 = vunpack.i.h.bf16 %v12020_v50  ;;  %v12021_v35 = vunpack.i.l.bf16 %v12020_v50 }
0x10cd   : > { %v8291_v22 = vsel %vm6904_vm6, %v18116_v43, %v12021_v35  ;;  %v8292_v7 = vsel %vm6904_vm6, %v18119_v12, %v12022_v0 }
0x10ce   : > { %v12030_v17 = vpop.permute.xlu0 %12029  ;;  %v8295_v31 = vsel %vm4859_vm3, %v8291_v22, %v12026_v63  ;;  %v8296_v37 = vsel %vm4859_vm3, %v8292_v7, %v12027_v42 }
0x10cf   : > { %v12032_v32 = vunpack.i.h.bf16 %v12030_v17  ;;  %v12031_v45 = vunpack.i.l.bf16 %v12030_v17  ;;  %v8299_v61 = vpack.c.bf16 %v8295_v31, %v8295_v31  ;;  %v8300_v15 = vpack.c.bf16 %v8296_v37, %v8296_v37 }
0x10d1   : > { %v8308_v27 = vsel %vm8306_vm8, %v8299_v61, 0  ;;  %v8351_v54 = vsel %vm8306_vm8, %v8300_v15, 0  ;;  %v8293_v55 = vsel %vm6904_vm6, %v18126_v2, %v12031_v45  ;;  %v8294_v21 = vsel %vm6904_vm6, %v18129_v8, %v12032_v32 }
0x10d2   : > { %11600 = vmatpush3.bf16.msra.mxu0 %v8308_v27  ;;  %11606 = vmatpush3.bf16.msra.mxu1 %v8351_v54  ;;  %v8297_v49 = vsel %vm4859_vm3, %v8293_v55, %v12036_v30  ;;  %v8298_v5 = vsel %vm4859_vm3, %v8294_v21, %v12037_v52  ;;  %v8971_v21 = vpack.c.bf16 %v18116_v43, %v18116_v43  ;;  %v8967_v43 = vld [vmem:[%s19983_s24] sm:$0xff]  ;;  %vm9935_vm3 = vcmask 7168   ;;  %s20084_s24 = sld [smem:[#allocation232_spill]] }
0x10d3   : > { %11611 = vmatprep.subr.bf16.mxu0 %v19846_v10  ;;  %11617 = vmatprep.subr.bf16.mxu1 %v19846_v10  ;;  %v8301_v18 = vpack.c.bf16 %v8297_v49, %v8297_v49  ;;  %v8302_v48 = vpack.c.bf16 %v8298_v5, %v8298_v5  ;;  %v8972_v49 = vpack.c.bf16 %v18119_v12, %v18119_v12 }
0x10d4   : > { %v8973_v12 = vpack.c.bf16 %v18126_v2, %v18126_v2  ;;  %v8968_v62 = vpack.c.bf16 %v8967_v43, %v8967_v43 }
0x10d5   : > { %11602 = vmatmul.mubr.msk.bf16.vlgmr.msra.gmra.mrb[16].mxu0 %vm8246_vm7, %v8227_v44  ;;  %11608 = vmatmul.mubr.msk.bf16.vlgmr.msra.gmra.mrb[0].mxu1 %vm8246_vm7, %v8227_v44  ;;  %v8394_v40 = vsel %vm8306_vm8, %v8301_v18, 0  ;;  %v8437_v9 = vsel %vm8306_vm8, %v8302_v48, 0  ;;  %v8979_v48 = vsel %vm8306_vm8, %v8971_v21, 0 }
0x10d6   : > { %11612 = vmatpush3.bf16.msra.mxu0 %v8394_v40  ;;  %11618 = vmatpush3.bf16.msra.mxu1 %v8437_v9  ;;  %v9022_v40 = vsel %vm8306_vm8, %v8972_v49, 0  ;;  %v8974_v9 = vpack.c.bf16 %v18129_v8, %v18129_v8 }
0x10d7   : > { %11613 = vmatprep.mubr.msk.bf16.mxu0 %vm12799_vm4, %v19846_v10  ;;  %11619 = vmatprep.mubr.msk.bf16.mxu1 %vm12799_vm4, %v19846_v10 }
0x10d8   : > { %11743 = vmatprep.subr.msk.bf16.mxu0 %vm8306_vm8, %v8229_v1  ;;  %11744 = vmatprep.subr.msk.bf16.mxu1 %vm8306_vm8, %v8229_v1 }
0x10dd   : > { %11614 = vmatmul.mubr.msk.bf16.vlgmr.msra.gmra.mrb[20].mxu0 %vm8246_vm7, %v8227_v44  ;;  %11620 = vmatmul.mubr.msk.bf16.vlgmr.msra.gmra.mrb[4].mxu1 %vm8246_vm7, %v8227_v44 }
0x10de   : > { %11624 = vmatpush3.bf16.msra.mxu0 %v8488_v39  ;;  %11630 = vmatpush3.bf16.msra.mxu1 %v8488_v39 }
0x10df   : > { %11745 = vmatprep.subr.msk.bf16.mxu0 %vm8306_vm8, %v8229_v1  ;;  %11746 = vmatprep.subr.msk.bf16.mxu1 %vm8306_vm8, %v8229_v1 }
0x11a8   : > { %v8344_v47 = vpop.f32.mrb[16].mxu0  ;;  %v8387_v25 = vpop.f32.mrb[0].mxu1 }
0x11a9   : > { %v8479_v50 = vpack.c.bf16 %v8387_v25, %v8344_v47  ;;  %v11603_v0 = vpop.f32.mrb[17].mxu0  ;;  %v11609_v35 = vpop.f32.mrb[1].mxu1 }
0x11aa   : > { %v8347_v42 = vpop.f32.mrb[18].mxu0  ;;  %v8390_v63 = vpop.f32.mrb[2].mxu1 }
0x11ab   : > { %v11604_v4 = vpop.f32.mrb[19].mxu0  ;;  %v11610_v22 = vpop.f32.mrb[3].mxu1  ;;  %8600 = vrot.lane.b32.xlu1 %v8479_v50, %s12801_s20  ;;  %8541 = vrot.lane.b32.xlu0 %v8479_v50, %s12804_s6 }
0x11ac   : > { %11625 = vmatprep.mubr.msk.bf16.mxu0 %vm8246_vm7, %v8479_v50 }
0x11b0   : > { %v8430_v7 = vpop.f32.mrb[20].mxu0  ;;  %v8473_v23 = vpop.f32.mrb[4].mxu1 }
0x11b1   : > { %v8480_v17 = vpack.c.bf16 %v8473_v23, %v8430_v7  ;;  %v11615_v31 = vpop.f32.mrb[21].mxu0  ;;  %v11621_v37 = vpop.f32.mrb[5].mxu1 }
0x11b2   : > { %v8476_v32 = vpop.f32.mrb[6].mxu1  ;;  %v8433_v45 = vpop.f32.mrb[22].mxu0 }
0x11b3   : > { %8602 = vrot.lane.b32.xlu1 %v8480_v17, %s12801_s20  ;;  %8543 = vrot.lane.b32.xlu0 %v8480_v17, %s12804_s6  ;;  %v11616_v61 = vpop.f32.mrb[23].mxu0  ;;  %v11622_v15 = vpop.f32.mrb[7].mxu1 }
0x11b4   : > { %11626 = vmatmul.mubr.msk.bf16.vlgmr.msra.gmra.mrb[24].mxu0 %vm8246_vm7, %v8480_v17 }
0x11b5   : > { %11636 = vmatpush3.bf16.msra.mxu0 %v8488_v39 }
0x11b6   : > { %11747 = vmatprep.subr.msk.bf16.mxu0 %vm8306_vm8, %v8229_v1  ;;  %v9065_v1 = vsel %vm8306_vm8, %v8973_v12, 0 }
0x11b7   : > { %8718 = vrot.lane.b32.xlu1 %v8479_v50, %s12797_s8  ;;  %8659 = vrot.lane.b32.xlu0 %v8479_v50, %s12805_s1  ;;  %v8969_v50 = vld [vmem:[%s19984_s10] sm:$0xff] }
0x11b8   : > { %v8970_v0 = vpack.c.bf16 %v8969_v50, %v8969_v50 }
0x11ba   : > { %v9159_v35 = vsel %vm8306_vm8, %v8970_v0, 0 }
0x11bb   : > { %8720 = vrot.lane.b32.xlu1 %v8480_v17, %s12797_s8  ;;  %8661 = vrot.lane.b32.xlu0 %v8480_v17, %s12805_s1  ;;  %s12807_s1 = smov 124   ;;  %s12808_s8 = smov 116  }
0x121d   : > { %v8601_v52 = vpop.permute.xlu1 %8600  ;;  %v8542_v30 = vpop.permute.xlu0 %8541 }
0x121e   : > { %11631 = vmatprep.mubr.msk.bf16.mxu1 %vm8246_vm7, %v8542_v30  ;;  %11637 = vmatprep.mubr.msk.bf16.mxu0 %vm8246_vm7, %v8601_v52 }
0x1225   : > { %v8603_v44 = vpop.permute.xlu1 %8602  ;;  %v8544_v27 = vpop.permute.xlu0 %8543 }
0x1226   : > { %11632 = vmatmul.mubr.msk.bf16.vlgmr.msra.gmra.mrb[8].mxu1 %vm8246_vm7, %v8544_v27  ;;  %11638 = vmatmul.mubr.msk.bf16.vlgmr.msra.gmra.mrb[28].mxu0 %vm8246_vm7, %v8603_v44 }
0x1227   : > { %11642 = vmatpush3.bf16.msra.mxu1 %v8488_v39  ;;  %11648 = vmatpush3.bf16.msra.mxu0 %v8488_v39  ;;  %v9108_v39 = vsel %vm8306_vm8, %v8974_v9, 0 }
0x1228   : > { %11653 = vmatprep.subr.bf16.mxu1 %v19846_v10  ;;  %11659 = vmatprep.subr.bf16.mxu0 %v19846_v10 }
0x1229   : > { %v8719_v54 = vpop.permute.xlu1 %8718  ;;  %v8660_v55 = vpop.permute.xlu0 %8659 }
0x122a   : > { %11643 = vmatprep.mubr.msk.bf16.mxu1 %vm8246_vm7, %v8660_v55  ;;  %11649 = vmatprep.mubr.msk.bf16.mxu0 %vm8246_vm7, %v8719_v54 }
0x122d   : > { %v8721_v5 = vpop.permute.xlu1 %8720  ;;  %v8662_v18 = vpop.permute.xlu0 %8661 }
0x122e   : > { %11644 = vmatmul.mubr.msk.bf16.vlgmr.msra.gmra.mrb[12].mxu1 %vm8246_vm7, %v8662_v18  ;;  %11650 = vmatmul.mubr.msk.bf16.vlgmr.msra.gmra.mrb[32].mxu0 %vm8246_vm7, %v8721_v5 }
0x122f   : > { %11654 = vmatpush3.bf16.msra.mxu1 %v8979_v48  ;;  %11660 = vmatpush3.bf16.msra.mxu0 %v9022_v40 }
0x1230   : > { %11655 = vmatprep.mubr.msk.bf16.mxu1 %vm12799_vm4, %v19846_v10  ;;  %11661 = vmatprep.mubr.msk.bf16.mxu0 %vm12799_vm4, %v19846_v10 }
0x1231   : > { %11665 = vmatprep.subr.bf16.mxu1 %v19846_v10  ;;  %11671 = vmatprep.subr.bf16.mxu0 %v19846_v10 }
0x1236   : > { %11656 = vmatmul.mubr.msk.bf16.vlgmr.msra.gmra.mrb[16].mxu1 %vm8246_vm7, %v8968_v62  ;;  %11662 = vmatmul.mubr.msk.bf16.vlgmr.msra.gmra.mrb[36].mxu0 %vm8246_vm7, %v8968_v62 }
0x1237   : > { %11666 = vmatpush3.bf16.msra.mxu1 %v9065_v1  ;;  %11672 = vmatpush3.bf16.msra.mxu0 %v9108_v39 }
0x1238   : > { %11667 = vmatprep.mubr.msk.bf16.mxu1 %vm12799_vm4, %v19846_v10  ;;  %11673 = vmatprep.mubr.msk.bf16.mxu0 %vm12799_vm4, %v19846_v10 }
0x1239   : > { %11748 = vmatprep.subr.msk.bf16.mxu1 %vm8306_vm8, %v8970_v0  ;;  %11749 = vmatprep.subr.msk.bf16.mxu0 %vm8306_vm8, %v8970_v0  ;;  %vm10090_vm8 = vcmask 48128  }
0x123e   : > { %11668 = vmatmul.mubr.msk.bf16.vlgmr.msra.gmra.mrb[20].mxu1 %vm8246_vm7, %v8968_v62  ;;  %11674 = vmatmul.mubr.msk.bf16.vlgmr.msra.gmra.mrb[40].mxu0 %vm8246_vm7, %v8968_v62 }
0x123f   : > { %11678 = vmatpush3.bf16.msra.mxu1 %v9159_v35  ;;  %11684 = vmatpush3.bf16.msra.mxu0 %v9159_v35 }
0x1240   : > { %11689 = vmatprep.subr.bf16.mxu1 %v19846_v10  ;;  %11695 = vmatprep.subr.bf16.mxu0 %v19846_v10 }
0x1287   : > { %v11627_v2 = vpop.f32.mrb[24].mxu0 }
0x1288   : > { %v8524_v8 = vpop.f32.mrb[25].mxu0  ;;  %v8783_v42 = vmul.f32 %v11627_v2, %v11627_v2 }
0x1289   : > { %v11628_v47 = vpop.f32.mrb[26].mxu0  ;;  %v8781_v63 = vmul.f32 %v8524_v8, %v8524_v8 }
0x128a   : > { %v8527_v25 = vpop.f32.mrb[27].mxu0  ;;  %v8784_v32 = vmul.f32 %v11628_v47, %v11628_v47 }
0x128b   : > { %v8782_v48 = vmul.f32 %v8527_v25, %v8527_v25 }
0x12f9   : > { %v11633_v4 = vpop.f32.mrb[8].mxu1  ;;  %v11639_v22 = vpop.f32.mrb[28].mxu0 }
0x12fa   : > { %v18224_v7 = vmul.f32 %v11633_v4, %v11627_v2  ;;  %v8791_v23 = vmul.f32 %v11633_v4, %v11633_v4  ;;  %v8787_v17 = vsub.f32 %v11639_v22, %v8783_v42  ;;  %v8585_v31 = vpop.f32.mrb[9].mxu1  ;;  %v8644_v37 = vpop.f32.mrb[29].mxu0 }
0x12fb   : > { %v18226_v45 = vmul.f32 %v8585_v31, %v8524_v8  ;;  %v8789_v61 = vmul.f32 %v8585_v31, %v8585_v31  ;;  %v8785_v15 = vsub.f32 %v8644_v37, %v8781_v63  ;;  %v11634_v52 = vpop.f32.mrb[10].mxu1  ;;  %v11640_v30 = vpop.f32.mrb[30].mxu0 }
0x12fc   : > { %v8847_v44 = vadd.f32 %v8791_v23, %v8783_v42  ;;  %v18228_v27 = vmul.f32 %v11634_v52, %v11628_v47  ;;  %v8792_v54 = vmul.f32 %v11634_v52, %v11634_v52  ;;  %v8588_v55 = vpop.f32.mrb[11].mxu1  ;;  %v8647_v21 = vpop.f32.mrb[31].mxu0  ;;  %v8788_v5 = vsub.f32 %v11640_v30, %v8784_v32 }
0x12fd   : > { %v8845_v49 = vadd.f32 %v8789_v61, %v8781_v63  ;;  %v18230_v18 = vmul.f32 %v8588_v55, %v8527_v25  ;;  %v8790_v9 = vmul.f32 %v8588_v55, %v8588_v55  ;;  %v8786_v1 = vsub.f32 %v8647_v21, %v8782_v48 }
0x12fe   : > { %v8851_v40 = vadd.f32 0.0001, %v8847_v44  ;;  %v8848_v43 = vadd.f32 %v8792_v54, %v8784_v32 }
0x12ff   : > { %v8849_v12 = vadd.f32 0.0001, %v8845_v49  ;;  %v8846_v39 = vadd.f32 %v8790_v9, %v8782_v48  ;;  %v8838_v32 = vmul.f32 2.0, %v18230_v18 }
0x1300   : > { %12282 = vrcp.f32 %v8851_v40  ;;  %v8852_v62 = vadd.f32 0.0001, %v8848_v43 }
0x1301   : > { %12284 = vrcp.f32 %v8849_v12  ;;  %v11645_v2 = vpop.f32.mrb[12].mxu1  ;;  %v18232_v8 = vpop.f32.mrb[32].mxu0  ;;  %v8850_v25 = vadd.f32 0.0001, %v8846_v39 }
0x1302   : > { %12286 = vrcp.f32 %v8852_v62  ;;  %v8795_v47 = vsub.f32 %v11645_v2, %v8791_v23  ;;  %v8703_v0 = vpop.f32.mrb[13].mxu1  ;;  %v18236_v35 = vpop.f32.mrb[33].mxu0 }
0x1303   : > { %v8793_v42 = vsub.f32 %v8703_v0, %v8789_v61  ;;  %v11646_v4 = vpop.f32.mrb[14].mxu1  ;;  %v18240_v22 = vpop.f32.mrb[34].mxu0  ;;  %12288 = vrcp.f32 %v8850_v25 }
0x1304   : > { %v8811_v31 = vadd.f32 %v8795_v47, %v8787_v17  ;;  %v8796_v37 = vsub.f32 %v11646_v4, %v8792_v54  ;;  %v8706_v23 = vpop.f32.mrb[15].mxu1  ;;  %v18244_v52 = vpop.f32.mrb[35].mxu0 }
0x1305   : > { %v8809_v30 = vadd.f32 %v8793_v42, %v8785_v15  ;;  %v8794_v44 = vsub.f32 %v8706_v23, %v8790_v9 }
0x1306   : > { %v8815_v55 = vadd.f32 0.0009, %v8811_v31  ;;  %v8812_v21 = vadd.f32 %v8796_v37, %v8788_v5  ;;  %v8837_v37 = vmul.f32 2.0, %v18226_v45 }
0x1307   : > { %v8813_v61 = vadd.f32 0.0009, %v8809_v30  ;;  %v8810_v49 = vadd.f32 %v8794_v44, %v8786_v1  ;;  %v8839_v1 = vmul.f32 2.0, %v18224_v7 }
0x1308   : > { %12290 = vrcp.f32 %v8815_v55  ;;  %v18248_v43 = vadd.f32 0.0009, %v8812_v21 }
0x1309   : > { %12292 = vrcp.f32 %v8813_v61  ;;  %v18250_v17 = vadd.f32 0.0009, %v8810_v49  ;;  %v9015_v54 = vpop.f32.mrb[16].mxu1  ;;  %v9058_v39 = vpop.f32.mrb[36].mxu0  ;;  %v8840_v49 = vmul.f32 2.0, %v18228_v27 }
0x130a   : > { %v12283_v2 = vpop.eup %12282  ;;  %12294 = vrcp.f32 %v18248_v43  ;;  %v9150_v15 = vpack.c.bf16 %v9058_v39, %v9015_v54  ;;  %v11657_v9 = vpop.f32.mrb[17].mxu1 }
0x130b   : > { %v11663_v47 = vpop.f32.mrb[37].mxu0  ;;  %v12285_v5 = vpop.eup %12284  ;;  %v8859_v0 = vmul.f32 %v12283_v2, %v8851_v40  ;;  %12296 = vrcp.f32 %v18250_v17  ;;  %v8843_v9 = vadd.f32 0.0001, %v8839_v1 }
0x130c   : > { %v9018_v42 = vpop.f32.mrb[18].mxu1  ;;  %v9061_v4 = vpop.f32.mrb[38].mxu0  ;;  %v8857_v23 = vmul.f32 %v12285_v5, %v8849_v12  ;;  %9212 = vrot.lane.b32.xlu0 %v9150_v15, %s12804_s6  ;;  %11679 = vmatprep.mubr.msk.bf16.mxu1 %vm8246_vm7, %v9150_v15 }
0x130d   : > { %v12287_v31 = vpop.eup %12286  ;;  %v11658_v30 = vpop.f32.mrb[19].mxu1  ;;  %v8863_v21 = vsub.f32 2.0, %v8859_v0  ;;  %v8841_v4 = vadd.f32 0.0001, %v8837_v37 }
0x130e   : > { %v11664_v44 = vpop.f32.mrb[39].mxu0  ;;  %v8860_v54 = vmul.f32 %v12287_v31, %v8852_v62  ;;  %v8861_v39 = vsub.f32 2.0, %v8857_v23  ;;  %v12289_v40 = vpop.eup %12288 }
0x130f   : > { %v8867_v47 = vmul.f32 %v12283_v2, %v8863_v21  ;;  %v8858_v12 = vmul.f32 %v12289_v40, %v8850_v25  ;;  %v8844_v44 = vadd.f32 0.0001, %v8840_v49  ;;  %v8842_v49 = vadd.f32 0.0001, %v8838_v32 }
0x1310   : > { %v8864_v42 = vsub.f32 2.0, %v8860_v54  ;;  %v8865_v48 = vmul.f32 %v12285_v5, %v8861_v39  ;;  %v19985_v5 = vsub.f32 %v18232_v8, %v18224_v7  ;;  %v19987_v8 = vsub.f32 %v18240_v22, %v18228_v27 }
0x1311   : > { %v8871_v30 = vmul.f32 %v8867_v47, %v8843_v9  ;;  %v9101_v50 = vpop.f32.mrb[20].mxu1  ;;  %v9144_v41 = vpop.f32.mrb[40].mxu0  ;;  %v8862_v13 = vsub.f32 2.0, %v8858_v12 }
0x1312   : > { %v8868_v63 = vmul.f32 %v12287_v31, %v8864_v42  ;;  %v12291_v15 = vpop.eup %12290  ;;  %v8869_v0 = vmul.f32 %v8865_v48, %v8841_v4  ;;  %v9151_v46 = vpack.c.bf16 %v9144_v41, %v9101_v50  ;;  %v11669_v62 = vpop.f32.mrb[21].mxu1  ;;  %v8803_v37 = vmul.f32 2.0, %v19985_v5 }
0x1313   : > { %v11675_v23 = vpop.f32.mrb[41].mxu0  ;;  %v12293_v6 = vpop.eup %12292  ;;  %v8823_v2 = vmul.f32 %v12291_v15, %v8815_v55  ;;  %v8866_v31 = vmul.f32 %v12289_v40, %v8862_v13  ;;  %v19986_v48 = vsub.f32 %v18236_v35, %v18226_v45  ;;  %v8804_v32 = vmul.f32 2.0, %v19987_v8 }
0x1314   : > { %v8872_v1 = vmul.f32 %v8868_v63, %v8844_v44  ;;  %v9104_v21 = vpop.f32.mrb[22].mxu1  ;;  %v9147_v25 = vpop.f32.mrb[42].mxu0  ;;  %v8821_v39 = vmul.f32 %v12293_v6, %v8813_v61  ;;  %9214 = vrot.lane.b32.xlu1 %v9151_v46, %s12804_s6  ;;  %11680 = vmatmul.mubr.msk.bf16.vlgmr.msra.gmra.mrb[24].mxu1 %vm8246_vm7, %v9151_v46  ;;  %v19988_v61 = vsub.f32 %v18244_v52, %v18230_v18  ;;  %v8807_v46 = vadd.f32 0.0009, %v8803_v37 }
0x1315   : > { %v12295_v54 = vpop.eup %12294  ;;  %v8801_v9 = vmul.f32 2.0, %v19986_v48  ;;  %v11670_v41 = vpop.f32.mrb[23].mxu1  ;;  %v8827_v55 = vsub.f32 2.0, %v8823_v2  ;;  %11691 = vmatprep.mubr.msk.bf16.mxu1 %vm12799_vm4, %v19846_v10  ;;  %v8870_v13 = vmul.f32 %v8866_v31, %v8842_v49  ;;  %v8808_v27 = vadd.f32 0.0009, %v8804_v32 }
0x1316   : > { %v11676_v50 = vpop.f32.mrb[43].mxu0  ;;  %v12297_v63 = vpop.eup %12296  ;;  %v8824_v7 = vmul.f32 %v12295_v54, %v18248_v43  ;;  %v8825_v45 = vsub.f32 2.0, %v8821_v39  ;;  %v8802_v40 = vmul.f32 2.0, %v19988_v61 }
0x1317   : > { %v8822_v35 = vmul.f32 %v12297_v63, %v18250_v17  ;;  %v8831_v47 = vmul.f32 %v12291_v15, %v8827_v55  ;;  %v8805_v4 = vadd.f32 0.0009, %v8801_v9 }
0x1318   : > { %v8828_v42 = vsub.f32 2.0, %v8824_v7  ;;  %v8829_v43 = vmul.f32 %v12293_v6, %v8825_v45  ;;  %v8806_v23 = vadd.f32 0.0009, %v8802_v40 }
0x1319   : > { %v8826_v12 = vsub.f32 2.0, %v8822_v35  ;;  %v18278_v44 = vmul.f32 %v8831_v47, %v8807_v46 }
0x131a   : > { %v8832_v22 = vmul.f32 %v12295_v54, %v8828_v42  ;;  %v18280_v62 = vmul.f32 %v8829_v43, %v8805_v4 }
0x131b   : > { %v8830_v2 = vmul.f32 %v12297_v63, %v8826_v12  ;;  %v18287_v18 = vmul.f32 %v8871_v30, %v18278_v44 }
0x131c   : > { %v18282_v5 = vmul.f32 %v8832_v22, %v8808_v27  ;;  %v18290_v52 = vmul.f32 %v8869_v0, %v18280_v62 }
0x131d   : > { %v18284_v17 = vmul.f32 %v8830_v2, %v8806_v23 }
0x131e   : > { %v18293_v6 = vmul.f32 %v8872_v1, %v18282_v5 }
0x131f   : > { %v18296_v15 = vmul.f32 %v8870_v13, %v18284_v17 }
0x137e   : > { %v9213_v37 = vpop.permute.xlu0 %9212 }
0x137f   : > { %11685 = vmatprep.mubr.msk.bf16.mxu0 %vm8246_vm7, %v9213_v37 }
0x1386   : > { %v9215_v21 = vpop.permute.xlu1 %9214 }
0x1387   : > { %11686 = vmatmul.mubr.msk.bf16.vlgmr.msra.gmra.mrb[44].mxu0 %vm8246_vm7, %v9215_v21 }
0x1388   : > { %11697 = vmatprep.mubr.msk.bf16.mxu0 %vm12799_vm4, %v19846_v10 }
0x13e7   : > { %v11681_v30 = vpop.f32.mrb[24].mxu1 }
0x13e8   : > { %v9195_v25 = vpop.f32.mrb[25].mxu1 }
0x13e9   : > { %v11682_v54 = vpop.f32.mrb[26].mxu1 }
0x13ea   : > { %v9198_v0 = vpop.f32.mrb[27].mxu1 }
0x145a   : > { %v11687_v49 = vpop.f32.mrb[44].mxu0 }
0x145b   : > { %v9302_v31 = vmul.f32 %v11687_v49, %v11681_v30  ;;  %v9256_v1 = vpop.f32.mrb[45].mxu0 }
0x145c   : > { %v9300_v39 = vmul.f32 %v9256_v1, %v9195_v25  ;;  %9279 = vrot.lane.b32.xlu0 %v9256_v1, %s12806_s9  ;;  %v11688_v48 = vpop.f32.mrb[46].mxu0 }
0x145d   : > { %v9303_v9 = vmul.f32 %v11688_v48, %v11682_v54  ;;  %v9259_v41 = vpop.f32.mrb[47].mxu0 }
0x145e   : > { %v9301_v50 = vmul.f32 %v9259_v41, %v9198_v0  ;;  %9281 = vrot.lane.b32.xlu1 %v9259_v41, %s12806_s9 }
0x145f   : > { %v12053_v63 = vpack.i.bf16 %v9303_v9, %v9302_v31 }
0x1460   : > { %v12043_v55 = vpack.i.bf16 %v9301_v50, %v9300_v39  ;;  %9283 = vrot.lane.b32.xlu0 %v11687_v49, %s12806_s9 }
0x1462   : > { %9285 = vrot.lane.b32.xlu1 %v11688_v48, %s12806_s9 }
0x1466   : > { %12044 = vrot.lane.b32.xlu1 %v12043_v55, %s12800_s13 }
0x146a   : > { %12054 = vrot.lane.b32.xlu1 %v12053_v63, %s12800_s13 }
0x14ce   : > { %v9280_v7 = vpop.permute.xlu0 %9279 }
0x14cf   : > { %v9292_v8 = vsel %vm9291_vm9, %v9195_v25, %v9280_v7 }
0x14d0   : > { %v9282_v32 = vpop.permute.xlu1 %9281  ;;  %v9296_v45 = vmul.f32 %v9292_v8, %v9292_v8 }
0x14d1   : > { %v9293_v13 = vsel %vm9291_vm9, %v9198_v0, %v9282_v32 }
0x14d2   : > { %v9297_v35 = vmul.f32 %v9293_v13, %v9293_v13  ;;  %v9284_v61 = vpop.permute.xlu0 %9283 }
0x14d3   : > { %v9294_v40 = vsel %vm9291_vm9, %v11681_v30, %v9284_v61 }
0x14d4   : > { %v12038_v46 = vpack.i.bf16 %v9297_v35, %v9296_v45  ;;  %v9286_v47 = vpop.permute.xlu1 %9285  ;;  %v9298_v4 = vmul.f32 %v9294_v40, %v9294_v40 }
0x14d5   : > { %v9295_v42 = vsel %vm9291_vm9, %v11682_v54, %v9286_v47  ;;  %v9271_v54 = vld [vmem:[%s19989_s4] sm:$0xff] }
0x14d6   : > { %v9299_v43 = vmul.f32 %v9295_v42, %v9295_v42  ;;  %12039 = vrot.lane.b32.xlu0 %v12038_v46, %s12803_s27  ;;  %v9272_v55 = vpack.c.bf16 %v9271_v54, %v9271_v54 }
0x14d8   : > { %v12048_v12 = vpack.i.bf16 %v9299_v43, %v9298_v4  ;;  %v12045_v27 = vpop.permute.xlu1 %12044 }
0x14d9   : > { %v12047_v37 = vunpack.i.h.bf16 %v12045_v27  ;;  %v12046_v21 = vunpack.i.l.bf16 %v12045_v27 }
0x14da   : > { %12049 = vrot.lane.b32.xlu0 %v12048_v12, %s12803_s27 }
0x14dc   : > { %v12055_v25 = vpop.permute.xlu1 %12054 }
0x14dd   : > { %v12057_v50 = vunpack.i.h.bf16 %v12055_v25  ;;  %v12056_v63 = vunpack.i.l.bf16 %v12055_v25 }
0x1548   : > { %v12040_v22 = vpop.permute.xlu0 %12039 }
0x1549   : > { %v12042_v23 = vunpack.i.h.bf16 %v12040_v22  ;;  %v12041_v2 = vunpack.i.l.bf16 %v12040_v22 }
0x154b   : > { %v9336_v30 = vsel %vm8246_vm7, %v9292_v8, %v12041_v2  ;;  %v9337_v0 = vsel %vm8246_vm7, %v9293_v13, %v12042_v23 }
0x154c   : > { %v12050_v49 = vpop.permute.xlu0 %12049  ;;  %v9340_v31 = vsel %vm6904_vm6, %v9336_v30, %v12046_v21  ;;  %v9341_v1 = vsel %vm6904_vm6, %v9337_v0, %v12047_v37 }
0x154d   : > { %v12052_v39 = vunpack.i.h.bf16 %v12050_v49  ;;  %v12051_v48 = vunpack.i.l.bf16 %v12050_v49  ;;  %v9344_v9 = vpack.c.bf16 %v9340_v31, %v9340_v31  ;;  %v9345_v41 = vpack.c.bf16 %v9341_v1, %v9341_v1 }
0x154f   : > { %v9353_v7 = vsel %vm9351_vm10, %v9344_v9, 0  ;;  %v9396_v8 = vsel %vm9351_vm10, %v9345_v41, 0  ;;  %v9338_v32 = vsel %vm8246_vm7, %v9294_v40, %v12051_v48  ;;  %v9339_v13 = vsel %vm8246_vm7, %v9295_v42, %v12052_v39  ;;  %v9273_v42 = vld [vmem:[%s19990_s18] sm:$0xf]  ;;  %v19991_v41 = vld [vmem:[#allocation65_spill] sm:$0xff] }
0x1550   : > { %11690 = vmatpush3.bf16.msra.mxu1 %v9353_v7  ;;  %11696 = vmatpush3.bf16.msra.mxu0 %v9396_v8  ;;  %v9342_v45 = vsel %vm6904_vm6, %v9338_v32, %v12056_v63  ;;  %v9343_v35 = vsel %vm6904_vm6, %v9339_v13, %v12057_v50  ;;  %v9274_v4 = vpack.c.bf16 %v9273_v42, %v9273_v42  ;;  %v3985_v50 = vsel %vm3984_vm1, %v19991_v41, 0.0  ;;  %v19992_v63 = vld [vmem:[#allocation64_spill] sm:$0xff]  ;;  %v19993_v7 = vld [vmem:[#allocation67_spill] sm:$0xff]  ;;  %v19994_v32 = vld [vmem:[#allocation66_spill] sm:$0xff] }
0x1551   : > { %11701 = vmatprep.subr.bf16.mxu1 %v19846_v10  ;;  %11707 = vmatprep.subr.bf16.mxu0 %v19846_v10  ;;  %v9346_v61 = vpack.c.bf16 %v9342_v45, %v9342_v45  ;;  %v9347_v46 = vpack.c.bf16 %v9343_v35, %v9343_v35  ;;  %v3994_v8 = vsel %vm3984_vm1, %v19993_v7, 0.0  ;;  %v4000_v13 = vsel %vm3984_vm1, %v19994_v32, 0.0  ;;  %v19995_v45 = vld [vmem:[#allocation68_spill] sm:$0xff]  ;;  %v19998_v42 = vld [vmem:[#allocation129_spill] sm:$0xff] }
0x1552   : > { %v18340_v43 = vsel %vm9351_vm10, %v9274_v4, 0  ;;  %v3988_v35 = vsel %vm3984_vm1, %v19995_v45, 0.0  ;;  %vm10086_vm6 = vcmask 23552  }
0x1553   : > { %11692 = vmatmul.mubr.msk.bf16.vlgmr.msra.gmra.mrb[28].mxu1 %vm9291_vm9, %v9272_v55  ;;  %11698 = vmatmul.mubr.msk.bf16.vlgmr.msra.gmra.mrb[48].mxu0 %vm9291_vm9, %v9272_v55  ;;  %v9439_v40 = vsel %vm9351_vm10, %v9346_v61, 0  ;;  %v9482_v47 = vsel %vm9351_vm10, %v9347_v46, 0  ;;  %v19996_v61 = vld [vmem:[#allocation69_spill] sm:$0xff] }
0x1554   : > { %11702 = vmatpush3.bf16.msra.mxu1 %v9439_v40  ;;  %11708 = vmatpush3.bf16.msra.mxu0 %v9482_v47  ;;  %v3927_v40 = vsel %vm3919_vm2, %v19996_v61, 0.0 }
0x1555   : > { %11703 = vmatprep.mubr.msk.bf16.mxu1 %vm12799_vm4, %v19846_v10  ;;  %11709 = vmatprep.mubr.msk.bf16.mxu0 %vm12799_vm4, %v19846_v10  ;;  %v4006_v47 = vsel %vm3984_vm1, %v3927_v40, 0.0  ;;  %v20013_v40 = vld [vmem:[#allocation82_spill] sm:$0xff] }
0x1556   : > { %11750 = vmatprep.subr.msk.bf16.mxu1 %vm9351_vm10, %v9274_v4  ;;  %11751 = vmatprep.subr.msk.bf16.mxu0 %vm9351_vm10, %v9274_v4 }
0x155b   : > { %11704 = vmatmul.mubr.msk.bf16.vlgmr.msra.gmra.mrb[32].mxu1 %vm9291_vm9, %v9272_v55  ;;  %11710 = vmatmul.mubr.msk.bf16.vlgmr.msra.gmra.mrb[52].mxu0 %vm9291_vm9, %v9272_v55  ;;  %v3991_v55 = vsel %vm3984_vm1, %v19992_v63, 0.0 }
0x155c   : > { %11714 = vmatpush3.bf16.msra.mxu1 %v18340_v43  ;;  %11720 = vmatpush3.bf16.msra.mxu0 %v18340_v43 }
0x155d   : > { %11752 = vmatprep.subr.msk.bf16.mxu1 %vm9351_vm10, %v9274_v4  ;;  %11753 = vmatprep.subr.msk.bf16.mxu0 %vm9351_vm10, %v9274_v4 }
0x1626   : > { %v9389_v10 = vpop.f32.mrb[28].mxu1  ;;  %v9432_v12 = vpop.f32.mrb[48].mxu0 }
0x1627   : > { %v9524_v27 = vpack.c.bf16 %v9432_v12, %v9389_v10  ;;  %v11693_v22 = vpop.f32.mrb[29].mxu1  ;;  %v11699_v23 = vpop.f32.mrb[49].mxu0  ;;  %v19999_v10 = vld [vmem:[#allocation132_spill] sm:$0xff] }
0x1628   : > { %v9392_v2 = vpop.f32.mrb[30].mxu1  ;;  %v9435_v37 = vpop.f32.mrb[50].mxu0  ;;  %v4012_v12 = vsel %vm3984_vm1, %v19999_v10, 0.0  ;;  %v20001_v23 = vld [vmem:[#allocation70_spill] sm:$0xff] }
0x1629   : > { %9586 = vrot.lane.b32.xlu0 %v9524_v27, %s12807_s1  ;;  %v11700_v21 = vpop.f32.mrb[51].mxu0  ;;  %v11694_v25 = vpop.f32.mrb[31].mxu1  ;;  %11715 = vmatprep.mubr.msk.bf16.mxu1 %vm9291_vm9, %v9524_v27  ;;  %v4018_v2 = vsel %vm3984_vm1, %v20001_v23, 0.0  ;;  %v20002_v37 = vld [vmem:[#allocation73_spill] sm:$0xff] }
0x162a   : > { %v4009_v21 = vsel %vm3984_vm1, %v20002_v37, 0.0  ;;  %v20003_v25 = vld [vmem:[#allocation133_spill] sm:$0xff]  ;;  %v20018_v37 = vld [vmem:[#allocation88_spill] sm:$0xff] }
0x162d   : > { %9645 = vrot.lane.b32.xlu0 %v9524_v27, %s12804_s6 }
0x162e   : > { %v9475_v30 = vpop.f32.mrb[32].mxu1  ;;  %v9518_v0 = vpop.f32.mrb[52].mxu0 }
0x162f   : > { %v9525_v54 = vpack.c.bf16 %v9518_v0, %v9475_v30  ;;  %v11711_v49 = vpop.f32.mrb[53].mxu0  ;;  %v11705_v31 = vpop.f32.mrb[33].mxu1  ;;  %v4024_v30 = vsel %vm3984_vm1, %v20003_v25, 0.0  ;;  %v20004_v0 = vld [vmem:[#allocation136_spill] sm:$0xff]  ;;  %v20019_v25 = vld [vmem:[#allocation179_spill] sm:$0xff] }
0x1630   : > { %v9478_v1 = vpop.f32.mrb[34].mxu1  ;;  %v9521_v39 = vpop.f32.mrb[54].mxu0  ;;  %v20005_v49 = vld [vmem:[#allocation72_spill] sm:$0xff] }
0x1631   : > { %9647 = vrot.lane.b32.xlu0 %v9525_v54, %s12804_s6  ;;  %9588 = vrot.lane.b32.xlu1 %v9525_v54, %s12807_s1  ;;  %v11706_v48 = vpop.f32.mrb[35].mxu1  ;;  %v11712_v9 = vpop.f32.mrb[55].mxu0  ;;  %v3935_v31 = vsel %vm3919_vm2, %v20005_v49, 0.0  ;;  %v20006_v39 = vld [vmem:[#allocation148_spill] sm:$0xff] }
0x1632   : > { %11716 = vmatmul.mubr.msk.bf16.vlgmr.msra.gmra.mrb[36].mxu1 %vm9291_vm9, %v9525_v54  ;;  %v4030_v1 = vsel %vm3984_vm1, %v3935_v31, 0.0  ;;  %v4021_v48 = vsel %vm3984_vm1, %v20006_v39, 0.0  ;;  %v20007_v9 = vld [vmem:[#allocation75_spill] sm:$0xff]  ;;  %v20021_v49 = vld [vmem:[#allocation96_spill] sm:$0xff]  ;;  %v20024_v39 = vld [vmem:[#allocation106_spill] sm:$0xff] }
0x1633   : > { %11726 = vmatpush3.bf16.msra.mxu1 %v18340_v43  ;;  %v4036_v41 = vsel %vm3984_vm1, %v20007_v9, 0.0  ;;  %v20022_v31 = vld [vmem:[#allocation103_spill] sm:$0xff]  ;;  %v20025_v9 = vld [vmem:[#allocation89_spill] sm:$0xff] }
0x1634   : > { %11754 = vmatprep.subr.msk.bf16.mxu1 %vm9351_vm10, %v9274_v4  ;;  %v3997_v4 = vsel %vm3984_vm1, %v19998_v42, 0.0  ;;  %vm10092_vm10 = vcmask 56320  }
0x1635   : > { %9763 = vrot.lane.b32.xlu0 %v9524_v27, %s12801_s20  ;;  %9704 = vrot.lane.b32.xlu1 %v9524_v27, %s12808_s8  ;;  %v20000_v27 = vld [vmem:[#allocation71_spill] sm:$0xff] }
0x1636   : > { %v4003_v22 = vsel %vm3984_vm1, %v20000_v27, 0.0 }
0x1639   : > { %9706 = vrot.lane.b32.xlu1 %v9525_v54, %s12808_s8 }
0x163d   : > { %9765 = vrot.lane.b32.xlu1 %v9525_v54, %s12801_s20  ;;  %v4015_v54 = vsel %vm3984_vm1, %v20004_v0, 0.0  ;;  %v20020_v0 = vld [vmem:[#allocation92_spill] sm:$0xff]  ;;  %s12809_s20 = smov 9  }
0x1654   : > { %3986 = vadd.xlane.f32.xlu0 %v3985_v50  ;;  %v20008_v50 = vld [vmem:[#allocation78_spill] sm:$0xff] }
0x1655   : > { %v4027_v63 = vsel %vm3984_vm1, %v20008_v50, 0.0 }
0x1658   : > { %3992 = vadd.xlane.f32.xlu0 %v3991_v55  ;;  %v20009_v55 = vld [vmem:[#allocation76_spill] sm:$0xff] }
0x1659   : > { %v4042_v7 = vsel %vm3984_vm1, %v20009_v55, 0.0  ;;  %v20028_v55 = vld [vmem:[#allocation186_spill] sm:$0xff] }
0x165c   : > { %3995 = vadd.xlane.f32.xlu0 %v3994_v8  ;;  %v20010_v8 = vld [vmem:[#allocation84_spill] sm:$0xff] }
0x165d   : > { %v4033_v32 = vsel %vm3984_vm1, %v20010_v8, 0.0 }
0x1660   : > { %4001 = vadd.xlane.f32.xlu0 %v4000_v13  ;;  %v20011_v13 = vld [vmem:[#allocation85_spill] sm:$0xff] }
0x1661   : > { %3989 = vadd.xlane.f32.xlu1 %v3988_v35  ;;  %v4048_v45 = vsel %vm3984_vm1, %v20011_v13, 0.0  ;;  %v20012_v35 = vld [vmem:[#allocation83_spill] sm:$0xff]  ;;  %v20030_v13 = vld [vmem:[#allocation93_spill] sm:$0xff] }
0x1662   : > { %v4039_v61 = vsel %vm3984_vm1, %v20012_v35, 0.0 }
0x1664   : > { %4007 = vadd.xlane.f32.xlu0 %v4006_v47  ;;  %v3943_v47 = vsel %vm3919_vm2, %v20013_v40, 0.0  ;;  %v20032_v40 = vld [vmem:[#allocation98_spill] sm:$0xff]  ;;  %vm8886_vm2 = vcmask 39936  }
0x1665   : > { %3998 = vadd.xlane.f32.xlu1 %v3997_v4  ;;  %v4054_v42 = vsel %vm3984_vm1, %v3943_v47, 0.0  ;;  %v20014_v4 = vld [vmem:[#allocation86_spill] sm:$0xff] }
0x1666   : > { %v4045_v10 = vsel %vm3984_vm1, %v20014_v4, 0.0  ;;  %v20034_v4 = vld [vmem:[#allocation189_spill] sm:$0xff] }
0x1668   : > { %4013 = vadd.xlane.f32.xlu0 %v4012_v12  ;;  %v20015_v12 = vld [vmem:[#allocation172_spill] sm:$0xff] }
0x1669   : > { %4004 = vadd.xlane.f32.xlu1 %v4003_v22  ;;  %v4060_v27 = vsel %vm3984_vm1, %v20015_v12, 0.0  ;;  %v20016_v22 = vld [vmem:[#allocation177_spill] sm:$0xff]  ;;  %v20036_v12 = vld [vmem:[#allocation102_spill] sm:$0xff] }
0x166a   : > { %v4051_v23 = vsel %vm3984_vm1, %v20016_v22, 0.0  ;;  %v20038_v22 = vld [vmem:[#allocation36_spill] sm:$0xff] }
0x166c   : > { %4019 = vadd.xlane.f32.xlu0 %v4018_v2  ;;  %v20017_v2 = vld [vmem:[#allocation90_spill] sm:$0xff] }
0x166d   : > { %4010 = vadd.xlane.f32.xlu1 %v4009_v21  ;;  %v4066_v46 = vsel %vm3984_vm1, %v20017_v2, 0.0  ;;  %v4057_v21 = vsel %vm3984_vm1, %v20018_v37, 0.0  ;;  %v20040_v2 = vld [vmem:[#allocation104_spill] sm:$0xff]  ;;  %v20042_v37 = vld [vmem:[#allocation49_spill] sm:$0xff] }
0x1670   : > { %4025 = vadd.xlane.f32.xlu0 %v4024_v30  ;;  %v4072_v30 = vsel %vm3984_vm1, %v20019_v25, 0.0  ;;  %v20044_v25 = vld [vmem:[#allocation112_spill] sm:$0xff] }
0x1671   : > { %4016 = vadd.xlane.f32.xlu1 %v4015_v54  ;;  %v4063_v54 = vsel %vm3984_vm1, %v20020_v0, 0.0  ;;  %v20046_v0 = vld [vmem:[#allocation113_spill] sm:$0xff]  ;;  %vm10004_vm1 = vcmask 1043459  }
0x1674   : > { %4031 = vadd.xlane.f32.xlu0 %v4030_v1  ;;  %v20023_v1 = vld [vmem:[#allocation74_spill] sm:$0xff] }
0x1675   : > { %4022 = vadd.xlane.f32.xlu1 %v4021_v48 }
0x1678   : > { %4037 = vadd.xlane.f32.xlu0 %v4036_v41  ;;  %v20026_v41 = vld [vmem:[#allocation94_spill] sm:$0xff] }
0x1679   : > { %4028 = vadd.xlane.f32.xlu1 %v4027_v63  ;;  %v20027_v63 = vld [vmem:[#allocation91_spill] sm:$0xff] }
0x167c   : > { %4043 = vadd.xlane.f32.xlu0 %v4042_v7 }
0x167d   : > { %4034 = vadd.xlane.f32.xlu1 %v4033_v32  ;;  %v20029_v32 = vld [vmem:[#allocation46_spill] sm:$0xff] }
0x1680   : > { %4049 = vadd.xlane.f32.xlu0 %v4048_v45 }
0x1681   : > { %4040 = vadd.xlane.f32.xlu1 %v4039_v61  ;;  %v20031_v61 = vld [vmem:[#allocation101_spill] sm:$0xff] }
0x1684   : > { %4055 = vadd.xlane.f32.xlu0 %v4054_v42  ;;  %v20033_v42 = vld [vmem:[#allocation99_spill] sm:$0xff] }
0x1685   : > { %4046 = vadd.xlane.f32.xlu1 %v4045_v10 }
0x1688   : > { %4061 = vadd.xlane.f32.xlu0 %v4060_v27  ;;  %v20037_v27 = vld [vmem:[#allocation48_spill] sm:$0xff] }
0x1689   : > { %4052 = vadd.xlane.f32.xlu1 %v4051_v23  ;;  %v20039_v23 = vld [vmem:[#allocation107_spill] sm:$0xff] }
0x168c   : > { %4067 = vadd.xlane.f32.xlu0 %v4066_v46  ;;  %v20041_v46 = vld [vmem:[#allocation205_spill] sm:$0xff] }
0x168d   : > { %4058 = vadd.xlane.f32.xlu1 %v4057_v21  ;;  %v20043_v21 = vld [vmem:[#allocation115_spill] sm:$0xff] }
0x1690   : > { %4073 = vadd.xlane.f32.xlu0 %v4072_v30  ;;  %v20045_v30 = vld [vmem:[#allocation119_spill] sm:$0xff] }
0x1691   : > { %4064 = vadd.xlane.f32.xlu1 %v4063_v54  ;;  %v20047_v54 = vld [vmem:[#allocation123_spill] sm:$0xff] }
0x1694   : > { %4079 = vadd.xlane.f32.xlu0 %v20021_v49  ;;  %v20048_v49 = vld [vmem:[#allocation117_spill] sm:$0xff] }
0x1695   : > { %4070 = vadd.xlane.f32.xlu1 %v20022_v31  ;;  %v20049_v31 = vld [vmem:[#allocation127_spill] sm:$0xff] }
0x1698   : > { %4141 = vadd.xlane.f32.xlu0 %v20023_v1  ;;  %v20050_v1 = vld [vmem:[#allocation125_spill] sm:$0xff] }
0x1699   : > { %4076 = vadd.xlane.f32.xlu1 %v20024_v39  ;;  %v20051_v39 = vld [vmem:[#allocation164_spill] sm:$0xff] }
0x169b   : > { %v9587_v48 = vpop.permute.xlu0 %9586 }
0x169c   : > { %4147 = vadd.xlane.f32.xlu0 %v20025_v9  ;;  %11721 = vmatprep.mubr.msk.bf16.mxu0 %vm9291_vm9, %v9587_v48  ;;  %v20052_v48 = vld [vmem:[#allocation128_spill] sm:$0xff]  ;;  %v20053_v9 = vld [vmem:[#allocation87_spill] sm:$0xff] }
0x169d   : > { %4138 = vadd.xlane.f32.xlu1 %v20026_v41  ;;  %v18462_v41 = vadd.s32 24, %v20053_v9  ;;  %vm8877_vm0 = vcmp.lt.s32.totalorder %v20053_v9, 5  ;;  %vm9922_vm4 = vcmp.lt.s32.totalorder %v20053_v9, 1 }
0x169f   : > { %v9646_v50 = vpop.permute.xlu0 %9645  ;;  %vm6302_vm11 = vcmp.lt.s32.totalorder %v18462_v41, 29 }
0x16a0   : > { %4153 = vadd.xlane.f32.xlu0 %v20027_v63  ;;  %11727 = vmatprep.mubr.msk.bf16.mxu1 %vm9291_vm9, %v9646_v50  ;;  %v20054_v50 = vld [vmem:[#allocation120_spill] sm:$0xff] }
0x16a1   : > { %4144 = vadd.xlane.f32.xlu1 %v20028_v55  ;;  %v20055_v63 = vld [vmem:[#allocation116_spill] sm:$0xff]  ;;  %v6339_v55 = vsel %vm6335_vm5, %v17619_v38, 0.0  ;;  %v6342_v38 = vsel %vm6335_vm5, %v17606_v14, 0.0  ;;  %v6354_v14 = vsel %vm6335_vm5, %v17632_v59, 0.0 }
0x16a3   : > { %v9648_v7 = vpop.permute.xlu0 %9647  ;;  %v9589_v8 = vpop.permute.xlu1 %9588 }
0x16a4   : > { %11722 = vmatmul.mubr.msk.bf16.vlgmr.msra.gmra.mrb[56].mxu0 %vm9291_vm9, %v9589_v8  ;;  %11728 = vmatmul.mubr.msk.bf16.vlgmr.msra.gmra.mrb[40].mxu1 %vm9291_vm9, %v9648_v7  ;;  %v20056_v7 = vld [vmem:[#allocation163_spill] sm:$0xff]  ;;  %v6306_v8 = vsel %vm6302_vm11, %v17615_v36, 0.0  ;;  %v6310_v36 = vsel %vm6302_vm11, %v17641_v56, 0.0 }
0x16a5   : > { %4159 = vadd.xlane.f32.xlu0 %v20029_v32  ;;  %4150 = vadd.xlane.f32.xlu1 %v20030_v13  ;;  %v6345_v32 = vsel %vm6335_vm5, %v6306_v8, 0.0  ;;  %v6336_v13 = vsel %vm6335_vm5, %v17611_v58, 0.0  ;;  %v6348_v58 = vsel %vm6335_vm5, %v17637_v16, 0.0 }
0x16a6   : > { %11732 = vmatpush3.bf16.msra.mxu0 %v18340_v43  ;;  %11738 = vmatpush3.bf16.msra.mxu1 %v18340_v43  ;;  %v20035_v43 = vld [vmem:[#allocation195_spill] sm:$0xff] }
0x16a7   : > { %v9764_v45 = vpop.permute.xlu0 %9763  ;;  %v9705_v35 = vpop.permute.xlu1 %9704 }
0x16a8   : > { %11733 = vmatprep.mubr.msk.bf16.mxu0 %vm9291_vm9, %v9705_v35  ;;  %11739 = vmatprep.mubr.msk.bf16.mxu1 %vm9291_vm9, %v9764_v45  ;;  %v6351_v45 = vsel %vm6335_vm5, %v17645_v11, 0.0  ;;  %v6363_v11 = vsel %vm6335_vm5, %v17665_v19, 0.0 }
0x16a9   : > { %4165 = vadd.xlane.f32.xlu0 %v20031_v61  ;;  %4156 = vadd.xlane.f32.xlu1 %v20032_v40  ;;  %v6357_v61 = vsel %vm6335_vm5, %v6310_v36, 0.0 }
0x16ab   : > { %v9707_v47 = vpop.permute.xlu1 %9706 }
0x16ac   : > { %11734 = vmatmul.mubr.msk.bf16.vlgmr.msra.gmra.mrb[60].mxu0 %vm9291_vm9, %v9707_v47 }
0x16ad   : > { %4171 = vadd.xlane.f32.xlu0 %v20033_v42  ;;  %4162 = vadd.xlane.f32.xlu1 %v20034_v4  ;;  %v20057_v42 = vld [vmem:[#allocation201_spill] sm:$0xff] }
0x16ae   : > { %v6314_v56 = vsel %vm6302_vm11, %v20057_v42, 0.0 }
0x16af   : > { %v9766_v10 = vpop.permute.xlu1 %9765  ;;  %v6369_v4 = vsel %vm6335_vm5, %v6314_v56, 0.0  ;;  %v20067_v56 = vld [vmem:[#allocation196_spill] sm:$0xff] }
0x16b0   : > { %11740 = vmatmul.mubr.msk.bf16.vlgmr.msra.gmra.mrb[44].mxu1 %vm9291_vm9, %v9766_v10  ;;  %v20058_v10 = vld [vmem:[#allocation208_spill] sm:$0xff] }
0x16b1   : > { %4177 = vadd.xlane.f32.xlu0 %v20035_v43  ;;  %4168 = vadd.xlane.f32.xlu1 %v20036_v12  ;;  %v6360_v16 = vsel %vm6335_vm5, %v20058_v10, 0.0  ;;  %v20068_v10 = vld [vmem:[#allocation194_spill] sm:$0xff] }
0x16b5   : > { %4183 = vadd.xlane.f32.xlu0 %v20037_v27  ;;  %4174 = vadd.xlane.f32.xlu1 %v20038_v22  ;;  %v20059_v27 = vld [vmem:[#allocation200_spill] sm:$0xff]  ;;  %v20060_v22 = vld [vmem:[#allocation77_spill] sm:$0xff] }
0x16b6   : > { %v6375_v59 = vsel %vm6335_vm5, %v20059_v27, 0.0 }
0x16b9   : > { %4189 = vadd.xlane.f32.xlu0 %v20039_v23  ;;  %4180 = vadd.xlane.f32.xlu1 %v20040_v2  ;;  %v6366_v23 = vsel %vm6335_vm5, %v20060_v22, 0.0 }
0x16bd   : > { %4195 = vadd.xlane.f32.xlu0 %v20041_v46  ;;  %4186 = vadd.xlane.f32.xlu1 %v20042_v37  ;;  %v20061_v37 = vld [vmem:[#allocation41_spill] sm:$0xff] }
0x16c1   : > { %4201 = vadd.xlane.f32.xlu0 %v20043_v21  ;;  %4192 = vadd.xlane.f32.xlu1 %v20044_v25  ;;  %v6318_v21 = vsel %vm6302_vm11, %v20061_v37, 0.0 }
0x16c5   : > { %4207 = vadd.xlane.f32.xlu0 %v20045_v30  ;;  %4198 = vadd.xlane.f32.xlu1 %v20046_v0  ;;  %v6381_v0 = vsel %vm6335_vm5, %v6318_v21, 0.0 }
0x16c9   : > { %4213 = vadd.xlane.f32.xlu0 %v20047_v54  ;;  %4204 = vadd.xlane.f32.xlu1 %v20048_v49  ;;  %v20062_v54 = vld [vmem:[#allocation181_spill] sm:$0xff] }
0x16ca   : > { %v6372_v49 = vsel %vm6335_vm5, %v20062_v54, 0.0 }
0x16cd   : > { %4219 = vadd.xlane.f32.xlu0 %v20049_v31  ;;  %4210 = vadd.xlane.f32.xlu1 %v20050_v1 }
0x16d1   : > { %4225 = vadd.xlane.f32.xlu0 %v20051_v39  ;;  %4216 = vadd.xlane.f32.xlu1 %v20052_v48 }
0x16d5   : > { %4231 = vadd.xlane.f32.xlu0 %v20054_v50  ;;  %4222 = vadd.xlane.f32.xlu1 %v20055_v63  ;;  %v20063_v50 = vld [vmem:[#allocation182_spill] sm:$0xff] }
0x16d6   : > { %v6427_v63 = vsel %vm6335_vm5, %v20063_v50, 0.0  ;;  %v20072_v50 = vld [vmem:[#allocation169_spill] sm:$0xff] }
0x16d9   : > { %6340 = vadd.xlane.f32.xlu0 %v6339_v55  ;;  %4228 = vadd.xlane.f32.xlu1 %v20056_v7  ;;  %v20064_v55 = vld [vmem:[#allocation178_spill] sm:$0xff] }
0x16da   : > { %v6378_v7 = vsel %vm6335_vm5, %v20064_v55, 0.0 }
0x16dd   : > { %6346 = vadd.xlane.f32.xlu0 %v6345_v32  ;;  %6337 = vadd.xlane.f32.xlu1 %v6336_v13  ;;  %v20065_v13 = vld [vmem:[#allocation154_spill] sm:$0xff] }
0x16e1   : > { %6352 = vadd.xlane.f32.xlu0 %v6351_v45  ;;  %v3987_v35 = vpop.xlane.xlu0 %3986  ;;  %6343 = vadd.xlane.f32.xlu1 %v6342_v38  ;;  %v6322_v45 = vsel %vm6302_vm11, %v20065_v13, 0.0 }
0x16e5   : > { %6358 = vadd.xlane.f32.xlu0 %v6357_v61  ;;  %v3993_v40 = vpop.xlane.xlu0 %3992  ;;  %6349 = vadd.xlane.f32.xlu1 %v6348_v58  ;;  %v6433_v61 = vsel %vm6335_vm5, %v6322_v45, 0.0  ;;  %v20066_v58 = vld [vmem:[#allocation191_spill] sm:$0xff] }
0x16e9   : > { %6364 = vadd.xlane.f32.xlu0 %v6363_v11  ;;  %v3996_v47 = vpop.xlane.xlu0 %3995  ;;  %6355 = vadd.xlane.f32.xlu1 %v6354_v14 }
0x16ed   : > { %6370 = vadd.xlane.f32.xlu0 %v6369_v4  ;;  %v4002_v43 = vpop.xlane.xlu0 %4001  ;;  %6361 = vadd.xlane.f32.xlu1 %v6360_v16  ;;  %v6439_v4 = vsel %vm6335_vm5, %v20067_v56, 0.0  ;;  %v6430_v16 = vsel %vm6335_vm5, %v20068_v10, 0.0  ;;  %v20075_v10 = vld [vmem:[#allocation180_spill] sm:$0xff] }
0x16ee   : > { %v3990_v12 = vpop.xlane.xlu1 %3989 }
0x16ef   : > { %v4081_v19 = vadd.f32 %v3990_v12, %v3987_v35 }
0x16f1   : > { %v4082_v2 = vadd.f32 %v4081_v19, %v3993_v40  ;;  %6376 = vadd.xlane.f32.xlu0 %v6375_v59  ;;  %v4008_v46 = vpop.xlane.xlu0 %4007  ;;  %6367 = vadd.xlane.f32.xlu1 %v6366_v23  ;;  %v6424_v40 = vsel %vm6335_vm5, %v20066_v58, 0.0  ;;  %v20069_v19 = vld [vmem:[#allocation204_spill] sm:$0xff]  ;;  %v20074_v58 = vld [vmem:[#allocation202_spill] sm:$0xff] }
0x16f2   : > { %v3999_v25 = vpop.xlane.xlu1 %3998  ;;  %v6326_v27 = vsel %vm6302_vm11, %v20069_v19, 0.0  ;;  %v18549_v19 = vadd.s32 8, %v20053_v9 }
0x16f3   : > { %v4083_v30 = vadd.f32 %v4082_v2, %v3996_v47  ;;  %v6445_v2 = vsel %vm6335_vm5, %v6326_v27, 0.0 }
0x16f4   : > { %vm7806_vm12 = vcmp.lt.s32.totalorder %v18549_v19, 13  ;;  %v8879_v19 = vsel %vm8877_vm0, %v18296_v15, 0.0  ;;  %v8882_v15 = vsel %vm8877_vm0, %v18280_v62, 0.0  ;;  %v8880_v62 = vsel %vm8877_vm0, %v18287_v18, 0.0 }
0x16f5   : > { %v4084_v31 = vadd.f32 %v4083_v30, %v3999_v25  ;;  %6382 = vadd.xlane.f32.xlu0 %v6381_v0  ;;  %v4014_v1 = vpop.xlane.xlu0 %4013  ;;  %6373 = vadd.xlane.f32.xlu1 %v6372_v49  ;;  %v7808_v41 = vsel %vm7806_vm12, %v18089_v60, 0.0 }
0x16f6   : > { %v4005_v39 = vpop.xlane.xlu1 %4004 }
0x16f7   : > { %v4085_v48 = vadd.f32 %v4084_v31, %v4002_v43 }
0x16f9   : > { %v4086_v8 = vadd.f32 %v4085_v48, %v4005_v39  ;;  %6428 = vadd.xlane.f32.xlu0 %v6427_v63  ;;  %v4020_v32 = vpop.xlane.xlu0 %4019  ;;  %6379 = vadd.xlane.f32.xlu1 %v6378_v7  ;;  %v20071_v39 = vld [vmem:[#allocation35_spill] sm:$0xff]  ;;  %v6442_v63 = vsel %vm6335_vm5, %v20072_v50, 0.0 }
0x16fa   : > { %v4011_v38 = vpop.xlane.xlu1 %4010  ;;  %v6451_v48 = vsel %vm6335_vm5, %v20071_v39, 0.0 }
0x16fb   : > { %v4087_v35 = vadd.f32 %v4086_v8, %v4008_v46  ;;  %v4094_v36 = vadd.f32 %v4014_v1, %v4011_v38  ;;  %v20070_v46 = vld [vmem:[#allocation165_spill] sm:$0xff] }
0x16fc   : > { %v6436_v37 = vsel %vm6335_vm5, %v20070_v46, 0.0 }
0x16fd   : > { %6434 = vadd.xlane.f32.xlu0 %v6433_v61  ;;  %v4026_v11 = vpop.xlane.xlu0 %4025  ;;  %6425 = vadd.xlane.f32.xlu1 %v6424_v40  ;;  %v4088_v47 = vrot.slane %v4087_v35, 4  ;;  %v6448_v40 = vsel %vm6335_vm5, %v20074_v58, 0.0 }
0x16fe   : > { %v4017_v14 = vpop.xlane.xlu1 %4016 }
0x16ff   : > { %v4095_v42 = vadd.f32 %v4094_v36, %v4017_v14  ;;  %v4089_v22 = vadd.f32 %v4088_v47, %v4087_v35 }
0x1701   : > { %6440 = vadd.xlane.f32.xlu0 %v6439_v4  ;;  %v4032_v43 = vpop.xlane.xlu0 %4031  ;;  %6431 = vadd.xlane.f32.xlu1 %v6430_v16  ;;  %v4096_v12 = vadd.f32 %v4095_v42, %v4020_v32  ;;  %v4090_v49 = vrot.slane %v4089_v22, 2  ;;  %v20073_v32 = vld [vmem:[#allocation152_spill] sm:$0xff]  ;;  %v6463_v16 = vsel %vm6335_vm5, %v20075_v10, 0.0 }
0x1702   : > { %v4023_v59 = vpop.xlane.xlu1 %4022  ;;  %v6330_v13 = vsel %vm6302_vm11, %v20073_v32, 0.0 }
0x1703   : > { %v4097_v23 = vadd.f32 %v4096_v12, %v4023_v59  ;;  %v4091_v38 = vadd.f32 %v4090_v49, %v4089_v22  ;;  %v6457_v61 = vsel %vm6335_vm5, %v6330_v13, 0.0  ;;  %v20078_v49 = vld [vmem:[#allocation184_spill] sm:$0xff]  ;;  %v7827_v13 = vsel %vm7823_vm14, %v7808_v41, 0.0 }
0x1704   : > { %v7818_v41 = vsel %vm7806_vm12, %v18048_v53, 0.0 }
0x1705   : > { %6446 = vadd.xlane.f32.xlu0 %v6445_v2  ;;  %v4038_v21 = vpop.xlane.xlu0 %4037  ;;  %6437 = vadd.xlane.f32.xlu1 %v6436_v37  ;;  %v4098_v25 = vadd.f32 %v4097_v23, %v4026_v11  ;;  %v18526_v30 = vpop.f32.mrb[36].mxu1  ;;  %v4092_v42 = vrot.slane %v4091_v38, 1  ;;  %v20077_v23 = vld [vmem:[#allocation81_spill] sm:$0xff] }
0x1706   : > { %v4029_v0 = vpop.xlane.xlu1 %4028  ;;  %v18528_v54 = vpop.f32.mrb[37].mxu1  ;;  %v6334_v2 = vsel %vm6302_vm11, %v20077_v23, 0.0  ;;  %vm10095_vm11 = vcmask 72704  }
0x1707   : > { %v4099_v31 = vadd.f32 %v4098_v25, %v4029_v0  ;;  %v18530_v1 = vpop.f32.mrb[38].mxu1  ;;  %v4093_v37 = vadd.f32 %v4092_v42, %v4091_v38  ;;  %v6469_v0 = vsel %vm6335_vm5, %v6334_v2, 0.0 }
0x1708   : > { %v18536_v55 = vpop.f32.mrb[39].mxu1 }
0x1709   : > { %v4100_v7 = vadd.f32 %v4099_v31, %v4032_v43  ;;  %6452 = vadd.xlane.f32.xlu0 %v6451_v48  ;;  %v4044_v8 = vpop.xlane.xlu0 %4043  ;;  %6443 = vadd.xlane.f32.xlu1 %v6442_v63  ;;  %v20076_v43 = vld [vmem:[#allocation190_spill] sm:$0xff]  ;;  %v6460_v31 = vsel %vm6335_vm5, %v20078_v49, 0.0 }
0x170a   : > { %v4035_v45 = vpop.xlane.xlu1 %4034  ;;  %v6454_v12 = vsel %vm6335_vm5, %v20076_v43, 0.0  ;;  %v7830_v43 = vsel %vm7823_vm14, %v18077_v20, 0.0  ;;  %vm10084_vm5 = vcmask 15360  }
0x170b   : > { %v4101_v35 = vrot.slane %v4100_v7, 4  ;;  %v4107_v36 = vadd.f32 %v4038_v21, %v4035_v45 }
0x170d   : > { %v4102_v11 = vadd.f32 %v4101_v35, %v4100_v7  ;;  %6458 = vadd.xlane.f32.xlu0 %v6457_v61  ;;  %v4050_v14 = vpop.xlane.xlu0 %4049  ;;  %6449 = vadd.xlane.f32.xlu1 %v6448_v40  ;;  %v4133_v7 = vmul.f32 0.00026874497, %v4093_v37  ;;  %v7810_v61 = vsel %vm7806_vm12, %v18085_v24, 0.0 }
0x170e   : > { %v4041_v47 = vpop.xlane.xlu1 %4040 }
0x170f   : > { %v4103_v56 = vrot.slane %v4102_v11, 2  ;;  %v4108_v4 = vadd.f32 %v4107_v36, %v4041_v47  ;;  %v20079_v36 = vld [vmem:[#allocation187_spill] sm:$0xff] }
0x1711   : > { %v4104_v27 = vadd.f32 %v4103_v56, %v4102_v11  ;;  %6464 = vadd.xlane.f32.xlu0 %v6463_v16  ;;  %v4056_v59 = vpop.xlane.xlu0 %4055  ;;  %6455 = vadd.xlane.f32.xlu1 %v6454_v12  ;;  %v4109_v22 = vadd.f32 %v4108_v4, %v4044_v8  ;;  %v7833_v11 = vsel %vm7823_vm14, %v7810_v61, 0.0  ;;  %v7812_v56 = vsel %vm7806_vm12, %v18103_v34, 0.0  ;;  %v20080_v61 = vld [vmem:[#allocation215_spill] sm:$0xff] }
0x1712   : > { %v4047_v46 = vpop.xlane.xlu1 %4046  ;;  %v7839_v24 = vsel %vm7823_vm14, %v7812_v56, 0.0 }
0x1713   : > { %v4105_v21 = vrot.slane %v4104_v27, 1  ;;  %v4110_v25 = vadd.f32 %v4109_v22, %v4047_v46  ;;  %v7836_v46 = vsel %vm7823_vm14, %v18095_v51, 0.0 }
0x1715   : > { %v4106_v39 = vadd.f32 %v4105_v21, %v4104_v27  ;;  %6470 = vadd.xlane.f32.xlu0 %v6469_v0  ;;  %v4062_v48 = vpop.xlane.xlu0 %4061  ;;  %6461 = vadd.xlane.f32.xlu1 %v6460_v31  ;;  %v4111_v50 = vadd.f32 %v4110_v25, %v4050_v14  ;;  %v7824_v14 = vsel %vm7823_vm14, %v18081_v29, 0.0  ;;  %v7816_v25 = vsel %vm7806_vm12, %v18050_v3, 0.0 }
0x1716   : > { %v4053_v63 = vpop.xlane.xlu1 %4052  ;;  %v7883_v31 = vsel %vm7823_vm14, %v7816_v25, 0.0  ;;  %v8927_v25 = vsel %vm8886_vm2, %v8882_v15, 0.0 }
0x1717   : > { %v4134_v8 = vmul.f32 0.00026874497, %v4106_v39  ;;  %v4112_v32 = vadd.f32 %v4111_v50, %v4053_v63  ;;  %v7842_v39 = vsel %vm7823_vm14, %v18092_v33, 0.0 }
0x1719   : > { %v10001_v45 = vsel %vm10000_vm13, %v4134_v8, %v4133_v7  ;;  %v4113_v38 = vadd.f32 %v4112_v32, %v4056_v59  ;;  %7828 = vadd.xlane.f32.xlu0 %v7827_v13  ;;  %v4068_v35 = vpop.xlane.xlu0 %4067  ;;  %6467 = vadd.xlane.f32.xlu1 %v20079_v36  ;;  %v7814_v59 = vsel %vm7806_vm12, %v18099_v57, 0.0  ;;  %v7889_v8 = vsel %vm7823_vm14, %v7818_v41, 0.0 }
0x171a   : > { %v4059_v60 = vpop.xlane.xlu1 %4058  ;;  %v7845_v2 = vsel %vm7823_vm14, %v7814_v59, 0.0  ;;  %v7880_v32 = vsel %vm7823_vm14, %v18045_v28, 0.0  ;;  %v8890_v59 = vsel %vm8886_vm2, %v8879_v19, 0.0  ;;  %v8885_v41 = vsel %vm8877_vm0, %v18282_v5, 0.0 }
0x171b   : > { %v4114_v58 = vrot.slane %v4113_v38, 4  ;;  %v4120_v40 = vadd.f32 %v4062_v48, %v4059_v60  ;;  %v7886_v60 = vsel %vm7823_vm14, %v20080_v61, 0.0 }
0x171d   : > { %v4115_v47 = vadd.f32 %v4114_v58, %v4113_v38  ;;  %7834 = vadd.xlane.f32.xlu0 %v7833_v11  ;;  %7825 = vadd.xlane.f32.xlu1 %v7824_v14  ;;  %v4074_v42 = vpop.xlane.xlu0 %4073 }
0x171e   : > { %v4065_v4 = vpop.xlane.xlu1 %4064 }
0x171f   : > { %v4116_v10 = vrot.slane %v4115_v47, 2  ;;  %v4121_v16 = vadd.f32 %v4120_v40, %v4065_v4  ;;  %v20081_v40 = vld [vmem:[#allocation38_spill] sm:$0xff]  ;;  %v20082_v4 = vld [vmem:[#allocation207_spill] sm:$0xff] }
0x1720   : > { %v7822_v11 = vsel %vm7806_vm12, %v20081_v40, 0.0 }
0x1721   : > { %v4117_v12 = vadd.f32 %v4116_v10, %v4115_v47  ;;  %7840 = vadd.xlane.f32.xlu0 %v7839_v24  ;;  %7831 = vadd.xlane.f32.xlu1 %v7830_v43  ;;  %v4080_v29 = vpop.xlane.xlu0 %4079  ;;  %v4122_v27 = vadd.f32 %v4121_v16, %v4068_v35  ;;  %v7901_v56 = vsel %vm7823_vm14, %v7822_v11, 0.0  ;;  %v7892_v10 = vsel %vm7823_vm14, %v20082_v4, 0.0 }
0x1722   : > { %v4071_v22 = vpop.xlane.xlu1 %4070 }
0x1723   : > { %v4118_v23 = vrot.slane %v4117_v12, 1  ;;  %v4123_v34 = vadd.f32 %v4122_v27, %v4071_v22  ;;  %v20083_v22 = vld [vmem:[#allocation212_spill] sm:$0xff] }
0x1725   : > { %v4119_v37 = vadd.f32 %v4118_v23, %v4117_v12  ;;  %7846 = vadd.xlane.f32.xlu0 %v7845_v2  ;;  %7837 = vadd.xlane.f32.xlu1 %v7836_v46  ;;  %v4142_v20 = vpop.xlane.xlu0 %4141  ;;  %v4124_v21 = vadd.f32 %v4123_v34, %v4074_v42  ;;  %v7898_v23 = vsel %vm7823_vm14, %v20083_v22, 0.0  ;;  %v8878_v46 = vsel %vm8877_vm0, %v18290_v52, 0.0 }
0x1726   : > { %v4077_v0 = vpop.xlane.xlu1 %4076 }
0x1727   : > { %v4135_v57 = vmul.f32 0.00026874497, %v4119_v37  ;;  %v4125_v49 = vadd.f32 %v4124_v21, %v4077_v0  ;;  %v8887_v0 = vsel %vm8886_vm2, %v8878_v46, 0.0 }
0x1729   : > { %v10003_v51 = vsel %vm10002_vm15, %v4135_v57, %v10001_v45  ;;  %v4126_v48 = vadd.f32 %v4125_v49, %v4080_v29  ;;  %7884 = vadd.xlane.f32.xlu0 %v7883_v31  ;;  %7843 = vadd.xlane.f32.xlu1 %v7842_v39  ;;  %v4148_v50 = vpop.xlane.xlu0 %4147  ;;  %v7820_v45 = vsel %vm7806_vm12, %v18070_v26, 0.0  ;;  %v8881_v57 = vsel %vm8877_vm0, %v18293_v6, 0.0 }
0x172a   : > { %v4139_v3 = vpop.xlane.xlu1 %4138  ;;  %v7895_v53 = vsel %vm7823_vm14, %v7820_v45, 0.0  ;;  %v8883_v6 = vsel %vm8877_vm0, %v18284_v17, 0.0  ;;  %vm10097_vm12 = vcmask 80896  }
0x172b   : > { %v4127_v63 = vrot.slane %v4126_v48, 4  ;;  %v4233_v7 = vadd.f32 %v4142_v20, %v4139_v3 }
0x172d   : > { %v4128_v13 = vadd.f32 %v4127_v63, %v4126_v48  ;;  %7890 = vadd.xlane.f32.xlu0 %v7889_v8  ;;  %7881 = vadd.xlane.f32.xlu1 %v7880_v32  ;;  %v4154_v33 = vpop.xlane.xlu0 %4153  ;;  %v8893_v48 = vsel %vm8886_vm2, %v8880_v62, 0.0  ;;  %v8936_v8 = vsel %vm8886_vm2, %v8885_v41, 0.0  ;;  %v8930_v32 = vsel %vm8886_vm2, %v8883_v6, 0.0 }
0x172e   : > { %v4145_v38 = vpop.xlane.xlu1 %4144 }
0x172f   : > { %v4129_v35 = vrot.slane %v4128_v13, 2  ;;  %v4234_v36 = vadd.f32 %v4233_v7, %v4145_v38 }
0x1731   : > { %v4130_v58 = vadd.f32 %v4129_v35, %v4128_v13  ;;  %7896 = vadd.xlane.f32.xlu0 %v7895_v53  ;;  %7887 = vadd.xlane.f32.xlu1 %v7886_v60  ;;  %v4235_v28 = vadd.f32 %v4234_v36, %v4148_v50 }
0x1732   : > { %v4160_v14 = vpop.xlane.xlu0 %4159  ;;  %v4151_v47 = vpop.xlane.xlu1 %4150 }
0x1733   : > { %v4131_v42 = vrot.slane %v4130_v58, 1  ;;  %v4236_v26 = vadd.f32 %v4235_v28, %v4151_v47 }
0x1735   : > { %v4132_v16 = vadd.f32 %v4131_v42, %v4130_v58  ;;  %7902 = vadd.xlane.f32.xlu0 %v7901_v56  ;;  %7893 = vadd.xlane.f32.xlu1 %v7892_v10  ;;  %v4237_v24 = vadd.f32 %v4236_v26, %v4154_v33  ;;  %v8884_v33 = vsel %vm8877_vm0, %v18278_v44, 0.0 }
0x1736   : > { %v4166_v43 = vpop.xlane.xlu0 %4165  ;;  %v4157_v12 = vpop.xlane.xlu1 %4156  ;;  %v8933_v17 = vsel %vm8886_vm2, %v8884_v33, 0.0 }
0x1737   : > { %v4136_v29 = vmul.f32 0.00026874497, %v4132_v16  ;;  %v4238_v27 = vadd.f32 %v4237_v24, %v4157_v12 }
0x1739   : > { %v18615_v34 = vsel %vm10004_vm1, %v4136_v29, %v10003_v51  ;;  %v4239_v2 = vadd.f32 %v4238_v27, %v4160_v14  ;;  %8891 = vadd.xlane.f32.xlu0 %v8890_v59  ;;  %7899 = vadd.xlane.f32.xlu1 %v7898_v23  ;;  %v8896_v51 = vsel %vm8886_vm2, %v8881_v57, 0.0 }
0x173a   : > { %v4172_v37 = vpop.xlane.xlu0 %4171  ;;  %v4163_v20 = vpop.xlane.xlu1 %4162 }
0x173b   : > { %v4246_v21 = vadd.f32 %v4166_v43, %v4163_v20  ;;  %v4240_v52 = vrot.slane %v4239_v2, 4 }
0x173d   : > { %8928 = vadd.xlane.f32.xlu0 %v8927_v25  ;;  %8888 = vadd.xlane.f32.xlu1 %v8887_v0  ;;  %v4241_v63 = vadd.f32 %v4240_v52, %v4239_v2 }
0x173e   : > { %v4178_v49 = vpop.xlane.xlu0 %4177  ;;  %v4169_v31 = vpop.xlane.xlu1 %4168 }
0x173f   : > { %v4247_v39 = vadd.f32 %v4246_v21, %v4169_v31  ;;  %v4242_v38 = vrot.slane %v4241_v63, 2 }
0x1741   : > { %8897 = vadd.xlane.f32.xlu0 %v8896_v51  ;;  %8894 = vadd.xlane.f32.xlu1 %v8893_v48  ;;  %v4248_v50 = vadd.f32 %v4247_v39, %v4172_v37  ;;  %v4243_v60 = vadd.f32 %v4242_v38, %v4241_v63 }
0x1742   : > { %v4184_v18 = vpop.xlane.xlu0 %4183  ;;  %v4175_v3 = vpop.xlane.xlu1 %4174 }
0x1743   : > { %v4249_v7 = vadd.f32 %v4248_v50, %v4175_v3  ;;  %v4244_v47 = vrot.slane %v4243_v60, 1 }
0x1745   : > { %8937 = vadd.xlane.f32.xlu0 %v8936_v8  ;;  %8931 = vadd.xlane.f32.xlu1 %v8930_v32  ;;  %v4250_v13 = vadd.f32 %v4249_v7, %v4178_v49  ;;  %v4245_v16 = vadd.f32 %v4244_v47, %v4243_v60 }
0x1746   : > { %v4190_v5 = vpop.xlane.xlu0 %4189  ;;  %v4181_v45 = vpop.xlane.xlu1 %4180 }
0x1747   : > { %v4251_v35 = vadd.f32 %v4250_v13, %v4181_v45  ;;  %v4285_v59 = vmul.f32 0.00026874497, %v4245_v16 }
0x1749   : > { %v4252_v36 = vadd.f32 %v4251_v35, %v4184_v18  ;;  %8934 = vadd.xlane.f32.xlu1 %v8933_v17 }
0x174a   : > { %v4196_v53 = vpop.xlane.xlu0 %4195  ;;  %v4187_v61 = vpop.xlane.xlu1 %4186 }
0x174b   : > { %v4253_v58 = vrot.slane %v4252_v36, 4  ;;  %v4259_v28 = vadd.f32 %v4190_v5, %v4187_v61 }
0x174d   : > { %v4254_v40 = vadd.f32 %v4253_v58, %v4252_v36 }
0x174e   : > { %v4202_v11 = vpop.xlane.xlu0 %4201  ;;  %v4193_v14 = vpop.xlane.xlu1 %4192 }
0x174f   : > { %v4255_v42 = vrot.slane %v4254_v40, 2  ;;  %v4260_v26 = vadd.f32 %v4259_v28, %v4193_v14 }
0x1751   : > { %v4256_v44 = vadd.f32 %v4255_v42, %v4254_v40  ;;  %v4261_v56 = vadd.f32 %v4260_v26, %v4196_v53  ;;  %v18649_v26 = vmul.f32 %v18526_v30, %v18526_v30 }
0x1752   : > { %v4208_v4 = vpop.xlane.xlu0 %4207  ;;  %v4199_v10 = vpop.xlane.xlu1 %4198 }
0x1753   : > { %v4257_v24 = vrot.slane %v4256_v44, 1  ;;  %v4262_v19 = vadd.f32 %v4261_v56, %v4199_v10 }
0x1755   : > { %v4258_v43 = vadd.f32 %v4257_v24, %v4256_v44  ;;  %v4263_v12 = vadd.f32 %v4262_v19, %v4202_v11 }
0x1756   : > { %v4214_v29 = vpop.xlane.xlu0 %4213  ;;  %v4205_v27 = vpop.xlane.xlu1 %4204 }
0x1757   : > { %v4286_v22 = vmul.f32 0.00026874497, %v4258_v43  ;;  %v4264_v23 = vadd.f32 %v4263_v12, %v4205_v27  ;;  %v18655_v43 = vmul.f32 %v18528_v54, %v18528_v54 }
0x1759   : > { %v10011_v2 = vsel %vm10000_vm13, %v4286_v22, %v4285_v59  ;;  %v4265_v15 = vadd.f32 %v4264_v23, %v4208_v4 }
0x175a   : > { %v4220_v46 = vpop.xlane.xlu0 %4219  ;;  %v4211_v37 = vpop.xlane.xlu1 %4210 }
0x175b   : > { %v4266_v20 = vrot.slane %v4265_v15, 4  ;;  %v4272_v21 = vadd.f32 %v4214_v29, %v4211_v37 }
0x175d   : > { %v4267_v25 = vadd.f32 %v4266_v20, %v4265_v15 }
0x175e   : > { %v4226_v0 = vpop.xlane.xlu0 %4225  ;;  %v4217_v57 = vpop.xlane.xlu1 %4216 }
0x175f   : > { %v4268_v62 = vrot.slane %v4267_v25, 2  ;;  %v4273_v49 = vadd.f32 %v4272_v21, %v4217_v57 }
0x1761   : > { %v4269_v31 = vadd.f32 %v4268_v62, %v4267_v25  ;;  %v4274_v52 = vadd.f32 %v4273_v49, %v4220_v46 }
0x1762   : > { %v4232_v39 = vpop.xlane.xlu0 %4231  ;;  %v4223_v51 = vpop.xlane.xlu1 %4222 }
0x1763   : > { %v4270_v48 = vrot.slane %v4269_v31, 1  ;;  %v4275_v50 = vadd.f32 %v4274_v52, %v4223_v51 }
0x1765   : > { %v4271_v41 = vadd.f32 %v4270_v48, %v4269_v31  ;;  %v4276_v6 = vadd.f32 %v4275_v50, %v4226_v0 }
0x1766   : > { %v6341_v18 = vpop.xlane.xlu0 %6340  ;;  %v4229_v3 = vpop.xlane.xlu1 %4228 }
0x1767   : > { %v4287_v63 = vmul.f32 0.00026874497, %v4271_v41  ;;  %v4277_v7 = vadd.f32 %v4276_v6, %v4229_v3  ;;  %v9827_v6 = vmul.f32 %v18536_v55, %v18536_v55 }
0x1769   : > { %v10012_v8 = vsel %vm10002_vm15, %v4287_v63, %v10011_v2  ;;  %v4278_v32 = vadd.f32 %v4277_v7, %v4232_v39 }
0x176a   : > { %v6347_v13 = vpop.xlane.xlu0 %6346  ;;  %v6338_v33 = vpop.xlane.xlu1 %6337 }
0x176b   : > { %v4279_v5 = vrot.slane %v4278_v32, 4  ;;  %v6384_v45 = vadd.f32 %v6341_v18, %v6338_v33 }
0x176d   : > { %v4280_v38 = vadd.f32 %v4279_v5, %v4278_v32 }
0x176e   : > { %v6353_v35 = vpop.xlane.xlu0 %6352  ;;  %v6344_v17 = vpop.xlane.xlu1 %6343 }
0x176f   : > { %v4281_v36 = vrot.slane %v4280_v38, 2  ;;  %v6385_v53 = vadd.f32 %v6384_v45, %v6344_v17 }
0x1771   : > { %v4282_v61 = vadd.f32 %v4281_v36, %v4280_v38  ;;  %v6386_v60 = vadd.f32 %v6385_v53, %v6347_v13 }
0x1772   : > { %v6359_v58 = vpop.xlane.xlu0 %6358  ;;  %v6350_v28 = vpop.xlane.xlu1 %6349 }
0x1773   : > { %v4283_v40 = vrot.slane %v4282_v61, 1  ;;  %v6387_v11 = vrot.slane %v6386_v60, 4  ;;  %v6393_v14 = vadd.f32 %v6353_v35, %v6350_v28 }
0x1775   : > { %v4284_v47 = vadd.f32 %v4283_v40, %v4282_v61  ;;  %v6388_v42 = vadd.f32 %v6387_v11, %v6386_v60 }
0x1776   : > { %v6365_v44 = vpop.xlane.xlu0 %6364  ;;  %v6356_v56 = vpop.xlane.xlu1 %6355 }
0x1777   : > { %v4288_v4 = vmul.f32 0.00026874497, %v4284_v47  ;;  %v6389_v10 = vrot.slane %v6388_v42, 2  ;;  %v6394_v16 = vadd.f32 %v6393_v14, %v6356_v56  ;;  %v11723_v24 = vpop.f32.mrb[56].mxu0  ;;  %v18651_v19 = vpop.f32.mrb[40].mxu1 }
0x1778   : > { %v18658_v12 = vmul.f32 %v11723_v24, %v18526_v30  ;;  %v9836_v29 = vmul.f32 %v11723_v24, %v11723_v24  ;;  %v9832_v27 = vsub.f32 %v18651_v19, %v18649_v26  ;;  %v9630_v59 = vpop.f32.mrb[57].mxu0  ;;  %v9689_v22 = vpop.f32.mrb[41].mxu1 }
0x1779   : > { %v10013_v23 = vsel %vm10004_vm1, %v4288_v4, %v10012_v8  ;;  %v6390_v2 = vadd.f32 %v6389_v10, %v6388_v42  ;;  %v6395_v15 = vadd.f32 %v6394_v16, %v6359_v58  ;;  %v18664_v46 = vmul.f32 %v9630_v59, %v18528_v54  ;;  %v11724_v37 = vpop.f32.mrb[58].mxu0  ;;  %v11730_v20 = vpop.f32.mrb[42].mxu1 }
0x177a   : > { %v18668_v21 = vsel %vm9935_vm3, %v18615_v34, %v10013_v23  ;;  %v9892_v30 = vadd.f32 %v9836_v29, %v18649_v26  ;;  %v9834_v25 = vmul.f32 %v9630_v59, %v9630_v59  ;;  %v6371_v0 = vpop.xlane.xlu0 %6370  ;;  %v9633_v57 = vpop.f32.mrb[59].mxu0  ;;  %v9830_v31 = vsub.f32 %v9689_v22, %v18655_v43 }
0x177b   : > { %v6391_v62 = vrot.slane %v6390_v2, 1  ;;  %v6396_v49 = vrot.slane %v6395_v15, 4  ;;  %v6362_v52 = vpop.xlane.xlu1 %6361  ;;  %v9692_v39 = vpop.f32.mrb[43].mxu1  ;;  %v9829_v54 = vmul.f32 %v18530_v1, %v18530_v1  ;;  %v18678_v34 = vmul.f32 %v11724_v37, %v18530_v1 }
0x177c   : > { %v18674_v51 = vadd.f32 0.0001, %v9892_v30  ;;  %v9890_v48 = vadd.f32 %v9834_v25, %v18655_v43  ;;  %v9837_v41 = vmul.f32 %v11724_v37, %v11724_v37  ;;  %v18686_v13 = vmul.f32 %v9633_v57, %v18536_v55 }
0x177d   : > { %v6397_v50 = vadd.f32 %v6396_v49, %v6395_v15  ;;  %v9833_v3 = vsub.f32 %v11730_v20, %v9829_v54  ;;  %v6392_v7 = vadd.f32 %v6391_v62, %v6390_v2  ;;  %v9835_v5 = vmul.f32 %v9633_v57, %v9633_v57 }
0x177e   : > { %12298 = vrcp.f32 %v18674_v51  ;;  %v18683_v18 = vadd.f32 0.0001, %v9890_v48  ;;  %v6377_v63 = vpop.xlane.xlu0 %6376  ;;  %v9893_v32 = vadd.f32 %v9837_v41, %v9829_v54  ;;  %v6402_v45 = vadd.f32 %v6365_v44, %v6362_v52 }
0x177f   : > { %v6398_v8 = vrot.slane %v6397_v50, 2  ;;  %v6368_v33 = vpop.xlane.xlu1 %6367  ;;  %v11735_v1 = vpop.f32.mrb[60].mxu0  ;;  %v9884_v17 = vmul.f32 2.0, %v18658_v12  ;;  %v9831_v53 = vsub.f32 %v9692_v39, %v9827_v6  ;;  %v9891_v60 = vadd.f32 %v9835_v5, %v9827_v6 }
0x1780   : > { %12300 = vrcp.f32 %v18683_v18  ;;  %v9748_v38 = vpop.f32.mrb[61].mxu0  ;;  %v18690_v36 = vadd.f32 0.0001, %v9893_v32  ;;  %v6403_v58 = vadd.f32 %v6402_v45, %v6368_v33  ;;  %v9840_v28 = vsub.f32 %v11735_v1, %v9836_v29 }
0x1781   : > { %v6399_v35 = vadd.f32 %v6398_v8, %v6397_v50  ;;  %v11736_v61 = vpop.f32.mrb[62].mxu0  ;;  %v9838_v40 = vsub.f32 %v9748_v38, %v9834_v25  ;;  %v6420_v14 = vmul.f32 0.0011890606, %v6392_v7  ;;  %v18695_v56 = vadd.f32 0.0001, %v9891_v60 }
0x1782   : > { %v6383_v55 = vpop.xlane.xlu0 %6382  ;;  %v9751_v11 = vpop.f32.mrb[63].mxu0  ;;  %12302 = vrcp.f32 %v18690_v36  ;;  %v9841_v42 = vsub.f32 %v11736_v61, %v9837_v41  ;;  %v6404_v4 = vadd.f32 %v6403_v58, %v6371_v0  ;;  %v9856_v10 = vadd.f32 %v9840_v28, %v9832_v27 }
0x1783   : > { %v6400_v47 = vrot.slane %v6399_v35, 1  ;;  %v6374_v26 = vpop.xlane.xlu1 %6373  ;;  %v18693_v44 = vpop.f32.mrb[44].mxu1  ;;  %v9854_v16 = vadd.f32 %v9838_v40, %v9830_v31  ;;  %v9839_v29 = vsub.f32 %v9751_v11, %v9835_v5  ;;  %12304 = vrcp.f32 %v18695_v56 }
0x1784   : > { %v18697_v24 = vpop.f32.mrb[45].mxu1  ;;  %v9857_v43 = vadd.f32 %v9841_v42, %v9833_v3  ;;  %v6411_v59 = vadd.f32 %v6377_v63, %v6374_v26  ;;  %v6405_v23 = vrot.slane %v6404_v4, 4  ;;  %v9860_v2 = vadd.f32 0.0009, %v9856_v10 }
0x1785   : > { %v6401_v19 = vadd.f32 %v6400_v47, %v6399_v35  ;;  %v18699_v22 = vpop.f32.mrb[46].mxu1  ;;  %v18702_v15 = vadd.f32 0.0009, %v9854_v16  ;;  %v9855_v25 = vadd.f32 %v9839_v29, %v9831_v53  ;;  %v9844_v0 = vsub.f32 %v18693_v44, %v18658_v12 }
0x1786   : > { %v6429_v37 = vpop.xlane.xlu0 %6428  ;;  %v18704_v20 = vpop.f32.mrb[47].mxu1  ;;  %v18706_v27 = vadd.f32 0.0009, %v9857_v43  ;;  %v6406_v49 = vadd.f32 %v6405_v23, %v6404_v4  ;;  %12306 = vrcp.f32 %v9860_v2  ;;  %v9842_v31 = vsub.f32 %v18697_v24, %v18664_v46 }
0x1787   : > { %v6421_v30 = vmul.f32 0.0011890606, %v6401_v19  ;;  %v6380_v57 = vpop.xlane.xlu1 %6379  ;;  %v9845_v52 = vsub.f32 %v18699_v22, %v18678_v34  ;;  %12308 = vrcp.f32 %v18702_v15  ;;  %v9859_v48 = vadd.f32 0.0009, %v9855_v25 }
0x1788   : > { %v12299_v62 = vpop.eup %12298  ;;  %v9882_v12 = vmul.f32 2.0, %v18664_v46  ;;  %v6407_v41 = vrot.slane %v6406_v49, 2  ;;  %12310 = vrcp.f32 %v18706_v27  ;;  %v9885_v7 = vmul.f32 2.0, %v18678_v34 }
0x1789   : > { %v10019_v39 = vsel %vm10000_vm13, %v6421_v30, %v6420_v14  ;;  %v9904_v54 = vmul.f32 %v12299_v62, %v18674_v51  ;;  %12312 = vrcp.f32 %v9859_v48  ;;  %v9888_v32 = vadd.f32 0.0001, %v9884_v17 }
0x178a   : > { %v12301_v50 = vpop.eup %12300  ;;  %v6435_v6 = vpop.xlane.xlu0 %6434  ;;  %v6408_v33 = vadd.f32 %v6407_v41, %v6406_v49  ;;  %v6412_v51 = vadd.f32 %v6411_v59, %v6380_v57  ;;  %v9883_v38 = vmul.f32 2.0, %v18686_v13  ;;  %v9843_v46 = vsub.f32 %v18704_v20, %v18686_v13 }
0x178b   : > { %v9908_v3 = vsub.f32 2.0, %v9904_v54  ;;  %v9902_v63 = vmul.f32 %v12301_v50, %v18683_v18  ;;  %v6426_v8 = vpop.xlane.xlu1 %6425  ;;  %v9886_v58 = vadd.f32 0.0001, %v9882_v12  ;;  %v9889_v17 = vadd.f32 0.0001, %v9885_v7 }
0x178c   : > { %v12303_v1 = vpop.eup %12302  ;;  %v6409_v53 = vrot.slane %v6408_v33, 1  ;;  %v6413_v61 = vadd.f32 %v6412_v51, %v6383_v55  ;;  %v6472_v18 = vadd.f32 %v6429_v37, %v6426_v8  ;;  %v9887_v4 = vadd.f32 0.0001, %v9883_v38 }
0x178d   : > { %v9912_v5 = vmul.f32 %v12299_v62, %v9908_v3  ;;  %v9906_v45 = vsub.f32 2.0, %v9902_v63  ;;  %v9905_v35 = vmul.f32 %v12303_v1, %v18690_v36  ;;  %v12305_v11 = vpop.eup %12304  ;;  %v9848_v10 = vmul.f32 2.0, %v9844_v0 }
0x178e   : > { %v6441_v60 = vpop.xlane.xlu0 %6440  ;;  %v6410_v47 = vadd.f32 %v6409_v53, %v6408_v33  ;;  %v6414_v42 = vrot.slane %v6413_v61, 4  ;;  %v9903_v13 = vmul.f32 %v12305_v11, %v18695_v56  ;;  %v9846_v22 = vmul.f32 2.0, %v9842_v31 }
0x178f   : > { %v9916_v34 = vmul.f32 %v9912_v5, %v9888_v32  ;;  %v9910_v28 = vmul.f32 %v12301_v50, %v9906_v45  ;;  %v6432_v40 = vpop.xlane.xlu1 %6431  ;;  %v9909_v14 = vsub.f32 2.0, %v9905_v35  ;;  %v9849_v23 = vmul.f32 2.0, %v9845_v52 }
0x1790   : > { %v6473_v26 = vadd.f32 %v6472_v18, %v6432_v40  ;;  %v12307_v36 = vpop.eup %12306  ;;  %v6422_v55 = vmul.f32 0.0011890606, %v6410_v47  ;;  %v6415_v24 = vadd.f32 %v6414_v42, %v6413_v61  ;;  %v9907_v29 = vsub.f32 2.0, %v9903_v13 }
0x1791   : > { %v9914_v44 = vmul.f32 %v9910_v28, %v9886_v58  ;;  %v9913_v16 = vmul.f32 %v12303_v1, %v9909_v14  ;;  %v12309_v43 = vpop.eup %12308  ;;  %v9868_v59 = vmul.f32 %v12307_v36, %v9860_v2  ;;  %v9847_v12 = vmul.f32 2.0, %v9843_v46 }
0x1792   : > { %v6474_v19 = vadd.f32 %v6473_v26, %v6435_v6  ;;  %v12311_v20 = vpop.eup %12310  ;;  %v10020_v25 = vsel %vm10002_vm15, %v6422_v55, %v10019_v39  ;;  %v9866_v57 = vmul.f32 %v12309_v43, %v18702_v15  ;;  %v6416_v62 = vrot.slane %v6415_v24, 2  ;;  %v18728_v56 = vpop.xlane.xlu0 %6446 }
0x1793   : > { %v6438_v37 = vpop.xlane.xlu1 %6437  ;;  %v9917_v30 = vmul.f32 %v9913_v16, %v9889_v17  ;;  %v12313_v0 = vpop.eup %12312  ;;  %v9911_v49 = vmul.f32 %v12305_v11, %v9907_v29  ;;  %v9872_v54 = vsub.f32 2.0, %v9868_v59  ;;  %v9869_v50 = vmul.f32 %v12311_v20, %v18706_v27 }
0x1794   : > { %v9870_v41 = vsub.f32 2.0, %v9866_v57  ;;  %v9867_v2 = vmul.f32 %v12313_v0, %v9859_v48  ;;  %v6417_v31 = vadd.f32 %v6416_v62, %v6415_v24  ;;  %v9852_v3 = vadd.f32 0.0009, %v9848_v10 }
0x1795   : > { %v9915_v52 = vmul.f32 %v9911_v49, %v9887_v4  ;;  %v9873_v6 = vsub.f32 2.0, %v9869_v50  ;;  %v9876_v39 = vmul.f32 %v12307_v36, %v9872_v54  ;;  %v9850_v7 = vadd.f32 0.0009, %v9846_v22 }
0x1796   : > { %v9871_v15 = vsub.f32 2.0, %v9867_v2  ;;  %v9874_v8 = vmul.f32 %v12309_v43, %v9870_v41  ;;  %v6418_v32 = vrot.slane %v6417_v31, 1  ;;  %v9853_v51 = vadd.f32 0.0009, %v9849_v23  ;;  %v6453_v46 = vpop.xlane.xlu0 %6452 }
0x1797   : > { %v6444_v63 = vpop.xlane.xlu1 %6443  ;;  %v9880_v33 = vmul.f32 %v9876_v39, %v9852_v3  ;;  %v9877_v1 = vmul.f32 %v12311_v20, %v9873_v6  ;;  %v9851_v5 = vadd.f32 0.0009, %v9847_v12  ;;  %v6475_v38 = vrot.slane %v6474_v19, 4 }
0x1798   : > { %v9878_v27 = vmul.f32 %v9874_v8, %v9850_v7  ;;  %v6419_v45 = vadd.f32 %v6418_v32, %v6417_v31  ;;  %v6481_v48 = vadd.f32 %v6441_v60, %v6438_v37  ;;  %v9875_v18 = vmul.f32 %v12313_v0, %v9871_v15 }
0x1799   : > { %v9920_v35 = vmul.f32 %v9916_v34, %v9880_v33  ;;  %v9929_v53 = vsel %vm9922_vm4, %v9880_v33, 0.0  ;;  %v9881_v61 = vmul.f32 %v9877_v1, %v9853_v51  ;;  %v6476_v36 = vadd.f32 %v6475_v38, %v6474_v19 }
0x179a   : > { %v9982_v28 = vsel %vm9935_vm3, %v9929_v53, 0.0  ;;  %v9918_v17 = vmul.f32 %v9914_v44, %v9878_v27  ;;  %v9927_v40 = vsel %vm9922_vm4, %v9878_v27, 0.0  ;;  %v6423_v11 = vmul.f32 0.0011890606, %v6419_v45  ;;  %v6459_v22 = vpop.xlane.xlu0 %6458 }
0x179b   : > { %v6450_v58 = vpop.xlane.xlu1 %6449  ;;  %v9925_v14 = vsel %vm9922_vm4, %v9920_v35, 0.0  ;;  %v9983_v47 = vrot.slane %v9982_v28, 4  ;;  %v9968_v60 = vsel %vm9935_vm3, %v9927_v40, 0.0  ;;  %v9921_v34 = vmul.f32 %v9917_v30, %v9881_v61 }
0x179c   : > { %v9950_v42 = vsel %vm9935_vm3, %v9925_v14, 0.0  ;;  %v9923_v26 = vsel %vm9922_vm4, %v9918_v17, 0.0  ;;  %v9969_v4 = vrot.slane %v9968_v60, 4  ;;  %v9930_v44 = vsel %vm9922_vm4, %v9881_v61, 0.0 }
0x179d   : > { %v9936_v13 = vsel %vm9935_vm3, %v9923_v26, 0.0  ;;  %v9926_v10 = vsel %vm9922_vm4, %v9921_v34, 0.0  ;;  %v6482_v16 = vadd.f32 %v6481_v48, %v6444_v63  ;;  %v9989_v59 = vsel %vm9935_vm3, %v9930_v44, 0.0 }
0x179e   : > { %v9937_v24 = vrot.slane %v9936_v13, 4  ;;  %v9970_v43 = vadd.f32 %v9969_v4, %v9968_v60  ;;  %v9957_v29 = vsel %vm9935_vm3, %v9926_v10, 0.0  ;;  %v9951_v23 = vrot.slane %v9950_v42, 4  ;;  %v6465_v63 = vpop.xlane.xlu0 %6464 }
0x179f   : > { %v6456_v55 = vpop.xlane.xlu1 %6455  ;;  %v9990_v37 = vrot.slane %v9989_v59, 4  ;;  %v9984_v20 = vadd.f32 %v9983_v47, %v9982_v28  ;;  %v18751_v30 = vsel %vm10004_vm1, %v6423_v11, %v10020_v25  ;;  %v9879_v57 = vmul.f32 %v9875_v18, %v9851_v5 }
0x17a0   : > { %v9958_v62 = vrot.slane %v9957_v29, 4  ;;  %v6477_v49 = vrot.slane %v6476_v36, 2  ;;  %v6483_v19 = vadd.f32 %v6482_v16, %v18728_v56  ;;  %v9938_v50 = vadd.f32 %v9937_v24, %v9936_v13 }
0x17a1   : > { %v9991_v0 = vadd.f32 %v9990_v37, %v9989_v59  ;;  %v9971_v12 = vrot.slane %v9970_v43, 2  ;;  %v9919_v41 = vmul.f32 %v9915_v52, %v9879_v57  ;;  %v9928_v2 = vsel %vm9922_vm4, %v9879_v57, 0.0 }
0x17a2   : > { %v9952_v31 = vadd.f32 %v9951_v23, %v9950_v42  ;;  %v9985_v6 = vrot.slane %v9984_v20, 2  ;;  %v9975_v39 = vsel %vm9935_vm3, %v9928_v2, 0.0  ;;  %v9959_v15 = vadd.f32 %v9958_v62, %v9957_v29  ;;  %v6471_v60 = vpop.xlane.xlu0 %6470 }
0x17a3   : > { %v6462_v54 = vpop.xlane.xlu1 %6461  ;;  %v9992_v3 = vrot.slane %v9991_v0, 2  ;;  %v9924_v25 = vsel %vm9922_vm4, %v9919_v41, 0.0  ;;  %v9976_v56 = vrot.slane %v9975_v39, 4  ;;  %v6478_v8 = vadd.f32 %v6477_v49, %v6476_v36 }
0x17a4   : > { %v9943_v7 = vsel %vm9935_vm3, %v9924_v25, 0.0  ;;  %v9939_v32 = vrot.slane %v9938_v50, 2  ;;  %v9972_v33 = vadd.f32 %v9971_v12, %v9970_v43  ;;  %v6484_v51 = vrot.slane %v6483_v19, 4 }
0x17a5   : > { %v9944_v52 = vrot.slane %v9943_v7, 4  ;;  %v9953_v5 = vrot.slane %v9952_v31, 2  ;;  %v9977_v27 = vadd.f32 %v9976_v56, %v9975_v39  ;;  %v6490_v45 = vadd.f32 %v6453_v46, %v6450_v58 }
0x17a6   : > { %v6499_v38 = vadd.f32 %v6465_v63, %v6462_v54  ;;  %v9986_v48 = vadd.f32 %v9985_v6, %v9984_v20  ;;  %v9993_v9 = vadd.f32 %v9992_v3, %v9991_v0  ;;  %v6485_v53 = vadd.f32 %v6484_v51, %v6483_v19 }
0x17a7   : > { %v6468_v1 = vpop.xlane.xlu1 %6467  ;;  %v9945_v35 = vadd.f32 %v9944_v52, %v9943_v7  ;;  %v9960_v61 = vrot.slane %v9959_v15, 2  ;;  %v9978_v18 = vrot.slane %v9977_v27, 2  ;;  %v6491_v28 = vadd.f32 %v6490_v45, %v6456_v55 }
0x17a8   : > { %v6500_v17 = vadd.f32 %v6499_v38, %v6468_v1  ;;  %v9940_v40 = vadd.f32 %v9939_v32, %v9938_v50  ;;  %v9973_v11 = vrot.slane %v9972_v33, 1  ;;  %v6486_v47 = vrot.slane %v6485_v53, 2 }
0x17a9   : > { %v9946_v14 = vrot.slane %v9945_v35, 2  ;;  %v9954_v34 = vadd.f32 %v9953_v5, %v9952_v31  ;;  %v9979_v42 = vadd.f32 %v9978_v18, %v9977_v27  ;;  %v6492_v26 = vadd.f32 %v6491_v28, %v6459_v22  ;;  %v7829_v18 = vpop.xlane.xlu0 %7828 }
0x17aa   : > { %v6501_v4 = vadd.f32 %v6500_v17, %v6471_v60  ;;  %v9987_v44 = vrot.slane %v9986_v48, 1  ;;  %v6487_v58 = vadd.f32 %v6486_v47, %v6485_v53  ;;  %v9994_v13 = vrot.slane %v9993_v9, 1 }
0x17ab   : > { %v9947_v46 = vadd.f32 %v9946_v14, %v9945_v35  ;;  %v9980_v10 = vrot.slane %v9979_v42, 1  ;;  %v6493_v36 = vrot.slane %v6492_v26, 4  ;;  %v9961_v24 = vadd.f32 %v9960_v61, %v9959_v15  ;;  %v7826_v61 = vpop.xlane.xlu1 %7825 }
0x17ac   : > { %v6502_v16 = vrot.slane %v6501_v4, 4  ;;  %v9941_v43 = vrot.slane %v9940_v40, 1  ;;  %v9974_v55 = vadd.f32 %v9973_v11, %v9972_v33  ;;  %v6488_v59 = vrot.slane %v6487_v58, 1 }
0x17ad   : > { %v9948_v29 = vrot.slane %v9947_v46, 1  ;;  %v9981_v23 = vadd.f32 %v9980_v10, %v9979_v42  ;;  %v6494_v37 = vadd.f32 %v6493_v36, %v6492_v26  ;;  %v9955_v57 = vrot.slane %v9954_v34, 1  ;;  %v7835_v17 = vpop.xlane.xlu0 %7834 }
0x17ae   : > { %v6503_v20 = vadd.f32 %v6502_v16, %v6501_v4  ;;  %v6479_v62 = vrot.slane %v6478_v8, 1  ;;  %v9988_v0 = vadd.f32 %v9987_v44, %v9986_v48  ;;  %v9995_v22 = vadd.f32 %v9994_v13, %v9993_v9 }
0x17af   : > { %v9949_v49 = vadd.f32 %v9948_v29, %v9947_v46  ;;  %v6495_v19 = vrot.slane %v6494_v37, 2  ;;  %v10077_v50 = vsel %vm10000_vm13, %v9981_v23, %v9974_v55  ;;  %v9962_v12 = vrot.slane %v9961_v24, 1  ;;  %v7832_v28 = vpop.xlane.xlu1 %7831 }
0x17b0   : > { %v6504_v54 = vrot.slane %v6503_v20, 2  ;;  %v6489_v41 = vadd.f32 %v6488_v59, %v6487_v58  ;;  %v10078_v2 = vsel %vm10002_vm15, %v9988_v0, %v10077_v50  ;;  %v9942_v31 = vadd.f32 %v9941_v43, %v9940_v40 }
0x17b1   : > { %v6496_v6 = vadd.f32 %v6495_v19, %v6494_v37  ;;  %v10079_v25 = vsel %vm10004_vm1, %v9995_v22, %v10078_v2  ;;  %v9956_v39 = vadd.f32 %v9955_v57, %v9954_v34  ;;  %v6480_v63 = vadd.f32 %v6479_v62, %v6478_v8  ;;  %v7841_v11 = vpop.xlane.xlu0 %7840 }
0x17b2   : > { %v6505_v3 = vadd.f32 %v6504_v54, %v6503_v20  ;;  %10080 = vrot.lane.b32.xlu0 %v10079_v25, %s12809_s20  ;;  %v9963_v15 = vadd.f32 %v9962_v12, %v9961_v24  ;;  %v10067_v7 = vsel %vm10000_vm13, %v9949_v49, %v9942_v31  ;;  %v6509_v52 = vmul.f32 0.0011890606, %v6489_v41 }
0x17b3   : > { %v6497_v56 = vrot.slane %v6496_v6, 1  ;;  %v10068_v33 = vsel %vm10002_vm15, %v9956_v39, %v10067_v7  ;;  %v6508_v27 = vmul.f32 0.0011890606, %v6480_v63  ;;  %v10085_v35 = vsel %vm10084_vm5, %v18668_v21, %v18751_v30  ;;  %v7838_v40 = vpop.xlane.xlu1 %7837 }
0x17b4   : > { %v6506_v32 = vrot.slane %v6505_v3, 1  ;;  %v10069_v51 = vsel %vm10004_vm1, %v9963_v15, %v10068_v33  ;;  %v7848_v10 = vadd.f32 %v7829_v18, %v7826_v61  ;;  %v7855_v16 = vadd.f32 %v7835_v17, %v7832_v28 }
0x17b5   : > { %v6498_v1 = vadd.f32 %v6497_v56, %v6496_v6  ;;  %10070 = vrot.lane.b32.xlu1 %v10069_v51, %s12803_s27  ;;  %v10027_v8 = vsel %vm10000_vm13, %v6509_v52, %v6508_v27  ;;  %v7847_v47 = vpop.xlane.xlu0 %7846  ;;  %v7862_v55 = vadd.f32 %v7841_v11, %v7838_v40  ;;  %s10341_s27 = sshll.u32 %s20090_s30, 2 }
0x17b6   : > { %v6507_v5 = vadd.f32 %v6506_v32, %v6505_v3  ;;  %v7849_v43 = vrot.slane %v7848_v10, 4  ;;  %v7856_v59 = vrot.slane %v7855_v16, 4  ;;  %s859_s25 = scalar_lea.vmem %s20084_s24, %s10341_s27 }
0x17b7   : > { %v6510_v45 = vmul.f32 0.0011890606, %v6498_v1  ;;  %v7844_v14 = vpop.xlane.xlu1 %7843  ;;  %v7863_v49 = vrot.slane %v7862_v55, 4 }
0x17b8   : > { %v6511_v38 = vmul.f32 0.0011890606, %v6507_v5  ;;  %v7869_v29 = vadd.f32 %v7847_v47, %v7844_v14  ;;  %v7850_v22 = vadd.f32 %v7849_v43, %v7848_v10  ;;  %v7857_v50 = vadd.f32 %v7856_v59, %v7855_v16 }
0x17b9   : > { %v10028_v48 = vsel %vm10002_vm15, %v6510_v45, %v10027_v8  ;;  %v7885_v34 = vpop.xlane.xlu0 %7884  ;;  %v7864_v7 = vadd.f32 %v7863_v49, %v7862_v55 }
0x17ba   : > { %v10029_v9 = vsel %vm10004_vm1, %v6511_v38, %v10028_v48  ;;  %v7870_v19 = vrot.slane %v7869_v29, 4  ;;  %v7851_v15 = vrot.slane %v7850_v22, 2  ;;  %v7858_v52 = vrot.slane %v7857_v50, 2 }
0x17bb   : > { %v18772_v53 = vsel %vm10086_vm6, %v10085_v35, %v10029_v9  ;;  %v7882_v60 = vpop.xlane.xlu1 %7881  ;;  %v7865_v28 = vrot.slane %v7864_v7, 2 }
0x17bc   : > { %v7904_v57 = vadd.f32 %v7885_v34, %v7882_v60  ;;  %v7871_v56 = vadd.f32 %v7870_v19, %v7869_v29  ;;  %v7852_v18 = vadd.f32 %v7851_v15, %v7850_v22  ;;  %v7859_v11 = vadd.f32 %v7858_v52, %v7857_v50 }
0x17bd   : > { %v7891_v26 = vpop.xlane.xlu0 %7890 }
0x17be   : > { %v7905_v25 = vrot.slane %v7904_v57, 4  ;;  %v7872_v17 = vrot.slane %v7871_v56, 2  ;;  %v7860_v16 = vrot.slane %v7859_v11, 1 }
0x17bf   : > { %v7888_v42 = vpop.xlane.xlu1 %7887 }
0x17c0   : > { %v7911_v23 = vadd.f32 %v7891_v26, %v7888_v42  ;;  %v7906_v48 = vadd.f32 %v7905_v25, %v7904_v57  ;;  %v7873_v10 = vadd.f32 %v7872_v17, %v7871_v56  ;;  %v7861_v50 = vadd.f32 %v7860_v16, %v7859_v11 }
0x17c1   : > { %v7897_v44 = vpop.xlane.xlu0 %7896 }
0x17c2   : > { %v7912_v12 = vrot.slane %v7911_v23, 4  ;;  %v7874_v19 = vrot.slane %v7873_v10, 1 }
0x17c3   : > { %v7894_v4 = vpop.xlane.xlu1 %7893 }
0x17c4   : > { %v7918_v37 = vadd.f32 %v7897_v44, %v7894_v4  ;;  %v7913_v51 = vadd.f32 %v7912_v12, %v7911_v23  ;;  %v7907_v44 = vrot.slane %v7906_v48, 2 }
0x17c5   : > { %v7903_v58 = vpop.xlane.xlu0 %7902 }
0x17c6   : > { %v7919_v31 = vrot.slane %v7918_v37, 4  ;;  %v7914_v14 = vrot.slane %v7913_v51, 2  ;;  %v7908_v57 = vadd.f32 %v7907_v44, %v7906_v48 }
0x17c7   : > { %v7900_v46 = vpop.xlane.xlu1 %7899 }
0x17c8   : > { %v7925_v62 = vadd.f32 %v7903_v58, %v7900_v46  ;;  %v7920_v27 = vadd.f32 %v7919_v31, %v7918_v37 }
0x17c9   : > { %v8892_v21 = vpop.xlane.xlu0 %8891 }
0x17ca   : > { %v8905_v6 = vrot.slane %v8892_v21, 4  ;;  %v7926_v39 = vrot.slane %v7925_v62, 4  ;;  %v7921_v34 = vrot.slane %v7920_v27, 2 }
0x17cb   : > { %v8889_v13 = vpop.xlane.xlu1 %8888 }
0x17cc   : > { %v8899_v54 = vrot.slane %v8889_v13, 4  ;;  %v8906_v45 = vadd.f32 %v8905_v6, %v8892_v21  ;;  %v7927_v9 = vadd.f32 %v7926_v39, %v7925_v62  ;;  %v7853_v21 = vrot.slane %v7852_v18, 1 }
0x17cd   : > { %v8929_v36 = vpop.xlane.xlu0 %8928  ;;  %v7922_v29 = vadd.f32 %v7921_v34, %v7920_v27  ;;  %v7909_v39 = vrot.slane %v7908_v57, 1 }
0x17ce   : > { %v8939_v63 = vrot.slane %v8929_v36, 4  ;;  %v8900_v32 = vadd.f32 %v8899_v54, %v8889_v13  ;;  %v8907_v42 = vrot.slane %v8906_v45, 2  ;;  %v7928_v46 = vrot.slane %v7927_v9, 2 }
0x17cf   : > { %v8895_v30 = vpop.xlane.xlu1 %8894  ;;  %v7854_v22 = vadd.f32 %v7853_v21, %v7852_v18  ;;  %v7923_v31 = vrot.slane %v7922_v29, 1 }
0x17d0   : > { %v8911_v41 = vrot.slane %v8895_v30, 4  ;;  %v8940_v35 = vadd.f32 %v8939_v63, %v8929_v36  ;;  %v8901_v40 = vrot.slane %v8900_v32, 2  ;;  %v8908_v59 = vadd.f32 %v8907_v42, %v8906_v45 }
0x17d1   : > { %v8898_v20 = vpop.xlane.xlu0 %8897  ;;  %v7929_v62 = vadd.f32 %v7928_v46, %v7927_v9  ;;  %v7876_v56 = vmul.f32 0.00591716, %v7854_v22  ;;  %v7924_v45 = vadd.f32 %v7923_v31, %v7922_v29  ;;  %v7910_v9 = vadd.f32 %v7909_v39, %v7908_v57 }
0x17d2   : > { %v8912_v1 = vadd.f32 %v8911_v41, %v8895_v30  ;;  %v8917_v38 = vrot.slane %v8898_v20, 4  ;;  %v8941_v58 = vrot.slane %v8940_v35, 2  ;;  %v7866_v30 = vadd.f32 %v7865_v28, %v7864_v7 }
0x17d3   : > { %v8932_v24 = vpop.xlane.xlu1 %8931  ;;  %v8902_v36 = vadd.f32 %v8901_v40, %v8900_v32  ;;  %v8909_v6 = vrot.slane %v8908_v59, 1  ;;  %v7930_v63 = vrot.slane %v7929_v62, 1 }
0x17d4   : > { %v8945_v2 = vrot.slane %v8932_v24, 4  ;;  %v8913_v47 = vrot.slane %v8912_v1, 2  ;;  %v8918_v26 = vadd.f32 %v8917_v38, %v8898_v20  ;;  %v8942_v20 = vadd.f32 %v8941_v58, %v8940_v35 }
0x17d5   : > { %v8938_v33 = vpop.xlane.xlu0 %8937  ;;  %v7867_v49 = vrot.slane %v7866_v30, 1  ;;  %v8903_v54 = vrot.slane %v8902_v36, 1  ;;  %v8910_v38 = vadd.f32 %v8909_v6, %v8908_v59  ;;  %v7931_v35 = vadd.f32 %v7930_v63, %v7929_v62 }
0x17d6   : > { %v8946_v5 = vadd.f32 %v8945_v2, %v8932_v24  ;;  %v8957_v61 = vrot.slane %v8938_v33, 4  ;;  %v7915_v24 = vadd.f32 %v7914_v14, %v7913_v51  ;;  %v8914_v43 = vadd.f32 %v8913_v47, %v8912_v1 }
0x17d7   : > { %v8935_v0 = vpop.xlane.xlu1 %8934  ;;  %v8919_v23 = vrot.slane %v8918_v26, 2  ;;  %v8943_v15 = vrot.slane %v8942_v20, 1  ;;  %v7868_v32 = vadd.f32 %v7867_v49, %v7866_v30  ;;  %v8904_v52 = vadd.f32 %v8903_v54, %v8902_v36 }
0x17d8   : > { %v8951_v3 = vrot.slane %v8935_v0, 4  ;;  %v8947_v60 = vrot.slane %v8946_v5, 2  ;;  %v8958_v13 = vadd.f32 %v8957_v61, %v8938_v33  ;;  %v7916_v12 = vrot.slane %v7915_v24, 1 }
0x17d9   : > { %v8915_v41 = vrot.slane %v8914_v43, 1  ;;  %v7875_v33 = vadd.f32 %v7874_v19, %v7873_v10  ;;  %v7877_v51 = vmul.f32 0.00591716, %v7861_v50  ;;  %v8944_v61 = vadd.f32 %v8943_v15, %v8942_v20 }
0x17da   : > { %v8952_v8 = vadd.f32 %v8951_v3, %v8935_v0  ;;  %v8948_v55 = vadd.f32 %v8947_v60, %v8946_v5  ;;  %v8959_v0 = vrot.slane %v8958_v13, 2  ;;  %v8920_v3 = vadd.f32 %v8919_v23, %v8918_v26 }
0x17db   : > { %v7917_v1 = vadd.f32 %v7916_v12, %v7915_v24  ;;  %v8916_v5 = vadd.f32 %v8915_v41, %v8914_v43  ;;  %v7878_v28 = vmul.f32 0.00591716, %v7868_v32  ;;  %v7879_v17 = vmul.f32 0.00591716, %v7875_v33 }
0x17dc   : > { %v8953_v4 = vrot.slane %v8952_v8, 2  ;;  %v8949_v2 = vrot.slane %v8948_v55, 1  ;;  %v8960_v7 = vadd.f32 %v8959_v0, %v8958_v13  ;;  %v8923_v40 = vmul.f32 0.04, %v8904_v52 }
0x17dd   : > { %v7933_v11 = vmul.f32 0.00591716, %v7917_v1  ;;  %v8925_v14 = vmul.f32 0.04, %v8916_v5  ;;  %v7934_v60 = vmul.f32 0.00591716, %v7924_v45  ;;  %v10035_v13 = vsel %vm10000_vm13, %v7877_v51, %v7876_v56 }
0x17de   : > { %v8954_v37 = vadd.f32 %v8953_v4, %v8952_v8  ;;  %v8950_v27 = vadd.f32 %v8949_v2, %v8948_v55  ;;  %v8921_v8 = vrot.slane %v8920_v3, 1  ;;  %v8961_v18 = vrot.slane %v8960_v7, 1 }
0x17df   : > { %v8924_v34 = vmul.f32 0.04, %v8910_v38  ;;  %v7932_v4 = vmul.f32 0.00591716, %v7910_v9  ;;  %v7935_v44 = vmul.f32 0.00591716, %v7931_v35  ;;  %v10036_v30 = vsel %vm10002_vm15, %v7878_v28, %v10035_v13 }
0x17e0   : > { %v8955_v25 = vrot.slane %v8954_v37, 1  ;;  %v8964_v47 = vmul.f32 0.04, %v8950_v27  ;;  %v8922_v42 = vadd.f32 %v8921_v8, %v8920_v3  ;;  %v8963_v46 = vmul.f32 0.04, %v8944_v61 }
0x17e1   : > { %v8962_v58 = vadd.f32 %v8961_v18, %v8960_v7  ;;  %v10051_v21 = vsel %vm10000_vm13, %v8924_v34, %v8923_v40  ;;  %v10043_v10 = vsel %vm10000_vm13, %v7933_v11, %v7932_v4  ;;  %v10037_v24 = vsel %vm10004_vm1, %v7879_v17, %v10036_v30 }
0x17e2   : > { %v8956_v48 = vadd.f32 %v8955_v25, %v8954_v37  ;;  %v10052_v36 = vsel %vm10002_vm15, %v8925_v14, %v10051_v21  ;;  %v10059_v16 = vsel %vm10000_vm13, %v8964_v47, %v8963_v46  ;;  %v10044_v43 = vsel %vm10002_vm15, %v7934_v60, %v10043_v10 }
0x17e3   : > { %v8926_v55 = vmul.f32 0.04, %v8922_v42  ;;  %v8966_v59 = vmul.f32 0.04, %v8962_v58  ;;  %v10045_v23 = vsel %vm10004_vm1, %v7935_v44, %v10044_v43  ;;  %v10088_v62 = vsel %vm9291_vm9, %v18772_v53, %v10037_v24 }
0x17e4   : > { %v8965_v26 = vmul.f32 0.04, %v8956_v48  ;;  %v10089_v20 = vsel %vm8886_vm2, %v10088_v62, %v10045_v23  ;;  %vm10099_vm13 = vcmask 125952  }
0x17e5   : > { %v10053_v37 = vsel %vm10004_vm1, %v8926_v55, %v10052_v36 }
0x17e6   : > { %v10060_v29 = vsel %vm10002_vm15, %v8965_v26, %v10059_v16  ;;  %v10091_v0 = vsel %vm10090_vm8, %v10089_v20, %v10053_v37 }
0x17e7   : > { %v10061_v57 = vsel %vm10004_vm1, %v8966_v59, %v10060_v29 }
0x17e8   : > { %v10093_v49 = vsel %vm10092_vm10, %v10091_v0, %v10061_v57 }
0x1824   : > { %v10081_v19 = vpop.permute.xlu0 %10080 }
0x1827   : > { %v10071_v22 = vpop.permute.xlu1 %10070 }
0x1828   : > { %v10094_v54 = vsel %vm8246_vm7, %v10093_v49, %v10071_v22 }
0x1829   : > { %v10096_v50 = vsel %vm10095_vm11, %v10094_v54, %v10081_v19 }
0x182a   : > { %v10098_v12 = vsel %vm10097_vm12, %v10096_v50, 0.0 }
0x182b   : > { %10100 = vst.msk [vmem:[%s859_s25] sm:$0xf] %vm10099_vm13, %v10098_v12 }
0x182c PF: > { %p39_p13 = scmp.ge.s32.totalorder %s13224_s29, 4   ;;  %s20085_s1 = smov %s12768_s22 }
0x182d   : > { %s20086_s22 = smov %s12772_s23  ;;  %s20087_s23 = smov %s13236_s2 }
0x182e   : > { %s20088_s24 = smov %s13224_s29  ;;  %41 = sbr.rel (!%p39_p13) target bundleno = 29 (0x1d), region = 201 }
0x1835   :  { %10120 = vsyncpa [#allocation3], 1 }
0x1836   :  { %10122 = vsyncpa [#allocation3 + $0x1], 1 }
0x1837   :  { %10123 = vsyncpa [#allocation5], 1 }
0x1838   :  { %10125 = vsyncpa [#allocation5 + $0x1], 1 }
0x1839   :  { %10126 = vsyncpa [#allocation8], 1 }
0x183a   :  { %10127 = vsyncpa [#allocation11], 1 }
0x183b   :  { %10128 = vsyncpa [#allocation14], 1 }
0x183c   :  { %10129 = vsyncpa [#allocation17], 1 }
0x183d   :  { %10130 = vsyncpa [#allocation20], 1 }
0x183e   :  { %10131 = vsyncpa [#allocation23], 1 }

</bundles_post_ra>
